<compile_context>
chip_gen: v5e
topology: v5e:2x2
jax: 0.10.0
libtpu: 0.0.40
codegen_flags: <defaults>
</compile_context>

<pallas_src>
import functools

import jax
import jax.numpy as jnp
import numpy as np
from jax.experimental import pallas as pl
from jax.experimental.pallas import tpu as pltpu

_LN_EPS = 1e-5  # PyTorch nn.LayerNorm default


def _vmem_limit_bytes():
    """Generation-aware VMEM budget: ~3/4 of physical capacity, capped at 100 MiB."""
    try:
        cap = int(pltpu.get_tpu_info().vmem_capacity_bytes)
    except Exception:
        cap = 64 * 1024 * 1024  # conservative fallback (v7x-sized VMEM)
    return max(32 * 1024 * 1024, min(cap * 3 // 4, 100 * 1024 * 1024))


def _layer_norm_f32(x, gamma, beta):
    mu = jnp.mean(x, axis=-1, keepdims=True)
    var = jnp.mean(jnp.square(x - mu), axis=-1, keepdims=True)
    return (x - mu) * jax.lax.rsqrt(var + _LN_EPS) * gamma + beta


# ---------------------------------------------------------------------------
# Fused whole-depth Transformer kernel.
# x tile: (TG, n, dim) -- TG independent (batch*patch) groups of n tokens.
# Per-layer weights are stacked on a leading `depth` axis, full-array blocks
# with constant index_maps, so they stay VMEM-resident across grid steps.
# (At very large dim/mlp_dim they could be single-buffered or split per layer;
# at these sizes double-buffered weights are ~1 MiB and irrelevant.)
# ---------------------------------------------------------------------------
def _transformer_kernel(x_ref, ln1g_ref, ln1b_ref, wqkv_ref, wo_ref, bo_ref,
                        ln2g_ref, ln2b_ref, w1_ref, b1_ref, w2_ref, b2_ref,
                        o_ref, *, depth, heads, dim_head, project_out):
    x = x_ref[...].astype(jnp.float32)                      # (TG, n, dim)
    tg, n, dim = x.shape
    inner = heads * dim_head
    rows = tg * n

    for l in range(depth):                                  # static unroll over layers
        # ----- attention block: x += to_out( softmax(q k^T) v ) -------------
        xn = _layer_norm_f32(x.reshape(rows, dim),
                             ln1g_ref[l].astype(jnp.float32),
                             ln1b_ref[l].astype(jnp.float32))
        # One big QKV matmul; the softmax scale is pre-folded into the Q columns.
        qkv = jnp.dot(xn, wqkv_ref[l].astype(jnp.float32),
                      preferred_element_type=jnp.float32)   # (rows, 3*inner)
        wo_l = wo_ref[l].astype(jnp.float32)                # (heads, dim_head, dim)

        proj = None
        for h in range(heads):                              # static unroll over heads
            q = qkv[:, 0 * inner + h * dim_head: 0 * inner + (h + 1) * dim_head]
            k = qkv[:, 1 * inner + h * dim_head: 1 * inner + (h + 1) * dim_head]
            v = qkv[:, 2 * inner + h * dim_head: 2 * inner + (h + 1) * dim_head]
            q = q.reshape(tg, n, dim_head)
            k = k.reshape(tg, n, dim_head)
            v = v.reshape(tg, n, dim_head)
            s = jnp.einsum('gnd,gmd->gnm', q, k,
                           preferred_element_type=jnp.float32)
            s = s - jnp.max(s, axis=-1, keepdims=True)
            e = jnp.exp(s)
            # approx reciprocal -> EUP slot instead of a VALU divide
            p = e * pl.reciprocal(jnp.sum(e, axis=-1, keepdims=True), approx=True)
            o_h = jnp.einsum('gnm,gmd->gnd', p, v,
                             preferred_element_type=jnp.float32)
            if project_out:
                # "concat heads + output projection" folded into per-head
                # (rows, dh) @ (dh, dim) matmuls accumulated in f32 -- no
                # lane-axis concatenate / relayout.
                c = jnp.dot(o_h.reshape(rows, dim_head), wo_l[h],
                            preferred_element_type=jnp.float32)
                proj = c if proj is None else proj + c
            else:
                # to_out == nn.Identity()  (heads == 1 and dim_head == dim)
                proj = o_h.reshape(rows, dim)
        if project_out:
            proj = proj + bo_ref[l].astype(jnp.float32)
        x = x + proj.reshape(tg, n, dim)

        # ----- feed-forward block: x += W2( SiLU( W1(LN(x)) + b1 ) ) + b2 ---
        x2 = x.reshape(rows, dim)
        xn2 = _layer_norm_f32(x2,
                              ln2g_ref[l].astype(jnp.float32),
                              ln2b_ref[l].astype(jnp.float32))
        hmid = jnp.dot(xn2, w1_ref[l].astype(jnp.float32),
                       preferred_element_type=jnp.float32) + b1_ref[l].astype(jnp.float32)
        hmid = hmid * jax.nn.sigmoid(hmid)                  # SiLU; Dropout(p=0) is identity
        y = jnp.dot(hmid, w2_ref[l].astype(jnp.float32),
                    preferred_element_type=jnp.float32) + b2_ref[l].astype(jnp.float32)
        x = (x2 + y).reshape(tg, n, dim)

    o_ref[...] = x.astype(o_ref.dtype)


# ---------------------------------------------------------------------------
# Wrapper: parameter stacking/folding, tiling, pallas_call.
# ---------------------------------------------------------------------------
def _choose_group_tile(G, n):
    """(batch*patch) groups of n tokens per grid step."""
    target_rows = 512            # big tiles amortize ~0.35us/step and fill MXU M
    tg = max(1, min(G, target_rows // max(n, 1)))
    # v7x has two TensorCores that only get work from >=2 "parallel" steps;
    # split a single full-size step in half only if each half still carries
    # >=256 rows (on single-TC v5e/v6e the extra step is then negligible).
    if tg == G and G >= 2 and (G // 2) * n >= 256:
        tg = pl.cdiv(G, 2)
    return tg


def _stack_params(layers, *, heads, dim_head, dim):
    """Stack per-layer params on a leading depth axis, fold the attention scale
    into the Q columns of Wqkv, and pre-split the output projection per head."""
    depth = len(layers)
    inner = heads * dim_head
    scale = float(dim_head) ** -0.5
    st = lambda name: jnp.stack([ly[name] for ly in layers])

    wqkv = st('wqkv')                                           # (depth, dim, 3*inner)
    col_scale = jnp.concatenate([jnp.full((inner,), scale, wqkv.dtype),
                                 jnp.ones((2 * inner,), wqkv.dtype)])
    wqkv = wqkv * col_scale[None, None, :]
    return dict(
        ln1g=st('ln1_g').reshape(depth, 1, dim),
        ln1b=st('ln1_b').reshape(depth, 1, dim),
        wqkv=wqkv,
        wo=st('wo').reshape(depth, heads, dim_head, dim),
        bo=st('bo').reshape(depth, 1, dim),
        ln2g=st('ln2_g').reshape(depth, 1, dim),
        ln2b=st('ln2_b').reshape(depth, 1, dim),
        w1=st('w1'),
        b1=st('b1').reshape(depth, 1, -1),
        w2=st('w2'),
        b2=st('b2').reshape(depth, 1, dim),
    )


def _resident_spec(arr):
    nd = arr.ndim
    return pl.BlockSpec(arr.shape, lambda i, _nd=nd: (0,) * _nd)


def transformer_forward(x, layers, *, heads, dim_head):
    """x: [b, p, n, dim]; layers: list of per-layer parameter dicts."""
    b, p, n, dim = x.shape
    depth = len(layers)
    project_out = not (heads == 1 and dim_head == dim)
    prm = _stack_params(layers, heads=heads, dim_head=dim_head, dim=dim)

    G = b * p
    x3 = x.reshape(G, n, dim)
    TG = _choose_group_tile(G, n)
    grid = (pl.cdiv(G, TG),)

    weight_order = ('ln1g', 'ln1b', 'wqkv', 'wo', 'bo',
                    'ln2g', 'ln2b', 'w1', 'b1', 'w2', 'b2')
    weights = [prm[k] for k in weight_order]

    kernel = functools.partial(_transformer_kernel, depth=depth, heads=heads,
                               dim_head=dim_head, project_out=project_out)
    out = pl.pallas_call(
        kernel,
        out_shape=jax.ShapeDtypeStruct((G, n, dim), x.dtype),
        grid_spec=pltpu.PrefetchScalarGridSpec(
            num_scalar_prefetch=0,
            grid=grid,
            in_specs=[pl.BlockSpec((TG, n, dim), lambda i: (i, 0, 0))]
                     + [_resident_spec(w) for w in weights],
            out_specs=pl.BlockSpec((TG, n, dim), lambda i: (i, 0, 0)),
        ),
        compiler_params=pltpu.CompilerParams(
            dimension_semantics=("parallel",),
            vmem_limit_bytes=_vmem_limit_bytes()),
    )(x3, *weights)
    return out.reshape(b, p, n, dim)


# ---------------------------------------------------------------------------
# Parameter init (PyTorch nn.Linear / nn.LayerNorm defaults) and a pure-JAX
# reference for correctness checking.
# ---------------------------------------------------------------------------
def _linear_params(key, fan_in, fan_out, bias=True, dtype=jnp.float32):
    kw, kb = jax.random.split(key)
    bound = 1.0 / np.sqrt(fan_in)
    # stored as [in, out] (transposed vs PyTorch [out, in]) so kernels do x @ w
    w = jax.random.uniform(kw, (fan_in, fan_out), dtype, -bound, bound)
    if bias:
        b = jax.random.uniform(kb, (fan_out,), dtype, -bound, bound)
        return w, b
    return w, None


def init_transformer_params(key, depth, dim, heads, dim_head, mlp_dim,
                            dtype=jnp.float32):
    inner = heads * dim_head
    project_out = not (heads == 1 and dim_head == dim)
    layers = []
    for _ in range(depth):
        key, k_qkv, k_out, k_f1, k_f2 = jax.random.split(key, 5)
        wqkv, _ = _linear_params(k_qkv, dim, 3 * inner, bias=False, dtype=dtype)
        if project_out:
            wo, bo = _linear_params(k_out, inner, dim, dtype=dtype)
        else:
            # to_out == nn.Identity(): realized as identity weights (skipped in-kernel).
            wo = jnp.eye(dim, dtype=dtype)
            bo = jnp.zeros((dim,), dtype=dtype)
        w1, b1 = _linear_params(k_f1, dim, mlp_dim, dtype=dtype)
        w2, b2 = _linear_params(k_f2, mlp_dim, dim, dtype=dtype)
        layers.append(dict(
            ln1_g=jnp.ones((dim,), dtype), ln1_b=jnp.zeros((dim,), dtype),
            wqkv=wqkv, wo=wo, bo=bo,
            ln2_g=jnp.ones((dim,), dtype), ln2_b=jnp.zeros((dim,), dtype),
            w1=w1, b1=b1, w2=w2, b2=b2,
        ))
    return layers


def reference_forward(x, layers, *, heads, dim_head):
    b, p, n, dim = x.shape
    scale = float(dim_head) ** -0.5
    hp = jax.lax.Precision.HIGHEST

    def ln(t, g, bt):
        mu = jnp.mean(t, axis=-1, keepdims=True)
        var = jnp.mean(jnp.square(t - mu), axis=-1, keepdims=True)
        return (t - mu) / jnp.sqrt(var + _LN_EPS) * g + bt

    out = x.astype(jnp.float32)
    for ly in layers:
        xn = ln(out, ly['ln1_g'], ly['ln1_b'])
        qkv = jnp.einsum('bpnd,de->bpne', xn, ly['wqkv'], precision=hp)
        q, k, v = jnp.split(qkv, 3, axis=-1)

        def split_heads(t):
            return t.reshape(b, p, n, heads, dim_head).transpose(0, 1, 3, 2, 4)

        q, k, v = split_heads(q), split_heads(k), split_heads(v)
        dots = jnp.einsum('bphnd,bphmd->bphnm', q, k, precision=hp) * scale
        attn = jax.nn.softmax(dots, axis=-1)
        o = jnp.einsum('bphnm,bphmd->bphnd', attn, v, precision=hp)
        o = o.transpose(0, 1, 3, 2, 4).reshape(b, p, n, heads * dim_head)
        o = jnp.einsum('bpni,id->bpnd', o, ly['wo'], precision=hp) + ly['bo']
        out = out + o

        xn = ln(out, ly['ln2_g'], ly['ln2_b'])
        h = jnp.einsum('bpnd,dh->bpnh', xn, ly['w1'], precision=hp) + ly['b1']
        h = h * jax.nn.sigmoid(h)
        f = jnp.einsum('bpnh,hd->bpnd', h, ly['w2'], precision=hp) + ly['b2']
        out = out + f
    return out


if __name__ == "__main__":
    key = jax.random.PRNGKey(0)
    k_x, k_p = jax.random.split(key)

    # Small MobileViT-style shapes with a lane-dense last dim:
    # batch=2, patches=4, tokens-per-patch=8, dim=128; heads=4, dim_head=32,
    # mlp_dim=256, depth=2.
    b, p, n, dim = 2, 4, 8, 128
    depth, heads, dim_head, mlp_dim = 2, 4, 32, 256

    x = jax.random.normal(k_x, (b, p, n, dim), jnp.float32)
    layers = init_transformer_params(k_p, depth, dim, heads, dim_head, mlp_dim)

    out = transformer_forward(x, layers, heads=heads, dim_head=dim_head)
    out = jax.block_until_ready(out)

    ref = reference_forward(x, layers, heads=heads, dim_head=dim_head)
    # Tolerance slightly relaxed vs exact-division softmax because the kernel
    # deliberately uses the EUP approximate reciprocal for the softmax denominator.
    np.testing.assert_allclose(np.asarray(out), np.asarray(ref),
                               rtol=2e-3, atol=2e-3)

    # TODO(synk): Dropout with p > 0 (training mode) is not implemented; p=0.0
    # (the module default) is the identity and is folded away.
    print("KERNEL_OK")
</pallas_src>

<mosaic_0001>
module attributes {stable_mosaic.version = 11 : i64} {
  func.func @_transformer_kernel(%arg0: i32, %arg1: memref<8x8x128xf32, #tpu.memory_space<vmem>>, %arg2: memref<2x1x128xf32, #tpu.memory_space<vmem>>, %arg3: memref<2x1x128xf32, #tpu.memory_space<vmem>>, %arg4: memref<2x128x384xf32, #tpu.memory_space<vmem>>, %arg5: memref<2x4x32x128xf32, #tpu.memory_space<vmem>>, %arg6: memref<2x1x128xf32, #tpu.memory_space<vmem>>, %arg7: memref<2x1x128xf32, #tpu.memory_space<vmem>>, %arg8: memref<2x1x128xf32, #tpu.memory_space<vmem>>, %arg9: memref<2x128x256xf32, #tpu.memory_space<vmem>>, %arg10: memref<2x1x256xf32, #tpu.memory_space<vmem>>, %arg11: memref<2x256x128xf32, #tpu.memory_space<vmem>>, %arg12: memref<2x1x128xf32, #tpu.memory_space<vmem>>, %arg13: memref<8x8x128xf32, #tpu.memory_space<vmem>>) attributes {dimension_semantics = [#tpu.dimension_semantics<parallel>], iteration_bounds = array<i64: 1>, scalar_prefetch = 0 : i64, scratch_operands = 0 : i64, tpu.core_type = #tpu.core_type<tc>, window_params = [{transform_indices = @transform_0, window_bounds = array<i64: 8, 8, 128>}, {pipeline_mode = #tpu.pipeline_mode<synchronous>, transform_indices = @transform_1, window_bounds = array<i64: 2, 1, 128>}, {pipeline_mode = #tpu.pipeline_mode<synchronous>, transform_indices = @transform_2, window_bounds = array<i64: 2, 1, 128>}, {pipeline_mode = #tpu.pipeline_mode<synchronous>, transform_indices = @transform_3, window_bounds = array<i64: 2, 128, 384>}, {pipeline_mode = #tpu.pipeline_mode<synchronous>, transform_indices = @transform_4, window_bounds = array<i64: 2, 4, 32, 128>}, {pipeline_mode = #tpu.pipeline_mode<synchronous>, transform_indices = @transform_5, window_bounds = array<i64: 2, 1, 128>}, {pipeline_mode = #tpu.pipeline_mode<synchronous>, transform_indices = @transform_6, window_bounds = array<i64: 2, 1, 128>}, {pipeline_mode = #tpu.pipeline_mode<synchronous>, transform_indices = @transform_7, window_bounds = array<i64: 2, 1, 128>}, {pipeline_mode = #tpu.pipeline_mode<synchronous>, transform_indices = @transform_8, window_bounds = array<i64: 2, 128, 256>}, {pipeline_mode = #tpu.pipeline_mode<synchronous>, transform_indices = @transform_9, window_bounds = array<i64: 2, 1, 256>}, {pipeline_mode = #tpu.pipeline_mode<synchronous>, transform_indices = @transform_10, window_bounds = array<i64: 2, 256, 128>}, {pipeline_mode = #tpu.pipeline_mode<synchronous>, transform_indices = @transform_11, window_bounds = array<i64: 2, 1, 128>}, {transform_indices = @transform_12, window_bounds = array<i64: 8, 8, 128>}]} {
    %c0 = arith.constant 0 : index
    %c0_0 = arith.constant 0 : index
    %c0_1 = arith.constant 0 : index
    %0 = vector.load %arg1[%c0, %c0_0, %c0_1] : memref<8x8x128xf32, #tpu.memory_space<vmem>>, vector<8x8x128xf32>
    %1 = vector.shape_cast %0 : vector<8x8x128xf32> to vector<64x128xf32>
    %c0_2 = arith.constant 0 : index
    %c0_3 = arith.constant 0 : index
    %c0_4 = arith.constant 0 : index
    %2 = vector.load %arg2[%c0_2, %c0_3, %c0_4] : memref<2x1x128xf32, #tpu.memory_space<vmem>>, vector<1x1x128xf32>
    %3 = vector.shape_cast %2 : vector<1x1x128xf32> to vector<1x128xf32>
    %c0_5 = arith.constant 0 : index
    %c0_6 = arith.constant 0 : index
    %c0_7 = arith.constant 0 : index
    %4 = vector.load %arg3[%c0_5, %c0_6, %c0_7] : memref<2x1x128xf32, #tpu.memory_space<vmem>>, vector<1x1x128xf32>
    %5 = vector.shape_cast %4 : vector<1x1x128xf32> to vector<1x128xf32>
    %cst = arith.constant dense<0.000000e+00> : vector<64xf32>
    %6 = vector.multi_reduction <add>, %1, %cst [1] : vector<64x128xf32> to vector<64xf32>
    %7 = vector.shape_cast %6 : vector<64xf32> to vector<64x1xf32>
    %cst_8 = arith.constant 1.280000e+02 : f32
    %8 = vector.broadcast %cst_8 : f32 to vector<64x1xf32>
    %9 = arith.divf %7, %8 : vector<64x1xf32>
    %10 = vector.broadcast %9 : vector<64x1xf32> to vector<64x128xf32>
    %11 = arith.subf %1, %10 : vector<64x128xf32>
    %12 = arith.mulf %11, %11 : vector<64x128xf32>
    %cst_9 = arith.constant dense<0.000000e+00> : vector<64xf32>
    %13 = vector.multi_reduction <add>, %12, %cst_9 [1] : vector<64x128xf32> to vector<64xf32>
    %14 = vector.shape_cast %13 : vector<64xf32> to vector<64x1xf32>
    %cst_10 = arith.constant 1.280000e+02 : f32
    %15 = vector.broadcast %cst_10 : f32 to vector<64x1xf32>
    %16 = arith.divf %14, %15 : vector<64x1xf32>
    %17 = vector.broadcast %9 : vector<64x1xf32> to vector<64x128xf32>
    %18 = arith.subf %1, %17 : vector<64x128xf32>
    %cst_11 = arith.constant 9.99999974E-6 : f32
    %19 = vector.broadcast %cst_11 : f32 to vector<64x1xf32>
    %20 = arith.addf %16, %19 : vector<64x1xf32>
    %21 = math.rsqrt %20 : vector<64x1xf32>
    %22 = vector.broadcast %21 : vector<64x1xf32> to vector<64x128xf32>
    %23 = arith.mulf %18, %22 : vector<64x128xf32>
    %24 = vector.broadcast %3 : vector<1x128xf32> to vector<64x128xf32>
    %25 = arith.mulf %23, %24 : vector<64x128xf32>
    %26 = vector.broadcast %5 : vector<1x128xf32> to vector<64x128xf32>
    %27 = arith.addf %25, %26 : vector<64x128xf32>
    %c0_12 = arith.constant 0 : index
    %c0_13 = arith.constant 0 : index
    %c0_14 = arith.constant 0 : index
    %28 = vector.load %arg4[%c0_12, %c0_13, %c0_14] : memref<2x128x384xf32, #tpu.memory_space<vmem>>, vector<1x128x384xf32>
    %29 = vector.shape_cast %28 : vector<1x128x384xf32> to vector<128x384xf32>
    %cst_15 = arith.constant dense<0.000000e+00> : vector<64x384xf32>
    %30 = tpu.matmul %27, %29, %cst_15 {dimension_numbers = #tpu.dot_dimension_numbers<[1], [0], [0], [1], [0, 0, 1, 1], [], []>} : vector<64x128xf32>, vector<128x384xf32>, vector<64x384xf32> -> vector<64x384xf32>
    %c0_16 = arith.constant 0 : index
    %c0_17 = arith.constant 0 : index
    %c0_18 = arith.constant 0 : index
    %c0_19 = arith.constant 0 : index
    %31 = vector.load %arg5[%c0_16, %c0_17, %c0_18, %c0_19] : memref<2x4x32x128xf32, #tpu.memory_space<vmem>>, vector<1x4x32x128xf32>
    %32 = vector.shape_cast %31 : vector<1x4x32x128xf32> to vector<4x32x128xf32>
    %33 = vector.extract_strided_slice %30 {offsets = [0, 0], sizes = [64, 32], strides = [1, 1]} : vector<64x384xf32> to vector<64x32xf32>
    %34 = vector.extract_strided_slice %30 {offsets = [0, 128], sizes = [64, 32], strides = [1, 1]} : vector<64x384xf32> to vector<64x32xf32>
    %35 = vector.extract_strided_slice %30 {offsets = [0, 256], sizes = [64, 32], strides = [1, 1]} : vector<64x384xf32> to vector<64x32xf32>
    %36 = vector.shape_cast %33 : vector<64x32xf32> to vector<8x8x32xf32>
    %37 = vector.shape_cast %34 : vector<64x32xf32> to vector<8x8x32xf32>
    %38 = vector.shape_cast %35 : vector<64x32xf32> to vector<8x8x32xf32>
    "tpu.trace_start"() <{level = 10 : i32, message = "gnd,gmd->gnm"}> : () -> ()
    %cst_20 = arith.constant dense<0.000000e+00> : vector<8x8x8xf32>
    %39 = tpu.matmul %36, %37, %cst_20 {dimension_numbers = #tpu.dot_dimension_numbers<[2], [2], [1], [1], [0, 0, 0, 1, 1, 1], [0], [0]>} : vector<8x8x32xf32>, vector<8x8x32xf32>, vector<8x8x8xf32> -> vector<8x8x8xf32>
    "tpu.trace_stop"() : () -> ()
    %cst_21 = arith.constant dense<0xFF800000> : vector<8x8xf32>
    %40 = vector.multi_reduction <maximumf>, %39, %cst_21 [2] : vector<8x8x8xf32> to vector<8x8xf32>
    %41 = vector.shape_cast %40 : vector<8x8xf32> to vector<8x8x1xf32>
    %42 = vector.broadcast %41 : vector<8x8x1xf32> to vector<8x8x8xf32>
    %43 = arith.subf %39, %42 : vector<8x8x8xf32>
    %44 = math.exp %43 : vector<8x8x8xf32>
    %cst_22 = arith.constant dense<0.000000e+00> : vector<8x8xf32>
    %45 = vector.multi_reduction <add>, %44, %cst_22 [2] : vector<8x8x8xf32> to vector<8x8xf32>
    %46 = vector.shape_cast %45 : vector<8x8xf32> to vector<8x8x1xf32>
    %47 = tpu.reciprocal %46 {approx = true} : vector<8x8x1xf32> -> vector<8x8x1xf32>
    %48 = vector.broadcast %47 : vector<8x8x1xf32> to vector<8x8x8xf32>
    %49 = arith.mulf %44, %48 : vector<8x8x8xf32>
    "tpu.trace_start"() <{level = 10 : i32, message = "gnm,gmd->gnd"}> : () -> ()
    %cst_23 = arith.constant dense<0.000000e+00> : vector<8x8x32xf32>
    %50 = tpu.matmul %49, %38, %cst_23 {dimension_numbers = #tpu.dot_dimension_numbers<[2], [1], [1], [2], [0, 0, 0, 1, 1, 2], [0], [0]>} : vector<8x8x8xf32>, vector<8x8x32xf32>, vector<8x8x32xf32> -> vector<8x8x32xf32>
    "tpu.trace_stop"() : () -> ()
    %51 = vector.shape_cast %50 : vector<8x8x32xf32> to vector<64x32xf32>
    %52 = vector.extract_strided_slice %32 {offsets = [0, 0, 0], sizes = [1, 32, 128], strides = [1, 1, 1]} : vector<4x32x128xf32> to vector<1x32x128xf32>
    %53 = vector.shape_cast %52 : vector<1x32x128xf32> to vector<32x128xf32>
    %cst_24 = arith.constant dense<0.000000e+00> : vector<64x128xf32>
    %54 = tpu.matmul %51, %53, %cst_24 {dimension_numbers = #tpu.dot_dimension_numbers<[1], [0], [0], [1], [0, 0, 1, 1], [], []>} : vector<64x32xf32>, vector<32x128xf32>, vector<64x128xf32> -> vector<64x128xf32>
    %55 = vector.extract_strided_slice %30 {offsets = [0, 32], sizes = [64, 32], strides = [1, 1]} : vector<64x384xf32> to vector<64x32xf32>
    %56 = vector.extract_strided_slice %30 {offsets = [0, 160], sizes = [64, 32], strides = [1, 1]} : vector<64x384xf32> to vector<64x32xf32>
    %57 = vector.extract_strided_slice %30 {offsets = [0, 288], sizes = [64, 32], strides = [1, 1]} : vector<64x384xf32> to vector<64x32xf32>
    %58 = vector.shape_cast %55 : vector<64x32xf32> to vector<8x8x32xf32>
    %59 = vector.shape_cast %56 : vector<64x32xf32> to vector<8x8x32xf32>
    %60 = vector.shape_cast %57 : vector<64x32xf32> to vector<8x8x32xf32>
    "tpu.trace_start"() <{level = 10 : i32, message = "gnd,gmd->gnm"}> : () -> ()
    %cst_25 = arith.constant dense<0.000000e+00> : vector<8x8x8xf32>
    %61 = tpu.matmul %58, %59, %cst_25 {dimension_numbers = #tpu.dot_dimension_numbers<[2], [2], [1], [1], [0, 0, 0, 1, 1, 1], [0], [0]>} : vector<8x8x32xf32>, vector<8x8x32xf32>, vector<8x8x8xf32> -> vector<8x8x8xf32>
    "tpu.trace_stop"() : () -> ()
    %cst_26 = arith.constant dense<0xFF800000> : vector<8x8xf32>
    %62 = vector.multi_reduction <maximumf>, %61, %cst_26 [2] : vector<8x8x8xf32> to vector<8x8xf32>
    %63 = vector.shape_cast %62 : vector<8x8xf32> to vector<8x8x1xf32>
    %64 = vector.broadcast %63 : vector<8x8x1xf32> to vector<8x8x8xf32>
    %65 = arith.subf %61, %64 : vector<8x8x8xf32>
    %66 = math.exp %65 : vector<8x8x8xf32>
    %cst_27 = arith.constant dense<0.000000e+00> : vector<8x8xf32>
    %67 = vector.multi_reduction <add>, %66, %cst_27 [2] : vector<8x8x8xf32> to vector<8x8xf32>
    %68 = vector.shape_cast %67 : vector<8x8xf32> to vector<8x8x1xf32>
    %69 = tpu.reciprocal %68 {approx = true} : vector<8x8x1xf32> -> vector<8x8x1xf32>
    %70 = vector.broadcast %69 : vector<8x8x1xf32> to vector<8x8x8xf32>
    %71 = arith.mulf %66, %70 : vector<8x8x8xf32>
    "tpu.trace_start"() <{level = 10 : i32, message = "gnm,gmd->gnd"}> : () -> ()
    %cst_28 = arith.constant dense<0.000000e+00> : vector<8x8x32xf32>
    %72 = tpu.matmul %71, %60, %cst_28 {dimension_numbers = #tpu.dot_dimension_numbers<[2], [1], [1], [2], [0, 0, 0, 1, 1, 2], [0], [0]>} : vector<8x8x8xf32>, vector<8x8x32xf32>, vector<8x8x32xf32> -> vector<8x8x32xf32>
    "tpu.trace_stop"() : () -> ()
    %73 = vector.shape_cast %72 : vector<8x8x32xf32> to vector<64x32xf32>
    %74 = vector.extract_strided_slice %32 {offsets = [1, 0, 0], sizes = [1, 32, 128], strides = [1, 1, 1]} : vector<4x32x128xf32> to vector<1x32x128xf32>
    %75 = vector.shape_cast %74 : vector<1x32x128xf32> to vector<32x128xf32>
    %cst_29 = arith.constant dense<0.000000e+00> : vector<64x128xf32>
    %76 = tpu.matmul %73, %75, %cst_29 {dimension_numbers = #tpu.dot_dimension_numbers<[1], [0], [0], [1], [0, 0, 1, 1], [], []>} : vector<64x32xf32>, vector<32x128xf32>, vector<64x128xf32> -> vector<64x128xf32>
    %77 = arith.addf %54, %76 : vector<64x128xf32>
    %78 = vector.extract_strided_slice %30 {offsets = [0, 64], sizes = [64, 32], strides = [1, 1]} : vector<64x384xf32> to vector<64x32xf32>
    %79 = vector.extract_strided_slice %30 {offsets = [0, 192], sizes = [64, 32], strides = [1, 1]} : vector<64x384xf32> to vector<64x32xf32>
    %80 = vector.extract_strided_slice %30 {offsets = [0, 320], sizes = [64, 32], strides = [1, 1]} : vector<64x384xf32> to vector<64x32xf32>
    %81 = vector.shape_cast %78 : vector<64x32xf32> to vector<8x8x32xf32>
    %82 = vector.shape_cast %79 : vector<64x32xf32> to vector<8x8x32xf32>
    %83 = vector.shape_cast %80 : vector<64x32xf32> to vector<8x8x32xf32>
    "tpu.trace_start"() <{level = 10 : i32, message = "gnd,gmd->gnm"}> : () -> ()
    %cst_30 = arith.constant dense<0.000000e+00> : vector<8x8x8xf32>
    %84 = tpu.matmul %81, %82, %cst_30 {dimension_numbers = #tpu.dot_dimension_numbers<[2], [2], [1], [1], [0, 0, 0, 1, 1, 1], [0], [0]>} : vector<8x8x32xf32>, vector<8x8x32xf32>, vector<8x8x8xf32> -> vector<8x8x8xf32>
    "tpu.trace_stop"() : () -> ()
    %cst_31 = arith.constant dense<0xFF800000> : vector<8x8xf32>
    %85 = vector.multi_reduction <maximumf>, %84, %cst_31 [2] : vector<8x8x8xf32> to vector<8x8xf32>
    %86 = vector.shape_cast %85 : vector<8x8xf32> to vector<8x8x1xf32>
    %87 = vector.broadcast %86 : vector<8x8x1xf32> to vector<8x8x8xf32>
    %88 = arith.subf %84, %87 : vector<8x8x8xf32>
    %89 = math.exp %88 : vector<8x8x8xf32>
    %cst_32 = arith.constant dense<0.000000e+00> : vector<8x8xf32>
    %90 = vector.multi_reduction <add>, %89, %cst_32 [2] : vector<8x8x8xf32> to vector<8x8xf32>
    %91 = vector.shape_cast %90 : vector<8x8xf32> to vector<8x8x1xf32>
    %92 = tpu.reciprocal %91 {approx = true} : vector<8x8x1xf32> -> vector<8x8x1xf32>
    %93 = vector.broadcast %92 : vector<8x8x1xf32> to vector<8x8x8xf32>
    %94 = arith.mulf %89, %93 : vector<8x8x8xf32>
    "tpu.trace_start"() <{level = 10 : i32, message = "gnm,gmd->gnd"}> : () -> ()
    %cst_33 = arith.constant dense<0.000000e+00> : vector<8x8x32xf32>
    %95 = tpu.matmul %94, %83, %cst_33 {dimension_numbers = #tpu.dot_dimension_numbers<[2], [1], [1], [2], [0, 0, 0, 1, 1, 2], [0], [0]>} : vector<8x8x8xf32>, vector<8x8x32xf32>, vector<8x8x32xf32> -> vector<8x8x32xf32>
    "tpu.trace_stop"() : () -> ()
    %96 = vector.shape_cast %95 : vector<8x8x32xf32> to vector<64x32xf32>
    %97 = vector.extract_strided_slice %32 {offsets = [2, 0, 0], sizes = [1, 32, 128], strides = [1, 1, 1]} : vector<4x32x128xf32> to vector<1x32x128xf32>
    %98 = vector.shape_cast %97 : vector<1x32x128xf32> to vector<32x128xf32>
    %cst_34 = arith.constant dense<0.000000e+00> : vector<64x128xf32>
    %99 = tpu.matmul %96, %98, %cst_34 {dimension_numbers = #tpu.dot_dimension_numbers<[1], [0], [0], [1], [0, 0, 1, 1], [], []>} : vector<64x32xf32>, vector<32x128xf32>, vector<64x128xf32> -> vector<64x128xf32>
    %100 = arith.addf %77, %99 : vector<64x128xf32>
    %101 = vector.extract_strided_slice %30 {offsets = [0, 96], sizes = [64, 32], strides = [1, 1]} : vector<64x384xf32> to vector<64x32xf32>
    %102 = vector.extract_strided_slice %30 {offsets = [0, 224], sizes = [64, 32], strides = [1, 1]} : vector<64x384xf32> to vector<64x32xf32>
    %103 = vector.extract_strided_slice %30 {offsets = [0, 352], sizes = [64, 32], strides = [1, 1]} : vector<64x384xf32> to vector<64x32xf32>
    %104 = vector.shape_cast %101 : vector<64x32xf32> to vector<8x8x32xf32>
    %105 = vector.shape_cast %102 : vector<64x32xf32> to vector<8x8x32xf32>
    %106 = vector.shape_cast %103 : vector<64x32xf32> to vector<8x8x32xf32>
    "tpu.trace_start"() <{level = 10 : i32, message = "gnd,gmd->gnm"}> : () -> ()
    %cst_35 = arith.constant dense<0.000000e+00> : vector<8x8x8xf32>
    %107 = tpu.matmul %104, %105, %cst_35 {dimension_numbers = #tpu.dot_dimension_numbers<[2], [2], [1], [1], [0, 0, 0, 1, 1, 1], [0], [0]>} : vector<8x8x32xf32>, vector<8x8x32xf32>, vector<8x8x8xf32> -> vector<8x8x8xf32>
    "tpu.trace_stop"() : () -> ()
    %cst_36 = arith.constant dense<0xFF800000> : vector<8x8xf32>
    %108 = vector.multi_reduction <maximumf>, %107, %cst_36 [2] : vector<8x8x8xf32> to vector<8x8xf32>
    %109 = vector.shape_cast %108 : vector<8x8xf32> to vector<8x8x1xf32>
    %110 = vector.broadcast %109 : vector<8x8x1xf32> to vector<8x8x8xf32>
    %111 = arith.subf %107, %110 : vector<8x8x8xf32>
    %112 = math.exp %111 : vector<8x8x8xf32>
    %cst_37 = arith.constant dense<0.000000e+00> : vector<8x8xf32>
    %113 = vector.multi_reduction <add>, %112, %cst_37 [2] : vector<8x8x8xf32> to vector<8x8xf32>
    %114 = vector.shape_cast %113 : vector<8x8xf32> to vector<8x8x1xf32>
    %115 = tpu.reciprocal %114 {approx = true} : vector<8x8x1xf32> -> vector<8x8x1xf32>
    %116 = vector.broadcast %115 : vector<8x8x1xf32> to vector<8x8x8xf32>
    %117 = arith.mulf %112, %116 : vector<8x8x8xf32>
    "tpu.trace_start"() <{level = 10 : i32, message = "gnm,gmd->gnd"}> : () -> ()
    %cst_38 = arith.constant dense<0.000000e+00> : vector<8x8x32xf32>
    %118 = tpu.matmul %117, %106, %cst_38 {dimension_numbers = #tpu.dot_dimension_numbers<[2], [1], [1], [2], [0, 0, 0, 1, 1, 2], [0], [0]>} : vector<8x8x8xf32>, vector<8x8x32xf32>, vector<8x8x32xf32> -> vector<8x8x32xf32>
    "tpu.trace_stop"() : () -> ()
    %119 = vector.shape_cast %118 : vector<8x8x32xf32> to vector<64x32xf32>
    %120 = vector.extract_strided_slice %32 {offsets = [3, 0, 0], sizes = [1, 32, 128], strides = [1, 1, 1]} : vector<4x32x128xf32> to vector<1x32x128xf32>
    %121 = vector.shape_cast %120 : vector<1x32x128xf32> to vector<32x128xf32>
    %cst_39 = arith.constant dense<0.000000e+00> : vector<64x128xf32>
    %122 = tpu.matmul %119, %121, %cst_39 {dimension_numbers = #tpu.dot_dimension_numbers<[1], [0], [0], [1], [0, 0, 1, 1], [], []>} : vector<64x32xf32>, vector<32x128xf32>, vector<64x128xf32> -> vector<64x128xf32>
    %123 = arith.addf %100, %122 : vector<64x128xf32>
    %c0_40 = arith.constant 0 : index
    %c0_41 = arith.constant 0 : index
    %c0_42 = arith.constant 0 : index
    %124 = vector.load %arg6[%c0_40, %c0_41, %c0_42] : memref<2x1x128xf32, #tpu.memory_space<vmem>>, vector<1x1x128xf32>
    %125 = vector.shape_cast %124 : vector<1x1x128xf32> to vector<1x128xf32>
    %126 = vector.broadcast %125 : vector<1x128xf32> to vector<64x128xf32>
    %127 = arith.addf %123, %126 : vector<64x128xf32>
    %128 = vector.shape_cast %127 : vector<64x128xf32> to vector<8x8x128xf32>
    %129 = arith.addf %0, %128 : vector<8x8x128xf32>
    %130 = vector.shape_cast %129 : vector<8x8x128xf32> to vector<64x128xf32>
    %c0_43 = arith.constant 0 : index
    %c0_44 = arith.constant 0 : index
    %c0_45 = arith.constant 0 : index
    %131 = vector.load %arg7[%c0_43, %c0_44, %c0_45] : memref<2x1x128xf32, #tpu.memory_space<vmem>>, vector<1x1x128xf32>
    %132 = vector.shape_cast %131 : vector<1x1x128xf32> to vector<1x128xf32>
    %c0_46 = arith.constant 0 : index
    %c0_47 = arith.constant 0 : index
    %c0_48 = arith.constant 0 : index
    %133 = vector.load %arg8[%c0_46, %c0_47, %c0_48] : memref<2x1x128xf32, #tpu.memory_space<vmem>>, vector<1x1x128xf32>
    %134 = vector.shape_cast %133 : vector<1x1x128xf32> to vector<1x128xf32>
    %cst_49 = arith.constant dense<0.000000e+00> : vector<64xf32>
    %135 = vector.multi_reduction <add>, %130, %cst_49 [1] : vector<64x128xf32> to vector<64xf32>
    %136 = vector.shape_cast %135 : vector<64xf32> to vector<64x1xf32>
    %cst_50 = arith.constant 1.280000e+02 : f32
    %137 = vector.broadcast %cst_50 : f32 to vector<64x1xf32>
    %138 = arith.divf %136, %137 : vector<64x1xf32>
    %139 = vector.broadcast %138 : vector<64x1xf32> to vector<64x128xf32>
    %140 = arith.subf %130, %139 : vector<64x128xf32>
    %141 = arith.mulf %140, %140 : vector<64x128xf32>
    %cst_51 = arith.constant dense<0.000000e+00> : vector<64xf32>
    %142 = vector.multi_reduction <add>, %141, %cst_51 [1] : vector<64x128xf32> to vector<64xf32>
    %143 = vector.shape_cast %142 : vector<64xf32> to vector<64x1xf32>
    %cst_52 = arith.constant 1.280000e+02 : f32
    %144 = vector.broadcast %cst_52 : f32 to vector<64x1xf32>
    %145 = arith.divf %143, %144 : vector<64x1xf32>
    %146 = vector.broadcast %138 : vector<64x1xf32> to vector<64x128xf32>
    %147 = arith.subf %130, %146 : vector<64x128xf32>
    %cst_53 = arith.constant 9.99999974E-6 : f32
    %148 = vector.broadcast %cst_53 : f32 to vector<64x1xf32>
    %149 = arith.addf %145, %148 : vector<64x1xf32>
    %150 = math.rsqrt %149 : vector<64x1xf32>
    %151 = vector.broadcast %150 : vector<64x1xf32> to vector<64x128xf32>
    %152 = arith.mulf %147, %151 : vector<64x128xf32>
    %153 = vector.broadcast %132 : vector<1x128xf32> to vector<64x128xf32>
    %154 = arith.mulf %152, %153 : vector<64x128xf32>
    %155 = vector.broadcast %134 : vector<1x128xf32> to vector<64x128xf32>
    %156 = arith.addf %154, %155 : vector<64x128xf32>
    %c0_54 = arith.constant 0 : index
    %c0_55 = arith.constant 0 : index
    %c0_56 = arith.constant 0 : index
    %157 = vector.load %arg9[%c0_54, %c0_55, %c0_56] : memref<2x128x256xf32, #tpu.memory_space<vmem>>, vector<1x128x256xf32>
    %158 = vector.shape_cast %157 : vector<1x128x256xf32> to vector<128x256xf32>
    %cst_57 = arith.constant dense<0.000000e+00> : vector<64x256xf32>
    %159 = tpu.matmul %156, %158, %cst_57 {dimension_numbers = #tpu.dot_dimension_numbers<[1], [0], [0], [1], [0, 0, 1, 1], [], []>} : vector<64x128xf32>, vector<128x256xf32>, vector<64x256xf32> -> vector<64x256xf32>
    %c0_58 = arith.constant 0 : index
    %c0_59 = arith.constant 0 : index
    %c0_60 = arith.constant 0 : index
    %160 = vector.load %arg10[%c0_58, %c0_59, %c0_60] : memref<2x1x256xf32, #tpu.memory_space<vmem>>, vector<1x1x256xf32>
    %161 = vector.shape_cast %160 : vector<1x1x256xf32> to vector<1x256xf32>
    %162 = vector.broadcast %161 : vector<1x256xf32> to vector<64x256xf32>
    %163 = arith.addf %159, %162 : vector<64x256xf32>
    %164 = arith.negf %163 : vector<64x256xf32>
    %165 = math.exp %164 : vector<64x256xf32>
    %cst_61 = arith.constant 1.000000e+00 : f32
    %166 = vector.broadcast %cst_61 : f32 to vector<64x256xf32>
    %167 = arith.addf %166, %165 : vector<64x256xf32>
    %168 = arith.divf %166, %167 : vector<64x256xf32>
    %169 = arith.mulf %163, %168 : vector<64x256xf32>
    %c0_62 = arith.constant 0 : index
    %c0_63 = arith.constant 0 : index
    %c0_64 = arith.constant 0 : index
    %170 = vector.load %arg11[%c0_62, %c0_63, %c0_64] : memref<2x256x128xf32, #tpu.memory_space<vmem>>, vector<1x256x128xf32>
    %171 = vector.shape_cast %170 : vector<1x256x128xf32> to vector<256x128xf32>
    %cst_65 = arith.constant dense<0.000000e+00> : vector<64x128xf32>
    %172 = tpu.matmul %169, %171, %cst_65 {dimension_numbers = #tpu.dot_dimension_numbers<[1], [0], [0], [1], [0, 0, 1, 1], [], []>} : vector<64x256xf32>, vector<256x128xf32>, vector<64x128xf32> -> vector<64x128xf32>
    %c0_66 = arith.constant 0 : index
    %c0_67 = arith.constant 0 : index
    %c0_68 = arith.constant 0 : index
    %173 = vector.load %arg12[%c0_66, %c0_67, %c0_68] : memref<2x1x128xf32, #tpu.memory_space<vmem>>, vector<1x1x128xf32>
    %174 = vector.shape_cast %173 : vector<1x1x128xf32> to vector<1x128xf32>
    %175 = vector.broadcast %174 : vector<1x128xf32> to vector<64x128xf32>
    %176 = arith.addf %172, %175 : vector<64x128xf32>
    %177 = arith.addf %130, %176 : vector<64x128xf32>
    %178 = vector.shape_cast %177 : vector<64x128xf32> to vector<8x8x128xf32>
    %179 = vector.shape_cast %178 : vector<8x8x128xf32> to vector<64x128xf32>
    %c1 = arith.constant 1 : index
    %c0_69 = arith.constant 0 : index
    %c0_70 = arith.constant 0 : index
    %180 = vector.load %arg2[%c1, %c0_69, %c0_70] : memref<2x1x128xf32, #tpu.memory_space<vmem>>, vector<1x1x128xf32>
    %181 = vector.shape_cast %180 : vector<1x1x128xf32> to vector<1x128xf32>
    %c1_71 = arith.constant 1 : index
    %c0_72 = arith.constant 0 : index
    %c0_73 = arith.constant 0 : index
    %182 = vector.load %arg3[%c1_71, %c0_72, %c0_73] : memref<2x1x128xf32, #tpu.memory_space<vmem>>, vector<1x1x128xf32>
    %183 = vector.shape_cast %182 : vector<1x1x128xf32> to vector<1x128xf32>
    %cst_74 = arith.constant dense<0.000000e+00> : vector<64xf32>
    %184 = vector.multi_reduction <add>, %179, %cst_74 [1] : vector<64x128xf32> to vector<64xf32>
    %185 = vector.shape_cast %184 : vector<64xf32> to vector<64x1xf32>
    %cst_75 = arith.constant 1.280000e+02 : f32
    %186 = vector.broadcast %cst_75 : f32 to vector<64x1xf32>
    %187 = arith.divf %185, %186 : vector<64x1xf32>
    %188 = vector.broadcast %187 : vector<64x1xf32> to vector<64x128xf32>
    %189 = arith.subf %179, %188 : vector<64x128xf32>
    %190 = arith.mulf %189, %189 : vector<64x128xf32>
    %cst_76 = arith.constant dense<0.000000e+00> : vector<64xf32>
    %191 = vector.multi_reduction <add>, %190, %cst_76 [1] : vector<64x128xf32> to vector<64xf32>
    %192 = vector.shape_cast %191 : vector<64xf32> to vector<64x1xf32>
    %cst_77 = arith.constant 1.280000e+02 : f32
    %193 = vector.broadcast %cst_77 : f32 to vector<64x1xf32>
    %194 = arith.divf %192, %193 : vector<64x1xf32>
    %195 = vector.broadcast %187 : vector<64x1xf32> to vector<64x128xf32>
    %196 = arith.subf %179, %195 : vector<64x128xf32>
    %cst_78 = arith.constant 9.99999974E-6 : f32
    %197 = vector.broadcast %cst_78 : f32 to vector<64x1xf32>
    %198 = arith.addf %194, %197 : vector<64x1xf32>
    %199 = math.rsqrt %198 : vector<64x1xf32>
    %200 = vector.broadcast %199 : vector<64x1xf32> to vector<64x128xf32>
    %201 = arith.mulf %196, %200 : vector<64x128xf32>
    %202 = vector.broadcast %181 : vector<1x128xf32> to vector<64x128xf32>
    %203 = arith.mulf %201, %202 : vector<64x128xf32>
    %204 = vector.broadcast %183 : vector<1x128xf32> to vector<64x128xf32>
    %205 = arith.addf %203, %204 : vector<64x128xf32>
    %c1_79 = arith.constant 1 : index
    %c0_80 = arith.constant 0 : index
    %c0_81 = arith.constant 0 : index
    %206 = vector.load %arg4[%c1_79, %c0_80, %c0_81] : memref<2x128x384xf32, #tpu.memory_space<vmem>>, vector<1x128x384xf32>
    %207 = vector.shape_cast %206 : vector<1x128x384xf32> to vector<128x384xf32>
    %cst_82 = arith.constant dense<0.000000e+00> : vector<64x384xf32>
    %208 = tpu.matmul %205, %207, %cst_82 {dimension_numbers = #tpu.dot_dimension_numbers<[1], [0], [0], [1], [0, 0, 1, 1], [], []>} : vector<64x128xf32>, vector<128x384xf32>, vector<64x384xf32> -> vector<64x384xf32>
    %c1_83 = arith.constant 1 : index
    %c0_84 = arith.constant 0 : index
    %c0_85 = arith.constant 0 : index
    %c0_86 = arith.constant 0 : index
    %209 = vector.load %arg5[%c1_83, %c0_84, %c0_85, %c0_86] : memref<2x4x32x128xf32, #tpu.memory_space<vmem>>, vector<1x4x32x128xf32>
    %210 = vector.shape_cast %209 : vector<1x4x32x128xf32> to vector<4x32x128xf32>
    %211 = vector.extract_strided_slice %208 {offsets = [0, 0], sizes = [64, 32], strides = [1, 1]} : vector<64x384xf32> to vector<64x32xf32>
    %212 = vector.extract_strided_slice %208 {offsets = [0, 128], sizes = [64, 32], strides = [1, 1]} : vector<64x384xf32> to vector<64x32xf32>
    %213 = vector.extract_strided_slice %208 {offsets = [0, 256], sizes = [64, 32], strides = [1, 1]} : vector<64x384xf32> to vector<64x32xf32>
    %214 = vector.shape_cast %211 : vector<64x32xf32> to vector<8x8x32xf32>
    %215 = vector.shape_cast %212 : vector<64x32xf32> to vector<8x8x32xf32>
    %216 = vector.shape_cast %213 : vector<64x32xf32> to vector<8x8x32xf32>
    "tpu.trace_start"() <{level = 10 : i32, message = "gnd,gmd->gnm"}> : () -> ()
    %cst_87 = arith.constant dense<0.000000e+00> : vector<8x8x8xf32>
    %217 = tpu.matmul %214, %215, %cst_87 {dimension_numbers = #tpu.dot_dimension_numbers<[2], [2], [1], [1], [0, 0, 0, 1, 1, 1], [0], [0]>} : vector<8x8x32xf32>, vector<8x8x32xf32>, vector<8x8x8xf32> -> vector<8x8x8xf32>
    "tpu.trace_stop"() : () -> ()
    %cst_88 = arith.constant dense<0xFF800000> : vector<8x8xf32>
    %218 = vector.multi_reduction <maximumf>, %217, %cst_88 [2] : vector<8x8x8xf32> to vector<8x8xf32>
    %219 = vector.shape_cast %218 : vector<8x8xf32> to vector<8x8x1xf32>
    %220 = vector.broadcast %219 : vector<8x8x1xf32> to vector<8x8x8xf32>
    %221 = arith.subf %217, %220 : vector<8x8x8xf32>
    %222 = math.exp %221 : vector<8x8x8xf32>
    %cst_89 = arith.constant dense<0.000000e+00> : vector<8x8xf32>
    %223 = vector.multi_reduction <add>, %222, %cst_89 [2] : vector<8x8x8xf32> to vector<8x8xf32>
    %224 = vector.shape_cast %223 : vector<8x8xf32> to vector<8x8x1xf32>
    %225 = tpu.reciprocal %224 {approx = true} : vector<8x8x1xf32> -> vector<8x8x1xf32>
    %226 = vector.broadcast %225 : vector<8x8x1xf32> to vector<8x8x8xf32>
    %227 = arith.mulf %222, %226 : vector<8x8x8xf32>
    "tpu.trace_start"() <{level = 10 : i32, message = "gnm,gmd->gnd"}> : () -> ()
    %cst_90 = arith.constant dense<0.000000e+00> : vector<8x8x32xf32>
    %228 = tpu.matmul %227, %216, %cst_90 {dimension_numbers = #tpu.dot_dimension_numbers<[2], [1], [1], [2], [0, 0, 0, 1, 1, 2], [0], [0]>} : vector<8x8x8xf32>, vector<8x8x32xf32>, vector<8x8x32xf32> -> vector<8x8x32xf32>
    "tpu.trace_stop"() : () -> ()
    %229 = vector.shape_cast %228 : vector<8x8x32xf32> to vector<64x32xf32>
    %230 = vector.extract_strided_slice %210 {offsets = [0, 0, 0], sizes = [1, 32, 128], strides = [1, 1, 1]} : vector<4x32x128xf32> to vector<1x32x128xf32>
    %231 = vector.shape_cast %230 : vector<1x32x128xf32> to vector<32x128xf32>
    %cst_91 = arith.constant dense<0.000000e+00> : vector<64x128xf32>
    %232 = tpu.matmul %229, %231, %cst_91 {dimension_numbers = #tpu.dot_dimension_numbers<[1], [0], [0], [1], [0, 0, 1, 1], [], []>} : vector<64x32xf32>, vector<32x128xf32>, vector<64x128xf32> -> vector<64x128xf32>
    %233 = vector.extract_strided_slice %208 {offsets = [0, 32], sizes = [64, 32], strides = [1, 1]} : vector<64x384xf32> to vector<64x32xf32>
    %234 = vector.extract_strided_slice %208 {offsets = [0, 160], sizes = [64, 32], strides = [1, 1]} : vector<64x384xf32> to vector<64x32xf32>
    %235 = vector.extract_strided_slice %208 {offsets = [0, 288], sizes = [64, 32], strides = [1, 1]} : vector<64x384xf32> to vector<64x32xf32>
    %236 = vector.shape_cast %233 : vector<64x32xf32> to vector<8x8x32xf32>
    %237 = vector.shape_cast %234 : vector<64x32xf32> to vector<8x8x32xf32>
    %238 = vector.shape_cast %235 : vector<64x32xf32> to vector<8x8x32xf32>
    "tpu.trace_start"() <{level = 10 : i32, message = "gnd,gmd->gnm"}> : () -> ()
    %cst_92 = arith.constant dense<0.000000e+00> : vector<8x8x8xf32>
    %239 = tpu.matmul %236, %237, %cst_92 {dimension_numbers = #tpu.dot_dimension_numbers<[2], [2], [1], [1], [0, 0, 0, 1, 1, 1], [0], [0]>} : vector<8x8x32xf32>, vector<8x8x32xf32>, vector<8x8x8xf32> -> vector<8x8x8xf32>
    "tpu.trace_stop"() : () -> ()
    %cst_93 = arith.constant dense<0xFF800000> : vector<8x8xf32>
    %240 = vector.multi_reduction <maximumf>, %239, %cst_93 [2] : vector<8x8x8xf32> to vector<8x8xf32>
    %241 = vector.shape_cast %240 : vector<8x8xf32> to vector<8x8x1xf32>
    %242 = vector.broadcast %241 : vector<8x8x1xf32> to vector<8x8x8xf32>
    %243 = arith.subf %239, %242 : vector<8x8x8xf32>
    %244 = math.exp %243 : vector<8x8x8xf32>
    %cst_94 = arith.constant dense<0.000000e+00> : vector<8x8xf32>
    %245 = vector.multi_reduction <add>, %244, %cst_94 [2] : vector<8x8x8xf32> to vector<8x8xf32>
    %246 = vector.shape_cast %245 : vector<8x8xf32> to vector<8x8x1xf32>
    %247 = tpu.reciprocal %246 {approx = true} : vector<8x8x1xf32> -> vector<8x8x1xf32>
    %248 = vector.broadcast %247 : vector<8x8x1xf32> to vector<8x8x8xf32>
    %249 = arith.mulf %244, %248 : vector<8x8x8xf32>
    "tpu.trace_start"() <{level = 10 : i32, message = "gnm,gmd->gnd"}> : () -> ()
    %cst_95 = arith.constant dense<0.000000e+00> : vector<8x8x32xf32>
    %250 = tpu.matmul %249, %238, %cst_95 {dimension_numbers = #tpu.dot_dimension_numbers<[2], [1], [1], [2], [0, 0, 0, 1, 1, 2], [0], [0]>} : vector<8x8x8xf32>, vector<8x8x32xf32>, vector<8x8x32xf32> -> vector<8x8x32xf32>
    "tpu.trace_stop"() : () -> ()
    %251 = vector.shape_cast %250 : vector<8x8x32xf32> to vector<64x32xf32>
    %252 = vector.extract_strided_slice %210 {offsets = [1, 0, 0], sizes = [1, 32, 128], strides = [1, 1, 1]} : vector<4x32x128xf32> to vector<1x32x128xf32>
    %253 = vector.shape_cast %252 : vector<1x32x128xf32> to vector<32x128xf32>
    %cst_96 = arith.constant dense<0.000000e+00> : vector<64x128xf32>
    %254 = tpu.matmul %251, %253, %cst_96 {dimension_numbers = #tpu.dot_dimension_numbers<[1], [0], [0], [1], [0, 0, 1, 1], [], []>} : vector<64x32xf32>, vector<32x128xf32>, vector<64x128xf32> -> vector<64x128xf32>
    %255 = arith.addf %232, %254 : vector<64x128xf32>
    %256 = vector.extract_strided_slice %208 {offsets = [0, 64], sizes = [64, 32], strides = [1, 1]} : vector<64x384xf32> to vector<64x32xf32>
    %257 = vector.extract_strided_slice %208 {offsets = [0, 192], sizes = [64, 32], strides = [1, 1]} : vector<64x384xf32> to vector<64x32xf32>
    %258 = vector.extract_strided_slice %208 {offsets = [0, 320], sizes = [64, 32], strides = [1, 1]} : vector<64x384xf32> to vector<64x32xf32>
    %259 = vector.shape_cast %256 : vector<64x32xf32> to vector<8x8x32xf32>
    %260 = vector.shape_cast %257 : vector<64x32xf32> to vector<8x8x32xf32>
    %261 = vector.shape_cast %258 : vector<64x32xf32> to vector<8x8x32xf32>
    "tpu.trace_start"() <{level = 10 : i32, message = "gnd,gmd->gnm"}> : () -> ()
    %cst_97 = arith.constant dense<0.000000e+00> : vector<8x8x8xf32>
    %262 = tpu.matmul %259, %260, %cst_97 {dimension_numbers = #tpu.dot_dimension_numbers<[2], [2], [1], [1], [0, 0, 0, 1, 1, 1], [0], [0]>} : vector<8x8x32xf32>, vector<8x8x32xf32>, vector<8x8x8xf32> -> vector<8x8x8xf32>
    "tpu.trace_stop"() : () -> ()
    %cst_98 = arith.constant dense<0xFF800000> : vector<8x8xf32>
    %263 = vector.multi_reduction <maximumf>, %262, %cst_98 [2] : vector<8x8x8xf32> to vector<8x8xf32>
    %264 = vector.shape_cast %263 : vector<8x8xf32> to vector<8x8x1xf32>
    %265 = vector.broadcast %264 : vector<8x8x1xf32> to vector<8x8x8xf32>
    %266 = arith.subf %262, %265 : vector<8x8x8xf32>
    %267 = math.exp %266 : vector<8x8x8xf32>
    %cst_99 = arith.constant dense<0.000000e+00> : vector<8x8xf32>
    %268 = vector.multi_reduction <add>, %267, %cst_99 [2] : vector<8x8x8xf32> to vector<8x8xf32>
    %269 = vector.shape_cast %268 : vector<8x8xf32> to vector<8x8x1xf32>
    %270 = tpu.reciprocal %269 {approx = true} : vector<8x8x1xf32> -> vector<8x8x1xf32>
    %271 = vector.broadcast %270 : vector<8x8x1xf32> to vector<8x8x8xf32>
    %272 = arith.mulf %267, %271 : vector<8x8x8xf32>
    "tpu.trace_start"() <{level = 10 : i32, message = "gnm,gmd->gnd"}> : () -> ()
    %cst_100 = arith.constant dense<0.000000e+00> : vector<8x8x32xf32>
    %273 = tpu.matmul %272, %261, %cst_100 {dimension_numbers = #tpu.dot_dimension_numbers<[2], [1], [1], [2], [0, 0, 0, 1, 1, 2], [0], [0]>} : vector<8x8x8xf32>, vector<8x8x32xf32>, vector<8x8x32xf32> -> vector<8x8x32xf32>
    "tpu.trace_stop"() : () -> ()
    %274 = vector.shape_cast %273 : vector<8x8x32xf32> to vector<64x32xf32>
    %275 = vector.extract_strided_slice %210 {offsets = [2, 0, 0], sizes = [1, 32, 128], strides = [1, 1, 1]} : vector<4x32x128xf32> to vector<1x32x128xf32>
    %276 = vector.shape_cast %275 : vector<1x32x128xf32> to vector<32x128xf32>
    %cst_101 = arith.constant dense<0.000000e+00> : vector<64x128xf32>
    %277 = tpu.matmul %274, %276, %cst_101 {dimension_numbers = #tpu.dot_dimension_numbers<[1], [0], [0], [1], [0, 0, 1, 1], [], []>} : vector<64x32xf32>, vector<32x128xf32>, vector<64x128xf32> -> vector<64x128xf32>
    %278 = arith.addf %255, %277 : vector<64x128xf32>
    %279 = vector.extract_strided_slice %208 {offsets = [0, 96], sizes = [64, 32], strides = [1, 1]} : vector<64x384xf32> to vector<64x32xf32>
    %280 = vector.extract_strided_slice %208 {offsets = [0, 224], sizes = [64, 32], strides = [1, 1]} : vector<64x384xf32> to vector<64x32xf32>
    %281 = vector.extract_strided_slice %208 {offsets = [0, 352], sizes = [64, 32], strides = [1, 1]} : vector<64x384xf32> to vector<64x32xf32>
    %282 = vector.shape_cast %279 : vector<64x32xf32> to vector<8x8x32xf32>
    %283 = vector.shape_cast %280 : vector<64x32xf32> to vector<8x8x32xf32>
    %284 = vector.shape_cast %281 : vector<64x32xf32> to vector<8x8x32xf32>
    "tpu.trace_start"() <{level = 10 : i32, message = "gnd,gmd->gnm"}> : () -> ()
    %cst_102 = arith.constant dense<0.000000e+00> : vector<8x8x8xf32>
    %285 = tpu.matmul %282, %283, %cst_102 {dimension_numbers = #tpu.dot_dimension_numbers<[2], [2], [1], [1], [0, 0, 0, 1, 1, 1], [0], [0]>} : vector<8x8x32xf32>, vector<8x8x32xf32>, vector<8x8x8xf32> -> vector<8x8x8xf32>
    "tpu.trace_stop"() : () -> ()
    %cst_103 = arith.constant dense<0xFF800000> : vector<8x8xf32>
    %286 = vector.multi_reduction <maximumf>, %285, %cst_103 [2] : vector<8x8x8xf32> to vector<8x8xf32>
    %287 = vector.shape_cast %286 : vector<8x8xf32> to vector<8x8x1xf32>
    %288 = vector.broadcast %287 : vector<8x8x1xf32> to vector<8x8x8xf32>
    %289 = arith.subf %285, %288 : vector<8x8x8xf32>
    %290 = math.exp %289 : vector<8x8x8xf32>
    %cst_104 = arith.constant dense<0.000000e+00> : vector<8x8xf32>
    %291 = vector.multi_reduction <add>, %290, %cst_104 [2] : vector<8x8x8xf32> to vector<8x8xf32>
    %292 = vector.shape_cast %291 : vector<8x8xf32> to vector<8x8x1xf32>
    %293 = tpu.reciprocal %292 {approx = true} : vector<8x8x1xf32> -> vector<8x8x1xf32>
    %294 = vector.broadcast %293 : vector<8x8x1xf32> to vector<8x8x8xf32>
    %295 = arith.mulf %290, %294 : vector<8x8x8xf32>
    "tpu.trace_start"() <{level = 10 : i32, message = "gnm,gmd->gnd"}> : () -> ()
    %cst_105 = arith.constant dense<0.000000e+00> : vector<8x8x32xf32>
    %296 = tpu.matmul %295, %284, %cst_105 {dimension_numbers = #tpu.dot_dimension_numbers<[2], [1], [1], [2], [0, 0, 0, 1, 1, 2], [0], [0]>} : vector<8x8x8xf32>, vector<8x8x32xf32>, vector<8x8x32xf32> -> vector<8x8x32xf32>
    "tpu.trace_stop"() : () -> ()
    %297 = vector.shape_cast %296 : vector<8x8x32xf32> to vector<64x32xf32>
    %298 = vector.extract_strided_slice %210 {offsets = [3, 0, 0], sizes = [1, 32, 128], strides = [1, 1, 1]} : vector<4x32x128xf32> to vector<1x32x128xf32>
    %299 = vector.shape_cast %298 : vector<1x32x128xf32> to vector<32x128xf32>
    %cst_106 = arith.constant dense<0.000000e+00> : vector<64x128xf32>
    %300 = tpu.matmul %297, %299, %cst_106 {dimension_numbers = #tpu.dot_dimension_numbers<[1], [0], [0], [1], [0, 0, 1, 1], [], []>} : vector<64x32xf32>, vector<32x128xf32>, vector<64x128xf32> -> vector<64x128xf32>
    %301 = arith.addf %278, %300 : vector<64x128xf32>
    %c1_107 = arith.constant 1 : index
    %c0_108 = arith.constant 0 : index
    %c0_109 = arith.constant 0 : index
    %302 = vector.load %arg6[%c1_107, %c0_108, %c0_109] : memref<2x1x128xf32, #tpu.memory_space<vmem>>, vector<1x1x128xf32>
    %303 = vector.shape_cast %302 : vector<1x1x128xf32> to vector<1x128xf32>
    %304 = vector.broadcast %303 : vector<1x128xf32> to vector<64x128xf32>
    %305 = arith.addf %301, %304 : vector<64x128xf32>
    %306 = vector.shape_cast %305 : vector<64x128xf32> to vector<8x8x128xf32>
    %307 = arith.addf %178, %306 : vector<8x8x128xf32>
    %308 = vector.shape_cast %307 : vector<8x8x128xf32> to vector<64x128xf32>
    %c1_110 = arith.constant 1 : index
    %c0_111 = arith.constant 0 : index
    %c0_112 = arith.constant 0 : index
    %309 = vector.load %arg7[%c1_110, %c0_111, %c0_112] : memref<2x1x128xf32, #tpu.memory_space<vmem>>, vector<1x1x128xf32>
    %310 = vector.shape_cast %309 : vector<1x1x128xf32> to vector<1x128xf32>
    %c1_113 = arith.constant 1 : index
    %c0_114 = arith.constant 0 : index
    %c0_115 = arith.constant 0 : index
    %311 = vector.load %arg8[%c1_113, %c0_114, %c0_115] : memref<2x1x128xf32, #tpu.memory_space<vmem>>, vector<1x1x128xf32>
    %312 = vector.shape_cast %311 : vector<1x1x128xf32> to vector<1x128xf32>
    %cst_116 = arith.constant dense<0.000000e+00> : vector<64xf32>
    %313 = vector.multi_reduction <add>, %308, %cst_116 [1] : vector<64x128xf32> to vector<64xf32>
    %314 = vector.shape_cast %313 : vector<64xf32> to vector<64x1xf32>
    %cst_117 = arith.constant 1.280000e+02 : f32
    %315 = vector.broadcast %cst_117 : f32 to vector<64x1xf32>
    %316 = arith.divf %314, %315 : vector<64x1xf32>
    %317 = vector.broadcast %316 : vector<64x1xf32> to vector<64x128xf32>
    %318 = arith.subf %308, %317 : vector<64x128xf32>
    %319 = arith.mulf %318, %318 : vector<64x128xf32>
    %cst_118 = arith.constant dense<0.000000e+00> : vector<64xf32>
    %320 = vector.multi_reduction <add>, %319, %cst_118 [1] : vector<64x128xf32> to vector<64xf32>
    %321 = vector.shape_cast %320 : vector<64xf32> to vector<64x1xf32>
    %cst_119 = arith.constant 1.280000e+02 : f32
    %322 = vector.broadcast %cst_119 : f32 to vector<64x1xf32>
    %323 = arith.divf %321, %322 : vector<64x1xf32>
    %324 = vector.broadcast %316 : vector<64x1xf32> to vector<64x128xf32>
    %325 = arith.subf %308, %324 : vector<64x128xf32>
    %cst_120 = arith.constant 9.99999974E-6 : f32
    %326 = vector.broadcast %cst_120 : f32 to vector<64x1xf32>
    %327 = arith.addf %323, %326 : vector<64x1xf32>
    %328 = math.rsqrt %327 : vector<64x1xf32>
    %329 = vector.broadcast %328 : vector<64x1xf32> to vector<64x128xf32>
    %330 = arith.mulf %325, %329 : vector<64x128xf32>
    %331 = vector.broadcast %310 : vector<1x128xf32> to vector<64x128xf32>
    %332 = arith.mulf %330, %331 : vector<64x128xf32>
    %333 = vector.broadcast %312 : vector<1x128xf32> to vector<64x128xf32>
    %334 = arith.addf %332, %333 : vector<64x128xf32>
    %c1_121 = arith.constant 1 : index
    %c0_122 = arith.constant 0 : index
    %c0_123 = arith.constant 0 : index
    %335 = vector.load %arg9[%c1_121, %c0_122, %c0_123] : memref<2x128x256xf32, #tpu.memory_space<vmem>>, vector<1x128x256xf32>
    %336 = vector.shape_cast %335 : vector<1x128x256xf32> to vector<128x256xf32>
    %cst_124 = arith.constant dense<0.000000e+00> : vector<64x256xf32>
    %337 = tpu.matmul %334, %336, %cst_124 {dimension_numbers = #tpu.dot_dimension_numbers<[1], [0], [0], [1], [0, 0, 1, 1], [], []>} : vector<64x128xf32>, vector<128x256xf32>, vector<64x256xf32> -> vector<64x256xf32>
    %c1_125 = arith.constant 1 : index
    %c0_126 = arith.constant 0 : index
    %c0_127 = arith.constant 0 : index
    %338 = vector.load %arg10[%c1_125, %c0_126, %c0_127] : memref<2x1x256xf32, #tpu.memory_space<vmem>>, vector<1x1x256xf32>
    %339 = vector.shape_cast %338 : vector<1x1x256xf32> to vector<1x256xf32>
    %340 = vector.broadcast %339 : vector<1x256xf32> to vector<64x256xf32>
    %341 = arith.addf %337, %340 : vector<64x256xf32>
    %342 = arith.negf %341 : vector<64x256xf32>
    %343 = math.exp %342 : vector<64x256xf32>
    %cst_128 = arith.constant 1.000000e+00 : f32
    %344 = vector.broadcast %cst_128 : f32 to vector<64x256xf32>
    %345 = arith.addf %344, %343 : vector<64x256xf32>
    %346 = arith.divf %344, %345 : vector<64x256xf32>
    %347 = arith.mulf %341, %346 : vector<64x256xf32>
    %c1_129 = arith.constant 1 : index
    %c0_130 = arith.constant 0 : index
    %c0_131 = arith.constant 0 : index
    %348 = vector.load %arg11[%c1_129, %c0_130, %c0_131] : memref<2x256x128xf32, #tpu.memory_space<vmem>>, vector<1x256x128xf32>
    %349 = vector.shape_cast %348 : vector<1x256x128xf32> to vector<256x128xf32>
    %cst_132 = arith.constant dense<0.000000e+00> : vector<64x128xf32>
    %350 = tpu.matmul %347, %349, %cst_132 {dimension_numbers = #tpu.dot_dimension_numbers<[1], [0], [0], [1], [0, 0, 1, 1], [], []>} : vector<64x256xf32>, vector<256x128xf32>, vector<64x128xf32> -> vector<64x128xf32>
    %c1_133 = arith.constant 1 : index
    %c0_134 = arith.constant 0 : index
    %c0_135 = arith.constant 0 : index
    %351 = vector.load %arg12[%c1_133, %c0_134, %c0_135] : memref<2x1x128xf32, #tpu.memory_space<vmem>>, vector<1x1x128xf32>
    %352 = vector.shape_cast %351 : vector<1x1x128xf32> to vector<1x128xf32>
    %353 = vector.broadcast %352 : vector<1x128xf32> to vector<64x128xf32>
    %354 = arith.addf %350, %353 : vector<64x128xf32>
    %355 = arith.addf %308, %354 : vector<64x128xf32>
    %356 = vector.shape_cast %355 : vector<64x128xf32> to vector<8x8x128xf32>
    %c0_136 = arith.constant 0 : index
    %c0_137 = arith.constant 0 : index
    %c0_138 = arith.constant 0 : index
    %357 = vector.load %arg13[%c0_136, %c0_137, %c0_138] : memref<8x8x128xf32, #tpu.memory_space<vmem>>, vector<8x8x128xf32>
    tpu.vector_store %arg13[%c0_136, %c0_137, %c0_138], %356 {strides = array<i32>} : memref<8x8x128xf32, #tpu.memory_space<vmem>>, vector<8x8x128xf32>,
    return
  }
  func.func @transform_0(%arg0: i32) -> (i32, i32, i32) {
    %c0_i32 = arith.constant 0 : i32
    %c0_i32_0 = arith.constant 0 : i32
    %c0_i32_1 = arith.constant 0 : i32
    return %arg0, %c0_i32, %c0_i32_0 : i32, i32, i32
  }
  func.func @transform_1(%arg0: i32) -> (i32, i32, i32) {
    %c0_i32 = arith.constant 0 : i32
    %c0_i32_0 = arith.constant 0 : i32
    %c0_i32_1 = arith.constant 0 : i32
    %c0_i32_2 = arith.constant 0 : i32
    return %c0_i32, %c0_i32_0, %c0_i32_1 : i32, i32, i32
  }
  func.func @transform_2(%arg0: i32) -> (i32, i32, i32) {
    %c0_i32 = arith.constant 0 : i32
    %c0_i32_0 = arith.constant 0 : i32
    %c0_i32_1 = arith.constant 0 : i32
    %c0_i32_2 = arith.constant 0 : i32
    return %c0_i32, %c0_i32_0, %c0_i32_1 : i32, i32, i32
  }
  func.func @transform_3(%arg0: i32) -> (i32, i32, i32) {
    %c0_i32 = arith.constant 0 : i32
    %c0_i32_0 = arith.constant 0 : i32
    %c0_i32_1 = arith.constant 0 : i32
    %c0_i32_2 = arith.constant 0 : i32
    return %c0_i32, %c0_i32_0, %c0_i32_1 : i32, i32, i32
  }
  func.func @transform_4(%arg0: i32) -> (i32, i32, i32, i32) {
    %c0_i32 = arith.constant 0 : i32
    %c0_i32_0 = arith.constant 0 : i32
    %c0_i32_1 = arith.constant 0 : i32
    %c0_i32_2 = arith.constant 0 : i32
    %c0_i32_3 = arith.constant 0 : i32
    return %c0_i32, %c0_i32_0, %c0_i32_1, %c0_i32_2 : i32, i32, i32, i32
  }
  func.func @transform_5(%arg0: i32) -> (i32, i32, i32) {
    %c0_i32 = arith.constant 0 : i32
    %c0_i32_0 = arith.constant 0 : i32
    %c0_i32_1 = arith.constant 0 : i32
    %c0_i32_2 = arith.constant 0 : i32
    return %c0_i32, %c0_i32_0, %c0_i32_1 : i32, i32, i32
  }
  func.func @transform_6(%arg0: i32) -> (i32, i32, i32) {
    %c0_i32 = arith.constant 0 : i32
    %c0_i32_0 = arith.constant 0 : i32
    %c0_i32_1 = arith.constant 0 : i32
    %c0_i32_2 = arith.constant 0 : i32
    return %c0_i32, %c0_i32_0, %c0_i32_1 : i32, i32, i32
  }
  func.func @transform_7(%arg0: i32) -> (i32, i32, i32) {
    %c0_i32 = arith.constant 0 : i32
    %c0_i32_0 = arith.constant 0 : i32
    %c0_i32_1 = arith.constant 0 : i32
    %c0_i32_2 = arith.constant 0 : i32
    return %c0_i32, %c0_i32_0, %c0_i32_1 : i32, i32, i32
  }
  func.func @transform_8(%arg0: i32) -> (i32, i32, i32) {
    %c0_i32 = arith.constant 0 : i32
    %c0_i32_0 = arith.constant 0 : i32
    %c0_i32_1 = arith.constant 0 : i32
    %c0_i32_2 = arith.constant 0 : i32
    return %c0_i32, %c0_i32_0, %c0_i32_1 : i32, i32, i32
  }
  func.func @transform_9(%arg0: i32) -> (i32, i32, i32) {
    %c0_i32 = arith.constant 0 : i32
    %c0_i32_0 = arith.constant 0 : i32
    %c0_i32_1 = arith.constant 0 : i32
    %c0_i32_2 = arith.constant 0 : i32
    return %c0_i32, %c0_i32_0, %c0_i32_1 : i32, i32, i32
  }
  func.func @transform_10(%arg0: i32) -> (i32, i32, i32) {
    %c0_i32 = arith.constant 0 : i32
    %c0_i32_0 = arith.constant 0 : i32
    %c0_i32_1 = arith.constant 0 : i32
    %c0_i32_2 = arith.constant 0 : i32
    return %c0_i32, %c0_i32_0, %c0_i32_1 : i32, i32, i32
  }
  func.func @transform_11(%arg0: i32) -> (i32, i32, i32) {
    %c0_i32 = arith.constant 0 : i32
    %c0_i32_0 = arith.constant 0 : i32
    %c0_i32_1 = arith.constant 0 : i32
    %c0_i32_2 = arith.constant 0 : i32
    return %c0_i32, %c0_i32_0, %c0_i32_1 : i32, i32, i32
  }
  func.func @transform_12(%arg0: i32) -> (i32, i32, i32) {
    %c0_i32 = arith.constant 0 : i32
    %c0_i32_0 = arith.constant 0 : i32
    %c0_i32_1 = arith.constant 0 : i32
    return %arg0, %c0_i32, %c0_i32_0 : i32, i32, i32
  }
}

</mosaic_0001>

<bundles_post_ra>
// kernel: tpu_custom_call.1
= control target key start
LH: loop header
LB: loop body
LE: loop exit
PB: predicated region body
PF: predicated region fallthrough
CT: control target
= control target key end

     0   :  { %17 = vsyncpa [#allocation3], 0  ;;  %s10471_s0 = inlined_call_operand.hbm [shape: f32[8,8,128], index: 0, kind: input, shape index: {}]   ;;  %s10472_s1 = inlined_call_operand.hbm [shape: f32[2,1,128], index: 1, kind: input, shape index: {}]   ;;  %s10473_s2 = inlined_call_operand.hbm [shape: f32[2,1,128], index: 2, kind: input, shape index: {}]   ;;  %s10474_s3 = inlined_call_operand.hbm [shape: f32[2,128,384], index: 3, kind: input, shape index: {}]   ;;  %s10475_s4 = inlined_call_operand.hbm [shape: f32[2,4,32,128], index: 4, kind: input, shape index: {}]   ;;  %s10476_s5 = inlined_call_operand.vmem [shape: f32[2,1,128], index: 5, kind: input, shape index: {}]   ;;  %s10477_s6 = inlined_call_operand.hbm [shape: f32[2,1,128], index: 6, kind: input, shape index: {}]   ;;  %s10478_s7 = inlined_call_operand.hbm [shape: f32[2,1,128], index: 7, kind: input, shape index: {}]   ;;  %s10479_s8 = inlined_call_operand.hbm [shape: f32[2,128,256], index: 8, kind: input, shape index: {}]   ;;  %s10480_s9 = inlined_call_operand.vmem [shape: f32[2,1,256], index: 9, kind: input, shape index: {}]   ;;  %s10481_s10 = inlined_call_operand.hbm [shape: f32[2,256,128], index: 10, kind: input, shape index: {}]   ;;  %s10482_s11 = inlined_call_operand.vmem [shape: f32[2,1,128], index: 11, kind: input, shape index: {}]   ;;  %s10483_s12 = inlined_call_operand.hbm [shape: f32[8,8,128], index: 12, kind: output, shape index: {}]  }
   0x1   :  { %18 = vsyncpa [#allocation6], 0 }
   0x2   :  { %19 = vsyncpa [#allocation9], 0 }
   0x3   :  { %20 = vsyncpa [#allocation12], 0 }
   0x4   :  { %21 = vsyncpa [#allocation15], 0  ;;  %s40_s23 = sshll.u32 %s10472_s1, 4  ;;  %s41_s23 = int_to_ptr.hbm [resolvable:$true] %s40_s23 }
   0x5   :  { %22 = vsyncpa [#allocation4], 0  ;;  %s8314_s24 = smov [#allocation5]   ;;  %s66_s28 = sshll.u32 %s10474_s3, 4  ;;  %s67_s28 = int_to_ptr.hbm [resolvable:$true] %s66_s28 }
   0x6   :  { %s42_s25 = sshll.u32 %s8314_s24, 4  ;;  %s8315_s29 = smov 16   ;;  %s43_s25 = int_to_ptr.vmem [resolvable:$true] %s42_s25 }
   0x7   :  { %s8316_s30 = smov 1   ;;  %s8317_s13 = smov [#allocation8]  }
   0x8   :  { %48 = dma.hbm_to_vmem [thread:$0]  %s41_s23, 32, %s43_s25, [#allocation6], %s8315_s29, %s8315_s29, %s8316_s30  }
   0x9   :  { %s68_s14 = sshll.u32 %s8317_s13, 4  ;;  %s8318_s1 = smov 384   ;;  %s69_s14 = int_to_ptr.vmem [resolvable:$true] %s68_s14 }
   0xa   :  { %s8319_s15 = smov 24   ;;  %s94_s18 = sshll.u32 %s10477_s6, 4  ;;  %s95_s18 = int_to_ptr.hbm [resolvable:$true] %s94_s18 }
   0xb   :  { %74 = dma.hbm_to_vmem [thread:$0]  %s67_s28, 12288, %s69_s14, [#allocation9], %s8318_s1, %s8318_s1, %s8319_s15  }
   0xc   :  { %s8320_s19 = smov [#allocation11]   ;;  %s120_s22 = sshll.u32 %s10479_s8, 4  ;;  %s121_s22 = int_to_ptr.hbm [resolvable:$true] %s120_s22 }
   0xd   :  { %s96_s3 = sshll.u32 %s8320_s19, 4  ;;  %s8321_s23 = smov [#allocation14]   ;;  %s97_s3 = int_to_ptr.vmem [resolvable:$true] %s96_s3 }
   0xe   :  { %102 = dma.hbm_to_vmem [thread:$0]  %s95_s18, 32, %s97_s3, [#allocation12], %s8315_s29, %s8315_s29, %s8316_s30  }
   0xf   :  { %s122_s24 = sshll.u32 %s8321_s23, 4  ;;  %s27_s6 = sshll.u32 %s10471_s0, 4  ;;  %s123_s24 = int_to_ptr.vmem [resolvable:$true] %s122_s24  ;;  %s28_s6 = int_to_ptr.hbm [resolvable:$true] %s27_s6 }
  0x10   :  { %s8322_s27 = smov 256   ;;  %s8323_s28 = smov [#allocation2]  }
  0x11   :  { %128 = dma.hbm_to_vmem [thread:$0]  %s121_s22, 8192, %s123_s24, [#allocation15], %s8322_s27, %s8322_s27, %s8315_s29  }
  0x12   :  { %s29_s13 = sshll.u32 %s8323_s28, 4  ;;  %s8324_s8 = smov 128   ;;  %s30_s13 = int_to_ptr.vmem [resolvable:$true] %s29_s13 }
  0x13   :  { %s8325_s14 = smov 8   ;;  %s53_s16 = sshll.u32 %s10473_s2, 4  ;;  %s54_s16 = int_to_ptr.hbm [resolvable:$true] %s53_s16 }
  0x14   :  { %35 = dma.hbm_to_vmem [thread:$0]  %s28_s6, 1024, %s30_s13, [#allocation3], %s8324_s8, %s8324_s8, %s8325_s14  }
  0x15   :  { %s8326_s17 = smov [#allocation7]   ;;  %s79_s3 = sshll.u32 %s10475_s4, 4  ;;  %s80_s3 = int_to_ptr.hbm [resolvable:$true] %s79_s3 }
  0x16   :  { %s55_s0 = sshll.u32 %s8326_s17, 4  ;;  %s8327_s20 = smov [#allocation10]   ;;  %s56_s0 = int_to_ptr.vmem [resolvable:$true] %s55_s0 }
  0x17   :  { %61 = dma.hbm_to_vmem [thread:$0]  %s54_s16, 32, %s56_s0, [#allocation6], %s8315_s29, %s8315_s29, %s8316_s30  }
  0x18   :  { %s81_s21 = sshll.u32 %s8327_s20, 4  ;;  %s107_s24 = sshll.u32 %s10478_s7, 4  ;;  %s82_s21 = int_to_ptr.vmem [resolvable:$true] %s81_s21  ;;  %s108_s24 = int_to_ptr.hbm [resolvable:$true] %s107_s24 }
  0x19   :  { %87 = dma.hbm_to_vmem [thread:$0]  %s80_s3, 4096, %s82_s21, [#allocation9], %s8324_s8, %s8324_s8, %s8325_s14  }
  0x1a   :  { %s135_s4 = sshll.u32 %s10481_s10, 4  ;;  %s8328_s26 = smov [#allocation13]   ;;  %s136_s4 = int_to_ptr.hbm [resolvable:$true] %s135_s4 }
  0x1b   :  { %s109_s6 = sshll.u32 %s8328_s26, 4  ;;  %s8329_s27 = smov [#allocation16]   ;;  %s110_s6 = int_to_ptr.vmem [resolvable:$true] %s109_s6 }
  0x1c   :  { %115 = dma.hbm_to_vmem [thread:$0]  %s108_s24, 32, %s110_s6, [#allocation12], %s8315_s29, %s8315_s29, %s8316_s30  }
  0x1d   :  { %s137_s7 = sshll.u32 %s8329_s27, 4  ;;  %s138_s7 = int_to_ptr.vmem [resolvable:$true] %s137_s7 }
  0x1e   :  { %143 = dma.hbm_to_vmem [thread:$0]  %s136_s4, 8192, %s138_s7, [#allocation15], %s8324_s8, %s8324_s8, %s8325_s14  }
  0x1f   :  { %8302 = dma.done.wait [#allocation3], 1024  }
  0x20   :  { %8303 = vsyncadd [#allocation3], 4294966272 }
  0x21   :  { %8304 = dma.done.wait [#allocation6], 64  }
  0x22   :  { %8305 = vsyncadd [#allocation6], 4294967232 }
  0x23   :  { %8306 = dma.done.wait [#allocation9], 16384  }
  0x24   :  { %8307 = vsyncadd [#allocation9], 4294950912 }
  0x25   :  { %8308 = dma.done.wait [#allocation12], 64  }
  0x26   :  { %8309 = vsyncadd [#allocation12], 4294967232 }
  0x27   :  { %8310 = dma.done.wait [#allocation15], 16384  }
  0x28   :  { %8311 = vsyncadd [#allocation15], 4294950912  ;;  %v186_v0 = vld [vmem:[#allocation2 + $0x20] sm:$0xff]  ;;  %v184_v1 = vld [vmem:[#allocation2 + $0x10] sm:$0xff]  ;;  %v8330_v7 = vmov 128.0   ;;  %s8331_s10 = smov 96  }
  0x29   :  { %v182_v2 = vld [vmem:[#allocation2] sm:$0xff]  ;;  %200 = vadd.xlane.f32.xlu2 %v186_v0  ;;  %196 = vadd.xlane.f32.xlu1 %v184_v1  ;;  %v187_v3 = vld [vmem:[#allocation2 + $0x28] sm:$0xff]  ;;  %v185_v4 = vld [vmem:[#allocation2 + $0x18] sm:$0xff]  ;;  %7604 = vrcp.f32 %v8330_v7  ;;  %s8332_s29 = smov 64   ;;  %s8333_s30 = smov 32  }
  0x2a   :  { %192 = vadd.xlane.f32.xlu0 %v182_v2  ;;  %v183_v5 = vld [vmem:[#allocation2 + $0x8] sm:$0xff]  ;;  %v188_v6 = vld [vmem:[#allocation2 + $0x30] sm:$0xff]  ;;  %v428_v18 = vld [vmem:[#allocation8 + $0x178] sm:$0xff]  ;;  %s7154_s23 = sshll.u32 %s10483_s12, 4  ;;  %s7155_s23 = int_to_ptr.hbm [resolvable:$true] %s7154_s23 }
  0x2b   :  { %v426_v16 = vld [vmem:[#allocation8 + $0x168] sm:$0xff]  ;;  %v427_v17 = vld [vmem:[#allocation8 + $0x170] sm:$0xff]  ;;  %v424_v22 = vld [vmem:[#allocation8 + $0x158] sm:$0xff]  ;;  %511 = vmatpush.msra.mxu2 %v428_v18 }
  0x2c   :  { %429 = vmatpush.msra.mxu0 %v426_v16  ;;  %470 = vmatpush.msra.mxu1 %v427_v17  ;;  %v423_v21 = vld [vmem:[#allocation8 + $0x150] sm:$0xff]  ;;  %v425_v23 = vld [vmem:[#allocation8 + $0x160] sm:$0xff]  ;;  %v420_v49 = vld [vmem:[#allocation8 + $0x138] sm:$0xff] }
  0x2d   :  { %512 = vmatpush.msra.mxu2 %v425_v23  ;;  %v8471_v39 = vld [vmem:[#allocation2 + $0x38] sm:$0xff]  ;;  %v421_v50 = vld [vmem:[#allocation8 + $0x140] sm:$0xff]  ;;  %v422_v51 = vld [vmem:[#allocation8 + $0x148] sm:$0xff] }
  0x2e   :  { %430 = vmatpush.msra.mxu0 %v423_v21  ;;  %471 = vmatpush.msra.mxu1 %v424_v22  ;;  %v417_v52 = vld [vmem:[#allocation8 + $0x120] sm:$0xff]  ;;  %v418_v53 = vld [vmem:[#allocation8 + $0x128] sm:$0xff]  ;;  %v419_v54 = vld [vmem:[#allocation8 + $0x130] sm:$0xff] }
  0x2f   :  { %v7605_v8 = vpop.eup %7604  ;;  %513 = vmatpush.msra.mxu2 %v422_v51  ;;  %v414_v55 = vld [vmem:[#allocation8 + $0x108] sm:$0xff]  ;;  %v415_v56 = vld [vmem:[#allocation8 + $0x110] sm:$0xff]  ;;  %v416_v57 = vld [vmem:[#allocation8 + $0x118] sm:$0xff] }
  0x30   :  { %v209_v9 = vmul.f32 128.0, %v7605_v8  ;;  %vm213_vm0 = vweird.f32 %v7605_v8  ;;  %431 = vmatpush.msra.mxu0 %v420_v49  ;;  %472 = vmatpush.msra.mxu1 %v421_v50  ;;  %v411_v58 = vld [vmem:[#allocation8 + $0xf0] sm:$0xff]  ;;  %v412_v59 = vld [vmem:[#allocation8 + $0xf8] sm:$0xff]  ;;  %v413_v60 = vld [vmem:[#allocation8 + $0x100] sm:$0xff] }
  0x31   :  { %202 = vadd.xlane.f32.xlu2 %v187_v3  ;;  %198 = vadd.xlane.f32.xlu1 %v185_v4  ;;  %v408_v61 = vld [vmem:[#allocation8 + $0xd8] sm:$0xff]  ;;  %v409_v62 = vld [vmem:[#allocation8 + $0xe0] sm:$0xff]  ;;  %v410_v63 = vld [vmem:[#allocation8 + $0xe8] sm:$0xff] }
  0x32   :  { %194 = vadd.xlane.f32.xlu0 %v183_v5  ;;  %v210_v10 = vsub.f32 1.0, %v209_v9  ;;  %432 = vmatpush.msra.mxu0 %v417_v52  ;;  %v400_v7 = vld [vmem:[#allocation8 + $0x98] sm:$0xff]  ;;  %v390_v16 = vld [vmem:[#allocation8 + $0x48] sm:$0xff]  ;;  %v391_v17 = vld [vmem:[#allocation8 + $0x50] sm:$0xff] }
  0x33   :  { %473 = vmatpush.msra.mxu1 %v418_v53  ;;  %514 = vmatpush.msra.mxu2 %v419_v54  ;;  %v396_v9 = vld [vmem:[#allocation8 + $0x78] sm:$0xff]  ;;  %v389_v21 = vld [vmem:[#allocation8 + $0x40] sm:$0xff] }
  0x34   :  { %v211_v11 = vmul.f32 %v7605_v8, %v210_v10  ;;  %433 = vmatpush.msra.mxu0 %v414_v55  ;;  %v397_v10 = vld [vmem:[#allocation8 + $0x80] sm:$0xff]  ;;  %v392_v18 = vld [vmem:[#allocation8 + $0x58] sm:$0xff] }
  0x35   :  { %474 = vmatpush.msra.mxu1 %v415_v56  ;;  %515 = vmatpush.msra.mxu2 %v416_v57  ;;  %v384_v22 = vld [vmem:[#allocation8 + $0x18] sm:$0xff]  ;;  %v385_v23 = vld [vmem:[#allocation8 + $0x20] sm:$0xff] }
  0x36   :  { %v212_v12 = vadd.f32 %v7605_v8, %v211_v11  ;;  %434 = vmatpush.msra.mxu0 %v411_v58  ;;  %v398_v11 = vld [vmem:[#allocation8 + $0x88] sm:$0xff] }
  0x37   :  { %475 = vmatpush.msra.mxu1 %v412_v59  ;;  %516 = vmatpush.msra.mxu2 %v413_v60 }
  0x38   :  { %v8449_v13 = vsel %vm213_vm0, %v7605_v8, %v212_v12  ;;  %435 = vmatpush.msra.mxu0 %v408_v61  ;;  %v401_v8 = vld [vmem:[#allocation8 + $0xa0] sm:$0xff] }
  0x39   :  { %204 = vadd.xlane.f32.xlu1 %v188_v6  ;;  %10492 = vst [vmem:[#allocation24_spill] sm:$0xff] %v8449_v13  ;;  %476 = vmatpush.msra.mxu1 %v409_v62  ;;  %v393_v12 = vld [vmem:[#allocation8 + $0x60] sm:$0xff] }
  0x3a   :  { %517 = vmatpush.msra.mxu2 %v410_v63 }
  0x9c   :  { %v201_v14 = vpop.xlane.xlu2 %200  ;;  %v197_v15 = vpop.xlane.xlu1 %196 }
  0x9d   :  { %v217_v19 = vmul.f32 %v8449_v13, %v197_v15  ;;  %v193_v20 = vpop.xlane.xlu0 %192  ;;  %v219_v35 = vmul.f32 %v8449_v13, %v201_v14  ;;  %v394_v14 = vld [vmem:[#allocation8 + $0x68] sm:$0xff]  ;;  %v395_v15 = vld [vmem:[#allocation8 + $0x70] sm:$0xff] }
  0x9e   :  { %v215_v24 = vmul.f32 %v8449_v13, %v193_v20  ;;  %v388_v20 = vld [vmem:[#allocation8 + $0x38] sm:$0xff] }
  0x9f   :  { %v8453_v25 = vsub.f32 %v184_v1, %v217_v19  ;;  %v8476_v41 = vsub.f32 %v186_v0, %v219_v35  ;;  %v405_v0 = vld [vmem:[#allocation8 + $0xc0] sm:$0xff]  ;;  %v406_v1 = vld [vmem:[#allocation8 + $0xc8] sm:$0xff]  ;;  %v387_v19 = vld [vmem:[#allocation8 + $0x30] sm:$0xff] }
  0xa0   :  { %v8455_v26 = vsub.f32 %v182_v2, %v215_v24  ;;  %v407_v2 = vld [vmem:[#allocation8 + $0xd0] sm:$0xff]  ;;  %436 = vmatpush.msra.mxu0 %v405_v0  ;;  %477 = vmatpush.msra.mxu1 %v406_v1  ;;  %v386_v24 = vld [vmem:[#allocation8 + $0x28] sm:$0xff] }
  0xa1   :  { %v233_v27 = vmul.f32 %v8453_v25, %v8453_v25  ;;  %v235_v44 = vmul.f32 %v8476_v41, %v8476_v41  ;;  %518 = vmatpush.msra.mxu2 %v407_v2 }
  0xa2   :  { %v231_v28 = vmul.f32 %v8455_v26, %v8455_v26 }
  0xa3   :  { %243 = vadd.xlane.f32.xlu1 %v233_v27  ;;  %v381_v27 = vld [vmem:[#allocation8] sm:$0xff] }
  0xa4   :  { %239 = vadd.xlane.f32.xlu0 %v231_v28  ;;  %v203_v29 = vpop.xlane.xlu2 %202  ;;  %v199_v30 = vpop.xlane.xlu1 %198  ;;  %v382_v28 = vld [vmem:[#allocation8 + $0x8] sm:$0xff] }
  0xa5   :  { %v220_v31 = vmul.f32 %v8449_v13, %v203_v29  ;;  %v195_v32 = vpop.xlane.xlu0 %194  ;;  %v218_v37 = vmul.f32 %v8449_v13, %v199_v30  ;;  %v383_v29 = vld [vmem:[#allocation8 + $0x10] sm:$0xff] }
  0xa6   :  { %v216_v33 = vmul.f32 %v8449_v13, %v195_v32 }
  0xa7   :  { %v8463_v34 = vsub.f32 %v187_v3, %v220_v31  ;;  %v8478_v42 = vsub.f32 %v185_v4, %v218_v37  ;;  %v402_v3 = vld [vmem:[#allocation8 + $0xa8] sm:$0xff]  ;;  %v403_v4 = vld [vmem:[#allocation8 + $0xb0] sm:$0xff] }
  0xa8   :  { %v8466_v36 = vsub.f32 %v183_v5, %v216_v33  ;;  %v404_v5 = vld [vmem:[#allocation8 + $0xb8] sm:$0xff]  ;;  %437 = vmatpush.msra.mxu0 %v402_v3  ;;  %478 = vmatpush.msra.mxu1 %v403_v4 }
  0xa9   :  { %v236_v38 = vmul.f32 %v8463_v34, %v8463_v34  ;;  %v234_v45 = vmul.f32 %v8478_v42, %v8478_v42  ;;  %519 = vmatpush.msra.mxu2 %v404_v5  ;;  %v8507_v4 = vld [vmem:[#allocation5] ss:$0 sm:$0xff] }
  0xaa   :  { %v232_v40 = vmul.f32 %v8466_v36, %v8466_v36  ;;  %479 = vmatpush.msra.mxu1 %v400_v7 }
  0xab   :  { %249 = vadd.xlane.f32.xlu1 %v236_v38  ;;  %520 = vmatpush.msra.mxu2 %v401_v8 }
  0xac   :  { %206 = vadd.xlane.f32.xlu0 %v8471_v39  ;;  %241 = vadd.xlane.f32.xlu2 %v232_v40  ;;  %v205_v43 = vpop.xlane.xlu1 %204 }
  0xad   :  { %v221_v46 = vmul.f32 %v8449_v13, %v205_v43  ;;  %480 = vmatpush.msra.mxu1 %v397_v10  ;;  %521 = vmatpush.msra.mxu2 %v398_v11 }
  0xaf   :  { %v8485_v47 = vsub.f32 %v188_v6, %v221_v46  ;;  %v399_v6 = vld [vmem:[#allocation8 + $0x90] sm:$0xff]  ;;  %481 = vmatpush.msra.mxu1 %v394_v14  ;;  %522 = vmatpush.msra.mxu2 %v395_v15 }
  0xb0   :  { %438 = vmatpush.msra.mxu0 %v399_v6 }
  0xb1   :  { %v237_v48 = vmul.f32 %v8485_v47, %v8485_v47  ;;  %482 = vmatpush.msra.mxu1 %v391_v17  ;;  %523 = vmatpush.msra.mxu2 %v392_v18 }
  0xb2   :  { %439 = vmatpush.msra.mxu0 %v396_v9  ;;  %v8513_v9 = vld [vmem:[#allocation7] ss:$0 sm:$0xff] }
  0xb3   :  { %483 = vmatpush.msra.mxu1 %v388_v20  ;;  %524 = vmatpush.msra.mxu2 %v389_v21 }
  0xb4   :  { %247 = vadd.xlane.f32.xlu0 %v235_v44  ;;  %245 = vadd.xlane.f32.xlu2 %v234_v45 }
  0xb5   :  { %440 = vmatpush.msra.mxu0 %v393_v12  ;;  %484 = vmatpush.msra.mxu1 %v385_v23 }
  0xb6   :  { %525 = vmatpush.msra.mxu2 %v386_v24 }
  0xb7   :  { %441 = vmatpush.msra.mxu0 %v390_v16  ;;  %485 = vmatpush.msra.mxu1 %v382_v28 }
  0xb8   :  { %526 = vmatpush.msra.mxu2 %v383_v29 }
  0xb9   :  { %442 = vmatpush.msra.mxu0 %v387_v19 }
  0xbb   :  { %443 = vmatpush.msra.mxu0 %v384_v22 }
  0xbc   :  { %251 = vadd.xlane.f32.xlu2 %v237_v48 }
  0xbd   :  { %444 = vmatpush.msra.mxu0 %v381_v27 }
 0x116   :  { %v244_v30 = vpop.xlane.xlu1 %243 }
 0x117   :  { %v257_v31 = vmul.f32 %v244_v30, %v8449_v13  ;;  %v240_v32 = vpop.xlane.xlu0 %239 }
 0x118   :  { %v255_v33 = vmul.f32 %v240_v32, %v8449_v13 }
 0x119   :  { %v265_v35 = vadd.f32 1e-05, %v257_v31 }
 0x11a   :  { %v263_v37 = vadd.f32 1e-05, %v255_v33 }
 0x11b   :  { %7606 = vrsqrt.f32 %v265_v35  ;;  %vm297_vm6 = vweird.f32 %v265_v35 }
 0x11c   :  { %7608 = vrsqrt.f32 %v263_v37  ;;  %vm277_vm2 = vweird.f32 %v263_v37 }
 0x11e   :  { %v250_v54 = vpop.xlane.xlu1 %249 }
 0x11f   :  { %v242_v38 = vpop.xlane.xlu2 %241  ;;  %v207_v40 = vpop.xlane.xlu0 %206  ;;  %v260_v62 = vmul.f32 %v250_v54, %v8449_v13 }
 0x120   :  { %v256_v43 = vmul.f32 %v242_v38, %v8449_v13  ;;  %v222_v44 = vmul.f32 %v8449_v13, %v207_v40 }
 0x121   :  { %v8493_v45 = vpop.eup %7606  ;;  %v8510_v7 = vadd.f32 1e-05, %v260_v62 }
 0x122   :  { %v7609_v46 = vpop.eup %7608  ;;  %v264_v48 = vadd.f32 1e-05, %v256_v43  ;;  %v8496_v49 = vsub.f32 %v8471_v39, %v222_v44  ;;  %v292_v50 = vmul.f32 %v8493_v45, %v265_v35  ;;  %vm298_vm7 = vweird.f32 %v8493_v45 }
 0x123   :  { %v272_v51 = vmul.f32 %v7609_v46, %v263_v37  ;;  %vm278_vm1 = vweird.f32 %v7609_v46  ;;  %vm8521_vm9 = vmor %vm297_vm6, %vm298_vm7  ;;  %vm327_vm0 = vweird.f32 %v8510_v7 }
 0x124   :  { %7610 = vrsqrt.f32 %v264_v48  ;;  %v238_v52 = vmul.f32 %v8496_v49, %v8496_v49  ;;  %v293_v55 = vmul.f32 %v8493_v45, %v292_v50  ;;  %vm279_vm3 = vmor %vm277_vm2, %vm278_vm1  ;;  %vm287_vm4 = vweird.f32 %v264_v48 }
 0x125   :  { %v273_v53 = vmul.f32 %v7609_v46, %v272_v51 }
 0x126   :  { %253 = vadd.xlane.f32.xlu0 %v238_v52  ;;  %v294_v0 = vmul.f32 0.5, %v293_v55 }
 0x127   :  { %v274_v56 = vmul.f32 0.5, %v273_v53  ;;  %v246_v57 = vpop.xlane.xlu2 %245  ;;  %v248_v58 = vpop.xlane.xlu0 %247 }
 0x128   :  { %v258_v59 = vmul.f32 %v246_v57, %v8449_v13  ;;  %v259_v39 = vmul.f32 %v248_v58, %v8449_v13  ;;  %v295_v10 = vsub.f32 1.5, %v294_v0 }
 0x129   :  { %v275_v60 = vsub.f32 1.5, %v274_v56 }
 0x12a   :  { %v7611_v61 = vpop.eup %7610  ;;  %v266_v63 = vadd.f32 1e-05, %v258_v59  ;;  %v8505_v3 = vadd.f32 1e-05, %v259_v39  ;;  %v296_v19 = vmul.f32 %v8493_v45, %v295_v10 }
 0x12b   :  { %v276_v1 = vmul.f32 %v7609_v46, %v275_v60  ;;  %v282_v2 = vmul.f32 %v7611_v61, %v264_v48  ;;  %vm288_vm5 = vweird.f32 %v7611_v61 }
 0x12c   :  { %7612 = vrsqrt.f32 %v266_v63  ;;  %vm289_vm8 = vmor %vm287_vm4, %vm288_vm5  ;;  %v300_v32 = vsel %vm8521_vm9, %v8493_v45, %v296_v19  ;;  %vm307_vm10 = vweird.f32 %v266_v63  ;;  %vm317_vm13 = vweird.f32 %v8505_v3 }
 0x12d   :  { %v283_v5 = vmul.f32 %v7611_v61, %v282_v2  ;;  %7614 = vrsqrt.f32 %v8505_v3  ;;  %v280_v6 = vsel %vm279_vm3, %v7609_v46, %v276_v1  ;;  %v353_v40 = vmul.f32 %v300_v32, %v8453_v25 }
 0x12e   :  { %v351_v8 = vmul.f32 %v280_v6, %v8455_v26  ;;  %7616 = vrsqrt.f32 %v8510_v7  ;;  %vm568_vm9 = vcmask 261120  }
 0x12f   :  { %v284_v11 = vmul.f32 0.5, %v283_v5  ;;  %v252_v12 = vpop.xlane.xlu2 %251  ;;  %v364_v45 = vmul.f32 %v8507_v4, %v353_v40 }
 0x130   :  { %v362_v14 = vmul.f32 %v8507_v4, %v351_v8  ;;  %v261_v17 = vmul.f32 %v252_v12, %v8449_v13 }
 0x131   :  { %v285_v15 = vsub.f32 1.5, %v284_v11  ;;  %v375_v52 = vadd.f32 %v8513_v9, %v364_v45 }
 0x132   :  { %v7613_v16 = vpop.eup %7612  ;;  %v373_v26 = vadd.f32 %v8513_v9, %v362_v14  ;;  %v269_v28 = vadd.f32 1e-05, %v261_v17 }
 0x133   :  { %v7615_v18 = vpop.eup %7614  ;;  %v286_v20 = vmul.f32 %v7611_v61, %v285_v15  ;;  %v302_v21 = vmul.f32 %v7613_v16, %v266_v63  ;;  %vm308_vm11 = vweird.f32 %v7613_v16 }
 0x134   :  { %v312_v23 = vmul.f32 %v7615_v18, %v8505_v3  ;;  %445 = vmatmul.f32.vlgmr.msra.gmra.mxu0 %v373_v26  ;;  %486 = vmatmul.f32.vlgmr.msra.gmra.mxu1 %v373_v26  ;;  %v7617_v33 = vpop.eup %7616  ;;  %7618 = vrsqrt.f32 %v269_v28  ;;  %vm309_vm12 = vmor %vm307_vm10, %vm308_vm11  ;;  %vm318_vm14 = vweird.f32 %v7615_v18  ;;  %vm337_vm3 = vweird.f32 %v269_v28 }
 0x135   :  { %v303_v24 = vmul.f32 %v7613_v16, %v302_v21  ;;  %527 = vmatmul.f32.vlgmr.msra.gmra.mxu2 %v373_v26  ;;  %v290_v27 = vsel %vm289_vm8, %v7611_v61, %v286_v20  ;;  %v322_v43 = vmul.f32 %v7617_v33, %v8510_v7  ;;  %vm319_vm15 = vmor %vm317_vm13, %vm318_vm14  ;;  %vm328_vm1 = vweird.f32 %v7617_v33 }
 0x136   :  { %v352_v29 = vmul.f32 %v290_v27, %v8466_v36  ;;  %v313_v31 = vmul.f32 %v7615_v18, %v312_v23  ;;  %vm329_vm2 = vmor %vm327_vm0, %vm328_vm1  ;;  %vm777_vm10 = vcmask 64512  }
 0x137   :  { %v304_v30 = vmul.f32 0.5, %v303_v24  ;;  %v323_v46 = vmul.f32 %v7617_v33, %v322_v43 }
 0x138   :  { %v363_v35 = vmul.f32 %v8507_v4, %v352_v29  ;;  %v314_v44 = vmul.f32 0.5, %v313_v31 }
 0x139   :  { %v305_v37 = vsub.f32 1.5, %v304_v30  ;;  %v324_v53 = vmul.f32 0.5, %v323_v46 }
 0x13a   :  { %v374_v38 = vadd.f32 %v8513_v9, %v363_v35  ;;  %v315_v48 = vsub.f32 1.5, %v314_v44  ;;  %v7619_v51 = vpop.eup %7618 }
 0x13b   :  { %v306_v36 = vmul.f32 %v7613_v16, %v305_v37  ;;  %v332_v55 = vmul.f32 %v7619_v51, %v269_v28  ;;  %v325_v57 = vsub.f32 1.5, %v324_v53  ;;  %vm338_vm4 = vweird.f32 %v7619_v51 }
 0x13c   :  { %448 = vmatmul.f32.gmra.mxu0 %v374_v38  ;;  %489 = vmatmul.f32.gmra.mxu1 %v374_v38  ;;  %v316_v54 = vmul.f32 %v7615_v18, %v315_v48  ;;  %vm339_vm5 = vmor %vm337_vm3, %vm338_vm4 }
 0x13d   :  { %530 = vmatmul.f32.gmra.mxu2 %v374_v38  ;;  %v310_v50 = vsel %vm309_vm12, %v7613_v16, %v306_v36  ;;  %v333_v58 = vmul.f32 %v7619_v51, %v332_v55 }
 0x13e   :  { %v354_v25 = vmul.f32 %v310_v50, %v8478_v42  ;;  %v320_v59 = vsel %vm319_vm15, %v7615_v18, %v316_v54  ;;  %v326_v42 = vmul.f32 %v7617_v33, %v325_v57 }
 0x13f   :  { %v355_v60 = vmul.f32 %v320_v59, %v8476_v41  ;;  %v334_v61 = vmul.f32 0.5, %v333_v58 }
 0x140   :  { %v365_v56 = vmul.f32 %v8507_v4, %v354_v25  ;;  %v330_v0 = vsel %vm329_vm2, %v7617_v33, %v326_v42 }
 0x141   :  { %v366_v62 = vmul.f32 %v8507_v4, %v355_v60  ;;  %v335_v63 = vsub.f32 1.5, %v334_v61  ;;  %v356_v2 = vmul.f32 %v330_v0, %v8463_v34 }
 0x142   :  { %v376_v39 = vadd.f32 %v8513_v9, %v365_v56 }
 0x143   :  { %v377_v1 = vadd.f32 %v8513_v9, %v366_v62  ;;  %v336_v3 = vmul.f32 %v7619_v51, %v335_v63  ;;  %v367_v41 = vmul.f32 %v8507_v4, %v356_v2 }
 0x144   :  { %451 = vmatmul.f32.gmra.mxu0 %v375_v52  ;;  %492 = vmatmul.f32.gmra.mxu1 %v375_v52 }
 0x145   :  { %533 = vmatmul.f32.gmra.mxu2 %v375_v52  ;;  %v340_v5 = vsel %vm339_vm5, %v7619_v51, %v336_v3  ;;  %v378_v6 = vadd.f32 %v8513_v9, %v367_v41 }
 0x146   :  { %v357_v7 = vmul.f32 %v340_v5, %v8485_v47 }
 0x148   :  { %v368_v8 = vmul.f32 %v8507_v4, %v357_v7 }
 0x14a   :  { %v379_v10 = vadd.f32 %v8513_v9, %v368_v8 }
 0x14c   :  { %454 = vmatmul.f32.gmra.mxu0 %v376_v39  ;;  %495 = vmatmul.f32.gmra.mxu1 %v376_v39 }
 0x14d   :  { %536 = vmatmul.f32.gmra.mxu2 %v376_v39 }
 0x154   :  { %457 = vmatmul.f32.gmra.mxu0 %v377_v1  ;;  %498 = vmatmul.f32.gmra.mxu1 %v377_v1 }
 0x155   :  { %539 = vmatmul.f32.gmra.mxu2 %v377_v1 }
 0x15c   :  { %460 = vmatmul.f32.gmra.mxu0 %v378_v6  ;;  %501 = vmatmul.f32.gmra.mxu1 %v378_v6 }
 0x15d   :  { %542 = vmatmul.f32.gmra.mxu2 %v378_v6 }
 0x164   :  { %463 = vmatmul.f32.gmra.mxu0 %v379_v10  ;;  %504 = vmatmul.f32.gmra.mxu1 %v379_v10 }
 0x165   :  { %545 = vmatmul.f32.gmra.mxu2 %v379_v10 }
 0x199   :  { %v254_v34 = vpop.xlane.xlu0 %253 }
 0x19a   :  { %v262_v11 = vmul.f32 %v254_v34, %v8449_v13 }
 0x19c   :  { %v270_v12 = vadd.f32 1e-05, %v262_v11 }
 0x19e   :  { %7620 = vrsqrt.f32 %v270_v12  ;;  %vm347_vm7 = vweird.f32 %v270_v12 }
 0x1a4   :  { %v7621_v14 = vpop.eup %7620 }
 0x1a5   :  { %v342_v15 = vmul.f32 %v7621_v14, %v270_v12  ;;  %vm348_vm6 = vweird.f32 %v7621_v14 }
 0x1a6   :  { %vm349_vm8 = vmor %vm347_vm7, %vm348_vm6 }
 0x1a7   :  { %v343_v16 = vmul.f32 %v7621_v14, %v342_v15 }
 0x1a9   :  { %v344_v17 = vmul.f32 0.5, %v343_v16 }
 0x1ab   :  { %v345_v47 = vsub.f32 1.5, %v344_v17 }
 0x1ad   :  { %v346_v26 = vmul.f32 %v7621_v14, %v345_v47 }
 0x1af   :  { %v350_v18 = vsel %vm349_vm8, %v7621_v14, %v346_v26 }
 0x1b0   :  { %v358_v19 = vmul.f32 %v350_v18, %v8496_v49 }
 0x1b1   :  { %v8552_v20 = vpop.f32.mrf.mxu0  ;;  %v8554_v21 = vpop.f32.mrf.mxu1 }
 0x1b2   :  { %7171 = vmatpush.xpose.msk.msra.mxu3 %vm568_vm9, %v8554_v21  ;;  %v369_v22 = vmul.f32 %v8507_v4, %v358_v19 }
 0x1b4   :  { %v380_v23 = vadd.f32 %v8513_v9, %v369_v22 }
 0x1b5   :  { %7172 = vmatmul.msk.f32.vlgmr.msra.gmra.mxu3 %vm568_vm9, %v8552_v20 }
 0x1b6   :  { %466 = vmatmul.f32.gmra.mxu0 %v380_v23  ;;  %507 = vmatmul.f32.gmra.mxu1 %v380_v23 }
 0x1b7   :  { %548 = vmatmul.f32.gmra.mxu2 %v380_v23 }
 0x1b8   :  { %v8562_v24 = vpop.f32.mrf.mxu2 }
 0x1b9   :  { %v8564_v49 = vpop.f32.mrf.mxu0  ;;  %v8566_v27 = vpop.f32.mrf.mxu1 }
 0x1ba   :  { %1080 = vrot.lane.b32.xlu1 %v8566_v27, %s8331_s10  ;;  %7173 = vmatpush.xpose.msk.msrb.mxu3 %vm568_vm9, %v8566_v27 }
 0x1bb   :  { %1078 = vrot.lane.b32.xlu2 %v8564_v49, %s8331_s10 }
 0x1bd   :  { %7174 = vmatmul.msk.f32.vlgmr.msrb.gmra.mxu3 %vm568_vm9, %v8564_v49 }
 0x1c0   :  { %v8576_v4 = vpop.f32.mrf.mxu2 }
 0x1c1   :  { %v8578_v9 = vpop.f32.mrf.mxu0  ;;  %v8580_v28 = vpop.f32.mrf.mxu1 }
 0x1c2   :  { %7175 = vmatpush.xpose.msk.msra.mxu3 %vm568_vm9, %v8580_v28  ;;  %1106 = vrot.lane.b32.xlu0 %v8578_v9, %s8331_s10 }
 0x1c3   :  { %1108 = vrot.lane.b32.xlu2 %v8580_v28, %s8331_s10 }
 0x1c5   :  { %7176 = vmatmul.msk.f32.vlgmr.msra.gmra.mxu3 %vm568_vm9, %v8578_v9 }
 0x1c8   :  { %v8590_v29 = vpop.f32.mrf.mxu2 }
 0x1c9   :  { %v8592_v30 = vpop.f32.mrf.mxu0  ;;  %v8594_v31 = vpop.f32.mrf.mxu1 }
 0x1ca   :  { %7177 = vmatpush.xpose.msk.msrb.mxu3 %vm568_vm9, %v8594_v31  ;;  %1136 = vrot.lane.b32.xlu0 %v8594_v31, %s8331_s10 }
 0x1cd   :  { %7178 = vmatmul.msk.f32.vlgmr.msrb.gmra.mxu3 %vm568_vm9, %v8592_v30 }
 0x1d0   :  { %v8602_v32 = vpop.f32.mrf.mxu2 }
 0x1d1   :  { %v8604_v33 = vpop.f32.mrf.mxu0  ;;  %v8606_v35 = vpop.f32.mrf.mxu1 }
 0x1d2   :  { %7179 = vmatpush.xpose.msk.msra.mxu3 %vm568_vm9, %v8606_v35 }
 0x1d5   :  { %7180 = vmatmul.msk.f32.vlgmr.msra.gmra.mxu3 %vm568_vm9, %v8604_v33 }
 0x1d8   :  { %v8612_v37 = vpop.f32.mrf.mxu2 }
 0x1d9   :  { %976 = vmatpush.msrb.mxu1 %v8612_v37  ;;  %v8615_v38 = vpop.f32.mrf.mxu1  ;;  %v8617_v40 = vpop.f32.mrf.mxu0 }
 0x1da   :  { %7181 = vmatpush.xpose.msk.msrb.mxu3 %vm568_vm9, %v8615_v38 }
 0x1dd   :  { %7182 = vmatmul.msk.f32.vlgmr.msrb.gmra.mxu3 %vm568_vm9, %v8617_v40 }
 0x1e0   :  { %v8623_v43 = vpop.f32.mrf.mxu2 }
 0x1e1   :  { %999 = vmatpush.msra.mxu1 %v8623_v43  ;;  %v8626_v36 = vpop.f32.mrf.mxu1  ;;  %v8632_v44 = vpop.f32.mrf.mxu0 }
 0x1e2   :  { %1220 = vrot.lane.b32.xlu2 %v8626_v36, %s8331_s10  ;;  %7183 = vmatpush.xpose.msk.msra.mxu3 %vm568_vm9, %v8626_v36 }
 0x1e5   :  { %7184 = vmatmul.msk.f32.vlgmr.msra.gmra.mxu3 %vm568_vm9, %v8632_v44 }
 0x215   :  { %v8636_v45 = vpop.permute.xlu2 %1078 }
 0x21d   :  { %v1109_v46 = vpop.permute.xlu2 %1108 }
 0x21e   :  { %7199 = vmatpush.xpose.msk.msrb.mxu2 %vm568_vm9, %v1109_v46 }
 0x22c   :  { %v8660_v0 = vpop.permute.xlu1 %1080 }
 0x233   :  { %v8639_v48 = vpop.f32.mrf.mxu1  ;;  %v8645_v51 = vpop.f32.mrf.mxu0 }
 0x234   :  { %7185 = vmatpush.xpose.msk.msrb.mxu3 %vm568_vm9, %v8639_v48  ;;  %v1107_v50 = vpop.permute.xlu0 %1106 }
 0x235   :  { %7200 = vmatmul.msk.f32.vlgmr.msrb.gmra.mxu2 %vm568_vm9, %v1107_v50 }
 0x237   :  { %7186 = vmatmul.msk.f32.vlgmr.msrb.gmra.mxu3 %vm568_vm9, %v8645_v51 }
 0x238   :  { %884 = vmatpush.msra.mxu3 %v8562_v24  ;;  %v592_v52 = vpop.f32.mrf.mxu3 }
 0x239   :  { %v778_v25 = vsel %vm777_vm10, %v592_v52, -inf }
 0x23a   :  { %907 = vmatpush.msrb.mxu3 %v8576_v4  ;;  %779 = vmax.xlane.f32.xlu1 %v778_v25 }
 0x23c   :  { %v1221_v53 = vpop.permute.xlu2 %1220  ;;  %v8662_v41 = vpop.permute.xlu0 %1136 }
 0x23d   :  { %7207 = vmatpush.xpose.msk.msra.mxu2 %vm568_vm9, %v1221_v53 }
 0x240   :  { %v618_v54 = vpop.f32.mrf.mxu3 }
 0x241   :  { %v781_v55 = vsel %vm777_vm10, %v618_v54, -inf }
 0x242   :  { %782 = vmax.xlane.f32.xlu2 %v781_v55 }
 0x248   :  { %v644_v56 = vpop.f32.mrf.mxu3 }
 0x249   :  { %v784_v57 = vsel %vm777_vm10, %v644_v56, -inf }
 0x24a   :  { %785 = vmax.xlane.f32.xlu0 %v784_v57 }
 0x250   :  { %v670_v58 = vpop.f32.mrf.mxu3 }
 0x251   :  { %v787_v59 = vsel %vm777_vm10, %v670_v58, -inf }
 0x252   :  { %788 = vmax.xlane.f32.xlu1 %v787_v59 }
 0x258   :  { %v696_v39 = vpop.f32.mrf.mxu3 }
 0x259   :  { %v790_v60 = vsel %vm777_vm10, %v696_v39, -inf }
 0x25a   :  { %791 = vmax.xlane.f32.xlu2 %v790_v60 }
 0x260   :  { %v722_v42 = vpop.f32.mrf.mxu3 }
 0x261   :  { %v793_v61 = vsel %vm777_vm10, %v722_v42, -inf }
 0x262   :  { %794 = vmax.xlane.f32.xlu1 %v793_v61 }
 0x268   :  { %v748_v62 = vpop.f32.mrf.mxu3 }
 0x269   :  { %v796_v63 = vsel %vm777_vm10, %v748_v62, -inf }
 0x26a   :  { %797 = vmax.xlane.f32.xlu0 %v796_v63 }
 0x27b   :  { %1134 = vrot.lane.b32.xlu1 %v8592_v30, %s8331_s10 }
 0x2ad   :  { %v780_v1 = vpop.xlane.xlu1 %779 }
 0x2ae   :  { %v802_v2 = vsub.f32 %v592_v52, %v780_v1 }
 0x2b0   :  { %v810_v3 = vmul.f32 1.442695, %v802_v2 }
 0x2b2   :  { %7622 = vpow2.f32 %v810_v3 }
 0x2b5   :  { %v783_v5 = vpop.xlane.xlu2 %782 }
 0x2b6   :  { %v803_v6 = vsub.f32 %v618_v54, %v783_v5 }
 0x2b8   :  { %v7623_v7 = vpop.eup %7622  ;;  %v812_v8 = vmul.f32 1.442695, %v803_v6 }
 0x2b9   :  { %v826_v10 = vsel %vm777_vm10, %v7623_v7, 0.0 }
 0x2ba   :  { %7624 = vpow2.f32 %v812_v8  ;;  %827 = vadd.xlane.f32.xlu0 %v826_v10  ;;  %v774_v34 = vpop.f32.mrf.mxu3 }
 0x2bb   :  { %v799_v11 = vsel %vm777_vm10, %v774_v34, -inf }
 0x2bc   :  { %800 = vmax.xlane.f32.xlu2 %v799_v11 }
 0x2bd   :  { %v786_v12 = vpop.xlane.xlu0 %785 }
 0x2be   :  { %v804_v14 = vsub.f32 %v644_v56, %v786_v12 }
 0x2c0   :  { %v7625_v15 = vpop.eup %7624  ;;  %v814_v16 = vmul.f32 1.442695, %v804_v14 }
 0x2c1   :  { %v829_v17 = vsel %vm777_vm10, %v7625_v15, 0.0 }
 0x2c2   :  { %7626 = vpow2.f32 %v814_v16  ;;  %830 = vadd.xlane.f32.xlu1 %v829_v17 }
 0x2c5   :  { %v789_v50 = vpop.xlane.xlu1 %788 }
 0x2c6   :  { %v805_v52 = vsub.f32 %v670_v58, %v789_v50 }
 0x2c8   :  { %v8667_v47 = vpop.eup %7626  ;;  %v816_v25 = vmul.f32 1.442695, %v805_v52 }
 0x2c9   :  { %v832_v26 = vsel %vm777_vm10, %v8667_v47, 0.0 }
 0x2ca   :  { %833 = vadd.xlane.f32.xlu2 %v832_v26 }
 0x2cd   :  { %v792_v18 = vpop.xlane.xlu2 %791 }
 0x2ce   :  { %v806_v19 = vsub.f32 %v696_v39, %v792_v18  ;;  %1218 = vrot.lane.b32.xlu0 %v8632_v44, %s8331_s10 }
 0x2d0   :  { %v818_v22 = vmul.f32 1.442695, %v806_v19 }
 0x2d2   :  { %7628 = vpow2.f32 %v818_v22 }
 0x2d3   :  { %7630 = vpow2.f32 %v816_v25 }
 0x2d5   :  { %v795_v53 = vpop.xlane.xlu1 %794 }
 0x2d6   :  { %v807_v54 = vsub.f32 %v722_v42, %v795_v53  ;;  %v8686_v42 = vpop.f32.mrf.mxu2 }
 0x2d8   :  { %v8673_v23 = vpop.eup %7628  ;;  %v820_v55 = vmul.f32 1.442695, %v807_v54 }
 0x2d9   :  { %v838_v46 = vsel %vm777_vm10, %v8673_v23, 0.0  ;;  %v7631_v56 = vpop.eup %7630 }
 0x2da   :  { %839 = vadd.xlane.f32.xlu1 %v838_v46  ;;  %7632 = vpow2.f32 %v820_v55  ;;  %v835_v59 = vsel %vm777_vm10, %v7631_v56, 0.0 }
 0x2dd   :  { %v798_v57 = vpop.xlane.xlu0 %797 }
 0x2de   :  { %v808_v39 = vsub.f32 %v748_v62, %v798_v57  ;;  %v8690_v6 = vpop.f32.mrf.mxu2 }
 0x2e0   :  { %v7633_v60 = vpop.eup %7632  ;;  %v822_v61 = vmul.f32 1.442695, %v808_v39 }
 0x2e1   :  { %v841_v63 = vsel %vm777_vm10, %v7633_v60, 0.0 }
 0x2e2   :  { %1192 = vrot.lane.b32.xlu2 %v8615_v38, %s8331_s10  ;;  %7634 = vpow2.f32 %v822_v61 }
 0x2e6   :  { %v1131_v16 = vpop.f32.mrf.mxu2 }
 0x2e7   :  { %v1280_v19 = vsel %vm777_vm10, %v1131_v16, -inf }
 0x2e8   :  { %v7635_v1 = vpop.eup %7634 }
 0x2e9   :  { %v844_v58 = vsel %vm777_vm10, %v7635_v1, 0.0 }
 0x2ed   :  { %v8688_v2 = vpop.permute.xlu1 %1134 }
 0x2f8   :  { %836 = vadd.xlane.f32.xlu0 %v835_v59 }
 0x300   :  { %842 = vadd.xlane.f32.xlu0 %v841_v63 }
 0x30b   :  { %845 = vadd.xlane.f32.xlu2 %v844_v58 }
 0x314   :  { %1248 = vrot.lane.b32.xlu0 %v8639_v48, %s8331_s10 }
 0x323   :  { %1246 = vrot.lane.b32.xlu2 %v8645_v51, %s8331_s10 }
 0x32d   :  { %v828_v62 = vpop.xlane.xlu0 %827 }
 0x32e   :  { %7636 = vrcp.f32 %v828_v62 }
 0x32f   :  { %v801_v3 = vpop.xlane.xlu2 %800 }
 0x330   :  { %v809_v5 = vsub.f32 %v774_v34, %v801_v3 }
 0x332   :  { %v824_v8 = vmul.f32 1.442695, %v809_v5 }
 0x334   :  { %v7637_v10 = vpop.eup %7636  ;;  %7638 = vpow2.f32 %v824_v8 }
 0x335   :  { %v858_v11 = vmul.f32 %v7637_v10, %v7623_v7  ;;  %v831_v12 = vpop.xlane.xlu1 %830 }
 0x336   :  { %7640 = vrcp.f32 %v831_v12 }
 0x337   :  { %7187 = vmatmul.msk.f32.vlgmr.msra.gmra.mxu3 %vm777_vm10, %v858_v11 }
 0x338   :  { %930 = vmatpush.msra.mxu3 %v8590_v29 }
 0x33a   :  { %v7639_v14 = vpop.eup %7638 }
 0x33b   :  { %v847_v17 = vsel %vm777_vm10, %v7639_v14, 0.0 }
 0x33c   :  { %v7641_v26 = vpop.eup %7640  ;;  %848 = vadd.xlane.f32.xlu1 %v847_v17 }
 0x33d   :  { %v859_v18 = vmul.f32 %v7641_v26, %v7625_v15  ;;  %v834_v34 = vpop.xlane.xlu2 %833 }
 0x33e   :  { %7642 = vrcp.f32 %v834_v34  ;;  %1281 = vmax.xlane.f32.xlu0 %v1280_v19 }
 0x33f   :  { %7188 = vmatmul.msk.f32.vlgmr.msrb.gmra.mxu3 %vm777_vm10, %v859_v18 }
 0x340   :  { %953 = vmatpush.msrb.mxu3 %v8602_v32  ;;  %v1219_v7 = vpop.permute.xlu0 %1218 }
 0x341   :  { %7208 = vmatmul.msk.f32.vlgmr.msra.gmra.mxu2 %vm568_vm9, %v1219_v7 }
 0x344   :  { %v7643_v22 = vpop.eup %7642 }
 0x345   :  { %v860_v46 = vmul.f32 %v7643_v22, %v8667_v47  ;;  %v1193_v55 = vpop.permute.xlu2 %1192 }
 0x347   :  { %7189 = vmatmul.msk.f32.vlgmr.msra.gmra.mxu3 %vm777_vm10, %v860_v46 }
 0x348   :  { %1022 = vmatpush.msra.mxu3 %v8686_v42 }
 0x34d   :  { %v840_v15 = vpop.xlane.xlu1 %839 }
 0x34e   :  { %7644 = vrcp.f32 %v840_v15 }
 0x354   :  { %v7645_v50 = vpop.eup %7644 }
 0x355   :  { %1190 = vrot.lane.b32.xlu1 %v8617_v40, %s8331_s10  ;;  %v862_v52 = vmul.f32 %v7645_v50, %v8673_v23 }
 0x357   :  { %7191 = vmatmul.msk.f32.vlgmr.msrb.gmra.mxu1 %vm777_vm10, %v862_v52 }
 0x358   :  { %7197 = vmatpush.xpose.msk.msrb.mxu1 %vm568_vm9, %v8660_v0 }
 0x36b   :  { %v837_v25 = vpop.xlane.xlu0 %836 }
 0x36c   :  { %7646 = vrcp.f32 %v837_v25 }
 0x372   :  { %v7647_v47 = vpop.eup %7646 }
 0x373   :  { %v861_v53 = vmul.f32 %v7647_v47, %v7631_v56  ;;  %v843_v54 = vpop.xlane.xlu0 %842 }
 0x374   :  { %7648 = vrcp.f32 %v843_v54 }
 0x375   :  { %7190 = vmatmul.msk.f32.vlgmr.msrb.gmra.mxu3 %vm777_vm10, %v861_v53 }
 0x376   :  { %1045 = vmatpush.msrb.mxu3 %v8690_v6 }
 0x37a   :  { %v7649_v57 = vpop.eup %7648 }
 0x37b   :  { %v863_v59 = vmul.f32 %v7649_v57, %v7633_v60  ;;  %v7487_v57 = vpack.i.bf16 %v8590_v29, %v8576_v4 }
 0x37d   :  { %7192 = vmatmul.msk.f32.vlgmr.msra.gmra.mxu1 %vm777_vm10, %v863_v59 }
 0x37e   :  { %7205 = vmatpush.xpose.msk.msra.mxu1 %vm568_vm9, %v1193_v55  ;;  %v846_v23 = vpop.xlane.xlu2 %845 }
 0x37f   :  { %7650 = vrcp.f32 %v846_v23 }
 0x385   :  { %v7651_v0 = vpop.eup %7650  ;;  %7198 = vmatmul.msk.f32.vlgmr.msrb.gmra.mxu1 %vm568_vm9, %v8636_v45 }
 0x386   :  { %v864_v56 = vmul.f32 %v7651_v0, %v7635_v1  ;;  %v1249_v61 = vpop.permute.xlu0 %1248  ;;  %v1247_v5 = vpop.permute.xlu2 %1246 }
 0x388   :  { %7193 = vmatmul.msk.f32.vlgmr.msra.gmra.mxu3 %vm777_vm10, %v864_v56 }
 0x389   :  { %7201 = vmatpush.xpose.msk.msra.mxu3 %vm568_vm9, %v8662_v41 }
 0x3af   :  { %v849_v39 = vpop.xlane.xlu1 %848 }
 0x3b0   :  { %7652 = vrcp.f32 %v849_v39 }
 0x3b1   :  { %v1282_v58 = vpop.xlane.xlu0 %1281 }
 0x3b2   :  { %v1300_v62 = vsub.f32 %v1131_v16, %v1282_v58 }
 0x3b4   :  { %v1310_v3 = vmul.f32 1.442695, %v1300_v62 }
 0x3b6   :  { %v7653_v60 = vpop.eup %7652  ;;  %7654 = vpow2.f32 %v1310_v3 }
 0x3b7   :  { %v865_v63 = vmul.f32 %v7653_v60, %v7639_v14 }
 0x3b9   :  { %7194 = vmatmul.msk.f32.vlgmr.msrb.gmra.mxu3 %vm777_vm10, %v865_v63 }
 0x3ba   :  { %7209 = vmatpush.xpose.msk.msrb.mxu3 %vm568_vm9, %v1249_v61  ;;  %v8733_v16 = vpop.f32.mrf.mxu3 }
 0x3bc   :  { %v8724_v8 = vpop.eup %7654 }
 0x3bd   :  { %v1328_v10 = vsel %vm777_vm10, %v8724_v8, 0.0 }
 0x3c1   :  { %7202 = vmatmul.msk.f32.vlgmr.msra.gmra.mxu3 %vm568_vm9, %v8688_v2 }
 0x3c2   :  { %v8735_v17 = vpop.f32.mrf.mxu3 }
 0x3c4   :  { %v1243_v45 = vpop.f32.mrf.mxu2 }
 0x3c5   :  { %v1292_v1 = vsel %vm777_vm10, %v1243_v45, -inf }
 0x3c6   :  { %1293 = vmax.xlane.f32.xlu0 %v1292_v1 }
 0x3c7   :  { %v1191_v41 = vpop.permute.xlu1 %1190 }
 0x3c8   :  { %7206 = vmatmul.msk.f32.vlgmr.msra.gmra.mxu1 %vm568_vm9, %v1191_v41 }
 0x3c9   :  { %7210 = vmatmul.msk.f32.vlgmr.msrb.gmra.mxu3 %vm568_vm9, %v1247_v5 }
 0x3ca   :  { %v8737_v26 = vpop.f32.mrf.mxu3 }
 0x3ce   :  { %1329 = vadd.xlane.f32.xlu0 %v1328_v10 }
 0x3d4   :  { %v8728_v11 = vpop.f32.mrf.mxu1 }
 0x3f8   :  { %v8739_v18 = vpop.f32.mrf.mxu3 }
 0x3fa   :  { %v8730_v2 = vpop.f32.mrf.mxu1 }
 0x402   :  { %v1103_v12 = vpop.f32.mrf.mxu1 }
 0x403   :  { %v1277_v14 = vsel %vm777_vm10, %v1103_v12, -inf }
 0x404   :  { %1278 = vmax.xlane.f32.xlu1 %v1277_v14 }
 0x40b   :  { %v8741_v34 = vpop.f32.mrf.mxu3 }
 0x439   :  { %v1294_v19 = vpop.xlane.xlu0 %1293 }
 0x43a   :  { %v1304_v22 = vsub.f32 %v1243_v45, %v1294_v19 }
 0x43c   :  { %v8743_v7 = vpop.f32.mrf.mxu3  ;;  %v1318_v46 = vmul.f32 1.442695, %v1304_v22 }
 0x43e   :  { %7656 = vpow2.f32 %v1318_v46 }
 0x444   :  { %v1159_v15 = vpop.f32.mrf.mxu3  ;;  %v8747_v47 = vpop.eup %7656 }
 0x445   :  { %v1215_v50 = vpop.f32.mrf.mxu1  ;;  %v1283_v52 = vsel %vm777_vm10, %v1159_v15, -inf  ;;  %v1340_v53 = vsel %vm777_vm10, %v8747_v47, 0.0 }
 0x446   :  { %1284 = vmax.xlane.f32.xlu1 %v1283_v52  ;;  %v1289_v25 = vsel %vm777_vm10, %v1215_v50, -inf }
 0x447   :  { %1290 = vmax.xlane.f32.xlu2 %v1289_v25 }
 0x44c   :  { %v1271_v54 = vpop.f32.mrf.mxu3 }
 0x44d   :  { %v1295_v55 = vsel %vm777_vm10, %v1271_v54, -inf }
 0x44f   :  { %1341 = vadd.xlane.f32.xlu2 %v1340_v53 }
 0x457   :  { %1296 = vmax.xlane.f32.xlu2 %v1295_v55  ;;  %v7492_v55 = vpack.i.bf16 %v8602_v32, %v8623_v43 }
 0x45f   :  { %7488 = vrot.lane.b32.xlu1 %v7487_v57, %s8331_s10  ;;  %v7512_v57 = vpack.i.bf16 %v8690_v6, %v8686_v42 }
 0x477   :  { %v1279_v59 = vpop.xlane.xlu1 %1278 }
 0x478   :  { %v1299_v23 = vsub.f32 %v1103_v12, %v1279_v59  ;;  %v1330_v12 = vpop.xlane.xlu0 %1329 }
 0x47a   :  { %v1308_v0 = vmul.f32 1.442695, %v1299_v23  ;;  %v8831_v23 = vpack.i.bf16 %v8576_v4, %v8562_v24 }
 0x47c   :  { %7658 = vpow2.f32 %v1308_v0  ;;  %v8839_v0 = vpack.i.bf16 %v8602_v32, %v8590_v29 }
 0x482   :  { %v8755_v56 = vpop.eup %7658 }
 0x483   :  { %v1325_v39 = vsel %vm777_vm10, %v8755_v56, 0.0 }
 0x489   :  { %1326 = vadd.xlane.f32.xlu1 %v1325_v39 }
 0x4a2   :  { %1552 = vrot.lane.b32.xlu1 %v8690_v6, %s8331_s10 }
 0x4aa   :  { %1738 = vrot.lane.b32.xlu1 %v8566_v27, %s8332_s29 }
 0x4b2   :  { %1736 = vrot.lane.b32.xlu1 %v8564_v49, %s8332_s29 }
 0x4b9   :  { %v1285_v61 = vpop.xlane.xlu1 %1284 }
 0x4ba   :  { %v1301_v60 = vsub.f32 %v1159_v15, %v1285_v61  ;;  %1764 = vrot.lane.b32.xlu1 %v8578_v9, %s8332_s29  ;;  %v1291_v63 = vpop.xlane.xlu2 %1290 }
 0x4bb   :  { %v1303_v58 = vsub.f32 %v1215_v50, %v1291_v63 }
 0x4bc   :  { %v1312_v62 = vmul.f32 1.442695, %v1301_v60 }
 0x4bd   :  { %v1316_v3 = vmul.f32 1.442695, %v1303_v58 }
 0x4be   :  { %7660 = vpow2.f32 %v1312_v62 }
 0x4bf   :  { %7662 = vpow2.f32 %v1316_v3 }
 0x4c0   :  { %7664 = vrcp.f32 %v1330_v12 }
 0x4c2   :  { %1850 = vrot.lane.b32.xlu1 %v8615_v38, %s8332_s29  ;;  %v8769_v45 = vpop.xlane.xlu2 %1341 }
 0x4c4   :  { %v8771_v1 = vpop.eup %7660 }
 0x4c5   :  { %v8773_v41 = vpop.eup %7662  ;;  %v1331_v5 = vsel %vm777_vm10, %v8771_v1, 0.0 }
 0x4c6   :  { %1332 = vadd.xlane.f32.xlu0 %v1331_v5  ;;  %v1337_v10 = vsel %vm777_vm10, %v8773_v41, 0.0  ;;  %v7665_v46 = vpop.eup %7664 }
 0x4c7   :  { %1338 = vadd.xlane.f32.xlu2 %v1337_v10  ;;  %v1356_v25 = vmul.f32 %v7665_v46, %v8724_v8  ;;  %v8796_v8 = vpack.i.bf16 %v8623_v43, %v8612_v37  ;;  %v555_v10 = vld [vmem:[#allocation10 + $0x18] sm:$0xff] }
 0x4ca   :  { %1878 = vrot.lane.b32.xlu1 %v8626_v36, %s8332_s29  ;;  %v1297_v14 = vpop.xlane.xlu2 %1296 }
 0x4cb   :  { %v1305_v19 = vsub.f32 %v1271_v54, %v1297_v14 }
 0x4cd   :  { %v1320_v22 = vmul.f32 1.442695, %v1305_v19 }
 0x4cf   :  { %7666 = vpow2.f32 %v1320_v22  ;;  %v8858_v22 = vld [vmem:[#allocation10 + $0x38] sm:$0xff] }
 0x4d1   :  { %v7489_v15 = vpop.permute.xlu1 %7488 }
 0x4d2   :  { %v7491_v50 = vunpack.i.h.bf16 %v7489_v15  ;;  %v7490_v52 = vunpack.i.l.bf16 %v7489_v15  ;;  %1904 = vrot.lane.b32.xlu1 %v8645_v51, %s8332_s29 }
 0x4d4   :  { %1411 = vmatpush.msrb.mxu1 %v7490_v52  ;;  %1438 = vmatpush.msrb.mxu2 %v7491_v50  ;;  %v8861_v50 = vld [vmem:[#allocation10 + $0x30] sm:$0xff]  ;;  %v552_v52 = vld [vmem:[#allocation10] sm:$0xff] }
 0x4d5   :  { %v8784_v53 = vpop.eup %7666  ;;  %7213 = vmatmul.msk.f32.vlgmr.msrb.gmra.mxu2 %vm777_vm10, %v1356_v25  ;;  %v8865_v25 = vld [vmem:[#allocation10 + $0x28] sm:$0xff] }
 0x4d6   :  { %v1343_v54 = vsel %vm777_vm10, %v8784_v53, 0.0 }
 0x4d7   :  { %1344 = vadd.xlane.f32.xlu2 %v1343_v54  ;;  %v8871_v54 = vld [vmem:[#allocation10 + $0x20] sm:$0xff] }
 0x4da   :  { %1050 = vrot.lane.b32.xlu1 %v8552_v20, %s8331_s10  ;;  %7493 = vrot.lane.b32.xlu0 %v7492_v55, %s8331_s10 }
 0x4e2   :  { %7508 = vrot.lane.b32.xlu1 %v8796_v8, %s8332_s29  ;;  %1710 = vrot.lane.b32.xlu0 %v8554_v21, %s8332_s29 }
 0x4ea   :  { %7513 = vrot.lane.b32.xlu1 %v7512_v57, %s8332_s29  ;;  %1708 = vrot.lane.b32.xlu0 %v8552_v20, %s8332_s29 }
 0x4ef   :  { %1525 = vrot.lane.b32.xlu2 %v8686_v42, %s8331_s10 }
 0x4f2   :  { %2301 = vrot.lane.b32.xlu1 %v8552_v20, %s8333_s30  ;;  %1794 = vrot.lane.b32.xlu0 %v8594_v31, %s8332_s29 }
 0x4f7   :  { %1766 = vrot.lane.b32.xlu2 %v8580_v28, %s8332_s29 }
 0x4fa   :  { %1822 = vrot.lane.b32.xlu0 %v8606_v35, %s8332_s29 }
 0x4fc   :  { %v1327_v43 = vpop.xlane.xlu1 %1326 }
 0x4fd   :  { %7668 = vrcp.f32 %v1327_v43 }
 0x4ff   :  { %1792 = vrot.lane.b32.xlu2 %v8592_v30, %s8332_s29 }
 0x502   :  { %1848 = vrot.lane.b32.xlu0 %v8617_v40, %s8332_s29 }
 0x503   :  { %v7669_v59 = vpop.eup %7668 }
 0x504   :  { %v1355_v20 = vmul.f32 %v7669_v59, %v8755_v56 }
 0x506   :  { %7212 = vmatmul.msk.f32.vlgmr.msrb.gmra.mxu1 %vm777_vm10, %v1355_v20 }
 0x507   :  { %1820 = vrot.lane.b32.xlu2 %v8604_v33, %s8332_s29 }
 0x50a   :  { %1876 = vrot.lane.b32.xlu0 %v8632_v44, %s8332_s29 }
 0x50f   :  { %1906 = vrot.lane.b32.xlu2 %v8639_v48, %s8332_s29 }
 0x512   :  { %7498 = vrot.lane.b32.xlu0 %v8831_v23, %s8332_s29 }
 0x514   :  { %v1553_v4 = vpop.permute.xlu1 %1552 }
 0x517   :  { %1052 = vrot.lane.b32.xlu2 %v8554_v21, %s8331_s10 }
 0x51a   :  { %7503 = vrot.lane.b32.xlu0 %v8839_v0, %s8332_s29 }
 0x51c   :  { %v1739_v56 = vpop.permute.xlu1 %1738 }
 0x51f   :  { %2303 = vrot.lane.b32.xlu2 %v8554_v21, %s8333_s30 }
 0x522   :  { %1164 = vrot.lane.b32.xlu0 %v8606_v35, %s8331_s10 }
 0x524   :  { %v1737_v29 = vpop.permute.xlu1 %1736 }
 0x527   :  { %1162 = vrot.lane.b32.xlu2 %v8604_v33, %s8331_s10 }
 0x52c   :  { %v8854_v14 = vpop.permute.xlu1 %1764 }
 0x534   :  { %v1851_v57 = vpop.permute.xlu1 %1850 }
 0x539   :  { %v1333_v39 = vpop.xlane.xlu0 %1332 }
 0x53a   :  { %v1339_v61 = vpop.xlane.xlu2 %1338  ;;  %7670 = vrcp.f32 %v1333_v39 }
 0x53b   :  { %7672 = vrcp.f32 %v1339_v61 }
 0x53c   :  { %7674 = vrcp.f32 %v8769_v45  ;;  %v554_v45 = vld [vmem:[#allocation10 + $0x10] sm:$0xff]  ;;  %v1879_v20 = vpop.permute.xlu1 %1878 }
 0x540   :  { %v7671_v32 = vpop.eup %7670 }
 0x541   :  { %v7673_v63 = vpop.eup %7672  ;;  %v1357_v3 = vmul.f32 %v7671_v32, %v8771_v1 }
 0x542   :  { %v1359_v5 = vmul.f32 %v7673_v63, %v8773_v41  ;;  %v7675_v12 = vpop.eup %7674  ;;  %v553_v41 = vld [vmem:[#allocation10 + $0x8] sm:$0xff] }
 0x543   :  { %v1360_v19 = vmul.f32 %v7675_v12, %v8747_v47 }
 0x54a   :  { %v1345_v60 = vpop.xlane.xlu2 %1344 }
 0x54b   :  { %7676 = vrcp.f32 %v1345_v60 }
 0x54c   :  { %v7494_v58 = vpop.permute.xlu0 %7493 }
 0x54d   :  { %v7496_v21 = vunpack.i.h.bf16 %v7494_v58  ;;  %v7495_v62 = vunpack.i.l.bf16 %v7494_v58 }
 0x54f   :  { %1465 = vmatpush.msra.mxu3 %v7496_v21  ;;  %1519 = vmatpush.msra.mxu1 %v7495_v62 }
 0x550   :  { %7214 = vmatmul.msk.f32.vlgmr.msra.gmra.mxu3 %vm777_vm10, %v1357_v3  ;;  %7216 = vmatmul.msk.f32.vlgmr.msra.gmra.mxu1 %vm777_vm10, %v1359_v5 }
 0x551   :  { %1573 = vmatpush.msrb.mxu3 %v1553_v4  ;;  %1679 = vmatpush.msrb.mxu1 %v555_v10  ;;  %v7677_v46 = vpop.eup %7676 }
 0x552   :  { %v1526_v1 = vpop.permute.xlu2 %1525  ;;  %v1361_v47 = vmul.f32 %v7677_v46, %v8784_v53 }
 0x553   :  { %7237 = vmatpush.xpose.msk.msra.mxu3 %vm568_vm9, %v1739_v56  ;;  %1546 = vmatpush.msra.mxu2 %v1526_v1  ;;  %v1905_v56 = vpop.permute.xlu1 %1904 }
 0x554   :  { %1680 = vmatpush.msrb.mxu1 %v554_v45  ;;  %7217 = vmatmul.msk.f32.vlgmr.msra.gmra.mxu2 %vm777_vm10, %v1360_v19  ;;  %v1711_v15 = vpop.permute.xlu0 %1710 }
 0x555   :  { %7462 = vmatpush.msrb.mxu2 %v8858_v22 }
 0x556   :  { %1681 = vmatpush.msrb.mxu1 %v553_v41 }
 0x557   :  { %7463 = vmatpush.msrb.mxu2 %v8861_v50 }
 0x558   :  { %1682 = vmatpush.msrb.mxu1 %v552_v52  ;;  %7218 = vmatmul.msk.f32.vlgmr.msrb.gmra.mxu3 %vm777_vm10, %v1361_v47  ;;  %v8910_v10 = vpop.f32.mrf.mxu2 }
 0x559   :  { %7227 = vmatmul.msk.f32.vlgmr.msrb.gmra.mxu1 %vm568_vm9, %v8733_v16  ;;  %7464 = vmatpush.msrb.mxu2 %v8865_v25 }
 0x55a   :  { %v1767_v55 = vpop.permute.xlu2 %1766 }
 0x55b   :  { %7465 = vmatpush.msrb.mxu2 %v8871_v54  ;;  %v1051_v61 = vpop.permute.xlu1 %1050 }
 0x55c   :  { %v1709_v53 = vpop.permute.xlu0 %1708 }
 0x55d   :  { %7235 = vmatpush.xpose.msk.msra.mxu2 %vm568_vm9, %v1711_v15 }
 0x560   :  { %7238 = vmatmul.msk.f32.vlgmr.msra.gmra.mxu3 %vm568_vm9, %v1737_v29 }
 0x561   :  { %7228 = vmatmul.msk.f32.gmra.mxu1 %vm568_vm9, %v8735_v17 }
 0x562   :  { %v1793_v43 = vpop.permute.xlu2 %1792 }
 0x563   :  { %v8895_v32 = vpop.permute.xlu1 %7508 }
 0x564   :  { %v1795_v59 = vpop.permute.xlu0 %1794 }
 0x565   :  { %7241 = vmatpush.xpose.msk.msrb.mxu3 %vm568_vm9, %v1795_v59 }
 0x568   :  { %7242 = vmatmul.msk.f32.vlgmr.msrb.gmra.mxu3 %vm568_vm9, %v1793_v43 }
 0x569   :  { %7245 = vmatpush.xpose.msk.msra.mxu3 %vm568_vm9, %v1851_v57  ;;  %7229 = vmatmul.msk.f32.gmra.mxu1 %vm568_vm9, %v8737_v26 }
 0x56a   :  { %v1821_v16 = vpop.permute.xlu2 %1820 }
 0x56b   :  { %v8900_v58 = vpop.permute.xlu1 %7513 }
 0x56c   :  { %v1823_v4 = vpop.permute.xlu0 %1822 }
 0x571   :  { %7230 = vmatmul.msk.f32.gmra.mxu1 %vm568_vm9, %v8739_v18 }
 0x572   :  { %v1907_v17 = vpop.permute.xlu2 %1906 }
 0x573   :  { %7249 = vmatpush.xpose.msk.msrb.mxu3 %vm568_vm9, %v1907_v17  ;;  %v2302_v62 = vpop.permute.xlu1 %2301 }
 0x574   :  { %v1849_v39 = vpop.permute.xlu0 %1848 }
 0x575   :  { %7246 = vmatmul.msk.f32.vlgmr.msra.gmra.mxu3 %vm568_vm9, %v1849_v39 }
 0x579   :  { %7231 = vmatmul.msk.f32.gmra.mxu1 %vm568_vm9, %v8728_v11 }
 0x57a   :  { %v1053_v29 = vpop.permute.xlu2 %1052 }
 0x57b   :  { %7195 = vmatpush.xpose.msk.msrb.mxu0 %vm568_vm9, %v1053_v29 }
 0x57c   :  { %v1877_v26 = vpop.permute.xlu0 %1876 }
 0x57d   :  { %7250 = vmatmul.msk.f32.vlgmr.msrb.gmra.mxu3 %vm568_vm9, %v1905_v56 }
 0x57e   :  { %7196 = vmatmul.msk.f32.vlgmr.msrb.gmra.mxu0 %vm568_vm9, %v1051_v61 }
 0x581   :  { %7232 = vmatmul.msk.f32.gmra.mxu1 %vm568_vm9, %v8730_v2 }
 0x582   :  { %v2304_v18 = vpop.permute.xlu2 %2303 }
 0x583   :  { %7267 = vmatpush.xpose.msk.msra.mxu1 %vm568_vm9, %v2304_v18  ;;  %v8907_v5 = vpop.f32.mrf.mxu1 }
 0x584   :  { %v7499_v60 = vpop.permute.xlu0 %7498 }
 0x585   :  { %v7501_v63 = vunpack.i.h.bf16 %v7499_v60  ;;  %v7500_v15 = vunpack.i.l.bf16 %v7499_v60 }
 0x587   :  { %2067 = vmatpush.msra.mxu3 %v7501_v63 }
 0x589   :  { %7233 = vmatmul.msk.f32.gmra.mxu1 %vm568_vm9, %v8741_v34 }
 0x58a   :  { %v1163_v3 = vpop.permute.xlu2 %1162 }
 0x58c   :  { %v7504_v11 = vpop.permute.xlu0 %7503 }
 0x58d   :  { %v7506_v21 = vunpack.i.h.bf16 %v7504_v11 }
 0x58f   :  { %2119 = vmatpush.msrb.mxu3 %v7506_v21 }
 0x591   :  { %7234 = vmatmul.msk.f32.gmra.mxu1 %vm568_vm9, %v8743_v7 }
 0x594   :  { %v1165_v2 = vpop.permute.xlu0 %1164 }
 0x595   :  { %7203 = vmatpush.xpose.msk.msra.mxu0 %vm568_vm9, %v1165_v2 }
 0x598   :  { %7204 = vmatmul.msk.f32.vlgmr.msra.gmra.mxu0 %vm568_vm9, %v1163_v3 }
 0x599   :  { %7268 = vmatmul.msk.f32.vlgmr.msra.gmra.mxu1 %vm568_vm9, %v2302_v62 }
 0x5cd   :  { %v1521_v34 = vpop.f32.mrf.mxu1 }
 0x5ce   :  { %7224 = vmatmul.msk.f32.vlgmr.msrb.gmra.mxu2 %vm568_vm9, %v1521_v34 }
 0x5cf   :  { %7239 = vmatpush.xpose.msk.msrb.mxu2 %vm568_vm9, %v1767_v55  ;;  %v7505_v55 = vunpack.i.l.bf16 %v7504_v11 }
 0x5d3   :  { %v8913_v12 = vpop.f32.mrf.mxu3 }
 0x5d7   :  { %v1548_v7 = vpop.f32.mrf.mxu2 }
 0x5d8   :  { %7225 = vmatmul.msk.f32.gmra.mxu2 %vm568_vm9, %v1548_v7 }
 0x5db   :  { %v1575_v45 = vpop.f32.mrf.mxu3 }
 0x5e0   :  { %7226 = vmatmul.msk.f32.gmra.mxu2 %vm568_vm9, %v1575_v45 }
 0x5e3   :  { %v1761_v19 = vpop.f32.mrf.mxu3 }
 0x5e4   :  { %v1935_v1 = vsel %vm777_vm10, %v1761_v19, -inf }
 0x5e5   :  { %1936 = vmax.xlane.f32.xlu0 %v1935_v1 }
 0x5e8   :  { %7236 = vmatmul.msk.f32.vlgmr.msra.gmra.mxu2 %vm568_vm9, %v1709_v53 }
 0x5e9   :  { %7243 = vmatpush.xpose.msk.msra.mxu2 %vm568_vm9, %v1823_v4 }
 0x5eb   :  { %v1817_v41 = vpop.f32.mrf.mxu3 }
 0x5ec   :  { %v1941_v46 = vsel %vm777_vm10, %v1817_v41, -inf }
 0x5ed   :  { %1942 = vmax.xlane.f32.xlu2 %v1941_v46 }
 0x5f0   :  { %7240 = vmatmul.msk.f32.vlgmr.msrb.gmra.mxu2 %vm568_vm9, %v8854_v14 }
 0x5f1   :  { %7247 = vmatpush.xpose.msk.msrb.mxu2 %vm568_vm9, %v1879_v20 }
 0x5f8   :  { %7244 = vmatmul.msk.f32.vlgmr.msra.gmra.mxu2 %vm568_vm9, %v1821_v16  ;;  %v1873_v52 = vpop.f32.mrf.mxu3 }
 0x5f9   :  { %2041 = vmatpush.msra.mxu2 %v7500_v15  ;;  %v1947_v47 = vsel %vm777_vm10, %v1873_v52, -inf }
 0x5fa   :  { %1948 = vmax.xlane.f32.xlu1 %v1947_v47 }
 0x600   :  { %7248 = vmatmul.msk.f32.vlgmr.msrb.gmra.mxu2 %vm568_vm9, %v1877_v26  ;;  %v1929_v57 = vpop.f32.mrf.mxu3 }
 0x601   :  { %2093 = vmatpush.msrb.mxu2 %v7505_v55  ;;  %v1953_v53 = vsel %vm777_vm10, %v1929_v57, -inf }
 0x602   :  { %1954 = vmax.xlane.f32.xlu0 %v1953_v53 }
 0x651   :  { %v8928_v43 = vpop.f32.mrf.mxu2 }
 0x658   :  { %v1937_v14 = vpop.xlane.xlu0 %1936 }
 0x659   :  { %v1957_v59 = vsub.f32 %v1761_v19, %v1937_v14 }
 0x65b   :  { %v1966_v20 = vmul.f32 1.442695, %v1957_v59  ;;  %v8930_v4 = vpop.f32.mrf.mxu2 }
 0x65d   :  { %7678 = vpow2.f32 %v1966_v20  ;;  %v7511_v20 = vunpack.i.h.bf16 %v8895_v32 }
 0x660   :  { %v1943_v16 = vpop.xlane.xlu2 %1942 }
 0x661   :  { %v1959_v17 = vsub.f32 %v1817_v41, %v1943_v16 }
 0x663   :  { %v7679_v56 = vpop.eup %7678  ;;  %v8932_v39 = vpop.f32.mrf.mxu2  ;;  %v1970_v29 = vmul.f32 1.442695, %v1959_v17 }
 0x664   :  { %v1983_v61 = vsel %vm777_vm10, %v7679_v56, 0.0 }
 0x665   :  { %1984 = vadd.xlane.f32.xlu0 %v1983_v61  ;;  %7680 = vpow2.f32 %v1970_v29 }
 0x66b   :  { %v1733_v26 = vpop.f32.mrf.mxu2  ;;  %v7681_v21 = vpop.eup %7680 }
 0x66c   :  { %v1932_v18 = vsel %vm777_vm10, %v1733_v26, -inf  ;;  %v1989_v62 = vsel %vm777_vm10, %v7681_v21, 0.0 }
 0x66d   :  { %v1949_v60 = vpop.xlane.xlu1 %1948  ;;  %1933 = vmax.xlane.f32.xlu2 %v1932_v18 }
 0x66e   :  { %v1961_v63 = vsub.f32 %v1873_v52, %v1949_v60 }
 0x670   :  { %v1974_v11 = vmul.f32 1.442695, %v1961_v63 }
 0x672   :  { %7682 = vpow2.f32 %v1974_v11  ;;  %v7516_v11 = vunpack.i.h.bf16 %v8900_v58 }
 0x673   :  { %v1789_v2 = vpop.f32.mrf.mxu2 }
 0x674   :  { %v1938_v3 = vsel %vm777_vm10, %v1789_v2, -inf }
 0x675   :  { %v1955_v34 = vpop.xlane.xlu0 %1954  ;;  %1990 = vadd.xlane.f32.xlu2 %v1989_v62  ;;  %1939 = vmax.xlane.f32.xlu1 %v1938_v3 }
 0x676   :  { %v1963_v7 = vsub.f32 %v1929_v57, %v1955_v34 }
 0x678   :  { %v7683_v45 = vpop.eup %7682  ;;  %v1978_v19 = vmul.f32 1.442695, %v1963_v7  ;;  %v8961_v7 = vpop.f32.mrf.mxu1 }
 0x679   :  { %v1995_v1 = vsel %vm777_vm10, %v7683_v45, 0.0 }
 0x67a   :  { %7684 = vpow2.f32 %v1978_v19  ;;  %1996 = vadd.xlane.f32.xlu0 %v1995_v1 }
 0x67b   :  { %v8939_v41 = vpop.f32.mrf.mxu2 }
 0x67c   :  { %v1944_v52 = vsel %vm777_vm10, %v8939_v41, -inf }
 0x680   :  { %v7685_v46 = vpop.eup %7684 }
 0x681   :  { %v2001_v15 = vsel %vm777_vm10, %v7685_v46, 0.0 }
 0x682   :  { %2002 = vadd.xlane.f32.xlu2 %v2001_v15  ;;  %1945 = vmax.xlane.f32.xlu0 %v1944_v52 }
 0x683   :  { %v1901_v47 = vpop.f32.mrf.mxu2 }
 0x684   :  { %v1950_v55 = vsel %vm777_vm10, %v1901_v47, -inf }
 0x68a   :  { %1951 = vmax.xlane.f32.xlu2 %v1950_v55 }
 0x696   :  { %2331 = vrot.lane.b32.xlu0 %v8566_v27, %s8333_s30 }
 0x6a2   :  { %2329 = vrot.lane.b32.xlu2 %v8564_v49, %s8333_s30 }
 0x6d8   :  { %v1985_v57 = vpop.xlane.xlu0 %1984 }
 0x6d9   :  { %7686 = vrcp.f32 %v1985_v57  ;;  %v8964_v57 = vpop.f32.mrf.mxu1 }
 0x6df   :  { %v7687_v53 = vpop.eup %7686 }
 0x6e0   :  { %v2013_v14 = vmul.f32 %v7687_v53, %v7679_v56  ;;  %v1934_v59 = vpop.xlane.xlu2 %1933 }
 0x6e1   :  { %v1956_v16 = vsub.f32 %v1733_v26, %v1934_v59 }
 0x6e2   :  { %7252 = vmatmul.msk.f32.vlgmr.msra.gmra.mxu3 %vm777_vm10, %v2013_v14 }
 0x6e3   :  { %v1964_v17 = vmul.f32 1.442695, %v1956_v16  ;;  %2171 = vmatpush.msra.mxu3 %v7511_v20 }
 0x6e5   :  { %7688 = vpow2.f32 %v1964_v17 }
 0x6e8   :  { %v1991_v61 = vpop.xlane.xlu2 %1990  ;;  %v1940_v29 = vpop.xlane.xlu1 %1939 }
 0x6e9   :  { %7690 = vrcp.f32 %v1991_v61  ;;  %v1958_v27 = vsub.f32 %v1789_v2, %v1940_v29 }
 0x6eb   :  { %v8951_v18 = vpop.eup %7688  ;;  %v1968_v49 = vmul.f32 1.442695, %v1958_v27 }
 0x6ec   :  { %v1980_v60 = vsel %vm777_vm10, %v8951_v18, 0.0 }
 0x6ed   :  { %7692 = vpow2.f32 %v1968_v49  ;;  %v1997_v56 = vpop.xlane.xlu0 %1996  ;;  %1981 = vadd.xlane.f32.xlu1 %v1980_v60  ;;  %v7510_v49 = vunpack.i.l.bf16 %v8895_v32  ;;  %v7515_v60 = vunpack.i.l.bf16 %v8900_v58 }
 0x6ee   :  { %7694 = vrcp.f32 %v1997_v56 }
 0x6ef   :  { %v7691_v63 = vpop.eup %7690 }
 0x6f0   :  { %v2015_v26 = vmul.f32 %v7691_v63, %v7681_v21 }
 0x6f2   :  { %7254 = vmatmul.msk.f32.vlgmr.msrb.gmra.mxu3 %vm777_vm10, %v2015_v26 }
 0x6f3   :  { %v8957_v62 = vpop.eup %7692  ;;  %2223 = vmatpush.msrb.mxu3 %v7516_v11 }
 0x6f4   :  { %v1986_v2 = vsel %vm777_vm10, %v8957_v62, 0.0  ;;  %v7695_v3 = vpop.eup %7694 }
 0x6f5   :  { %v2003_v34 = vpop.xlane.xlu2 %2002  ;;  %1987 = vadd.xlane.f32.xlu0 %v1986_v2  ;;  %v2017_v19 = vmul.f32 %v7695_v3, %v7683_v45 }
 0x6f6   :  { %7696 = vrcp.f32 %v2003_v34 }
 0x6fa   :  { %7256 = vmatmul.msk.f32.vlgmr.msra.gmra.mxu3 %vm777_vm10, %v2017_v19 }
 0x6fc   :  { %v7697_v21 = vpop.eup %7696 }
 0x6fd   :  { %v1952_v1 = vpop.xlane.xlu2 %1951  ;;  %v2019_v52 = vmul.f32 %v7697_v21, %v7685_v46 }
 0x6fe   :  { %v1962_v15 = vsub.f32 %v1901_v47, %v1952_v1  ;;  %v8975_v47 = vpop.f32.mrf.mxu1 }
 0x700   :  { %v1976_v55 = vmul.f32 1.442695, %v1962_v15 }
 0x702   :  { %7698 = vpow2.f32 %v1976_v55  ;;  %7258 = vmatmul.msk.f32.vlgmr.msrb.gmra.mxu3 %vm777_vm10, %v2019_v52 }
 0x705   :  { %v2330_v63 = vpop.permute.xlu2 %2329 }
 0x706   :  { %2359 = vrot.lane.b32.xlu1 %v8580_v28, %s8333_s30  ;;  %v8979_v46 = vpop.f32.mrf.mxu1  ;;  %v1946_v28 = vpop.xlane.xlu0 %1945 }
 0x707   :  { %v1960_v14 = vsub.f32 %v8939_v41, %v1946_v28 }
 0x708   :  { %v8969_v53 = vpop.eup %7698 }
 0x709   :  { %2357 = vrot.lane.b32.xlu0 %v8578_v9, %s8333_s30  ;;  %v1998_v45 = vsel %vm777_vm10, %v8969_v53, 0.0  ;;  %v1972_v9 = vmul.f32 1.442695, %v1960_v14 }
 0x70a   :  { %1999 = vadd.xlane.f32.xlu2 %v1998_v45 }
 0x70b   :  { %7700 = vpow2.f32 %v1972_v9 }
 0x70e   :  { %v8984_v59 = vpop.f32.mrf.mxu1  ;;  %v2332_v17 = vpop.permute.xlu0 %2331 }
 0x711   :  { %2415 = vrot.lane.b32.xlu0 %v8606_v35, %s8333_s30  ;;  %v7701_v35 = vpop.eup %7700 }
 0x716   :  { %v8990_v20 = vpop.f32.mrf.mxu1 }
 0x719   :  { %2441 = vrot.lane.b32.xlu0 %v8617_v40, %s8333_s30  ;;  %v1992_v40 = vsel %vm777_vm10, %v7701_v35, 0.0 }
 0x71e   :  { %v8997_v41 = vpop.f32.mrf.mxu1 }
 0x721   :  { %2499 = vrot.lane.b32.xlu0 %v8639_v48, %s8333_s30 }
 0x722   :  { %2385 = vrot.lane.b32.xlu2 %v8592_v30, %s8333_s30 }
 0x726   :  { %v8999_v48 = vpop.f32.mrf.mxu1 }
 0x72a   :  { %2413 = vrot.lane.b32.xlu2 %v8604_v33, %s8333_s30  ;;  %v1075_v33 = vpop.f32.mrf.mxu0 }
 0x72e   :  { %v9001_v16 = vpop.f32.mrf.mxu1 }
 0x72f   :  { %v2525_v30 = vsel %vm777_vm10, %v9001_v16, -inf }
 0x730   :  { %1993 = vadd.xlane.f32.xlu1 %v1992_v40 }
 0x732   :  { %2469 = vrot.lane.b32.xlu2 %v8632_v44, %s8333_s30  ;;  %v1274_v44 = vsel %vm777_vm10, %v1075_v33, -inf }
 0x749   :  { %2387 = vrot.lane.b32.xlu1 %v8594_v31, %s8333_s30 }
 0x74b   :  { %2526 = vmax.xlane.f32.xlu0 %v2525_v30 }
 0x751   :  { %2443 = vrot.lane.b32.xlu1 %v8615_v38, %s8333_s30 }
 0x759   :  { %2471 = vrot.lane.b32.xlu1 %v8626_v36, %s8333_s30 }
 0x75b   :  { %1275 = vmax.xlane.f32.xlu2 %v1274_v44 }
 0x760   :  { %v1982_v61 = vpop.xlane.xlu1 %1981 }
 0x761   :  { %7702 = vrcp.f32 %v1982_v61  ;;  %2497 = vrot.lane.b32.xlu1 %v8645_v51, %s8333_s30 }
 0x765   :  { %v9039_v44 = vpop.f32.mrf.mxu3 }
 0x767   :  { %v7703_v31 = vpop.eup %7702 }
 0x768   :  { %v2012_v29 = vmul.f32 %v7703_v31, %v8951_v18  ;;  %v1988_v27 = vpop.xlane.xlu0 %1987  ;;  %v1187_v18 = vpop.f32.mrf.mxu0 }
 0x769   :  { %7704 = vrcp.f32 %v1988_v27  ;;  %v1286_v32 = vsel %vm777_vm10, %v1187_v18, -inf  ;;  %v7517_v27 = vpack.i.bf16 %v8612_v37, %v8562_v24 }
 0x76a   :  { %7251 = vmatmul.msk.f32.vlgmr.msra.gmra.mxu2 %vm777_vm10, %v2012_v29 }
 0x76b   :  { %2145 = vmatpush.msra.mxu2 %v7510_v49 }
 0x76f   :  { %v7705_v38 = vpop.eup %7704 }
 0x770   :  { %v2014_v36 = vmul.f32 %v7705_v38, %v8957_v62 }
 0x772   :  { %7253 = vmatmul.msk.f32.vlgmr.msrb.gmra.mxu2 %vm777_vm10, %v2014_v36 }
 0x773   :  { %2197 = vmatpush.msrb.mxu2 %v7515_v60 }
 0x778   :  { %v2360_v56 = vpop.permute.xlu1 %2359 }
 0x779   :  { %7271 = vmatpush.xpose.msk.msra.mxu3 %vm568_vm9, %v2360_v56 }
 0x77b   :  { %v2358_v51 = vpop.permute.xlu0 %2357 }
 0x77c   :  { %7272 = vmatmul.msk.f32.vlgmr.msra.gmra.mxu3 %vm568_vm9, %v2358_v51 }
 0x77d   :  { %v2000_v11 = vpop.xlane.xlu2 %1999 }
 0x783   :  { %v2416_v62 = vpop.permute.xlu0 %2415 }
 0x785   :  { %v2386_v34 = vpop.permute.xlu2 %2385 }
 0x78b   :  { %1287 = vmax.xlane.f32.xlu1 %v1286_v32  ;;  %v2442_v21 = vpop.permute.xlu0 %2441 }
 0x78d   :  { %v2414_v15 = vpop.permute.xlu2 %2413 }
 0x793   :  { %v2500_v52 = vpop.permute.xlu0 %2499 }
 0x7a3   :  { %v1994_v26 = vpop.xlane.xlu1 %1993 }
 0x7a4   :  { %7706 = vrcp.f32 %v1994_v26 }
 0x7a5   :  { %7708 = vrcp.f32 %v2000_v11 }
 0x7aa   :  { %v7707_v2 = vpop.eup %7706 }
 0x7ab   :  { %v2016_v58 = vmul.f32 %v7707_v2, %v7701_v35  ;;  %v7709_v3 = vpop.eup %7708 }
 0x7ac   :  { %v2018_v19 = vmul.f32 %v7709_v3, %v8969_v53  ;;  %v2470_v53 = vpop.permute.xlu2 %2469 }
 0x7ad   :  { %7255 = vmatmul.msk.f32.vlgmr.msra.gmra.mxu2 %vm777_vm10, %v2016_v58 }
 0x7ae   :  { %7269 = vmatpush.xpose.msk.msra.mxu2 %vm568_vm9, %v2332_v17  ;;  %v9041_v17 = vpop.f32.mrf.mxu3 }
 0x7b5   :  { %7257 = vmatmul.msk.f32.vlgmr.msrb.gmra.mxu2 %vm777_vm10, %v2018_v19 }
 0x7b6   :  { %7275 = vmatpush.xpose.msk.msrb.mxu2 %vm568_vm9, %v2416_v62  ;;  %v9043_v61 = vpop.f32.mrf.mxu3 }
 0x7bb   :  { %v2388_v1 = vpop.permute.xlu1 %2387 }
 0x7bc   :  { %7273 = vmatpush.xpose.msk.msrb.mxu1 %vm568_vm9, %v2388_v1 }
 0x7bd   :  { %7270 = vmatmul.msk.f32.vlgmr.msra.gmra.mxu2 %vm568_vm9, %v2330_v63 }
 0x7be   :  { %7281 = vmatpush.xpose.msk.msra.mxu2 %vm568_vm9, %v2500_v52  ;;  %v9045_v31 = vpop.f32.mrf.mxu3  ;;  %v2527_v37 = vpop.xlane.xlu0 %2526 }
 0x7bf   :  { %7274 = vmatmul.msk.f32.vlgmr.msrb.gmra.mxu1 %vm568_vm9, %v2386_v34  ;;  %v2549_v62 = vsub.f32 %v9001_v16, %v2527_v37 }
 0x7c1   :  { %v2557_v34 = vmul.f32 1.442695, %v2549_v62 }
 0x7c3   :  { %v2444_v55 = vpop.permute.xlu1 %2443 }
 0x7c4   :  { %7277 = vmatpush.xpose.msk.msrb.mxu3 %vm568_vm9, %v2444_v55 }
 0x7c5   :  { %7276 = vmatmul.msk.f32.vlgmr.msrb.gmra.mxu2 %vm568_vm9, %v2414_v15 }
 0x7c7   :  { %7278 = vmatmul.msk.f32.vlgmr.msrb.gmra.mxu3 %vm568_vm9, %v2442_v21 }
 0x7cb   :  { %v2472_v45 = vpop.permute.xlu1 %2471 }
 0x7cc   :  { %7279 = vmatpush.xpose.msk.msra.mxu1 %vm568_vm9, %v2472_v45 }
 0x7ce   :  { %v1276_v28 = vpop.xlane.xlu2 %1275 }
 0x7cf   :  { %v1298_v14 = vsub.f32 %v1075_v33, %v1276_v28  ;;  %7280 = vmatmul.msk.f32.vlgmr.msra.gmra.mxu1 %vm568_vm9, %v2470_v53 }
 0x7d1   :  { %v1306_v9 = vmul.f32 1.442695, %v1298_v14 }
 0x7d3   :  { %7710 = vpow2.f32 %v1306_v9  ;;  %v2498_v35 = vpop.permute.xlu1 %2497 }
 0x7d4   :  { %7282 = vmatmul.msk.f32.vlgmr.msra.gmra.mxu2 %vm568_vm9, %v2498_v35 }
 0x7d9   :  { %v7711_v40 = vpop.eup %7710 }
 0x7da   :  { %v1322_v30 = vsel %vm777_vm10, %v7711_v40, 0.0 }
 0x7db   :  { %1323 = vadd.xlane.f32.xlu1 %v1322_v30 }
 0x7ed   :  { %v9051_v49 = vpop.f32.mrf.mxu2 }
 0x7f5   :  { %v9053_v56 = vpop.f32.mrf.mxu2 }
 0x7fe   :  { %v1288_v38 = vpop.xlane.xlu1 %1287 }
 0x7ff   :  { %v2382_v33 = vpop.f32.mrf.mxu3  ;;  %v1302_v36 = vsub.f32 %v1187_v18, %v1288_v38 }
 0x800   :  { %v2531_v29 = vsel %vm777_vm10, %v2382_v33, -inf }
 0x801   :  { %2532 = vmax.xlane.f32.xlu0 %v2531_v29  ;;  %v1314_v60 = vmul.f32 1.442695, %v1302_v36 }
 0x803   :  { %7712 = vpow2.f32 %v1314_v60 }
 0x804   :  { %7714 = vpow2.f32 %v2557_v34 }
 0x809   :  { %v7713_v51 = vpop.eup %7712 }
 0x80a   :  { %v1334_v11 = vsel %vm777_vm10, %v7713_v51, 0.0  ;;  %v9065_v1 = vpop.eup %7714 }
 0x80b   :  { %v2573_v15 = vsel %vm777_vm10, %v9065_v1, 0.0 }
 0x815   :  { %7518 = vrot.lane.b32.xlu0 %v7517_v27, %s8331_s10 }
 0x830   :  { %v9055_v32 = vpop.f32.mrf.mxu2 }
 0x838   :  { %v9059_v24 = vpop.f32.mrf.mxu2 }
 0x83c   :  { %v2410_v63 = vpop.f32.mrf.mxu1 }
 0x83d   :  { %v2534_v26 = vsel %vm777_vm10, %v2410_v63, -inf }
 0x83e   :  { %2535 = vmax.xlane.f32.xlu2 %v2534_v26 }
 0x83f   :  { %1335 = vadd.xlane.f32.xlu0 %v1334_v11 }
 0x840   :  { %v2354_v19 = vpop.f32.mrf.mxu2 }
 0x841   :  { %v2528_v21 = vsel %vm777_vm10, %v2354_v19, -inf }
 0x84a   :  { %v2466_v18 = vpop.f32.mrf.mxu3 }
 0x84b   :  { %v2540_v2 = vsel %vm777_vm10, %v2466_v18, -inf }
 0x84c   :  { %2541 = vmax.xlane.f32.xlu2 %v2540_v2  ;;  %v2494_v58 = vpop.f32.mrf.mxu1 }
 0x84d   :  { %v2543_v3 = vsel %vm777_vm10, %v2494_v58, -inf }
 0x84e   :  { %2544 = vmax.xlane.f32.xlu1 %v2543_v3  ;;  %v1324_v53 = vpop.xlane.xlu1 %1323 }
 0x854   :  { %2529 = vmax.xlane.f32.xlu2 %v2528_v21 }
 0x85c   :  { %2574 = vadd.xlane.f32.xlu2 %v2573_v15 }
 0x867   :  { %7523 = vrot.lane.b32.xlu1 %v8831_v23, %s8333_s30  ;;  %v2438_v23 = vpop.f32.mrf.mxu2 }
 0x86f   :  { %v9088_v11 = vpop.f32.mrf.mxu2 }
 0x870   :  { %v2546_v62 = vsel %vm777_vm10, %v9088_v11, -inf }
 0x874   :  { %v2533_v16 = vpop.xlane.xlu0 %2532 }
 0x875   :  { %v2551_v52 = vsub.f32 %v2382_v33, %v2533_v16  ;;  %v2537_v33 = vsel %vm777_vm10, %v2438_v23, -inf }
 0x877   :  { %v2561_v55 = vmul.f32 1.442695, %v2551_v52 }
 0x879   :  { %7716 = vpow2.f32 %v2561_v55 }
 0x87a   :  { %7718 = vrcp.f32 %v1324_v53 }
 0x87f   :  { %v9071_v45 = vpop.eup %7716 }
 0x880   :  { %v2579_v28 = vsel %vm777_vm10, %v9071_v45, 0.0  ;;  %v7719_v14 = vpop.eup %7718 }
 0x881   :  { %2580 = vadd.xlane.f32.xlu2 %v2579_v28  ;;  %v1354_v29 = vmul.f32 %v7719_v14, %v7711_v40 }
 0x887   :  { %v7519_v9 = vpop.permute.xlu0 %7518 }
 0x888   :  { %v7521_v35 = vunpack.i.h.bf16 %v7519_v9  ;;  %v7520_v30 = vunpack.i.l.bf16 %v7519_v9 }
 0x88a   :  { %1384 = vmatpush.msrb.mxu0 %v7520_v30 }
 0x88b   :  { %7211 = vmatmul.msk.f32.vlgmr.msrb.gmra.mxu0 %vm777_vm10, %v1354_v29 }
 0x88c   :  { %1492 = vmatpush.msra.mxu0 %v7521_v35 }
 0x88e   :  { %1614 = vmatpush.msrb.mxu0 %v8858_v22 }
 0x890   :  { %1615 = vmatpush.msrb.mxu0 %v8861_v50 }
 0x891   :  { %2538 = vmax.xlane.f32.xlu1 %v2537_v33 }
 0x892   :  { %1616 = vmatpush.msrb.mxu0 %v8865_v25 }
 0x894   :  { %1617 = vmatpush.msrb.mxu0 %v8871_v54 }
 0x8aa   :  { %7528 = vrot.lane.b32.xlu1 %v8839_v0, %s8333_s30 }
 0x8b1   :  { %v2536_v40 = vpop.xlane.xlu2 %2535 }
 0x8b2   :  { %v2552_v27 = vsub.f32 %v2410_v63, %v2536_v40  ;;  %v1336_v38 = vpop.xlane.xlu0 %1335 }
 0x8b3   :  { %7720 = vrcp.f32 %v1336_v38 }
 0x8b4   :  { %v2563_v36 = vmul.f32 1.442695, %v2552_v27 }
 0x8b6   :  { %7722 = vpow2.f32 %v2563_v36 }
 0x8b9   :  { %v7721_v60 = vpop.eup %7720 }
 0x8ba   :  { %v1358_v22 = vmul.f32 %v7721_v60, %v7713_v51  ;;  %v562_v60 = vld [vmem:[#allocation10 + $0x50] sm:$0xff] }
 0x8bc   :  { %v9083_v26 = vpop.eup %7722  ;;  %7215 = vmatmul.msk.f32.vlgmr.msra.gmra.mxu0 %vm777_vm10, %v1358_v22 }
 0x8bd   :  { %v2582_v50 = vsel %vm777_vm10, %v9083_v26, 0.0 }
 0x8be   :  { %2583 = vadd.xlane.f32.xlu2 %v2582_v50  ;;  %v561_v50 = vld [vmem:[#allocation10 + $0x48] sm:$0xff] }
 0x8bf   :  { %v2542_v25 = vpop.xlane.xlu2 %2541 }
 0x8c0   :  { %v2554_v0 = vsub.f32 %v2466_v18, %v2542_v25 }
 0x8c1   :  { %v2545_v54 = vpop.xlane.xlu1 %2544 }
 0x8c2   :  { %v2555_v63 = vsub.f32 %v2494_v58, %v2545_v54  ;;  %v2567_v2 = vmul.f32 1.442695, %v2554_v0 }
 0x8c4   :  { %v2569_v37 = vmul.f32 1.442695, %v2555_v63 }
 0x8c6   :  { %7724 = vpow2.f32 %v2569_v37  ;;  %2547 = vmax.xlane.f32.xlu2 %v2546_v62 }
 0x8c7   :  { %v2530_v51 = vpop.xlane.xlu2 %2529  ;;  %7726 = vpow2.f32 %v2567_v2 }
 0x8c8   :  { %v2550_v3 = vsub.f32 %v2354_v19, %v2530_v51 }
 0x8ca   :  { %v2559_v34 = vmul.f32 1.442695, %v2550_v3 }
 0x8cc   :  { %v9092_v21 = vpop.eup %7724  ;;  %7728 = vpow2.f32 %v2559_v34 }
 0x8cd   :  { %v2591_v15 = vsel %vm777_vm10, %v9092_v21, 0.0  ;;  %v9096_v58 = vpop.eup %7726 }
 0x8ce   :  { %2592 = vadd.xlane.f32.xlu0 %v2591_v15  ;;  %v2588_v52 = vsel %vm777_vm10, %v9096_v58, 0.0 }
 0x8cf   :  { %v2575_v18 = vpop.xlane.xlu2 %2574 }
 0x8d0   :  { %7730 = vrcp.f32 %v2575_v18 }
 0x8d2   :  { %v9098_v16 = vpop.eup %7728 }
 0x8d3   :  { %v2576_v19 = vsel %vm777_vm10, %v9098_v16, 0.0 }
 0x8d4   :  { %2589 = vadd.xlane.f32.xlu1 %v2588_v52  ;;  %2577 = vadd.xlane.f32.xlu2 %v2576_v19  ;;  %v565_v52 = vld [vmem:[#allocation10 + $0x68] sm:$0xff]  ;;  %v564_v19 = vld [vmem:[#allocation10 + $0x60] sm:$0xff] }
 0x8d6   :  { %v7731_v55 = vpop.eup %7730 }
 0x8d7   :  { %v2605_v9 = vmul.f32 %v7731_v55, %v9065_v1 }
 0x8d9   :  { %v7524_v53 = vpop.permute.xlu1 %7523 }
 0x8da   :  { %v7526_v28 = vunpack.i.h.bf16 %v7524_v53  ;;  %v7525_v14 = vunpack.i.l.bf16 %v7524_v53 }
 0x8dc   :  { %2634 = vmatpush.msra.mxu3 %v7525_v14  ;;  %2660 = vmatpush.msrb.mxu1 %v7526_v28 }
 0x8dd   :  { %7283 = vmatmul.msk.f32.vlgmr.msra.gmra.mxu3 %vm777_vm10, %v2605_v9 }
 0x8e2   :  { %2769 = vrot.lane.b32.xlu0 %v8686_v42, %s8333_s30 }
 0x8ea   :  { %2795 = vrot.lane.b32.xlu0 %v8690_v6, %s8333_s30 }
 0x8f4   :  { %v2581_v42 = vpop.xlane.xlu2 %2580 }
 0x904   :  { %v2539_v35 = vpop.xlane.xlu1 %2538 }
 0x905   :  { %v2553_v30 = vsub.f32 %v2438_v23, %v2539_v35  ;;  %v563_v23 = vld [vmem:[#allocation10 + $0x58] sm:$0xff] }
 0x906   :  { %2264 = vmatpush.msra.mxu0 %v563_v23 }
 0x907   :  { %v2565_v29 = vmul.f32 1.442695, %v2553_v30 }
 0x908   :  { %v1386_v33 = vpop.f32.mrf.mxu0  ;;  %2265 = vmatpush.msra.mxu0 %v562_v60 }
 0x909   :  { %7732 = vpow2.f32 %v2565_v29  ;;  %7219 = vmatmul.msk.f32.vlgmr.msrb.gmra.mxu0 %vm568_vm9, %v1386_v33 }
 0x90a   :  { %7734 = vrcp.f32 %v2581_v42  ;;  %2266 = vmatpush.msra.mxu0 %v561_v50 }
 0x90f   :  { %v9111_v40 = vpop.eup %7732 }
 0x910   :  { %v2585_v1 = vsel %vm777_vm10, %v9111_v40, 0.0  ;;  %v7735_v6 = vpop.eup %7734 }
 0x911   :  { %7220 = vmatmul.msk.f32.gmra.mxu0 %vm568_vm9, %v8907_v5  ;;  %2586 = vadd.xlane.f32.xlu2 %v2585_v1  ;;  %v2607_v22 = vmul.f32 %v7735_v6, %v9071_v45  ;;  %v560_v5 = vld [vmem:[#allocation10 + $0x40] sm:$0xff] }
 0x912   :  { %2267 = vmatpush.msra.mxu0 %v560_v5 }
 0x919   :  { %7221 = vmatmul.msk.f32.gmra.mxu0 %vm568_vm9, %v8910_v10 }
 0x91c   :  { %v7529_v27 = vpop.permute.xlu1 %7528 }
 0x91d   :  { %v7531_v38 = vunpack.i.h.bf16 %v7529_v27  ;;  %v7530_v36 = vunpack.i.l.bf16 %v7529_v27 }
 0x91f   :  { %2686 = vmatpush.msrb.mxu2 %v7530_v36  ;;  %2712 = vmatpush.msrb.mxu3 %v7531_v38  ;;  %v9165_v36 = vld [vmem:[%s10476_s5] ss:$0 sm:$0xff] }
 0x920   :  { %7285 = vmatmul.msk.f32.vlgmr.msrb.gmra.mxu2 %vm777_vm10, %v2607_v22 }
 0x921   :  { %7222 = vmatmul.msk.f32.gmra.mxu0 %vm568_vm9, %v8913_v12 }
 0x929   :  { %7533 = vrot.lane.b32.xlu2 %v8796_v8, %s8333_s30 }
 0x931   :  { %v2584_v10 = vpop.xlane.xlu2 %2583 }
 0x932   :  { %7736 = vrcp.f32 %v2584_v10  ;;  %v8054_v10 = vld [vmem:[#allocation2] sm:$0xff] }
 0x938   :  { %v7737_v25 = vpop.eup %7736 }
 0x939   :  { %v2608_v45 = vmul.f32 %v7737_v25, %v9083_v26  ;;  %v1494_v54 = vpop.f32.mrf.mxu0  ;;  %v2548_v0 = vpop.xlane.xlu2 %2547 }
 0x93a   :  { %7223 = vmatmul.msk.f32.gmra.mxu0 %vm568_vm9, %v1494_v54  ;;  %v2556_v63 = vsub.f32 %v9088_v11, %v2548_v0 }
 0x93b   :  { %7286 = vmatmul.msk.f32.vlgmr.msrb.gmra.mxu3 %vm777_vm10, %v2608_v45 }
 0x93c   :  { %v2571_v12 = vmul.f32 1.442695, %v2556_v63 }
 0x93e   :  { %7738 = vpow2.f32 %v2571_v12 }
 0x941   :  { %v2593_v8 = vpop.xlane.xlu0 %2592 }
 0x942   :  { %7259 = vmatmul.msk.f32.vlgmr.msra.gmra.mxu0 %vm568_vm9, %v9051_v49 }
 0x944   :  { %v7739_v26 = vpop.eup %7738 }
 0x945   :  { %v2594_v49 = vsel %vm777_vm10, %v7739_v26, 0.0 }
 0x947   :  { %v2578_v37 = vpop.xlane.xlu2 %2577 }
 0x948   :  { %7740 = vrcp.f32 %v2578_v37 }
 0x949   :  { %7742 = vrcp.f32 %v2593_v8 }
 0x94a   :  { %7260 = vmatmul.msk.f32.gmra.mxu0 %vm568_vm9, %v9039_v44  ;;  %v2590_v44 = vpop.xlane.xlu1 %2589 }
 0x94b   :  { %7744 = vrcp.f32 %v2590_v44 }
 0x94e   :  { %v7741_v62 = vpop.eup %7740 }
 0x94f   :  { %v2606_v2 = vmul.f32 %v7741_v62, %v9098_v16  ;;  %v7743_v51 = vpop.eup %7742  ;;  %v8055_v62 = vld [vmem:[#allocation2 + $0x8] sm:$0xff] }
 0x950   :  { %v2611_v11 = vmul.f32 %v7743_v51, %v9092_v21 }
 0x951   :  { %7284 = vmatmul.msk.f32.vlgmr.msrb.gmra.mxu1 %vm777_vm10, %v2606_v2  ;;  %v7745_v34 = vpop.eup %7744 }
 0x952   :  { %7261 = vmatmul.msk.f32.gmra.mxu0 %vm568_vm9, %v9053_v56  ;;  %2595 = vadd.xlane.f32.xlu2 %v2594_v49 }
 0x954   :  { %v2770_v3 = vpop.permute.xlu0 %2769 }
 0x955   :  { %2790 = vmatpush.msra.mxu3 %v2770_v3 }
 0x956   :  { %7289 = vmatmul.msk.f32.vlgmr.msra.gmra.mxu3 %vm777_vm10, %v2611_v11 }
 0x95a   :  { %7262 = vmatmul.msk.f32.gmra.mxu0 %vm568_vm9, %v9041_v17 }
 0x960   :  { %v2636_v55 = vpop.f32.mrf.mxu3 }
 0x962   :  { %7263 = vmatmul.msk.f32.gmra.mxu0 %vm568_vm9, %v9055_v32  ;;  %v2610_v32 = vmul.f32 %v7745_v34, %v9096_v58 }
 0x96a   :  { %7264 = vmatmul.msk.f32.gmra.mxu0 %vm568_vm9, %v9043_v61  ;;  %v567_v61 = vld [vmem:[#allocation10 + $0x78] sm:$0xff] }
 0x972   :  { %7265 = vmatmul.msk.f32.gmra.mxu0 %vm568_vm9, %v9059_v24  ;;  %v2796_v24 = vpop.permute.xlu0 %2795 }
 0x97a   :  { %7266 = vmatmul.msk.f32.gmra.mxu0 %vm568_vm9, %v9045_v31  ;;  %v566_v31 = vld [vmem:[#allocation10 + $0x70] sm:$0xff] }
 0x984   :  { %v2587_v56 = vpop.xlane.xlu2 %2586 }
 0x985   :  { %7746 = vrcp.f32 %v2587_v56  ;;  %v8056_v56 = vld [vmem:[#allocation2 + $0x10] sm:$0xff] }
 0x986   :  { %v1619_v30 = vpop.f32.mrf.mxu0 }
 0x987   :  { %v1685_v27 = vadd.f32 %v8961_v7, %v1619_v30 }
 0x98b   :  { %v7747_v21 = vpop.eup %7746 }
 0x98c   :  { %v7534_v15 = vpop.permute.xlu2 %7533  ;;  %v2609_v16 = vmul.f32 %v7747_v21, %v9111_v40 }
 0x98d   :  { %v7536_v17 = vunpack.i.h.bf16 %v7534_v15  ;;  %v7535_v18 = vunpack.i.l.bf16 %v7534_v15 }
 0x98e   :  { %v1622_v29 = vpop.f32.mrf.mxu0 }
 0x98f   :  { %2738 = vmatpush.msra.mxu1 %v7535_v18  ;;  %2764 = vmatpush.msra.mxu2 %v7536_v17  ;;  %v1688_v54 = vadd.f32 %v8964_v57, %v1622_v29  ;;  %v8057_v18 = vld [vmem:[#allocation2 + $0x18] sm:$0xff] }
 0x990   :  { %7287 = vmatmul.msk.f32.vlgmr.msra.gmra.mxu1 %vm777_vm10, %v2609_v16  ;;  %7288 = vmatmul.msk.f32.vlgmr.msra.gmra.mxu2 %vm777_vm10, %v2610_v32 }
 0x991   :  { %2816 = vmatpush.msrb.mxu1 %v2796_v24  ;;  %2857 = vmatpush.msrb.mxu2 %v567_v61 }
 0x993   :  { %2858 = vmatpush.msrb.mxu2 %v566_v31 }
 0x995   :  { %2859 = vmatpush.msrb.mxu2 %v565_v52 }
 0x996   :  { %v1625_v33 = vpop.f32.mrf.mxu0 }
 0x997   :  { %2860 = vmatpush.msrb.mxu2 %v564_v19 }
 0x998   :  { %7291 = vmatmul.msk.f32.vlgmr.msrb.gmra.mxu2 %vm568_vm9, %v2636_v55 }
 0x99e   :  { %v1628_v40 = vpop.f32.mrf.mxu0 }
 0x99f   :  { %v1694_v57 = vadd.f32 %v8979_v46, %v1628_v40  ;;  %v1703_v40 = vadd.f32 %v8997_v41, %v8930_v4 }
 0x9a3   :  { %v2688_v9 = vpop.f32.mrf.mxu2 }
 0x9b7   :  { %v1631_v1 = vpop.f32.mrf.mxu0 }
 0x9b8   :  { %v1697_v61 = vadd.f32 %v8984_v59, %v1631_v1 }
 0x9be   :  { %v2714_v35 = vpop.f32.mrf.mxu3 }
 0x9bf   :  { %v2269_v23 = vpop.f32.mrf.mxu0 }
 0x9c0   :  { %v2293_v38 = vadd.f32 %v2269_v23, %v1685_v27 }
 0x9c5   :  { %v2596_v58 = vpop.xlane.xlu2 %2595 }
 0x9c6   :  { %7748 = vrcp.f32 %v2596_v58  ;;  %v1700_v58 = vadd.f32 %v8990_v20, %v8928_v43  ;;  %v8059_v20 = vld [vmem:[#allocation2 + $0x28] sm:$0xff] }
 0x9c7   :  { %v2272_v45 = vpop.f32.mrf.mxu0 }
 0x9c8   :  { %v2294_v0 = vadd.f32 %v2272_v45, %v1688_v54 }
 0x9cc   :  { %v7749_v53 = vpop.eup %7748 }
 0x9cd   :  { %v2612_v28 = vmul.f32 %v7749_v53, %v7739_v26  ;;  %v1691_v26 = vadd.f32 %v8975_v47, %v1625_v33 }
 0x9ce   :  { %v2662_v14 = vpop.f32.mrf.mxu1 }
 0x9cf   :  { %7290 = vmatmul.msk.f32.vlgmr.msrb.gmra.mxu1 %vm777_vm10, %v2612_v28  ;;  %7292 = vmatmul.msk.f32.gmra.mxu2 %vm568_vm9, %v2662_v14  ;;  %v2275_v37 = vpop.f32.mrf.mxu0  ;;  %v8058_v28 = vld [vmem:[#allocation2 + $0x20] sm:$0xff] }
 0x9d0   :  { %v2295_v51 = vadd.f32 %v2275_v37, %v1691_v26  ;;  %v8061_v37 = vld [vmem:[#allocation2 + $0x38] sm:$0xff] }
 0x9d7   :  { %7293 = vmatmul.msk.f32.gmra.mxu2 %vm568_vm9, %v2688_v9  ;;  %v2278_v44 = vpop.f32.mrf.mxu0 }
 0x9d8   :  { %v2296_v21 = vadd.f32 %v2278_v44, %v1694_v57  ;;  %v3127_v44 = vld [vmem:[#allocation14 + $0xe8] sm:$0xff]  ;;  %v3124_v57 = vld [vmem:[#allocation14 + $0xd0] sm:$0xff] }
 0x9d9   :  { %v2792_v50 = vpop.f32.mrf.mxu3 }
 0x9df   :  { %7294 = vmatmul.msk.f32.gmra.mxu2 %vm568_vm9, %v2714_v35  ;;  %v2281_v16 = vpop.f32.mrf.mxu0 }
 0x9e0   :  { %v2297_v24 = vadd.f32 %v2281_v16, %v1697_v61  ;;  %v3119_v16 = vld [vmem:[#allocation14 + $0xa8] sm:$0xff]  ;;  %v3116_v61 = vld [vmem:[#allocation14 + $0x90] sm:$0xff] }
 0x9e7   :  { %v2284_v52 = vpop.f32.mrf.mxu0 }
 0x9e8   :  { %v2298_v9 = vadd.f32 %v2284_v52, %v1700_v58  ;;  %v3112_v52 = vld [vmem:[#allocation14 + $0x70] sm:$0xff]  ;;  %v3111_v58 = vld [vmem:[#allocation14 + $0x68] sm:$0xff] }
 0x9ef   :  { %v2287_v33 = vpop.f32.mrf.mxu0 }
 0x9f7   :  { %v2290_v4 = vpop.f32.mrf.mxu0 }
 0xa0d   :  { %v2740_v42 = vpop.f32.mrf.mxu1 }
 0xa0e   :  { %7295 = vmatmul.msk.f32.gmra.mxu2 %vm568_vm9, %v2740_v42  ;;  %v2299_v42 = vadd.f32 %v2287_v33, %v1703_v40  ;;  %v3102_v40 = vld [vmem:[#allocation14 + $0x20] sm:$0xff] }
 0xa13   :  { %v2766_v6 = vpop.f32.mrf.mxu2 }
 0xa16   :  { %7296 = vmatmul.msk.f32.gmra.mxu2 %vm568_vm9, %v2766_v6 }
 0xa1b   :  { %v2862_v60 = vpop.f32.mrf.mxu2 }
 0xa1c   :  { %v2886_v22 = vadd.f32 %v2862_v60, %v2293_v38  ;;  %v8060_v38 = vld [vmem:[#allocation2 + $0x30] sm:$0xff] }
 0xa1e   :  { %v2898_v5 = vadd.f32 %v9165_v36, %v2886_v22  ;;  %7297 = vmatmul.msk.f32.gmra.mxu2 %vm568_vm9, %v2792_v50  ;;  %v1706_v22 = vadd.f32 %v8999_v48, %v8932_v39 }
 0xa20   :  { %v9169_v25 = vadd.f32 %v8054_v10, %v2898_v5  ;;  %v2300_v5 = vadd.f32 %v2290_v4, %v1706_v22 }
 0xa22   :  { %2916 = vadd.xlane.f32.xlu1 %v9169_v25 }
 0xa4c   :  { %v2818_v7 = vpop.f32.mrf.mxu1 }
 0xa4d   :  { %7298 = vmatmul.msk.f32.gmra.mxu2 %vm568_vm9, %v2818_v7 }
 0xa52   :  { %v2865_v63 = vpop.f32.mrf.mxu2 }
 0xa53   :  { %v2887_v12 = vadd.f32 %v2865_v63, %v2294_v0 }
 0xa55   :  { %v2899_v8 = vadd.f32 %v9165_v36, %v2887_v12 }
 0xa57   :  { %v9176_v2 = vadd.f32 %v8055_v62, %v2899_v8 }
 0xa59   :  { %2918 = vadd.xlane.f32.xlu0 %v9176_v2 }
 0xa5a   :  { %v2868_v49 = vpop.f32.mrf.mxu2 }
 0xa5b   :  { %v2888_v11 = vadd.f32 %v2868_v49, %v2295_v51  ;;  %v3128_v49 = vld [vmem:[#allocation14 + $0xf0] sm:$0xff] }
 0xa5c   :  { %3136 = vmatpush.msrb.mxu0 %v3128_v49 }
 0xa5d   :  { %v2900_v3 = vadd.f32 %v9165_v36, %v2888_v11  ;;  %v3129_v11 = vld [vmem:[#allocation14 + $0xf8] sm:$0xff] }
 0xa5e   :  { %3177 = vmatpush.msrb.mxu3 %v3129_v11 }
 0xa5f   :  { %v9181_v34 = vadd.f32 %v8056_v56, %v2900_v3  ;;  %v3126_v3 = vld [vmem:[#allocation14 + $0xe0] sm:$0xff]  ;;  %v3125_v56 = vld [vmem:[#allocation14 + $0xd8] sm:$0xff] }
 0xa60   :  { %3137 = vmatpush.msrb.mxu0 %v3126_v3  ;;  %3178 = vmatpush.msrb.mxu3 %v3127_v44  ;;  %v9254_v3 = vld [vmem:[#allocation11] ss:$0 sm:$0xff] }
 0xa61   :  { %2920 = vadd.xlane.f32.xlu1 %v9181_v34 }
 0xa62   :  { %v2871_v47 = vpop.f32.mrf.mxu2  ;;  %3138 = vmatpush.msrb.mxu0 %v3124_v57  ;;  %3179 = vmatpush.msrb.mxu3 %v3125_v56  ;;  %v9257_v56 = vld [vmem:[#allocation13] ss:$0 sm:$0xff] }
 0xa63   :  { %v2889_v15 = vadd.f32 %v2871_v47, %v2296_v21  ;;  %v3122_v21 = vld [vmem:[#allocation14 + $0xc0] sm:$0xff]  ;;  %v3123_v47 = vld [vmem:[#allocation14 + $0xc8] sm:$0xff] }
 0xa64   :  { %3139 = vmatpush.msrb.mxu0 %v3122_v21  ;;  %3180 = vmatpush.msrb.mxu3 %v3123_v47 }
 0xa65   :  { %v2901_v17 = vadd.f32 %v9165_v36, %v2889_v15  ;;  %v3120_v15 = vld [vmem:[#allocation14 + $0xb0] sm:$0xff] }
 0xa66   :  { %3140 = vmatpush.msrb.mxu0 %v3120_v15 }
 0xa67   :  { %v9185_v32 = vadd.f32 %v8057_v18, %v2901_v17  ;;  %v3121_v17 = vld [vmem:[#allocation14 + $0xb8] sm:$0xff]  ;;  %v3118_v18 = vld [vmem:[#allocation14 + $0xa0] sm:$0xff] }
 0xa68   :  { %3181 = vmatpush.msrb.mxu3 %v3121_v17  ;;  %3141 = vmatpush.msrb.mxu0 %v3118_v18 }
 0xa69   :  { %2922 = vadd.xlane.f32.xlu1 %v9185_v32 }
 0xa6a   :  { %3182 = vmatpush.msrb.mxu3 %v3119_v16  ;;  %3142 = vmatpush.msrb.mxu0 %v3116_v61 }
 0xa91   :  { %v2874_v46 = vpop.f32.mrf.mxu2 }
 0xa92   :  { %v2890_v31 = vadd.f32 %v2874_v46, %v2297_v24  ;;  %v3117_v24 = vld [vmem:[#allocation14 + $0x98] sm:$0xff]  ;;  %v3114_v46 = vld [vmem:[#allocation14 + $0x80] sm:$0xff] }
 0xa93   :  { %3183 = vmatpush.msrb.mxu3 %v3117_v24  ;;  %3143 = vmatpush.msrb.mxu0 %v3114_v46 }
 0xa94   :  { %v2902_v19 = vadd.f32 %v9165_v36, %v2890_v31  ;;  %v3115_v31 = vld [vmem:[#allocation14 + $0x88] sm:$0xff] }
 0xa95   :  { %v2917_v55 = vpop.xlane.xlu1 %2916  ;;  %3184 = vmatpush.msrb.mxu3 %v3115_v31  ;;  %3144 = vmatpush.msrb.mxu0 %v3112_v52 }
 0xa96   :  { %v2932_v53 = vmul.f32 %v2917_v55, %v8449_v13  ;;  %v9193_v14 = vadd.f32 %v8058_v28, %v2902_v19  ;;  %v3113_v19 = vld [vmem:[#allocation14 + $0x78] sm:$0xff]  ;;  %v3110_v55 = vld [vmem:[#allocation14 + $0x60] sm:$0xff] }
 0xa97   :  { %3185 = vmatpush.msrb.mxu3 %v3113_v19  ;;  %3145 = vmatpush.msrb.mxu0 %v3110_v55  ;;  %v3109_v28 = vld [vmem:[#allocation14 + $0x58] sm:$0xff] }
 0xa98   :  { %2924 = vadd.xlane.f32.xlu1 %v9193_v14  ;;  %v9197_v59 = vsub.f32 %v9169_v25, %v2932_v53  ;;  %v3108_v53 = vld [vmem:[#allocation14 + $0x50] sm:$0xff] }
 0xa99   :  { %v2877_v35 = vpop.f32.mrf.mxu2  ;;  %3186 = vmatpush.msrb.mxu3 %v3111_v58  ;;  %3146 = vmatpush.msrb.mxu0 %v3108_v53 }
 0xa9a   :  { %v2891_v30 = vadd.f32 %v2877_v35, %v2298_v9  ;;  %v2948_v43 = vmul.f32 %v9197_v59, %v9197_v59  ;;  %v3106_v9 = vld [vmem:[#allocation14 + $0x40] sm:$0xff]  ;;  %v3107_v35 = vld [vmem:[#allocation14 + $0x48] sm:$0xff] }
 0xa9b   :  { %3187 = vmatpush.msrb.mxu3 %v3109_v28  ;;  %3147 = vmatpush.msrb.mxu0 %v3106_v9 }
 0xa9c   :  { %v2903_v29 = vadd.f32 %v9165_v36, %v2891_v30  ;;  %v3104_v30 = vld [vmem:[#allocation14 + $0x30] sm:$0xff] }
 0xa9d   :  { %3188 = vmatpush.msrb.mxu3 %v3107_v35  ;;  %3148 = vmatpush.msrb.mxu0 %v3104_v30 }
 0xa9e   :  { %v9204_v1 = vadd.f32 %v8059_v20, %v2903_v29  ;;  %v3105_v29 = vld [vmem:[#allocation14 + $0x38] sm:$0xff] }
 0xa9f   :  { %3189 = vmatpush.msrb.mxu3 %v3105_v29  ;;  %3149 = vmatpush.msrb.mxu0 %v3102_v40 }
 0xaa0   :  { %2956 = vadd.xlane.f32.xlu1 %v2948_v43  ;;  %2926 = vadd.xlane.f32.xlu2 %v9204_v1  ;;  %v3103_v43 = vld [vmem:[#allocation14 + $0x28] sm:$0xff] }
 0xaa1   :  { %v2880_v6 = vpop.f32.mrf.mxu2  ;;  %3190 = vmatpush.msrb.mxu3 %v3103_v43 }
 0xaa2   :  { %v2892_v23 = vadd.f32 %v2880_v6, %v2299_v42  ;;  %v3100_v42 = vld [vmem:[#allocation14 + $0x10] sm:$0xff]  ;;  %v3101_v6 = vld [vmem:[#allocation14 + $0x18] sm:$0xff] }
 0xaa3   :  { %3150 = vmatpush.msrb.mxu0 %v3100_v42  ;;  %3191 = vmatpush.msrb.mxu3 %v3101_v6 }
 0xaa4   :  { %v2904_v27 = vadd.f32 %v9165_v36, %v2892_v23  ;;  %v3098_v23 = vld [vmem:[#allocation14] sm:$0xff] }
 0xaa5   :  { %3151 = vmatpush.msrb.mxu0 %v3098_v23 }
 0xaa6   :  { %v9208_v60 = vadd.f32 %v8060_v38, %v2904_v27  ;;  %v3099_v27 = vld [vmem:[#allocation14 + $0x8] sm:$0xff] }
 0xaa7   :  { %3192 = vmatpush.msrb.mxu3 %v3099_v27 }
 0xaa8   :  { %2928 = vadd.xlane.f32.xlu2 %v9208_v60 }
 0xacc   :  { %v2919_v41 = vpop.xlane.xlu0 %2918 }
 0xacd   :  { %v2933_v50 = vmul.f32 %v2919_v41, %v8449_v13 }
 0xacf   :  { %v9215_v10 = vsub.f32 %v9176_v2, %v2933_v50 }
 0xad0   :  { %v2883_v45 = vpop.f32.mrf.mxu2 }
 0xad1   :  { %v2893_v7 = vadd.f32 %v2883_v45, %v2300_v5  ;;  %v2949_v54 = vmul.f32 %v9215_v10, %v9215_v10 }
 0xad3   :  { %v2905_v0 = vadd.f32 %v9165_v36, %v2893_v7  ;;  %2958 = vadd.xlane.f32.xlu1 %v2949_v54 }
 0xad4   :  { %v2921_v63 = vpop.xlane.xlu1 %2920 }
 0xad5   :  { %v2934_v12 = vmul.f32 %v2921_v63, %v8449_v13  ;;  %v9221_v8 = vadd.f32 %v8061_v37, %v2905_v0 }
 0xad7   :  { %v9224_v39 = vsub.f32 %v9181_v34, %v2934_v12  ;;  %2930 = vadd.xlane.f32.xlu0 %v9221_v8 }
 0xad9   :  { %v2950_v48 = vmul.f32 %v9224_v39, %v9224_v39 }
 0xadb   :  { %2960 = vadd.xlane.f32.xlu2 %v2950_v48 }
 0xadc   :  { %v2923_v26 = vpop.xlane.xlu1 %2922 }
 0xadd   :  { %v2935_v62 = vmul.f32 %v2923_v26, %v8449_v13 }
 0xadf   :  { %v9231_v36 = vsub.f32 %v9185_v32, %v2935_v62 }
 0xae1   :  { %v2951_v51 = vmul.f32 %v9231_v36, %v9231_v36 }
 0xae3   :  { %2962 = vadd.xlane.f32.xlu1 %v2951_v51 }
 0xb0b   :  { %v2925_v33 = vpop.xlane.xlu1 %2924 }
 0xb0c   :  { %v2936_v20 = vmul.f32 %v2925_v33, %v8449_v13 }
 0xb0e   :  { %v9237_v38 = vsub.f32 %v9193_v14, %v2936_v20 }
 0xb10   :  { %v2952_v4 = vmul.f32 %v9237_v38, %v9237_v38 }
 0xb12   :  { %2964 = vadd.xlane.f32.xlu0 %v2952_v4 }
 0xb13   :  { %v2957_v41 = vpop.xlane.xlu1 %2956  ;;  %v2927_v22 = vpop.xlane.xlu2 %2926 }
 0xb14   :  { %v2972_v50 = vmul.f32 %v2957_v41, %v8449_v13  ;;  %v2937_v5 = vmul.f32 %v2927_v22, %v8449_v13 }
 0xb16   :  { %v2980_v45 = vadd.f32 1e-05, %v2972_v50  ;;  %v9244_v7 = vsub.f32 %v9204_v1, %v2937_v5 }
 0xb18   :  { %7750 = vrsqrt.f32 %v2980_v45  ;;  %v2953_v54 = vmul.f32 %v9244_v7, %v9244_v7  ;;  %vm2994_vm12 = vweird.f32 %v2980_v45 }
 0xb1a   :  { %2966 = vadd.xlane.f32.xlu2 %v2953_v54 }
 0xb1b   :  { %v2929_v0 = vpop.xlane.xlu2 %2928 }
 0xb1c   :  { %v2938_v63 = vmul.f32 %v2929_v0, %v8449_v13 }
 0xb1e   :  { %v7751_v12 = vpop.eup %7750  ;;  %v9250_v37 = vsub.f32 %v9208_v60, %v2938_v63 }
 0xb1f   :  { %v2989_v48 = vmul.f32 %v7751_v12, %v2980_v45  ;;  %vm2995_vm11 = vweird.f32 %v7751_v12 }
 0xb20   :  { %v2954_v26 = vmul.f32 %v9250_v37, %v9250_v37  ;;  %vm2996_vm13 = vmor %vm2994_vm12, %vm2995_vm11 }
 0xb21   :  { %v2990_v62 = vmul.f32 %v7751_v12, %v2989_v48 }
 0xb22   :  { %2968 = vadd.xlane.f32.xlu1 %v2954_v26 }
 0xb23   :  { %v2991_v51 = vmul.f32 0.5, %v2990_v62 }
 0xb25   :  { %v2992_v49 = vsub.f32 1.5, %v2991_v51 }
 0xb27   :  { %v2993_v11 = vmul.f32 %v7751_v12, %v2992_v49 }
 0xb29   :  { %v2997_v44 = vsel %vm2996_vm13, %v7751_v12, %v2993_v11 }
 0xb2a   :  { %v3068_v57 = vmul.f32 %v2997_v44, %v9197_v59 }
 0xb2c   :  { %v3079_v21 = vmul.f32 %v9254_v3, %v3068_v57 }
 0xb2e   :  { %v3090_v47 = vadd.f32 %v9257_v56, %v3079_v21 }
 0xb30   :  { %3152 = vmatmul.f32.vlgmr.msrb.gmra.mxu0 %v3090_v47  ;;  %3193 = vmatmul.f32.vlgmr.msrb.gmra.mxu3 %v3090_v47  ;;  %v3553_v47 = vld [vmem:[#allocation16 + $0x78] sm:$0xff] }
 0xb31   :  { %3574 = vmatpush.msra.mxu1 %v3553_v47  ;;  %v3541_v47 = vld [vmem:[#allocation16 + $0x18] sm:$0xff] }
 0xb46   :  { %v2959_v15 = vpop.xlane.xlu1 %2958 }
 0xb47   :  { %v2973_v17 = vmul.f32 %v2959_v15, %v8449_v13 }
 0xb49   :  { %v2981_v18 = vadd.f32 1e-05, %v2973_v17 }
 0xb4a   :  { %v2931_v16 = vpop.xlane.xlu0 %2930 }
 0xb4b   :  { %7752 = vrsqrt.f32 %v2981_v18  ;;  %v2939_v61 = vmul.f32 %v2931_v16, %v8449_v13  ;;  %vm3004_vm15 = vweird.f32 %v2981_v18 }
 0xb4d   :  { %v9264_v24 = vsub.f32 %v9221_v8, %v2939_v61  ;;  %v3551_v61 = vld [vmem:[#allocation16 + $0x68] sm:$0xff] }
 0xb4e   :  { %v2961_v59 = vpop.xlane.xlu2 %2960 }
 0xb4f   :  { %v2974_v46 = vmul.f32 %v2961_v59, %v8449_v13  ;;  %v2955_v31 = vmul.f32 %v9264_v24, %v9264_v24 }
 0xb51   :  { %v7753_v52 = vpop.eup %7752  ;;  %v2982_v19 = vadd.f32 1e-05, %v2974_v46  ;;  %2970 = vadd.xlane.f32.xlu0 %v2955_v31  ;;  %v3550_v31 = vld [vmem:[#allocation16 + $0x60] sm:$0xff] }
 0xb52   :  { %v2999_v55 = vmul.f32 %v7753_v52, %v2981_v18  ;;  %vm3005_vm14 = vweird.f32 %v7753_v52 }
 0xb53   :  { %7754 = vrsqrt.f32 %v2982_v19  ;;  %vm3006_vm0 = vmor %vm3004_vm15, %vm3005_vm14  ;;  %vm3014_vm2 = vweird.f32 %v2982_v19 }
 0xb54   :  { %v3000_v58 = vmul.f32 %v7753_v52, %v2999_v55 }
 0xb56   :  { %v3001_v53 = vmul.f32 0.5, %v3000_v58  ;;  %v2963_v28 = vpop.xlane.xlu1 %2962  ;;  %v3549_v58 = vld [vmem:[#allocation16 + $0x58] sm:$0xff] }
 0xb57   :  { %v2975_v9 = vmul.f32 %v2963_v28, %v8449_v13 }
 0xb58   :  { %v3002_v35 = vsub.f32 1.5, %v3001_v53  ;;  %v3568_v53 = vld [vmem:[#allocation16 + $0xf0] sm:$0xff] }
 0xb59   :  { %v7755_v30 = vpop.eup %7754  ;;  %v2983_v29 = vadd.f32 1e-05, %v2975_v9 }
 0xb5a   :  { %v3003_v33 = vmul.f32 %v7753_v52, %v3002_v35  ;;  %v3009_v40 = vmul.f32 %v7755_v30, %v2982_v19  ;;  %vm3015_vm1 = vweird.f32 %v7755_v30 }
 0xb5b   :  { %7756 = vrsqrt.f32 %v2983_v29  ;;  %vm3016_vm3 = vmor %vm3014_vm2, %vm3015_vm1  ;;  %vm3024_vm5 = vweird.f32 %v2983_v29 }
 0xb5c   :  { %v3010_v43 = vmul.f32 %v7755_v30, %v3009_v40  ;;  %v3007_v20 = vsel %vm3006_vm0, %v7753_v52, %v3003_v33  ;;  %v3569_v52 = vld [vmem:[#allocation16 + $0xf8] sm:$0xff]  ;;  %v3567_v33 = vld [vmem:[#allocation16 + $0xe8] sm:$0xff] }
 0xb5d   :  { %v3069_v42 = vmul.f32 %v3007_v20, %v9215_v10  ;;  %3615 = vmatpush.msra.mxu2 %v3569_v52  ;;  %v3547_v20 = vld [vmem:[#allocation16 + $0x48] sm:$0xff] }
 0xb5e   :  { %v3011_v6 = vmul.f32 0.5, %v3010_v43 }
 0xb5f   :  { %v3080_v23 = vmul.f32 %v9254_v3, %v3069_v42  ;;  %3616 = vmatpush.msra.mxu2 %v3568_v53  ;;  %v3566_v42 = vld [vmem:[#allocation16 + $0xe0] sm:$0xff] }
 0xb60   :  { %v3012_v27 = vsub.f32 1.5, %v3011_v6 }
 0xb61   :  { %v7757_v4 = vpop.eup %7756  ;;  %v3091_v41 = vadd.f32 %v9257_v56, %v3080_v23  ;;  %3617 = vmatpush.msra.mxu2 %v3567_v33  ;;  %v3554_v33 = vld [vmem:[#allocation16 + $0x80] sm:$0xff] }
 0xb62   :  { %v3013_v22 = vmul.f32 %v7755_v30, %v3012_v27  ;;  %v3019_v50 = vmul.f32 %v7757_v4, %v2983_v29  ;;  %vm3025_vm4 = vweird.f32 %v7757_v4  ;;  %v3548_v29 = vld [vmem:[#allocation16 + $0x50] sm:$0xff]  ;;  %v3546_v27 = vld [vmem:[#allocation16 + $0x40] sm:$0xff] }
 0xb63   :  { %3155 = vmatmul.f32.gmra.mxu0 %v3091_v41  ;;  %3196 = vmatmul.f32.gmra.mxu3 %v3091_v41  ;;  %vm3026_vm6 = vmor %vm3024_vm5, %vm3025_vm4 }
 0xb64   :  { %v3020_v5 = vmul.f32 %v7757_v4, %v3019_v50  ;;  %v3017_v45 = vsel %vm3016_vm3, %v7755_v30, %v3013_v22  ;;  %3618 = vmatpush.msra.mxu2 %v3566_v42  ;;  %v3545_v50 = vld [vmem:[#allocation16 + $0x38] sm:$0xff] }
 0xb65   :  { %v3070_v54 = vmul.f32 %v3017_v45, %v9224_v39 }
 0xb66   :  { %v3021_v0 = vmul.f32 0.5, %v3020_v5  ;;  %v3564_v5 = vld [vmem:[#allocation16 + $0xd0] sm:$0xff] }
 0xb67   :  { %v3081_v10 = vmul.f32 %v9254_v3, %v3070_v54 }
 0xb68   :  { %v3022_v63 = vsub.f32 1.5, %v3021_v0 }
 0xb69   :  { %v3092_v12 = vadd.f32 %v9257_v56, %v3081_v10  ;;  %v3544_v10 = vld [vmem:[#allocation16 + $0x30] sm:$0xff] }
 0xb6a   :  { %v3023_v48 = vmul.f32 %v7757_v4, %v3022_v63  ;;  %v3563_v63 = vld [vmem:[#allocation16 + $0xc8] sm:$0xff] }
 0xb6b   :  { %3158 = vmatmul.f32.gmra.mxu0 %v3092_v12  ;;  %3199 = vmatmul.f32.gmra.mxu3 %v3092_v12 }
 0xb6c   :  { %v3027_v26 = vsel %vm3026_vm6, %v7757_v4, %v3023_v48  ;;  %v3565_v4 = vld [vmem:[#allocation16 + $0xd8] sm:$0xff] }
 0xb6d   :  { %v3071_v62 = vmul.f32 %v3027_v26, %v9231_v36  ;;  %v3552_v36 = vld [vmem:[#allocation16 + $0x70] sm:$0xff]  ;;  %3619 = vmatpush.msra.mxu2 %v3565_v4  ;;  %v3543_v26 = vld [vmem:[#allocation16 + $0x28] sm:$0xff] }
 0xb6e   :  { %3575 = vmatpush.msra.mxu1 %v3552_v36  ;;  %v3559_v36 = vld [vmem:[#allocation16 + $0xa8] sm:$0xff] }
 0xb6f   :  { %v3082_v51 = vmul.f32 %v9254_v3, %v3071_v62  ;;  %3620 = vmatpush.msra.mxu2 %v3564_v5  ;;  %v3562_v62 = vld [vmem:[#allocation16 + $0xc0] sm:$0xff] }
 0xb70   :  { %3576 = vmatpush.msra.mxu1 %v3551_v61 }
 0xb71   :  { %v3093_v49 = vadd.f32 %v9257_v56, %v3082_v51  ;;  %3621 = vmatpush.msra.mxu2 %v3563_v63 }
 0xb72   :  { %3577 = vmatpush.msra.mxu1 %v3550_v31 }
 0xb73   :  { %3161 = vmatmul.f32.gmra.mxu0 %v3093_v49  ;;  %3202 = vmatmul.f32.gmra.mxu3 %v3093_v49 }
 0xb74   :  { %3578 = vmatpush.msra.mxu1 %v3549_v58  ;;  %3622 = vmatpush.msra.mxu2 %v3562_v62 }
 0xb76   :  { %3579 = vmatpush.msra.mxu1 %v3548_v29  ;;  %v3555_v29 = vld [vmem:[#allocation16 + $0x88] sm:$0xff] }
 0xb78   :  { %3580 = vmatpush.msra.mxu1 %v3547_v20 }
 0xb7a   :  { %3581 = vmatpush.msra.mxu1 %v3546_v27 }
 0xb7c   :  { %3582 = vmatpush.msra.mxu1 %v3545_v50 }
 0xb7e   :  { %3583 = vmatpush.msra.mxu1 %v3544_v10 }
 0xb80   :  { %3584 = vmatpush.msra.mxu1 %v3543_v26 }
 0xb85   :  { %v2965_v39 = vpop.xlane.xlu0 %2964 }
 0xb86   :  { %v2976_v11 = vmul.f32 %v2965_v39, %v8449_v13  ;;  %v3542_v39 = vld [vmem:[#allocation16 + $0x20] sm:$0xff] }
 0xb87   :  { %3585 = vmatpush.msra.mxu1 %v3542_v39 }
 0xb88   :  { %v2984_v44 = vadd.f32 1e-05, %v2976_v11  ;;  %v3561_v11 = vld [vmem:[#allocation16 + $0xb8] sm:$0xff] }
 0xb89   :  { %3623 = vmatpush.msra.mxu2 %v3561_v11  ;;  %3586 = vmatpush.msra.mxu1 %v3541_v47 }
 0xb8a   :  { %7758 = vrsqrt.f32 %v2984_v44  ;;  %vm3034_vm8 = vweird.f32 %v2984_v44 }
 0xb8d   :  { %v2967_v57 = vpop.xlane.xlu2 %2966 }
 0xb8e   :  { %v2977_v21 = vmul.f32 %v2967_v57, %v8449_v13 }
 0xb90   :  { %v7759_v15 = vpop.eup %7758  ;;  %v2985_v17 = vadd.f32 1e-05, %v2977_v21  ;;  %v3130_v21 = vld [vmem:[%s10480_s9] sm:$0x3] }
 0xb91   :  { %v3029_v18 = vmul.f32 %v7759_v15, %v2984_v44  ;;  %vm3035_vm7 = vweird.f32 %v7759_v15 }
 0xb92   :  { %7760 = vrsqrt.f32 %v2985_v17  ;;  %vm3036_vm11 = vmor %vm3034_vm8, %vm3035_vm7  ;;  %vm3044_vm13 = vweird.f32 %v2985_v17 }
 0xb93   :  { %v3030_v16 = vmul.f32 %v7759_v15, %v3029_v18  ;;  %v3540_v18 = vld [vmem:[#allocation16 + $0x10] sm:$0xff] }
 0xb94   :  { %3587 = vmatpush.msra.mxu1 %v3540_v18 }
 0xb95   :  { %v3031_v59 = vmul.f32 0.5, %v3030_v16  ;;  %v2969_v46 = vpop.xlane.xlu1 %2968  ;;  %v9296_v16 = vperm.slane %v3130_v21, 0 }
 0xb96   :  { %v2978_v19 = vmul.f32 %v2969_v46, %v8449_v13  ;;  %v3558_v46 = vld [vmem:[#allocation16 + $0xa0] sm:$0xff] }
 0xb97   :  { %v3032_v55 = vsub.f32 1.5, %v3031_v59  ;;  %v3539_v59 = vld [vmem:[#allocation16 + $0x8] sm:$0xff] }
 0xb98   :  { %v7761_v28 = vpop.eup %7760  ;;  %v9282_v9 = vadd.f32 1e-05, %v2978_v19  ;;  %3588 = vmatpush.msra.mxu1 %v3539_v59  ;;  %v3538_v19 = vld [vmem:[#allocation16] sm:$0xff] }
 0xb99   :  { %v3033_v35 = vmul.f32 %v7759_v15, %v3032_v55  ;;  %v3039_v30 = vmul.f32 %v7761_v28, %v2985_v17  ;;  %vm3045_vm12 = vweird.f32 %v7761_v28  ;;  %v3557_v55 = vld [vmem:[#allocation16 + $0x98] sm:$0xff] }
 0xb9a   :  { %7762 = vrsqrt.f32 %v9282_v9  ;;  %vm3046_vm14 = vmor %vm3044_vm13, %vm3045_vm12  ;;  %vm3054_vm0 = vweird.f32 %v9282_v9  ;;  %3589 = vmatpush.msra.mxu1 %v3538_v19 }
 0xb9b   :  { %v3040_v40 = vmul.f32 %v7761_v28, %v3039_v30  ;;  %v3037_v43 = vsel %vm3036_vm11, %v7759_v15, %v3033_v35  ;;  %v3560_v15 = vld [vmem:[#allocation16 + $0xb0] sm:$0xff]  ;;  %v9302_v30 = vperm.slane %v3130_v21, 1 }
 0xb9c   :  { %v3072_v6 = vmul.f32 %v3037_v43, %v9237_v38  ;;  %3624 = vmatpush.msra.mxu2 %v3560_v15 }
 0xb9d   :  { %v3041_v23 = vmul.f32 0.5, %v3040_v40 }
 0xb9e   :  { %v3083_v41 = vmul.f32 %v9254_v3, %v3072_v6  ;;  %3625 = vmatpush.msra.mxu2 %v3559_v36 }
 0xb9f   :  { %v3042_v22 = vsub.f32 1.5, %v3041_v23 }
 0xba0   :  { %v7763_v45 = vpop.eup %7762  ;;  %v3094_v54 = vadd.f32 %v9257_v56, %v3083_v41  ;;  %3626 = vmatpush.msra.mxu2 %v3558_v46 }
 0xba1   :  { %v3043_v0 = vmul.f32 %v7761_v28, %v3042_v22  ;;  %v3049_v38 = vmul.f32 %v7763_v45, %v9282_v9  ;;  %vm3055_vm15 = vweird.f32 %v7763_v45 }
 0xba2   :  { %3164 = vmatmul.f32.gmra.mxu0 %v3094_v54  ;;  %3205 = vmatmul.f32.gmra.mxu3 %v3094_v54  ;;  %vm3056_vm1 = vmor %vm3054_vm0, %vm3055_vm15 }
 0xba3   :  { %v3047_v12 = vsel %vm3046_vm14, %v7761_v28, %v3043_v0  ;;  %v3050_v48 = vmul.f32 %v7763_v45, %v3049_v38  ;;  %3627 = vmatpush.msra.mxu2 %v3557_v55  ;;  %v3556_v28 = vld [vmem:[#allocation16 + $0x90] sm:$0xff] }
 0xba4   :  { %v3073_v51 = vmul.f32 %v3047_v12, %v9244_v7 }
 0xba5   :  { %v3051_v49 = vmul.f32 0.5, %v3050_v48  ;;  %3628 = vmatpush.msra.mxu2 %v3556_v28 }
 0xba6   :  { %v3084_v44 = vmul.f32 %v9254_v3, %v3073_v51 }
 0xba7   :  { %v3052_v57 = vsub.f32 1.5, %v3051_v49  ;;  %3629 = vmatpush.msra.mxu2 %v3555_v29 }
 0xba8   :  { %v3095_v17 = vadd.f32 %v9257_v56, %v3084_v44 }
 0xba9   :  { %v3053_v7 = vmul.f32 %v7763_v45, %v3052_v57  ;;  %3630 = vmatpush.msra.mxu2 %v3554_v33 }
 0xbaa   :  { %3167 = vmatmul.f32.gmra.mxu0 %v3095_v17  ;;  %3208 = vmatmul.f32.gmra.mxu3 %v3095_v17 }
 0xbab   :  { %v3057_v61 = vsel %vm3056_vm1, %v7763_v45, %v3053_v7 }
 0xbac   :  { %v3074_v31 = vmul.f32 %v3057_v61, %v9250_v37 }
 0xbad   :  { %v3153_v52 = vpop.f32.mrf.mxu0 }
 0xbae   :  { %v3154_v58 = vadd.f32 %v3153_v52, %v9296_v16  ;;  %v3085_v53 = vmul.f32 %v9254_v3, %v3074_v31 }
 0xbb0   :  { %v7299_v9 = vmul.f32 -1.442695, %v3154_v58  ;;  %v3096_v35 = vadd.f32 %v9257_v56, %v3085_v53 }
 0xbb2   :  { %7764 = vpow2.f32 %v7299_v9  ;;  %3170 = vmatmul.f32.gmra.mxu0 %v3096_v35  ;;  %3211 = vmatmul.f32.gmra.mxu3 %v3096_v35 }
 0xbb3   :  { %v3194_v37 = vpop.f32.mrf.mxu3 }
 0xbb4   :  { %v3195_v40 = vadd.f32 %v3194_v37, %v9302_v30 }
 0xbb6   :  { %v7300_v43 = vmul.f32 -1.442695, %v3195_v40 }
 0xbb8   :  { %v7765_v20 = vpop.eup %7764  ;;  %7766 = vpow2.f32 %v7300_v43 }
 0xbb9   :  { %v3266_v42 = vadd.f32 1.0, %v7765_v20 }
 0xbbb   :  { %7768 = vrcp.f32 %v3266_v42  ;;  %v3293_v22 = vand.u32 2147483648, %v3266_v42  ;;  %v3291_v45 = vand.u32 2147483647, %v3266_v42  ;;  %vm3287_vm3 = vweird.f32 %v3266_v42 }
 0xbbd   :  { %v3294_v12 = vor.u32 1.1754944e-38, %v3293_v22  ;;  %vm3292_vm5 = vcmp.eq.f32.partialorder %v3291_v45, 8.507059e+37 }
 0xbbe   :  { %v7767_v6 = vpop.eup %7766 }
 0xbbf   :  { %v3267_v23 = vadd.f32 1.0, %v7767_v6 }
 0xbc1   :  { %v7769_v27 = vpop.eup %7768  ;;  %7770 = vrcp.f32 %v3267_v23  ;;  %v3308_v51 = vand.u32 2147483648, %v3267_v23  ;;  %v3306_v11 = vand.u32 2147483647, %v3267_v23  ;;  %vm3302_vm7 = vweird.f32 %v3267_v23 }
 0xbc2   :  { %v3283_v4 = vmul.f32 %v7769_v27, %v3266_v42  ;;  %vm3288_vm2 = vweird.f32 %v7769_v27 }
 0xbc3   :  { %vm3289_vm4 = vmor %vm3287_vm3, %vm3288_vm2  ;;  %v3309_v57 = vor.u32 1.1754944e-38, %v3308_v51  ;;  %vm3307_vm11 = vcmp.eq.f32.partialorder %v3306_v11, 8.507059e+37 }
 0xbc4   :  { %v3284_v41 = vsub.f32 1.0, %v3283_v4  ;;  %v2971_v50 = vpop.xlane.xlu0 %2970 }
 0xbc5   :  { %v2979_v54 = vmul.f32 %v2971_v50, %v8449_v13 }
 0xbc6   :  { %v3285_v5 = vmul.f32 %v7769_v27, %v3284_v41 }
 0xbc7   :  { %v7771_v0 = vpop.eup %7770  ;;  %v2987_v63 = vadd.f32 1e-05, %v2979_v54 }
 0xbc8   :  { %v3286_v38 = vadd.f32 %v7769_v27, %v3285_v5  ;;  %v3298_v10 = vmul.f32 %v7771_v0, %v3267_v23  ;;  %vm3303_vm6 = vweird.f32 %v7771_v0 }
 0xbc9   :  { %7772 = vrsqrt.f32 %v2987_v63  ;;  %vm3304_vm8 = vmor %vm3302_vm7, %vm3303_vm6  ;;  %vm3064_vm13 = vweird.f32 %v2987_v63 }
 0xbca   :  { %v3290_v48 = vsel %vm3289_vm4, %v7769_v27, %v3286_v38  ;;  %v3299_v26 = vsub.f32 1.0, %v3298_v10 }
 0xbcb   :  { %v3295_v62 = vsel %vm3292_vm5, %v3294_v12, %v3290_v48 }
 0xbcc   :  { %v3522_v49 = vmul.f32 %v3295_v62, %v3154_v58  ;;  %v3300_v39 = vmul.f32 %v7771_v0, %v3299_v26 }
 0xbce   :  { %v3301_v44 = vadd.f32 %v7771_v0, %v3300_v39  ;;  %3590 = vmatmul.f32.vlgmr.msra.gmra.mxu1 %v3522_v49 }
 0xbcf   :  { %v7773_v21 = vpop.eup %7772 }
 0xbd0   :  { %v3305_v47 = vsel %vm3304_vm8, %v7771_v0, %v3301_v44  ;;  %v3059_v17 = vmul.f32 %v7773_v21, %v2987_v63  ;;  %vm3065_vm12 = vweird.f32 %v7773_v21 }
 0xbd1   :  { %v3310_v15 = vsel %vm3307_vm11, %v3309_v57, %v3305_v47  ;;  %vm3066_vm14 = vmor %vm3064_vm13, %vm3065_vm12 }
 0xbd2   :  { %v3523_v7 = vmul.f32 %v3310_v15, %v3195_v40  ;;  %v3060_v18 = vmul.f32 %v7773_v21, %v3059_v17 }
 0xbd4   :  { %3631 = vmatmul.f32.vlgmr.msra.gmra.mxu2 %v3523_v7  ;;  %v3061_v36 = vmul.f32 0.5, %v3060_v18 }
 0xbd6   :  { %v3062_v61 = vsub.f32 1.5, %v3061_v36 }
 0xbd8   :  { %v3063_v59 = vmul.f32 %v7773_v21, %v3062_v61 }
 0xbda   :  { %v3067_v46 = vsel %vm3066_vm14, %v7773_v21, %v3063_v59 }
 0xbdb   :  { %v3075_v31 = vmul.f32 %v3067_v46, %v9264_v24 }
 0xbdd   :  { %v3086_v52 = vmul.f32 %v9254_v3, %v3075_v31 }
 0xbdf   :  { %v3097_v19 = vadd.f32 %v9257_v56, %v3086_v52 }
 0xbe0   :  { %v3156_v55 = vpop.f32.mrf.mxu0 }
 0xbe1   :  { %v3157_v58 = vadd.f32 %v3156_v55, %v9296_v16  ;;  %3173 = vmatmul.f32.gmra.mxu0 %v3097_v19  ;;  %3214 = vmatmul.f32.gmra.mxu3 %v3097_v19 }
 0xbe3   :  { %v7301_v53 = vmul.f32 -1.442695, %v3157_v58 }
 0xbe5   :  { %7774 = vpow2.f32 %v7301_v53 }
 0xbe6   :  { %v3197_v28 = vpop.f32.mrf.mxu3 }
 0xbe7   :  { %v9311_v9 = vadd.f32 %v3197_v28, %v9302_v30 }
 0xbe8   :  { %v3159_v35 = vpop.f32.mrf.mxu0 }
 0xbe9   :  { %v7302_v29 = vmul.f32 -1.442695, %v9311_v9  ;;  %v9315_v24 = vadd.f32 %v3159_v35, %v9296_v16 }
 0xbeb   :  { %v7775_v3 = vpop.eup %7774  ;;  %7776 = vpow2.f32 %v7302_v29  ;;  %v7303_v56 = vmul.f32 -1.442695, %v9315_v24 }
 0xbec   :  { %v3268_v37 = vadd.f32 1.0, %v7775_v3 }
 0xbed   :  { %7778 = vpow2.f32 %v7303_v56 }
 0xbee   :  { %7780 = vrcp.f32 %v3268_v37  ;;  %v3200_v33 = vpop.f32.mrf.mxu3  ;;  %v3321_v54 = vand.u32 2147483647, %v3268_v37  ;;  %v3323_v0 = vand.u32 2147483648, %v3268_v37  ;;  %vm3317_vm0 = vweird.f32 %v3268_v37 }
 0xbef   :  { %v9319_v40 = vadd.f32 %v3200_v33, %v9302_v30 }
 0xbf0   :  { %v3162_v43 = vpop.f32.mrf.mxu0  ;;  %vm3322_vm2 = vcmp.eq.f32.partialorder %v3321_v54, 8.507059e+37  ;;  %v3324_v39 = vor.u32 1.1754944e-38, %v3323_v0 }
 0xbf1   :  { %v7777_v20 = vpop.eup %7776  ;;  %v7304_v42 = vmul.f32 -1.442695, %v9319_v40  ;;  %v9323_v6 = vadd.f32 %v3162_v43, %v9296_v16 }
 0xbf2   :  { %v3269_v23 = vadd.f32 1.0, %v7777_v20 }
 0xbf3   :  { %v7779_v27 = vpop.eup %7778  ;;  %7782 = vpow2.f32 %v7304_v42  ;;  %v7305_v4 = vmul.f32 -1.442695, %v9323_v6 }
 0xbf4   :  { %v7781_v41 = vpop.eup %7780  ;;  %7784 = vrcp.f32 %v3269_v23  ;;  %v3270_v50 = vadd.f32 1.0, %v7779_v27  ;;  %v3336_v15 = vand.u32 2147483647, %v3269_v23  ;;  %v3338_v17 = vand.u32 2147483648, %v3269_v23 }
 0xbf5   :  { %v3313_v22 = vmul.f32 %v7781_v41, %v3268_v37  ;;  %7786 = vpow2.f32 %v7305_v4  ;;  %vm3318_vm15 = vweird.f32 %v7781_v41  ;;  %vm3332_vm4 = vweird.f32 %v3269_v23 }
 0xbf6   :  { %v3203_v5 = vpop.f32.mrf.mxu3  ;;  %7788 = vrcp.f32 %v3270_v50  ;;  %vm3319_vm1 = vmor %vm3317_vm0, %vm3318_vm15  ;;  %v3351_v46 = vand.u32 2147483647, %v3270_v50  ;;  %v3353_v31 = vand.u32 2147483648, %v3270_v50  ;;  %v3339_v19 = vor.u32 1.1754944e-38, %v3338_v17 }
 0xbf7   :  { %v3314_v45 = vsub.f32 1.0, %v3313_v22  ;;  %v9327_v38 = vadd.f32 %v3203_v5, %v9302_v30  ;;  %vm3337_vm7 = vcmp.eq.f32.partialorder %v3336_v15, 8.507059e+37  ;;  %vm3347_vm8 = vweird.f32 %v3270_v50 }
 0xbf8   :  { %vm3352_vm12 = vcmp.eq.f32.partialorder %v3351_v46, 8.507059e+37  ;;  %v3354_v33 = vor.u32 1.1754944e-38, %v3353_v31 }
 0xbf9   :  { %v7783_v10 = vpop.eup %7782  ;;  %v3315_v63 = vmul.f32 %v7781_v41, %v3314_v45  ;;  %v7306_v26 = vmul.f32 -1.442695, %v9327_v38 }
 0xbfa   :  { %v7785_v12 = vpop.eup %7784  ;;  %v9329_v48 = vadd.f32 1.0, %v7783_v10 }
 0xbfb   :  { %v7787_v62 = vpop.eup %7786  ;;  %v3316_v51 = vadd.f32 %v7781_v41, %v3315_v63  ;;  %v3328_v49 = vmul.f32 %v7785_v12, %v3269_v23  ;;  %vm3333_vm3 = vweird.f32 %v7785_v12 }
 0xbfc   :  { %7790 = vrcp.f32 %v9329_v48  ;;  %v7789_v11 = vpop.eup %7788  ;;  %v9333_v21 = vadd.f32 1.0, %v7787_v62  ;;  %vm3334_vm5 = vmor %vm3332_vm4, %vm3333_vm3  ;;  %v3368_v42 = vand.u32 2147483648, %v9329_v48  ;;  %vm3362_vm14 = vweird.f32 %v9329_v48 }
 0xbfd   :  { %v3320_v44 = vsel %vm3319_vm1, %v7781_v41, %v3316_v51  ;;  %v3329_v57 = vsub.f32 1.0, %v3328_v49  ;;  %7792 = vpow2.f32 %v7306_v26  ;;  %v3343_v7 = vmul.f32 %v7789_v11, %v3270_v50 }
 0xbfe   :  { %v3325_v47 = vsel %vm3322_vm2, %v3324_v39, %v3320_v44  ;;  %7794 = vrcp.f32 %v9333_v21  ;;  %vm3348_vm6 = vweird.f32 %v7789_v11  ;;  %v3366_v41 = vand.u32 2147483647, %v9329_v48 }
 0xbff   :  { %v3524_v18 = vmul.f32 %v3325_v47, %v3157_v58  ;;  %v3330_v36 = vmul.f32 %v7785_v12, %v3329_v57  ;;  %v3344_v61 = vsub.f32 1.0, %v3343_v7  ;;  %vm3349_vm11 = vmor %vm3347_vm8, %vm3348_vm6  ;;  %v3383_v5 = vand.u32 2147483648, %v9333_v21 }
 0xc00   :  { %v3369_v45 = vor.u32 1.1754944e-38, %v3368_v42  ;;  %v3381_v0 = vand.u32 2147483647, %v9333_v21  ;;  %vm3367_vm1 = vcmp.eq.f32.partialorder %v3366_v41, 8.507059e+37  ;;  %vm3377_vm2 = vweird.f32 %v9333_v21 }
 0xc01   :  { %v3331_v59 = vadd.f32 %v7785_v12, %v3330_v36  ;;  %3593 = vmatmul.f32.gmra.mxu1 %v3524_v18  ;;  %v3345_v55 = vmul.f32 %v7789_v11, %v3344_v61 }
 0xc02   :  { %v7791_v52 = vpop.eup %7790  ;;  %vm3382_vm4 = vcmp.eq.f32.partialorder %v3381_v0, 8.507059e+37 }
 0xc03   :  { %v7793_v53 = vpop.eup %7792  ;;  %v3335_v28 = vsel %vm3334_vm5, %v7785_v12, %v3331_v59  ;;  %v3358_v58 = vmul.f32 %v7791_v52, %v9329_v48  ;;  %v3346_v29 = vadd.f32 %v7789_v11, %v3345_v55  ;;  %vm3363_vm13 = vweird.f32 %v7791_v52 }
 0xc04   :  { %v3340_v35 = vsel %vm3337_vm7, %v3339_v19, %v3335_v28  ;;  %v3273_v3 = vadd.f32 1.0, %v7793_v53  ;;  %v7795_v56 = vpop.eup %7794  ;;  %vm3364_vm15 = vmor %vm3362_vm14, %vm3363_vm13  ;;  %v3384_v48 = vor.u32 1.1754944e-38, %v3383_v5 }
 0xc05   :  { %v3525_v37 = vmul.f32 %v3340_v35, %v9311_v9  ;;  %v3359_v43 = vsub.f32 1.0, %v3358_v58  ;;  %v3350_v20 = vsel %vm3349_vm11, %v7789_v11, %v3346_v29  ;;  %v3373_v23 = vmul.f32 %v7795_v56, %v9333_v21 }
 0xc06   :  { %7796 = vrcp.f32 %v3273_v3  ;;  %v3355_v27 = vsel %vm3352_vm12, %v3354_v33, %v3350_v20  ;;  %vm3378_vm0 = vweird.f32 %v7795_v56  ;;  %v3398_v44 = vand.u32 2147483648, %v3273_v3 }
 0xc07   :  { %v3360_v4 = vmul.f32 %v7791_v52, %v3359_v43  ;;  %3634 = vmatmul.f32.gmra.mxu2 %v3525_v37  ;;  %v3526_v22 = vmul.f32 %v3355_v27, %v9315_v24  ;;  %v3374_v50 = vsub.f32 1.0, %v3373_v23  ;;  %vm3379_vm3 = vmor %vm3377_vm2, %vm3378_vm0  ;;  %v3396_v47 = vand.u32 2147483647, %v3273_v3 }
 0xc08   :  { %vm3392_vm6 = vweird.f32 %v3273_v3  ;;  %v3399_v21 = vor.u32 1.1754944e-38, %v3398_v44 }
 0xc09   :  { %v3361_v9 = vadd.f32 %v7791_v52, %v3360_v4  ;;  %v3375_v54 = vmul.f32 %v7795_v56, %v3374_v50  ;;  %3596 = vmatmul.f32.gmra.mxu1 %v3526_v22  ;;  %vm3397_vm8 = vcmp.eq.f32.partialorder %v3396_v47, 8.507059e+37 }
 0xc0b   :  { %v3365_v10 = vsel %vm3364_vm15, %v7791_v52, %v3361_v9  ;;  %v3376_v26 = vadd.f32 %v7795_v56, %v3375_v54 }
 0xc0c   :  { %v7797_v63 = vpop.eup %7796  ;;  %v3370_v12 = vsel %vm3367_vm1, %v3369_v45, %v3365_v10 }
 0xc0d   :  { %v3527_v24 = vmul.f32 %v3370_v12, %v9319_v40  ;;  %v3388_v62 = vmul.f32 %v7797_v63, %v3273_v3  ;;  %v3380_v51 = vsel %vm3379_vm3, %v7795_v56, %v3376_v26  ;;  %vm3393_vm5 = vweird.f32 %v7797_v63 }
 0xc0e   :  { %v3385_v49 = vsel %vm3382_vm4, %v3384_v48, %v3380_v51  ;;  %vm3394_vm7 = vmor %vm3392_vm6, %vm3393_vm5 }
 0xc0f   :  { %v3389_v39 = vsub.f32 1.0, %v3388_v62  ;;  %3637 = vmatmul.f32.gmra.mxu2 %v3527_v24  ;;  %v3528_v11 = vmul.f32 %v3385_v49, %v9323_v6 }
 0xc11   :  { %v3390_v57 = vmul.f32 %v7797_v63, %v3389_v39  ;;  %3599 = vmatmul.f32.gmra.mxu1 %v3528_v11 }
 0xc13   :  { %v3391_v15 = vadd.f32 %v7797_v63, %v3390_v57 }
 0xc15   :  { %v3395_v40 = vsel %vm3394_vm7, %v7797_v63, %v3391_v15 }
 0xc16   :  { %v3400_v17 = vsel %vm3397_vm8, %v3399_v21, %v3395_v40 }
 0xc17   :  { %v3529_v7 = vmul.f32 %v3400_v17, %v9327_v38 }
 0xc19   :  { %3640 = vmatmul.f32.gmra.mxu2 %v3529_v7 }
 0xc1f   :  { %v3165_v18 = vpop.f32.mrf.mxu0 }
 0xc20   :  { %v3166_v36 = vadd.f32 %v3165_v18, %v9296_v16 }
 0xc22   :  { %v7307_v61 = vmul.f32 -1.442695, %v3166_v36 }
 0xc24   :  { %7798 = vpow2.f32 %v7307_v61 }
 0xc25   :  { %v3206_v6 = vpop.f32.mrf.mxu3 }
 0xc26   :  { %v9351_v59 = vadd.f32 %v3206_v6, %v9302_v30 }
 0xc27   :  { %v3168_v46 = vpop.f32.mrf.mxu0 }
 0xc28   :  { %v7308_v31 = vmul.f32 -1.442695, %v9351_v59  ;;  %v9355_v52 = vadd.f32 %v3168_v46, %v9296_v16 }
 0xc2a   :  { %v7799_v19 = vpop.eup %7798  ;;  %7800 = vpow2.f32 %v7308_v31  ;;  %v7309_v38 = vmul.f32 -1.442695, %v9355_v52 }
 0xc2b   :  { %v3274_v55 = vadd.f32 1.0, %v7799_v19 }
 0xc2c   :  { %7802 = vpow2.f32 %v7309_v38 }
 0xc2d   :  { %7804 = vrcp.f32 %v3274_v55  ;;  %v3209_v53 = vpop.f32.mrf.mxu3  ;;  %v3411_v4 = vand.u32 2147483647, %v3274_v55  ;;  %v3413_v41 = vand.u32 2147483648, %v3274_v55  ;;  %vm3407_vm12 = vweird.f32 %v3274_v55 }
 0xc2e   :  { %v9359_v28 = vadd.f32 %v3209_v53, %v9302_v30 }
 0xc2f   :  { %v3171_v58 = vpop.f32.mrf.mxu0  ;;  %vm3412_vm14 = vcmp.eq.f32.partialorder %v3411_v4, 8.507059e+37  ;;  %v3414_v12 = vor.u32 1.1754944e-38, %v3413_v41 }
 0xc30   :  { %v7801_v35 = vpop.eup %7800  ;;  %v7310_v29 = vmul.f32 -1.442695, %v9359_v28  ;;  %v9363_v3 = vadd.f32 %v3171_v58, %v9296_v16 }
 0xc31   :  { %v3275_v56 = vadd.f32 1.0, %v7801_v35 }
 0xc32   :  { %v7803_v37 = vpop.eup %7802  ;;  %7806 = vpow2.f32 %v7310_v29  ;;  %v7311_v33 = vmul.f32 -1.442695, %v9363_v3 }
 0xc33   :  { %v7805_v43 = vpop.eup %7804  ;;  %7808 = vrcp.f32 %v3275_v56  ;;  %v3276_v42 = vadd.f32 1.0, %v7803_v37  ;;  %v3426_v49 = vand.u32 2147483647, %v3275_v56  ;;  %v3428_v39 = vand.u32 2147483648, %v3275_v56 }
 0xc34   :  { %v3403_v20 = vmul.f32 %v7805_v43, %v3274_v55  ;;  %7810 = vpow2.f32 %v7311_v33  ;;  %vm3408_vm11 = vweird.f32 %v7805_v43  ;;  %vm3422_vm0 = vweird.f32 %v3275_v56 }
 0xc35   :  { %v3212_v23 = vpop.f32.mrf.mxu3  ;;  %7812 = vrcp.f32 %v3276_v42  ;;  %vm3409_vm13 = vmor %vm3407_vm12, %vm3408_vm11  ;;  %v3441_v21 = vand.u32 2147483647, %v3276_v42  ;;  %v3443_v40 = vand.u32 2147483648, %v3276_v42  ;;  %v3429_v7 = vor.u32 1.1754944e-38, %v3428_v39 }
 0xc36   :  { %v3404_v27 = vsub.f32 1.0, %v3403_v20  ;;  %v9367_v22 = vadd.f32 %v3212_v23, %v9302_v30  ;;  %vm3427_vm3 = vcmp.eq.f32.partialorder %v3426_v49, 8.507059e+37  ;;  %vm3437_vm4 = vweird.f32 %v3276_v42 }
 0xc37   :  { %vm3442_vm6 = vcmp.eq.f32.partialorder %v3441_v21, 8.507059e+37  ;;  %v3444_v53 = vor.u32 1.1754944e-38, %v3443_v40 }
 0xc38   :  { %v7807_v50 = vpop.eup %7806  ;;  %v3405_v9 = vmul.f32 %v7805_v43, %v3404_v27  ;;  %v7312_v54 = vmul.f32 -1.442695, %v9367_v22 }
 0xc39   :  { %v7809_v5 = vpop.eup %7808  ;;  %v9369_v45 = vadd.f32 1.0, %v7807_v50 }
 0xc3a   :  { %v7811_v0 = vpop.eup %7810  ;;  %v3406_v10 = vadd.f32 %v7805_v43, %v3405_v9  ;;  %v3418_v63 = vmul.f32 %v7809_v5, %v3275_v56  ;;  %vm3423_vm15 = vweird.f32 %v7809_v5 }
 0xc3b   :  { %7814 = vrcp.f32 %v9369_v45  ;;  %v7813_v26 = vpop.eup %7812  ;;  %v9373_v62 = vadd.f32 1.0, %v7811_v0  ;;  %vm3424_vm1 = vmor %vm3422_vm0, %vm3423_vm15  ;;  %v3458_v29 = vand.u32 2147483648, %v9369_v45  ;;  %vm3452_vm8 = vweird.f32 %v9369_v45 }
 0xc3c   :  { %v3410_v24 = vsel %vm3409_vm13, %v7805_v43, %v3406_v10  ;;  %v3419_v48 = vsub.f32 1.0, %v3418_v63  ;;  %7816 = vpow2.f32 %v7312_v54  ;;  %v3433_v11 = vmul.f32 %v7813_v26, %v3276_v42 }
 0xc3d   :  { %v3415_v51 = vsel %vm3412_vm14, %v3414_v12, %v3410_v24  ;;  %7818 = vrcp.f32 %v9373_v62  ;;  %vm3438_vm2 = vweird.f32 %v7813_v26  ;;  %v3456_v43 = vand.u32 2147483647, %v9369_v45 }
 0xc3e   :  { %v3530_v44 = vmul.f32 %v3415_v51, %v3166_v36  ;;  %v3420_v57 = vmul.f32 %v7809_v5, %v3419_v48  ;;  %v3434_v47 = vsub.f32 1.0, %v3433_v11  ;;  %vm3439_vm5 = vmor %vm3437_vm4, %vm3438_vm2  ;;  %v3473_v23 = vand.u32 2147483648, %v9373_v62 }
 0xc3f   :  { %v3459_v27 = vor.u32 1.1754944e-38, %v3458_v29  ;;  %v3471_v41 = vand.u32 2147483647, %v9373_v62  ;;  %vm3457_vm13 = vcmp.eq.f32.partialorder %v3456_v43, 8.507059e+37  ;;  %vm3467_vm14 = vweird.f32 %v9373_v62 }
 0xc40   :  { %v3421_v15 = vadd.f32 %v7809_v5, %v3420_v57  ;;  %3602 = vmatmul.f32.gmra.mxu1 %v3530_v44  ;;  %v3435_v18 = vmul.f32 %v7813_v26, %v3434_v47 }
 0xc41   :  { %v7815_v17 = vpop.eup %7814  ;;  %vm3472_vm0 = vcmp.eq.f32.partialorder %v3471_v41, 8.507059e+37 }
 0xc42   :  { %v7817_v61 = vpop.eup %7816  ;;  %v3425_v6 = vsel %vm3424_vm1, %v7809_v5, %v3421_v15  ;;  %v3448_v36 = vmul.f32 %v7815_v17, %v9369_v45  ;;  %v3436_v31 = vadd.f32 %v7813_v26, %v3435_v18  ;;  %vm3453_vm7 = vweird.f32 %v7815_v17 }
 0xc43   :  { %v3430_v46 = vsel %vm3427_vm3, %v3429_v7, %v3425_v6  ;;  %v3279_v19 = vadd.f32 1.0, %v7817_v61  ;;  %v7819_v38 = vpop.eup %7818  ;;  %vm3454_vm11 = vmor %vm3452_vm8, %vm3453_vm7  ;;  %v3474_v45 = vor.u32 1.1754944e-38, %v3473_v23 }
 0xc44   :  { %v3531_v55 = vmul.f32 %v3430_v46, %v9351_v59  ;;  %v3449_v58 = vsub.f32 1.0, %v3448_v36  ;;  %v3440_v35 = vsel %vm3439_vm5, %v7813_v26, %v3436_v31  ;;  %v3463_v56 = vmul.f32 %v7819_v38, %v9373_v62 }
 0xc45   :  { %7820 = vrcp.f32 %v3279_v19  ;;  %v3445_v37 = vsel %vm3442_vm6, %v3444_v53, %v3440_v35  ;;  %vm3468_vm12 = vweird.f32 %v7819_v38  ;;  %v3488_v24 = vand.u32 2147483648, %v3279_v19 }
 0xc46   :  { %v3450_v33 = vmul.f32 %v7815_v17, %v3449_v58  ;;  %3643 = vmatmul.f32.gmra.mxu2 %v3531_v55  ;;  %v3532_v20 = vmul.f32 %v3445_v37, %v9355_v52  ;;  %v3464_v42 = vsub.f32 1.0, %v3463_v56  ;;  %vm3469_vm15 = vmor %vm3467_vm14, %vm3468_vm12  ;;  %v3486_v51 = vand.u32 2147483647, %v3279_v19 }
 0xc47   :  { %vm3482_vm2 = vweird.f32 %v3279_v19  ;;  %v3489_v62 = vor.u32 1.1754944e-38, %v3488_v24 }
 0xc48   :  { %v3451_v59 = vadd.f32 %v7815_v17, %v3450_v33  ;;  %v3465_v4 = vmul.f32 %v7819_v38, %v3464_v42  ;;  %3605 = vmatmul.f32.gmra.mxu1 %v3532_v20  ;;  %vm3487_vm4 = vcmp.eq.f32.partialorder %v3486_v51, 8.507059e+37 }
 0xc4a   :  { %v3455_v50 = vsel %vm3454_vm11, %v7815_v17, %v3451_v59  ;;  %v3466_v54 = vadd.f32 %v7819_v38, %v3465_v4 }
 0xc4b   :  { %v7821_v9 = vpop.eup %7820  ;;  %v3460_v5 = vsel %vm3457_vm13, %v3459_v27, %v3455_v50  ;;  %v3591_v39 = vpop.f32.mrf.mxu1 }
 0xc4c   :  { %v3533_v52 = vmul.f32 %v3460_v5, %v9359_v28  ;;  %v3478_v0 = vmul.f32 %v7821_v9, %v3279_v19  ;;  %v3470_v10 = vsel %vm3469_vm15, %v7819_v38, %v3466_v54  ;;  %vm3483_vm1 = vweird.f32 %v7821_v9  ;;  %v9391_v28 = vld [vmem:[%s10482_s11] ss:$0 sm:$0xff] }
 0xc4d   :  { %v3475_v63 = vsel %vm3472_vm0, %v3474_v45, %v3470_v10  ;;  %vm3484_vm3 = vmor %vm3482_vm2, %vm3483_vm1  ;;  %v3592_v57 = vadd.f32 %v9391_v28, %v3591_v39 }
 0xc4e   :  { %v3479_v12 = vsub.f32 1.0, %v3478_v0  ;;  %3646 = vmatmul.f32.gmra.mxu2 %v3533_v52  ;;  %v3534_v26 = vmul.f32 %v3475_v63, %v9363_v3 }
 0xc50   :  { %v3480_v48 = vmul.f32 %v7821_v9, %v3479_v12  ;;  %3608 = vmatmul.f32.gmra.mxu1 %v3534_v26 }
 0xc52   :  { %v3481_v49 = vadd.f32 %v7821_v9, %v3480_v48 }
 0xc54   :  { %v3485_v11 = vsel %vm3484_vm3, %v7821_v9, %v3481_v49 }
 0xc55   :  { %v3490_v44 = vsel %vm3487_vm4, %v3489_v62, %v3485_v11 }
 0xc56   :  { %v3535_v3 = vmul.f32 %v3490_v44, %v9367_v22 }
 0xc57   :  { %v3632_v47 = vpop.f32.mrf.mxu2 }
 0xc58   :  { %3649 = vmatmul.f32.gmra.mxu2 %v3535_v3  ;;  %v3633_v15 = vadd.f32 %v3632_v47, %v3592_v57 }
 0xc5a   :  { %v9396_v21 = vadd.f32 %v3633_v15, %v9169_v25 }
 0xc5c   :  { %3668 = vadd.xlane.f32.xlu2 %v9396_v21 }
 0xc5e   :  { %v3174_v40 = vpop.f32.mrf.mxu0 }
 0xc5f   :  { %v3175_v17 = vadd.f32 %v3174_v40, %v9296_v16 }
 0xc61   :  { %v7313_v7 = vmul.f32 -1.442695, %v3175_v17 }
 0xc63   :  { %7822 = vpow2.f32 %v7313_v7 }
 0xc64   :  { %v3215_v18 = vpop.f32.mrf.mxu3 }
 0xc65   :  { %v3216_v61 = vadd.f32 %v3215_v18, %v9302_v30 }
 0xc67   :  { %v7314_v6 = vmul.f32 -1.442695, %v3216_v61 }
 0xc69   :  { %v7823_v22 = vpop.eup %7822  ;;  %7824 = vpow2.f32 %v7314_v6 }
 0xc6a   :  { %v3280_v36 = vadd.f32 1.0, %v7823_v22 }
 0xc6c   :  { %7826 = vrcp.f32 %v3280_v36  ;;  %v3503_v55 = vand.u32 2147483648, %v3280_v36  ;;  %v3501_v16 = vand.u32 2147483647, %v3280_v36  ;;  %vm3497_vm6 = vweird.f32 %v3280_v36 }
 0xc6e   :  { %v3504_v30 = vor.u32 1.1754944e-38, %v3503_v55  ;;  %vm3502_vm8 = vcmp.eq.f32.partialorder %v3501_v16, 8.507059e+37 }
 0xc6f   :  { %v7825_v46 = vpop.eup %7824 }
 0xc70   :  { %v3281_v31 = vadd.f32 1.0, %v7825_v46 }
 0xc72   :  { %v7827_v19 = vpop.eup %7826  ;;  %7828 = vrcp.f32 %v3281_v31  ;;  %v3518_v43 = vand.u32 2147483648, %v3281_v31  ;;  %v3516_v59 = vand.u32 2147483647, %v3281_v31  ;;  %vm3512_vm12 = vweird.f32 %v3281_v31 }
 0xc73   :  { %v3493_v25 = vmul.f32 %v7827_v19, %v3280_v36  ;;  %vm3498_vm5 = vweird.f32 %v7827_v19 }
 0xc74   :  { %vm3499_vm7 = vmor %vm3497_vm6, %vm3498_vm5  ;;  %v3519_v27 = vor.u32 1.1754944e-38, %v3518_v43  ;;  %vm3517_vm14 = vcmp.eq.f32.partialorder %v3516_v59, 8.507059e+37  ;;  %v3898_v43 = vld [vmem:[#allocation8 + $0x2f8] sm:$0xff]  ;;  %v3895_v59 = vld [vmem:[#allocation8 + $0x2e0] sm:$0xff] }
 0xc75   :  { %v3494_v38 = vsub.f32 1.0, %v3493_v25  ;;  %3981 = vmatpush.msrb.mxu1 %v3898_v43 }
 0xc77   :  { %v3495_v53 = vmul.f32 %v7827_v19, %v3494_v38  ;;  %3982 = vmatpush.msrb.mxu1 %v3895_v59 }
 0xc78   :  { %v7829_v58 = vpop.eup %7828 }
 0xc79   :  { %v3496_v35 = vadd.f32 %v7827_v19, %v3495_v53  ;;  %v3508_v29 = vmul.f32 %v7829_v58, %v3281_v31  ;;  %vm3513_vm11 = vweird.f32 %v7829_v58 }
 0xc7a   :  { %vm3514_vm13 = vmor %vm3512_vm12, %vm3513_vm11 }
 0xc7b   :  { %v3500_v56 = vsel %vm3499_vm7, %v7827_v19, %v3496_v35  ;;  %v3509_v37 = vsub.f32 1.0, %v3508_v29 }
 0xc7c   :  { %v3505_v33 = vsel %vm3502_vm8, %v3504_v30, %v3500_v56 }
 0xc7d   :  { %v3536_v20 = vmul.f32 %v3505_v33, %v3175_v17  ;;  %v3510_v42 = vmul.f32 %v7829_v58, %v3509_v37  ;;  %v3896_v37 = vld [vmem:[#allocation8 + $0x2e8] sm:$0xff]  ;;  %v3897_v33 = vld [vmem:[#allocation8 + $0x2f0] sm:$0xff] }
 0xc7e   :  { %v3594_v9 = vpop.f32.mrf.mxu1  ;;  %3899 = vmatpush.msra.mxu0 %v3896_v37  ;;  %3940 = vmatpush.msra.mxu3 %v3897_v33  ;;  %v3853_v37 = vld [vmem:[#allocation8 + $0x190] sm:$0xff] }
 0xc7f   :  { %v3511_v23 = vadd.f32 %v7829_v58, %v3510_v42  ;;  %3611 = vmatmul.f32.gmra.mxu1 %v3536_v20  ;;  %v3595_v5 = vadd.f32 %v9391_v28, %v3594_v9  ;;  %v3893_v20 = vld [vmem:[#allocation8 + $0x2d0] sm:$0xff]  ;;  %v3894_v42 = vld [vmem:[#allocation8 + $0x2d8] sm:$0xff] }
 0xc80   :  { %3900 = vmatpush.msra.mxu0 %v3893_v20  ;;  %3941 = vmatpush.msra.mxu3 %v3894_v42  ;;  %v3889_v9 = vld [vmem:[#allocation8 + $0x2b0] sm:$0xff] }
 0xc81   :  { %v3515_v4 = vsel %vm3514_vm13, %v7829_v58, %v3511_v23  ;;  %v3890_v23 = vld [vmem:[#allocation8 + $0x2b8] sm:$0xff] }
 0xc82   :  { %v3520_v41 = vsel %vm3517_vm14, %v3519_v27, %v3515_v4  ;;  %v3891_v27 = vld [vmem:[#allocation8 + $0x2c0] sm:$0xff]  ;;  %v3892_v4 = vld [vmem:[#allocation8 + $0x2c8] sm:$0xff]  ;;  %3901 = vmatpush.msra.mxu0 %v3890_v23 }
 0xc83   :  { %v3537_v50 = vmul.f32 %v3520_v41, %v3216_v61  ;;  %3942 = vmatpush.msra.mxu3 %v3891_v27  ;;  %3983 = vmatpush.msrb.mxu1 %v3892_v4  ;;  %v3887_v41 = vld [vmem:[#allocation8 + $0x2a0] sm:$0xff] }
 0xc84   :  { %3902 = vmatpush.msra.mxu0 %v3887_v41 }
 0xc85   :  { %3652 = vmatmul.f32.gmra.mxu2 %v3537_v50  ;;  %v3888_v50 = vld [vmem:[#allocation8 + $0x2a8] sm:$0xff]  ;;  %3984 = vmatpush.msrb.mxu1 %v3889_v9 }
 0xc86   :  { %v3597_v0 = vpop.f32.mrf.mxu1  ;;  %3943 = vmatpush.msra.mxu3 %v3888_v50 }
 0xc87   :  { %v3598_v10 = vadd.f32 %v9391_v28, %v3597_v0  ;;  %v3881_v0 = vld [vmem:[#allocation8 + $0x270] sm:$0xff] }
 0xc8a   :  { %v3635_v54 = vpop.f32.mrf.mxu2 }
 0xc8b   :  { %v3636_v52 = vadd.f32 %v3635_v54, %v3595_v5  ;;  %v3884_v5 = vld [vmem:[#allocation8 + $0x288] sm:$0xff]  ;;  %v3885_v54 = vld [vmem:[#allocation8 + $0x290] sm:$0xff] }
 0xc8c   :  { %3903 = vmatpush.msra.mxu0 %v3884_v5  ;;  %3944 = vmatpush.msra.mxu3 %v3885_v54 }
 0xc8d   :  { %v9403_v45 = vadd.f32 %v3636_v52, %v9176_v2  ;;  %v3886_v52 = vld [vmem:[#allocation8 + $0x298] sm:$0xff] }
 0xc8e   :  { %v3600_v24 = vpop.f32.mrf.mxu1  ;;  %3985 = vmatpush.msrb.mxu1 %v3886_v52  ;;  %3904 = vmatpush.msra.mxu0 %v3881_v0 }
 0xc8f   :  { %3670 = vadd.xlane.f32.xlu1 %v9403_v45  ;;  %v3601_v48 = vadd.f32 %v9391_v28, %v3600_v24  ;;  %v3879_v24 = vld [vmem:[#allocation8 + $0x260] sm:$0xff] }
 0xc92   :  { %v3638_v63 = vpop.f32.mrf.mxu2 }
 0xc93   :  { %v3639_v12 = vadd.f32 %v3638_v63, %v3598_v10  ;;  %v3882_v10 = vld [vmem:[#allocation8 + $0x278] sm:$0xff]  ;;  %v3883_v63 = vld [vmem:[#allocation8 + $0x280] sm:$0xff] }
 0xc94   :  { %3945 = vmatpush.msra.mxu3 %v3882_v10  ;;  %3986 = vmatpush.msrb.mxu1 %v3883_v63 }
 0xc95   :  { %v9408_v26 = vadd.f32 %v3639_v12, %v9181_v34  ;;  %v3878_v12 = vld [vmem:[#allocation8 + $0x258] sm:$0xff] }
 0xc96   :  { %3905 = vmatpush.msra.mxu0 %v3878_v12  ;;  %3946 = vmatpush.msra.mxu3 %v3879_v24  ;;  %v9479_v12 = vld [vmem:[#allocation5 + $0x1] ss:$0 sm:$0xff] }
 0xc97   :  { %10495 = vst [vmem:[#allocation25_spill] sm:$0xff] %v9408_v26  ;;  %3672 = vadd.xlane.f32.xlu0 %v9408_v26 }
 0xc9c   :  { %v3641_v51 = vpop.f32.mrf.mxu2 }
 0xc9d   :  { %v3642_v49 = vadd.f32 %v3641_v51, %v3601_v48  ;;  %v3880_v48 = vld [vmem:[#allocation8 + $0x268] sm:$0xff]  ;;  %v3875_v51 = vld [vmem:[#allocation8 + $0x240] sm:$0xff] }
 0xc9e   :  { %3987 = vmatpush.msrb.mxu1 %v3880_v48  ;;  %3906 = vmatpush.msra.mxu0 %v3875_v51  ;;  %v9482_v51 = vld [vmem:[#allocation7 + $0x1] ss:$0 sm:$0xff] }
 0xc9f   :  { %v9413_v2 = vadd.f32 %v3642_v49, %v9185_v32  ;;  %v3876_v49 = vld [vmem:[#allocation8 + $0x248] sm:$0xff] }
 0xca0   :  { %3947 = vmatpush.msra.mxu3 %v3876_v49 }
 0xca1   :  { %10496 = vst [vmem:[#allocation26_spill] sm:$0xff] %v9413_v2  ;;  %3674 = vadd.xlane.f32.xlu2 %v9413_v2 }
 0xcbd   :  { %v3603_v62 = vpop.f32.mrf.mxu1 }
 0xcbe   :  { %v3604_v39 = vadd.f32 %v9391_v28, %v3603_v62  ;;  %v3877_v62 = vld [vmem:[#allocation8 + $0x250] sm:$0xff] }
 0xcbf   :  { %3988 = vmatpush.msrb.mxu1 %v3877_v62 }
 0xcc5   :  { %v3606_v3 = vpop.f32.mrf.mxu1 }
 0xcc6   :  { %v3607_v47 = vadd.f32 %v9391_v28, %v3606_v3  ;;  %v3869_v3 = vld [vmem:[#allocation8 + $0x210] sm:$0xff] }
 0xcc9   :  { %v3644_v11 = vpop.f32.mrf.mxu2 }
 0xcca   :  { %v3645_v44 = vadd.f32 %v3644_v11, %v3604_v39  ;;  %v3872_v39 = vld [vmem:[#allocation8 + $0x228] sm:$0xff]  ;;  %v3873_v11 = vld [vmem:[#allocation8 + $0x230] sm:$0xff] }
 0xccb   :  { %3907 = vmatpush.msra.mxu0 %v3872_v39  ;;  %3948 = vmatpush.msra.mxu3 %v3873_v11 }
 0xccc   :  { %v9418_v34 = vadd.f32 %v3645_v44, %v9193_v14  ;;  %v3874_v44 = vld [vmem:[#allocation8 + $0x238] sm:$0xff] }
 0xccd   :  { %v3609_v18 = vpop.f32.mrf.mxu1  ;;  %3989 = vmatpush.msrb.mxu1 %v3874_v44  ;;  %3908 = vmatpush.msra.mxu0 %v3869_v3 }
 0xcce   :  { %10497 = vst [vmem:[#allocation27_spill] sm:$0xff] %v9418_v34  ;;  %3676 = vadd.xlane.f32.xlu1 %v9418_v34  ;;  %v3610_v61 = vadd.f32 %v9391_v28, %v3609_v18  ;;  %v3863_v18 = vld [vmem:[#allocation8 + $0x1e0] sm:$0xff] }
 0xccf   :  { %v3669_v57 = vpop.xlane.xlu2 %3668 }
 0xcd0   :  { %v3684_v15 = vmul.f32 %v3669_v57, %v8449_v13  ;;  %v3870_v57 = vld [vmem:[#allocation8 + $0x218] sm:$0xff] }
 0xcd1   :  { %v3647_v32 = vpop.f32.mrf.mxu2  ;;  %3949 = vmatpush.msra.mxu3 %v3870_v57 }
 0xcd2   :  { %v9424_v40 = vsub.f32 %v9396_v21, %v3684_v15  ;;  %v3648_v17 = vadd.f32 %v3647_v32, %v3607_v47  ;;  %v3871_v47 = vld [vmem:[#allocation8 + $0x220] sm:$0xff]  ;;  %v3866_v15 = vld [vmem:[#allocation8 + $0x1f8] sm:$0xff] }
 0xcd3   :  { %3990 = vmatpush.msrb.mxu1 %v3871_v47  ;;  %v3867_v32 = vld [vmem:[#allocation8 + $0x200] sm:$0xff]  ;;  %3909 = vmatpush.msra.mxu0 %v3866_v15 }
 0xcd4   :  { %v9427_v7 = vadd.f32 %v3648_v17, %v9204_v1  ;;  %v3700_v14 = vmul.f32 %v9424_v40, %v9424_v40  ;;  %v3868_v17 = vld [vmem:[#allocation8 + $0x208] sm:$0xff]  ;;  %3950 = vmatpush.msra.mxu3 %v3867_v32 }
 0xcd5   :  { %3991 = vmatpush.msrb.mxu1 %v3868_v17  ;;  %3910 = vmatpush.msra.mxu0 %v3863_v18 }
 0xcd6   :  { %10498 = vst [vmem:[#allocation28_spill] sm:$0xff] %v9427_v7  ;;  %3708 = vadd.xlane.f32.xlu2 %v3700_v14  ;;  %3678 = vadd.xlane.f32.xlu0 %v9427_v7 }
 0xcdb   :  { %v3650_v6 = vpop.f32.mrf.mxu2 }
 0xcdc   :  { %v3651_v22 = vadd.f32 %v3650_v6, %v3610_v61  ;;  %v3864_v61 = vld [vmem:[#allocation8 + $0x1e8] sm:$0xff]  ;;  %v3865_v6 = vld [vmem:[#allocation8 + $0x1f0] sm:$0xff] }
 0xcdd   :  { %3951 = vmatpush.msra.mxu3 %v3864_v61  ;;  %3992 = vmatpush.msrb.mxu1 %v3865_v6 }
 0xcde   :  { %v9434_v36 = vadd.f32 %v3651_v22, %v9208_v60 }
 0xce0   :  { %10499 = vst [vmem:[#allocation29_spill] sm:$0xff] %v9434_v36  ;;  %3680 = vadd.xlane.f32.xlu1 %v9434_v36 }
 0xcfc   :  { %v3612_v31 = vpop.f32.mrf.mxu1 }
 0xcfd   :  { %v3613_v25 = vadd.f32 %v9391_v28, %v3612_v31  ;;  %v3862_v31 = vld [vmem:[#allocation8 + $0x1d8] sm:$0xff] }
 0xcfe   :  { %3993 = vmatpush.msrb.mxu1 %v3862_v31 }
 0xd02   :  { %v3671_v46 = vpop.xlane.xlu1 %3670 }
 0xd03   :  { %v3685_v1 = vmul.f32 %v3671_v46, %v8449_v13  ;;  %v3860_v46 = vld [vmem:[#allocation8 + $0x1c8] sm:$0xff] }
 0xd04   :  { %3911 = vmatpush.msra.mxu0 %v3860_v46 }
 0xd05   :  { %v9439_v19 = vsub.f32 %v9403_v45, %v3685_v1  ;;  %v3861_v1 = vld [vmem:[#allocation8 + $0x1d0] sm:$0xff] }
 0xd06   :  { %3952 = vmatpush.msra.mxu3 %v3861_v1 }
 0xd07   :  { %v3701_v38 = vmul.f32 %v9439_v19, %v9439_v19 }
 0xd08   :  { %v3653_v55 = vpop.f32.mrf.mxu2 }
 0xd09   :  { %v3654_v53 = vadd.f32 %v3653_v55, %v3613_v25  ;;  %3710 = vadd.xlane.f32.xlu0 %v3701_v38  ;;  %v3857_v25 = vld [vmem:[#allocation8 + $0x1b0] sm:$0xff]  ;;  %v3858_v38 = vld [vmem:[#allocation8 + $0x1b8] sm:$0xff] }
 0xd0a   :  { %v3673_v16 = vpop.xlane.xlu0 %3672  ;;  %3912 = vmatpush.msra.mxu0 %v3857_v25  ;;  %3953 = vmatpush.msra.mxu3 %v3858_v38 }
 0xd0b   :  { %v9445_v60 = vadd.f32 %v3654_v53, %v9221_v8  ;;  %v3686_v58 = vmul.f32 %v3673_v16, %v8449_v13  ;;  %v3859_v53 = vld [vmem:[#allocation8 + $0x1c0] sm:$0xff]  ;;  %v3854_v16 = vld [vmem:[#allocation8 + $0x198] sm:$0xff] }
 0xd0c   :  { %3994 = vmatpush.msrb.mxu1 %v3859_v53  ;;  %3913 = vmatpush.msra.mxu0 %v3854_v16 }
 0xd0d   :  { %10500 = vst [vmem:[#allocation30_spill] sm:$0xff] %v9445_v60  ;;  %v9449_v35 = vsub.f32 %v9408_v26, %v3686_v58  ;;  %3682 = vadd.xlane.f32.xlu2 %v9445_v60 }
 0xd0f   :  { %v3702_v28 = vmul.f32 %v9449_v35, %v9449_v35 }
 0xd11   :  { %3712 = vadd.xlane.f32.xlu1 %v3702_v28  ;;  %v3855_v28 = vld [vmem:[#allocation8 + $0x1a0] sm:$0xff] }
 0xd12   :  { %3954 = vmatpush.msra.mxu3 %v3855_v28 }
 0xd14   :  { %v3675_v29 = vpop.xlane.xlu2 %3674 }
 0xd15   :  { %v3687_v30 = vmul.f32 %v3675_v29, %v8449_v13  ;;  %v3856_v29 = vld [vmem:[#allocation8 + $0x1a8] sm:$0xff] }
 0xd16   :  { %3995 = vmatpush.msrb.mxu1 %v3856_v29 }
 0xd17   :  { %v9456_v56 = vsub.f32 %v9413_v2, %v3687_v30  ;;  %v3851_v30 = vld [vmem:[#allocation8 + $0x180] sm:$0xff] }
 0xd18   :  { %3914 = vmatpush.msra.mxu0 %v3851_v30  ;;  %3996 = vmatpush.msrb.mxu1 %v3853_v37 }
 0xd19   :  { %v3703_v8 = vmul.f32 %v9456_v56, %v9456_v56 }
 0xd1b   :  { %3714 = vadd.xlane.f32.xlu0 %v3703_v8  ;;  %v3852_v8 = vld [vmem:[#allocation8 + $0x188] sm:$0xff] }
 0xd1c   :  { %3955 = vmatpush.msra.mxu3 %v3852_v8 }
 0xd41   :  { %v3677_v14 = vpop.xlane.xlu1 %3676 }
 0xd42   :  { %v3688_v22 = vmul.f32 %v3677_v14, %v8449_v13 }
 0xd44   :  { %v9462_v55 = vsub.f32 %v9418_v34, %v3688_v22 }
 0xd46   :  { %v3704_v58 = vmul.f32 %v9462_v55, %v9462_v55 }
 0xd48   :  { %3716 = vadd.xlane.f32.xlu2 %v3704_v58 }
 0xd49   :  { %v3709_v33 = vpop.xlane.xlu2 %3708  ;;  %v3679_v43 = vpop.xlane.xlu0 %3678 }
 0xd4a   :  { %v3724_v20 = vmul.f32 %v3709_v33, %v8449_v13  ;;  %v3689_v42 = vmul.f32 %v3679_v43, %v8449_v13 }
 0xd4c   :  { %v3732_v59 = vadd.f32 1e-05, %v3724_v20  ;;  %v9469_v23 = vsub.f32 %v9427_v7, %v3689_v42 }
 0xd4e   :  { %7830 = vrsqrt.f32 %v3732_v59  ;;  %v3705_v27 = vmul.f32 %v9469_v23, %v9469_v23  ;;  %vm3746_vm0 = vweird.f32 %v3732_v59 }
 0xd50   :  { %3718 = vadd.xlane.f32.xlu1 %v3705_v27 }
 0xd53   :  { %v3681_v4 = vpop.xlane.xlu1 %3680 }
 0xd54   :  { %v7831_v41 = vpop.eup %7830  ;;  %v3690_v50 = vmul.f32 %v3681_v4, %v8449_v13 }
 0xd55   :  { %v3741_v9 = vmul.f32 %v7831_v41, %v3732_v59  ;;  %vm3747_vm15 = vweird.f32 %v7831_v41 }
 0xd56   :  { %v9475_v5 = vsub.f32 %v9434_v36, %v3690_v50  ;;  %vm3748_vm1 = vmor %vm3746_vm0, %vm3747_vm15 }
 0xd57   :  { %v3742_v54 = vmul.f32 %v7831_v41, %v3741_v9 }
 0xd58   :  { %v3706_v52 = vmul.f32 %v9475_v5, %v9475_v5 }
 0xd59   :  { %v3743_v0 = vmul.f32 0.5, %v3742_v54 }
 0xd5a   :  { %3720 = vadd.xlane.f32.xlu0 %v3706_v52 }
 0xd5b   :  { %v3744_v10 = vsub.f32 1.5, %v3743_v0 }
 0xd5d   :  { %v3745_v63 = vmul.f32 %v7831_v41, %v3744_v10 }
 0xd5f   :  { %v3749_v24 = vsel %vm3748_vm1, %v7831_v41, %v3745_v63 }
 0xd60   :  { %v3820_v48 = vmul.f32 %v3749_v24, %v9424_v40 }
 0xd62   :  { %v3831_v49 = vmul.f32 %v9479_v12, %v3820_v48 }
 0xd64   :  { %v3842_v62 = vadd.f32 %v9482_v51, %v3831_v49 }
 0xd66   :  { %3915 = vmatmul.f32.vlgmr.msra.gmra.mxu0 %v3842_v62  ;;  %3956 = vmatmul.f32.vlgmr.msra.gmra.mxu3 %v3842_v62 }
 0xd67   :  { %3997 = vmatmul.f32.vlgmr.msrb.gmra.mxu1 %v3842_v62 }
 0xd7c   :  { %v3711_v39 = vpop.xlane.xlu0 %3710 }
 0xd7d   :  { %v3725_v11 = vmul.f32 %v3711_v39, %v8449_v13 }
 0xd7f   :  { %v3733_v44 = vadd.f32 1e-05, %v3725_v11 }
 0xd80   :  { %v3683_v3 = vpop.xlane.xlu2 %3682 }
 0xd81   :  { %7832 = vrsqrt.f32 %v3733_v44  ;;  %v3691_v57 = vmul.f32 %v3683_v3, %v8449_v13  ;;  %vm3756_vm3 = vweird.f32 %v3733_v44 }
 0xd83   :  { %v9489_v47 = vsub.f32 %v9445_v60, %v3691_v57 }
 0xd84   :  { %v3713_v40 = vpop.xlane.xlu1 %3712 }
 0xd85   :  { %v3726_v15 = vmul.f32 %v3713_v40, %v8449_v13  ;;  %v3707_v32 = vmul.f32 %v9489_v47, %v9489_v47 }
 0xd87   :  { %v7833_v17 = vpop.eup %7832  ;;  %v3734_v14 = vadd.f32 1e-05, %v3726_v15  ;;  %3722 = vadd.xlane.f32.xlu2 %v3707_v32 }
 0xd88   :  { %v3751_v18 = vmul.f32 %v7833_v17, %v3733_v44  ;;  %vm3757_vm2 = vweird.f32 %v7833_v17 }
 0xd89   :  { %7834 = vrsqrt.f32 %v3734_v14  ;;  %vm3758_vm4 = vmor %vm3756_vm3, %vm3757_vm2  ;;  %vm3766_vm6 = vweird.f32 %v3734_v14 }
 0xd8a   :  { %v3752_v61 = vmul.f32 %v7833_v17, %v3751_v18 }
 0xd8c   :  { %v3753_v6 = vmul.f32 0.5, %v3752_v61 }
 0xd8e   :  { %v3754_v22 = vsub.f32 1.5, %v3753_v6  ;;  %v3715_v46 = vpop.xlane.xlu0 %3714 }
 0xd8f   :  { %v7835_v1 = vpop.eup %7834  ;;  %v3727_v31 = vmul.f32 %v3715_v46, %v8449_v13 }
 0xd90   :  { %v3755_v25 = vmul.f32 %v7833_v17, %v3754_v22  ;;  %v3761_v38 = vmul.f32 %v7835_v1, %v3734_v14  ;;  %vm3767_vm5 = vweird.f32 %v7835_v1 }
 0xd91   :  { %v3735_v53 = vadd.f32 1e-05, %v3727_v31  ;;  %vm3768_vm7 = vmor %vm3766_vm6, %vm3767_vm5 }
 0xd92   :  { %v3762_v16 = vmul.f32 %v7835_v1, %v3761_v38  ;;  %v3759_v58 = vsel %vm3758_vm4, %v7833_v17, %v3755_v25 }
 0xd93   :  { %7836 = vrsqrt.f32 %v3735_v53  ;;  %v3821_v28 = vmul.f32 %v3759_v58, %v9439_v19  ;;  %vm3776_vm11 = vweird.f32 %v3735_v53 }
 0xd94   :  { %v3763_v29 = vmul.f32 0.5, %v3762_v16 }
 0xd95   :  { %v3832_v30 = vmul.f32 %v9479_v12, %v3821_v28 }
 0xd96   :  { %v3764_v8 = vsub.f32 1.5, %v3763_v29 }
 0xd97   :  { %v3843_v37 = vadd.f32 %v9482_v51, %v3832_v30 }
 0xd98   :  { %v3765_v33 = vmul.f32 %v7835_v1, %v3764_v8 }
 0xd99   :  { %v7837_v43 = vpop.eup %7836  ;;  %3918 = vmatmul.f32.gmra.mxu0 %v3843_v37  ;;  %3959 = vmatmul.f32.gmra.mxu3 %v3843_v37 }
 0xd9a   :  { %v3771_v20 = vmul.f32 %v7837_v43, %v3735_v53  ;;  %4000 = vmatmul.f32.gmra.mxu1 %v3843_v37  ;;  %v3769_v42 = vsel %vm3768_vm7, %v7835_v1, %v3765_v33  ;;  %vm3777_vm8 = vweird.f32 %v7837_v43 }
 0xd9b   :  { %v3822_v59 = vmul.f32 %v3769_v42, %v9449_v35  ;;  %vm3778_vm12 = vmor %vm3776_vm11, %vm3777_vm8 }
 0xd9c   :  { %v3772_v27 = vmul.f32 %v7837_v43, %v3771_v20 }
 0xd9d   :  { %v3833_v19 = vmul.f32 %v9479_v12, %v3822_v59 }
 0xd9e   :  { %v3773_v4 = vmul.f32 0.5, %v3772_v27 }
 0xd9f   :  { %v3844_v41 = vadd.f32 %v9482_v51, %v3833_v19 }
 0xda0   :  { %v3774_v50 = vsub.f32 1.5, %v3773_v4 }
 0xda1   :  { %3921 = vmatmul.f32.gmra.mxu0 %v3844_v41  ;;  %3962 = vmatmul.f32.gmra.mxu3 %v3844_v41 }
 0xda2   :  { %v3775_v9 = vmul.f32 %v7837_v43, %v3774_v50  ;;  %4003 = vmatmul.f32.gmra.mxu1 %v3844_v41 }
 0xda4   :  { %v3779_v54 = vsel %vm3778_vm12, %v7837_v43, %v3775_v9 }
 0xda5   :  { %v3823_v52 = vmul.f32 %v3779_v54, %v9456_v56 }
 0xda7   :  { %v3834_v0 = vmul.f32 %v9479_v12, %v3823_v52 }
 0xda9   :  { %v3845_v35 = vadd.f32 %v9482_v51, %v3834_v0 }
 0xdab   :  { %3924 = vmatmul.f32.gmra.mxu0 %v3845_v35  ;;  %3965 = vmatmul.f32.gmra.mxu3 %v3845_v35 }
 0xdac   :  { %4006 = vmatmul.f32.gmra.mxu1 %v3845_v35 }
 0xdbb   :  { %v3717_v10 = vpop.xlane.xlu2 %3716 }
 0xdbc   :  { %v3728_v63 = vmul.f32 %v3717_v10, %v8449_v13 }
 0xdbe   :  { %v3736_v24 = vadd.f32 1e-05, %v3728_v63 }
 0xdc0   :  { %7838 = vrsqrt.f32 %v3736_v24  ;;  %vm3786_vm14 = vweird.f32 %v3736_v24 }
 0xdc3   :  { %v3719_v48 = vpop.xlane.xlu1 %3718 }
 0xdc4   :  { %v3729_v49 = vmul.f32 %v3719_v48, %v8449_v13 }
 0xdc6   :  { %v7839_v62 = vpop.eup %7838  ;;  %v3737_v39 = vadd.f32 1e-05, %v3729_v49 }
 0xdc7   :  { %v3781_v11 = vmul.f32 %v7839_v62, %v3736_v24  ;;  %vm3787_vm13 = vweird.f32 %v7839_v62 }
 0xdc8   :  { %7840 = vrsqrt.f32 %v3737_v39  ;;  %vm3788_vm15 = vmor %vm3786_vm14, %vm3787_vm13  ;;  %vm3796_vm1 = vweird.f32 %v3737_v39 }
 0xdc9   :  { %v3782_v56 = vmul.f32 %v7839_v62, %v3781_v11 }
 0xdcb   :  { %v3783_v44 = vmul.f32 0.5, %v3782_v56 }
 0xdcd   :  { %v3784_v3 = vsub.f32 1.5, %v3783_v44  ;;  %v3721_v57 = vpop.xlane.xlu0 %3720 }
 0xdce   :  { %v7841_v40 = vpop.eup %7840  ;;  %v3730_v15 = vmul.f32 %v3721_v57, %v8449_v13 }
 0xdcf   :  { %v3785_v32 = vmul.f32 %v7839_v62, %v3784_v3  ;;  %v3791_v17 = vmul.f32 %v7841_v40, %v3737_v39  ;;  %vm3797_vm0 = vweird.f32 %v7841_v40 }
 0xdd0   :  { %v3738_v14 = vadd.f32 1e-05, %v3730_v15  ;;  %vm3798_vm2 = vmor %vm3796_vm1, %vm3797_vm0 }
 0xdd1   :  { %v3789_v18 = vsel %vm3788_vm15, %v7839_v62, %v3785_v32  ;;  %v3792_v61 = vmul.f32 %v7841_v40, %v3791_v17 }
 0xdd2   :  { %7842 = vrsqrt.f32 %v3738_v14  ;;  %v3824_v6 = vmul.f32 %v3789_v18, %v9462_v55  ;;  %vm3806_vm4 = vweird.f32 %v3738_v14 }
 0xdd3   :  { %v3793_v22 = vmul.f32 0.5, %v3792_v61 }
 0xdd4   :  { %v3835_v46 = vmul.f32 %v9479_v12, %v3824_v6 }
 0xdd5   :  { %v3794_v1 = vsub.f32 1.5, %v3793_v22 }
 0xdd6   :  { %v3846_v31 = vadd.f32 %v9482_v51, %v3835_v46 }
 0xdd7   :  { %v3795_v25 = vmul.f32 %v7841_v40, %v3794_v1 }
 0xdd8   :  { %v7843_v38 = vpop.eup %7842  ;;  %3927 = vmatmul.f32.gmra.mxu0 %v3846_v31  ;;  %3968 = vmatmul.f32.gmra.mxu3 %v3846_v31 }
 0xdd9   :  { %v3799_v53 = vsel %vm3798_vm2, %v7841_v40, %v3795_v25  ;;  %v3801_v16 = vmul.f32 %v7843_v38, %v3738_v14  ;;  %4009 = vmatmul.f32.gmra.mxu1 %v3846_v31  ;;  %vm3807_vm3 = vweird.f32 %v7843_v38 }
 0xdda   :  { %v3825_v58 = vmul.f32 %v3799_v53, %v9469_v23  ;;  %vm3808_vm5 = vmor %vm3806_vm4, %vm3807_vm3 }
 0xddb   :  { %v3802_v28 = vmul.f32 %v7843_v38, %v3801_v16 }
 0xddc   :  { %v3836_v55 = vmul.f32 %v9479_v12, %v3825_v58 }
 0xddd   :  { %v3803_v29 = vmul.f32 0.5, %v3802_v28 }
 0xdde   :  { %v3847_v30 = vadd.f32 %v9482_v51, %v3836_v55 }
 0xddf   :  { %v3804_v8 = vsub.f32 1.5, %v3803_v29 }
 0xde0   :  { %3930 = vmatmul.f32.gmra.mxu0 %v3847_v30  ;;  %3971 = vmatmul.f32.gmra.mxu3 %v3847_v30 }
 0xde1   :  { %v3805_v37 = vmul.f32 %v7843_v38, %v3804_v8  ;;  %4012 = vmatmul.f32.gmra.mxu1 %v3847_v30 }
 0xde3   :  { %v3809_v33 = vsel %vm3808_vm5, %v7843_v38, %v3805_v37  ;;  %v9520_v59 = vpop.f32.mrf.mxu0 }
 0xde4   :  { %v3826_v43 = vmul.f32 %v3809_v33, %v9475_v5  ;;  %v9554_v62 = vpop.f32.mrf.mxu1 }
 0xde6   :  { %v3837_v20 = vmul.f32 %v9479_v12, %v3826_v43 }
 0xde8   :  { %v3848_v23 = vadd.f32 %v9482_v51, %v3837_v20 }
 0xde9   :  { %v9516_v42 = vpop.f32.mrf.mxu3 }
 0xdea   :  { %3933 = vmatmul.f32.gmra.mxu0 %v3848_v23  ;;  %3974 = vmatmul.f32.gmra.mxu3 %v3848_v23 }
 0xdeb   :  { %4015 = vmatmul.f32.gmra.mxu1 %v3848_v23  ;;  %7315 = vmatpush.xpose.msk.msrb.mxu2 %vm568_vm9, %v9516_v42 }
 0xdee   :  { %7316 = vmatmul.msk.f32.vlgmr.msrb.gmra.mxu2 %vm568_vm9, %v9520_v59 }
 0xdfa   :  { %v3723_v27 = vpop.xlane.xlu2 %3722 }
 0xdfb   :  { %v3731_v5 = vmul.f32 %v3723_v27, %v8449_v13 }
 0xdfd   :  { %v3739_v19 = vadd.f32 1e-05, %v3731_v5 }
 0xdff   :  { %7844 = vrsqrt.f32 %v3739_v19  ;;  %vm3816_vm7 = vweird.f32 %v3739_v19 }
 0xe05   :  { %v7845_v4 = vpop.eup %7844 }
 0xe06   :  { %v3811_v41 = vmul.f32 %v7845_v4, %v3739_v19  ;;  %vm3817_vm6 = vweird.f32 %v7845_v4 }
 0xe07   :  { %vm3818_vm8 = vmor %vm3816_vm7, %vm3817_vm6 }
 0xe08   :  { %v3812_v50 = vmul.f32 %v7845_v4, %v3811_v41 }
 0xe0a   :  { %v3813_v9 = vmul.f32 0.5, %v3812_v50 }
 0xe0c   :  { %v3814_v54 = vsub.f32 1.5, %v3813_v9 }
 0xe0e   :  { %v3815_v52 = vmul.f32 %v7845_v4, %v3814_v54 }
 0xe10   :  { %v3819_v0 = vsel %vm3818_vm8, %v7845_v4, %v3815_v52 }
 0xe11   :  { %v3827_v35 = vmul.f32 %v3819_v0, %v9489_v47 }
 0xe13   :  { %v3838_v10 = vmul.f32 %v9479_v12, %v3827_v35 }
 0xe15   :  { %v3849_v63 = vadd.f32 %v9482_v51, %v3838_v10 }
 0xe16   :  { %v9530_v48 = vpop.f32.mrf.mxu0 }
 0xe17   :  { %3936 = vmatmul.f32.gmra.mxu0 %v3849_v63  ;;  %3977 = vmatmul.f32.gmra.mxu3 %v3849_v63  ;;  %v9556_v39 = vpop.f32.mrf.mxu1 }
 0xe18   :  { %4018 = vmatmul.f32.gmra.mxu1 %v3849_v63 }
 0xe1c   :  { %v9528_v24 = vpop.f32.mrf.mxu3 }
 0xe1d   :  { %7317 = vmatpush.xpose.msk.msra.mxu2 %vm568_vm9, %v9528_v24 }
 0xe1e   :  { %v9542_v12 = vpop.f32.mrf.mxu0 }
 0xe1f   :  { %v9558_v11 = vpop.f32.mrf.mxu1 }
 0xe20   :  { %7318 = vmatmul.msk.f32.vlgmr.msra.gmra.mxu2 %vm568_vm9, %v9530_v48 }
 0xe24   :  { %v9536_v49 = vpop.f32.mrf.mxu3 }
 0xe25   :  { %4577 = vrot.lane.b32.xlu2 %v9536_v49, %s8331_s10  ;;  %7319 = vmatpush.xpose.msk.msrb.mxu2 %vm568_vm9, %v9536_v49 }
 0xe28   :  { %7320 = vmatmul.msk.f32.vlgmr.msrb.gmra.mxu2 %vm568_vm9, %v9542_v12  ;;  %v9550_v47 = vpop.f32.mrf.mxu0 }
 0xe29   :  { %v9560_v56 = vpop.f32.mrf.mxu1 }
 0xe2e   :  { %v9546_v51 = vpop.f32.mrf.mxu3 }
 0xe2f   :  { %7321 = vmatpush.xpose.msk.msrb.mxu0 %vm568_vm9, %v9546_v51 }
 0xe32   :  { %7322 = vmatmul.msk.f32.vlgmr.msrb.gmra.mxu0 %vm568_vm9, %v9550_v47 }
 0xe55   :  { %v9564_v3 = vpop.f32.mrf.mxu0 }
 0xe56   :  { %v9568_v57 = vpop.f32.mrf.mxu1 }
 0xe5b   :  { %v9562_v44 = vpop.f32.mrf.mxu3 }
 0xe5c   :  { %7323 = vmatpush.xpose.msk.msra.mxu2 %vm568_vm9, %v9562_v44 }
 0xe5d   :  { %v9579_v15 = vpop.f32.mrf.mxu0 }
 0xe5e   :  { %v9581_v32 = vpop.f32.mrf.mxu1 }
 0xe5f   :  { %7324 = vmatmul.msk.f32.vlgmr.msra.gmra.mxu2 %vm568_vm9, %v9564_v3 }
 0xe60   :  { %4353 = vmatpush.msrb.mxu2 %v9554_v62 }
 0xe62   :  { %4445 = vmatpush.msra.mxu2 %v9568_v57 }
 0xe63   :  { %v9574_v40 = vpop.f32.mrf.mxu3 }
 0xe64   :  { %7325 = vmatpush.xpose.msk.msrb.mxu3 %vm568_vm9, %v9574_v40 }
 0xe67   :  { %7326 = vmatmul.msk.f32.vlgmr.msrb.gmra.mxu3 %vm568_vm9, %v9579_v15  ;;  %v9591_v14 = vpop.f32.mrf.mxu0 }
 0xe68   :  { %4376 = vmatpush.msra.mxu3 %v9556_v39  ;;  %v9593_v18 = vpop.f32.mrf.mxu1 }
 0xe6a   :  { %4468 = vmatpush.msrb.mxu3 %v9581_v32 }
 0xe6d   :  { %v9586_v17 = vpop.f32.mrf.mxu3 }
 0xe6e   :  { %7327 = vmatpush.xpose.msk.msra.mxu0 %vm568_vm9, %v9586_v17 }
 0xe71   :  { %7328 = vmatmul.msk.f32.vlgmr.msra.gmra.mxu0 %vm568_vm9, %v9591_v14  ;;  %v9600_v6 = vpop.f32.mrf.mxu2 }
 0xe72   :  { %4399 = vmatpush.msrb.mxu0 %v9558_v11 }
 0xe74   :  { %4491 = vmatpush.msra.mxu0 %v9593_v18 }
 0xe7f   :  { %v4578_v43 = vpop.permute.xlu2 %4577 }
 0xe94   :  { %v9605_v22 = vpop.f32.mrf.mxu0 }
 0xe95   :  { %v9607_v46 = vpop.f32.mrf.mxu1 }
 0xe9a   :  { %v9598_v61 = vpop.f32.mrf.mxu3 }
 0xe9b   :  { %7329 = vmatpush.xpose.msk.msra.mxu1 %vm568_vm9, %v9598_v61 }
 0xe9e   :  { %7330 = vmatmul.msk.f32.vlgmr.msra.gmra.mxu1 %vm568_vm9, %v9605_v22 }
 0xe9f   :  { %4422 = vmatpush.msrb.mxu1 %v9560_v56 }
 0xea1   :  { %4514 = vmatpush.msra.mxu1 %v9607_v46 }
 0xea3   :  { %v9612_v1 = vpop.f32.mrf.mxu2 }
 0xea4   :  { %v4250_v35 = vsel %vm777_vm10, %v9612_v1, -inf }
 0xeab   :  { %v4114_v31 = vpop.f32.mrf.mxu2 }
 0xeac   :  { %v4253_v25 = vsel %vm777_vm10, %v4114_v31, -inf }
 0xead   :  { %4254 = vmax.xlane.f32.xlu1 %v4253_v25 }
 0xeaf   :  { %v4140_v38 = vpop.f32.mrf.mxu0 }
 0xeb0   :  { %v4256_v53 = vsel %vm777_vm10, %v4140_v38, -inf }
 0xeb1   :  { %4257 = vmax.xlane.f32.xlu2 %v4256_v53 }
 0xec9   :  { %4687 = vrot.lane.b32.xlu2 %v9591_v14, %s8331_s10 }
 0xeea   :  { %v4192_v63 = vpop.f32.mrf.mxu3 }
 0xeeb   :  { %v4262_v25 = vsel %vm777_vm10, %v4192_v63, -inf }
 0xeee   :  { %v4218_v16 = vpop.f32.mrf.mxu0 }
 0xeef   :  { %v4265_v58 = vsel %vm777_vm10, %v4218_v16, -inf }
 0xef0   :  { %4266 = vmax.xlane.f32.xlu0 %v4265_v58 }
 0xf04   :  { %4689 = vrot.lane.b32.xlu0 %v9586_v17, %s8331_s10 }
 0xf0c   :  { %4605 = vrot.lane.b32.xlu0 %v9546_v51, %s8331_s10 }
 0xf1b   :  { %v9623_v28 = vpop.f32.mrf.mxu1 }
 0xf1c   :  { %v4268_v55 = vsel %vm777_vm10, %v9623_v28, -inf }
 0xf1d   :  { %4269 = vmax.xlane.f32.xlu1 %v4268_v55 }
 0xf20   :  { %v4255_v29 = vpop.xlane.xlu1 %4254 }
 0xf21   :  { %v4273_v30 = vsub.f32 %v4114_v31, %v4255_v29 }
 0xf23   :  { %v4283_v8 = vmul.f32 1.442695, %v4273_v30 }
 0xf24   :  { %v4258_v20 = vpop.xlane.xlu2 %4257 }
 0xf25   :  { %7846 = vpow2.f32 %v4283_v8  ;;  %v4274_v23 = vsub.f32 %v4140_v38, %v4258_v20 }
 0xf27   :  { %v4285_v27 = vmul.f32 1.442695, %v4274_v23 }
 0xf29   :  { %7848 = vpow2.f32 %v4285_v27 }
 0xf2b   :  { %v7847_v37 = vpop.eup %7846 }
 0xf2c   :  { %v4301_v33 = vsel %vm777_vm10, %v7847_v37, 0.0  ;;  %v4688_v29 = vpop.permute.xlu2 %4687 }
 0xf2f   :  { %v7849_v5 = vpop.eup %7848 }
 0xf30   :  { %v4304_v19 = vsel %vm777_vm10, %v7849_v5, 0.0 }
 0xf36   :  { %4302 = vadd.xlane.f32.xlu0 %v4301_v33  ;;  %4575 = vrot.lane.b32.xlu1 %v9542_v12, %s8331_s10 }
 0xf4a   :  { %4715 = vrot.lane.b32.xlu0 %v9605_v22, %s8331_s10 }
 0xf60   :  { %4305 = vadd.xlane.f32.xlu1 %v4304_v19 }
 0xf63   :  { %v4267_v4 = vpop.xlane.xlu0 %4266 }
 0xf64   :  { %v4277_v41 = vsub.f32 %v4218_v16, %v4267_v4 }
 0xf66   :  { %v4291_v50 = vmul.f32 1.442695, %v4277_v41 }
 0xf68   :  { %7850 = vpow2.f32 %v4291_v50 }
 0xf6e   :  { %v7851_v9 = vpop.eup %7850 }
 0xf6f   :  { %v4313_v54 = vsel %vm777_vm10, %v7851_v9, 0.0 }
 0xf70   :  { %4314 = vadd.xlane.f32.xlu2 %v4313_v54 }
 0xf76   :  { %v4690_v52 = vpop.permute.xlu0 %4689 }
 0xf79   :  { %4603 = vrot.lane.b32.xlu1 %v9550_v47, %s8331_s10 }
 0xf7e   :  { %v4606_v0 = vpop.permute.xlu0 %4605 }
 0xf88   :  { %4717 = vrot.lane.b32.xlu2 %v9598_v61, %s8331_s10 }
 0xf90   :  { %v4270_v53 = vpop.xlane.xlu1 %4269 }
 0xfa3   :  { %4251 = vmax.xlane.f32.xlu1 %v4250_v35 }
 0xfa8   :  { %v4576_v16 = vpop.permute.xlu1 %4575 }
 0xfa9   :  { %v4303_v10 = vpop.xlane.xlu0 %4302 }
 0xfaa   :  { %7852 = vrcp.f32 %v4303_v10 }
 0xfb0   :  { %v7853_v31 = vpop.eup %7852 }
 0xfb1   :  { %v4329_v38 = vmul.f32 %v7853_v31, %v7847_v37  ;;  %4263 = vmax.xlane.f32.xlu2 %v4262_v25 }
 0xfb3   :  { %7333 = vmatmul.msk.f32.vlgmr.msrb.gmra.mxu0 %vm777_vm10, %v4329_v38 }
 0xfb4   :  { %7343 = vmatpush.xpose.msk.msrb.mxu0 %vm568_vm9, %v4578_v43 }
 0xfc9   :  { %4661 = vrot.lane.b32.xlu2 %v9574_v40, %s8331_s10 }
 0xfd1   :  { %5177 = vrot.lane.b32.xlu2 %v9520_v59, %s8332_s29 }
 0xfd3   :  { %v4306_v58 = vpop.xlane.xlu1 %4305 }
 0xfd4   :  { %7854 = vrcp.f32 %v4306_v58 }
 0xfd9   :  { %5289 = vrot.lane.b32.xlu2 %v9564_v3, %s8332_s29 }
 0xfda   :  { %v7855_v55 = vpop.eup %7854 }
 0xfdb   :  { %v4330_v30 = vmul.f32 %v7855_v55, %v7849_v5 }
 0xfdd   :  { %7334 = vmatmul.msk.f32.vlgmr.msrb.gmra.mxu1 %vm777_vm10, %v4330_v30 }
 0xfde   :  { %7345 = vmatpush.xpose.msk.msrb.mxu1 %vm568_vm9, %v4606_v0  ;;  %v7537_v0 = vpack.i.bf16 %v9593_v18, %v9558_v11 }
 0xfe3   :  { %v4315_v8 = vpop.xlane.xlu2 %4314 }
 0xfe4   :  { %7856 = vrcp.f32 %v4315_v8 }
 0xfea   :  { %v7857_v37 = vpop.eup %7856 }
 0xfeb   :  { %v4333_v33 = vmul.f32 %v7857_v37, %v7851_v9  ;;  %v9655_v43 = vpop.permute.xlu1 %4603  ;;  %v9658_v5 = vpop.permute.xlu2 %4717 }
 0xfed   :  { %7337 = vmatmul.msk.f32.vlgmr.msra.gmra.mxu0 %vm777_vm10, %v4333_v33  ;;  %v7542_v33 = vpack.i.bf16 %v9607_v46, %v9560_v56 }
 0xfee   :  { %7351 = vmatpush.xpose.msk.msra.mxu0 %vm568_vm9, %v4690_v52 }
 0xff5   :  { %7344 = vmatmul.msk.f32.vlgmr.msrb.gmra.mxu0 %vm568_vm9, %v4576_v16 }
 0xffd   :  { %7352 = vmatmul.msk.f32.vlgmr.msra.gmra.mxu0 %vm568_vm9, %v4688_v29  ;;  %v4247_v29 = vsel %vm777_vm10, %v9600_v6, -inf }
0x1016   :  { %v4252_v20 = vpop.xlane.xlu1 %4251 }
0x1017   :  { %v4272_v23 = vsub.f32 %v9612_v1, %v4252_v20  ;;  %v4278_v1 = vsub.f32 %v9623_v28, %v4270_v53  ;;  %v4716_v53 = vpop.permute.xlu0 %4715 }
0x1019   :  { %v4281_v27 = vmul.f32 1.442695, %v4272_v23  ;;  %v4293_v35 = vmul.f32 1.442695, %v4278_v1 }
0x101b   :  { %7858 = vpow2.f32 %v4281_v27 }
0x1021   :  { %v7859_v19 = vpop.eup %7858 }
0x1022   :  { %v4298_v4 = vsel %vm777_vm10, %v7859_v19, 0.0 }
0x1023   :  { %4299 = vadd.xlane.f32.xlu0 %v4298_v4 }
0x1024   :  { %v4264_v41 = vpop.xlane.xlu2 %4263 }
0x1025   :  { %v4276_v50 = vsub.f32 %v4192_v63, %v4264_v41 }
0x1027   :  { %v4289_v9 = vmul.f32 1.442695, %v4276_v50 }
0x1029   :  { %7860 = vpow2.f32 %v4289_v9 }
0x102a   :  { %7862 = vpow2.f32 %v4293_v35 }
0x102c   :  { %v4662_v23 = vpop.permute.xlu2 %4661 }
0x102f   :  { %v7861_v54 = vpop.eup %7860 }
0x1030   :  { %v4310_v52 = vsel %vm777_vm10, %v7861_v54, 0.0  ;;  %v7863_v10 = vpop.eup %7862  ;;  %v9673_v31 = vpop.f32.mrf.mxu0 }
0x1031   :  { %4311 = vadd.xlane.f32.xlu1 %v4310_v52  ;;  %v4316_v63 = vsel %vm777_vm10, %v7863_v10, 0.0 }
0x1034   :  { %v9714_v35 = vpop.permute.xlu2 %5177 }
0x1037   :  { %4547 = vrot.lane.b32.xlu0 %v9530_v48, %s8331_s10 }
0x104a   :  { %4549 = vrot.lane.b32.xlu1 %v9528_v24, %s8331_s10 }
0x1052   :  { %7538 = vrot.lane.b32.xlu1 %v7537_v0, %s8331_s10 }
0x105a   :  { %5179 = vrot.lane.b32.xlu1 %v9516_v42, %s8332_s29 }
0x1061   :  { %4317 = vadd.xlane.f32.xlu0 %v4316_v63 }
0x1062   :  { %5235 = vrot.lane.b32.xlu1 %v9536_v49, %s8332_s29 }
0x106a   :  { %5207 = vrot.lane.b32.xlu1 %v9528_v24, %s8332_s29  ;;  %v9679_v28 = vpop.f32.mrf.mxu0 }
0x1072   :  { %5205 = vrot.lane.b32.xlu1 %v9530_v48, %s8332_s29  ;;  %v4600_v25 = vpop.f32.mrf.mxu0 }
0x1073   :  { %v4749_v38 = vsel %vm777_vm10, %v4600_v25, -inf }
0x1074   :  { %4750 = vmax.xlane.f32.xlu2 %v4749_v38 }
0x1075   :  { %4659 = vrot.lane.b32.xlu0 %v9579_v15, %s8331_s10 }
0x107a   :  { %v4712_v1 = vpop.f32.mrf.mxu0 }
0x107b   :  { %v4761_v0 = vsel %vm777_vm10, %v4712_v1, -inf }
0x1096   :  { %v4300_v16 = vpop.xlane.xlu0 %4299 }
0x1097   :  { %7864 = vrcp.f32 %v4300_v16 }
0x109d   :  { %v7865_v58 = vpop.eup %7864 }
0x109e   :  { %v4328_v55 = vmul.f32 %v7865_v58, %v7859_v19 }
0x109f   :  { %4248 = vmax.xlane.f32.xlu0 %v4247_v29 }
0x10a0   :  { %7332 = vmatmul.msk.f32.vlgmr.msra.gmra.mxu3 %vm777_vm10, %v4328_v55 }
0x10a4   :  { %v4312_v30 = vpop.xlane.xlu1 %4311 }
0x10a5   :  { %7866 = vrcp.f32 %v4312_v30  ;;  %v9723_v30 = vpop.f32.mrf.mxu1 }
0x10a9   :  { %v4548_v27 = vpop.permute.xlu0 %4547 }
0x10ab   :  { %v7867_v8 = vpop.eup %7866 }
0x10ac   :  { %v4332_v37 = vmul.f32 %v7867_v8, %v7861_v54 }
0x10ae   :  { %7336 = vmatmul.msk.f32.vlgmr.msrb.gmra.mxu3 %vm777_vm10, %v4332_v37 }
0x10b3   :  { %7543 = vrot.lane.b32.xlu0 %v7542_v33, %s8331_s10 }
0x10bb   :  { %5233 = vrot.lane.b32.xlu0 %v9542_v12, %s8332_s29 }
0x10bc   :  { %v4550_v20 = vpop.permute.xlu1 %4549 }
0x10bd   :  { %7341 = vmatpush.xpose.msk.msra.mxu3 %vm568_vm9, %v4550_v20 }
0x10c0   :  { %7342 = vmatmul.msk.f32.vlgmr.msra.gmra.mxu3 %vm568_vm9, %v4548_v27 }
0x10c1   :  { %7349 = vmatpush.xpose.msk.msrb.mxu3 %vm568_vm9, %v4662_v23 }
0x10c3   :  { %5291 = vrot.lane.b32.xlu0 %v9562_v44, %s8332_s29 }
0x10c4   :  { %v7539_v19 = vpop.permute.xlu1 %7538 }
0x10c5   :  { %v7541_v4 = vunpack.i.h.bf16 %v7539_v19  ;;  %v7540_v41 = vunpack.i.l.bf16 %v7539_v19 }
0x10c7   :  { %4907 = vmatpush.msrb.mxu0 %v7540_v41 }
0x10c9   :  { %5015 = vmatpush.msra.mxu0 %v7541_v4 }
0x10cb   :  { %5263 = vrot.lane.b32.xlu0 %v9546_v51, %s8332_s29 }
0x10d4   :  { %v4318_v50 = vpop.xlane.xlu0 %4317 }
0x10d5   :  { %7868 = vrcp.f32 %v4318_v50 }
0x10db   :  { %v7869_v9 = vpop.eup %7868 }
0x10dc   :  { %v4334_v54 = vmul.f32 %v7869_v9, %v7863_v10 }
0x10de   :  { %7338 = vmatmul.msk.f32.vlgmr.msra.gmra.mxu1 %vm777_vm10, %v4334_v54 }
0x10df   :  { %7353 = vmatpush.xpose.msk.msra.mxu1 %vm568_vm9, %v9658_v5 }
0x10e6   :  { %7346 = vmatmul.msk.f32.vlgmr.msrb.gmra.mxu1 %vm568_vm9, %v9655_v43  ;;  %v9718_v43 = vpop.permute.xlu2 %5289 }
0x10e7   :  { %v4660_v52 = vpop.permute.xlu0 %4659 }
0x10e8   :  { %7350 = vmatmul.msk.f32.vlgmr.msrb.gmra.mxu3 %vm568_vm9, %v4660_v52 }
0x10ee   :  { %7354 = vmatmul.msk.f32.vlgmr.msra.gmra.mxu1 %vm568_vm9, %v4716_v53  ;;  %v4751_v63 = vpop.xlane.xlu2 %4750 }
0x10ef   :  { %v4769_v16 = vsub.f32 %v4600_v25, %v4751_v63 }
0x10f1   :  { %v4779_v58 = vmul.f32 1.442695, %v4769_v16 }
0x10f3   :  { %7870 = vpow2.f32 %v4779_v58 }
0x10f5   :  { %4762 = vmax.xlane.f32.xlu0 %v4761_v0 }
0x10f9   :  { %v7871_v55 = vpop.eup %7870 }
0x10fa   :  { %v4797_v29 = vsel %vm777_vm10, %v7871_v55, 0.0 }
0x1109   :  { %5345 = vrot.lane.b32.xlu0 %v9591_v14, %s8332_s29 }
0x1111   :  { %5317 = vrot.lane.b32.xlu0 %v9579_v15, %s8332_s29 }
0x1112   :  { %v9716_v5 = vpop.xlane.xlu0 %4248 }
0x1123   :  { %v9743_v54 = vpop.f32.mrf.mxu3 }
0x1125   :  { %v7544_v10 = vpop.permute.xlu0 %7543 }
0x1126   :  { %v7546_v38 = vunpack.i.h.bf16 %v7544_v10  ;;  %v7545_v53 = vunpack.i.l.bf16 %v7544_v10  ;;  %v4166_v10 = vpop.f32.mrf.mxu2 }
0x1127   :  { %v4259_v16 = vsel %vm777_vm10, %v4166_v10, -inf }
0x1128   :  { %4934 = vmatpush.msrb.mxu1 %v7545_v53 }
0x112a   :  { %5042 = vmatpush.msra.mxu1 %v7546_v38 }
0x112d   :  { %v9729_v23 = vpop.permute.xlu0 %5233 }
0x1131   :  { %v9747_v63 = vpop.f32.mrf.mxu3 }
0x1135   :  { %v9733_v27 = vpop.permute.xlu0 %5291 }
0x113b   :  { %4798 = vadd.xlane.f32.xlu0 %v4797_v29 }
0x113d   :  { %v9739_v19 = vpop.permute.xlu0 %5263 }
0x114f   :  { %5373 = vrot.lane.b32.xlu0 %v9605_v22, %s8332_s29 }
0x115b   :  { %v9725_v8 = vpop.f32.mrf.mxu1 }
0x1163   :  { %v4628_v37 = vpop.f32.mrf.mxu1 }
0x1164   :  { %v4752_v33 = vsel %vm777_vm10, %v4628_v37, -inf }
0x1165   :  { %4753 = vmax.xlane.f32.xlu2 %v4752_v33 }
0x1168   :  { %v4763_v4 = vpop.xlane.xlu0 %4762 }
0x1169   :  { %v4773_v41 = vsub.f32 %v4712_v1, %v4763_v4  ;;  %v4572_v1 = vpop.f32.mrf.mxu3 }
0x116a   :  { %v4746_v33 = vsel %vm777_vm10, %v4572_v1, -inf }
0x116b   :  { %v4740_v20 = vpop.f32.mrf.mxu1  ;;  %v4787_v9 = vmul.f32 1.442695, %v4773_v41 }
0x116c   :  { %v4764_v25 = vsel %vm777_vm10, %v4740_v20, -inf }
0x116d   :  { %4765 = vmax.xlane.f32.xlu1 %v4764_v25  ;;  %7872 = vpow2.f32 %v4787_v9  ;;  %v5180_v25 = vpop.permute.xlu1 %5179 }
0x1171   :  { %v4684_v4 = vpop.f32.mrf.mxu3 }
0x1172   :  { %v4758_v41 = vsel %vm777_vm10, %v4684_v4, -inf }
0x1173   :  { %v7873_v0 = vpop.eup %7872 }
0x1174   :  { %v4809_v38 = vsel %vm777_vm10, %v7873_v0, 0.0 }
0x1175   :  { %v5236_v9 = vpop.permute.xlu1 %5235 }
0x117b   :  { %v9741_v50 = vpop.permute.xlu0 %5345 }
0x117d   :  { %5261 = vrot.lane.b32.xlu2 %v9550_v47, %s8332_s29 }
0x1183   :  { %v9745_v52 = vpop.permute.xlu0 %5317 }
0x1185   :  { %5319 = vrot.lane.b32.xlu2 %v9574_v40, %s8332_s29 }
0x1186   :  { %5347 = vrot.lane.b32.xlu1 %v9586_v17, %s8332_s29 }
0x11ae   :  { %4810 = vadd.xlane.f32.xlu2 %v4809_v38  ;;  %v4799_v53 = vpop.xlane.xlu0 %4798  ;;  %v9755_v38 = vpop.permute.xlu1 %5207 }
0x11af   :  { %7874 = vrcp.f32 %v4799_v53 }
0x11b0   :  { %4260 = vmax.xlane.f32.xlu1 %v4259_v16 }
0x11b5   :  { %v7875_v58 = vpop.eup %7874 }
0x11b6   :  { %v4825_v29 = vmul.f32 %v7875_v58, %v7871_v55  ;;  %v9757_v53 = vpop.permute.xlu1 %5205 }
0x11b8   :  { %4747 = vmax.xlane.f32.xlu1 %v4746_v33  ;;  %7357 = vmatmul.msk.f32.vlgmr.msrb.gmra.mxu0 %vm777_vm10, %v4825_v29 }
0x11b9   :  { %7379 = vmatpush.xpose.msk.msrb.mxu0 %vm568_vm9, %v5180_v25 }
0x11c0   :  { %4759 = vmax.xlane.f32.xlu1 %v4758_v41 }
0x11d8   :  { %v4754_v16 = vpop.xlane.xlu2 %4753 }
0x11d9   :  { %v4770_v60 = vsub.f32 %v4628_v37, %v4754_v16 }
0x11db   :  { %v4781_v55 = vmul.f32 1.442695, %v4770_v60 }
0x11dd   :  { %7876 = vpow2.f32 %v4781_v55 }
0x11e0   :  { %v4766_v58 = vpop.xlane.xlu1 %4765  ;;  %v9766_v37 = vpop.permute.xlu2 %5261 }
0x11e1   :  { %v4774_v36 = vsub.f32 %v4740_v20, %v4766_v58 }
0x11e3   :  { %v7877_v33 = vpop.eup %7876  ;;  %v4789_v7 = vmul.f32 1.442695, %v4774_v36  ;;  %v4271_v36 = vsub.f32 %v9600_v6, %v9716_v5 }
0x11e4   :  { %v4800_v29 = vsel %vm777_vm10, %v7877_v33, 0.0 }
0x11e5   :  { %7878 = vpow2.f32 %v4789_v7  ;;  %4801 = vadd.xlane.f32.xlu2 %v4800_v29  ;;  %v4279_v16 = vmul.f32 1.442695, %v4271_v36 }
0x11e8   :  { %v9768_v60 = vpop.permute.xlu2 %5319 }
0x11eb   :  { %v9760_v25 = vpop.eup %7878 }
0x11ec   :  { %v4812_v41 = vsel %vm777_vm10, %v9760_v25, 0.0 }
0x11ed   :  { %4813 = vadd.xlane.f32.xlu2 %v4812_v41 }
0x11f8   :  { %v5348_v20 = vpop.permute.xlu1 %5347 }
0x1205   :  { %5375 = vrot.lane.b32.xlu2 %v9598_v61, %s8332_s29 }
0x1221   :  { %v4811_v7 = vpop.xlane.xlu2 %4810 }
0x1222   :  { %7880 = vrcp.f32 %v4811_v7 }
0x1223   :  { %v4261_v55 = vpop.xlane.xlu1 %4260  ;;  %7882 = vpow2.f32 %v4279_v16  ;;  %v7552_v16 = vpack.i.bf16 %v9558_v11, %v9554_v62 }
0x1224   :  { %v4275_v58 = vsub.f32 %v4166_v10, %v4261_v55 }
0x1226   :  { %v4287_v29 = vmul.f32 1.442695, %v4275_v58 }
0x1228   :  { %v7881_v13 = vpop.eup %7880  ;;  %7884 = vpow2.f32 %v4287_v29 }
0x1229   :  { %v4829_v41 = vmul.f32 %v7881_v13, %v7873_v0  ;;  %v9772_v34 = vpop.eup %7882 }
0x122a   :  { %v4295_v6 = vsel %vm777_vm10, %v9772_v34, 0.0 }
0x122b   :  { %v4748_v2 = vpop.xlane.xlu1 %4747  ;;  %7361 = vmatmul.msk.f32.vlgmr.msra.gmra.mxu0 %vm777_vm10, %v4829_v41 }
0x122c   :  { %v4768_v26 = vsub.f32 %v4572_v1, %v4748_v2  ;;  %7383 = vmatpush.xpose.msk.msra.mxu0 %vm568_vm9, %v5236_v9 }
0x122e   :  { %v9778_v5 = vpop.eup %7884  ;;  %v4777_v36 = vmul.f32 1.442695, %v4768_v26  ;;  %4296 = vadd.xlane.f32.xlu2 %v4295_v6 }
0x122f   :  { %v4307_v10 = vsel %vm777_vm10, %v9778_v5, 0.0 }
0x1230   :  { %7886 = vpow2.f32 %v4777_v36  ;;  %4308 = vadd.xlane.f32.xlu0 %v4307_v10 }
0x1233   :  { %v4760_v13 = vpop.xlane.xlu1 %4759  ;;  %7380 = vmatmul.msk.f32.vlgmr.msrb.gmra.mxu0 %vm568_vm9, %v9714_v35 }
0x1234   :  { %v4772_v0 = vsub.f32 %v4684_v4, %v4760_v13  ;;  %7387 = vmatpush.xpose.msk.msrb.mxu0 %vm568_vm9, %v9733_v27  ;;  %v7547_v27 = vpack.i.bf16 %v9581_v32, %v9556_v39 }
0x1236   :  { %v9786_v2 = vpop.eup %7886  ;;  %v4785_v1 = vmul.f32 1.442695, %v4772_v0 }
0x1237   :  { %v4794_v26 = vsel %vm777_vm10, %v9786_v2, 0.0 }
0x1238   :  { %7888 = vpow2.f32 %v4785_v1  ;;  %4795 = vadd.xlane.f32.xlu1 %v4794_v26 }
0x123b   :  { %7384 = vmatmul.msk.f32.vlgmr.msra.gmra.mxu0 %vm568_vm9, %v9729_v23 }
0x123c   :  { %7391 = vmatpush.xpose.msk.msra.mxu0 %vm568_vm9, %v5348_v20 }
0x123e   :  { %v9793_v9 = vpop.eup %7888 }
0x123f   :  { %v4806_v35 = vsel %vm777_vm10, %v9793_v9, 0.0 }
0x1240   :  { %4807 = vadd.xlane.f32.xlu0 %v4806_v35 }
0x1243   :  { %7388 = vmatmul.msk.f32.vlgmr.msrb.gmra.mxu0 %vm568_vm9, %v9718_v43  ;;  %v7557_v43 = vpack.i.bf16 %v9568_v57, %v9556_v39 }
0x1246   :  { %7548 = vrot.lane.b32.xlu2 %v7547_v27, %s8331_s10 }
0x124b   :  { %7392 = vmatmul.msk.f32.vlgmr.msra.gmra.mxu0 %vm568_vm9, %v9741_v50 }
0x124e   :  { %4633 = vrot.lane.b32.xlu2 %v9562_v44, %s8331_s10 }
0x1251   :  { %4521 = vrot.lane.b32.xlu1 %v9516_v42, %s8331_s10 }
0x1254   :  { %4519 = vrot.lane.b32.xlu0 %v9520_v59, %s8331_s10 }
0x1258   :  { %v4802_v23 = vpop.xlane.xlu2 %4801 }
0x1259   :  { %7890 = vrcp.f32 %v4802_v23  ;;  %7558 = vrot.lane.b32.xlu1 %v7557_v43, %s8332_s29 }
0x125c   :  { %4631 = vrot.lane.b32.xlu0 %v9564_v3, %s8331_s10 }
0x125f   :  { %v7891_v50 = vpop.eup %7890 }
0x1260   :  { %v4826_v4 = vmul.f32 %v7891_v50, %v7877_v33  ;;  %v4814_v20 = vpop.xlane.xlu2 %4813  ;;  %v7562_v33 = vpack.i.bf16 %v9593_v18, %v9560_v56 }
0x1261   :  { %7892 = vrcp.f32 %v4814_v20 }
0x1262   :  { %7358 = vmatmul.msk.f32.vlgmr.msrb.gmra.mxu1 %vm777_vm10, %v4826_v4 }
0x1263   :  { %7381 = vmatpush.xpose.msk.msrb.mxu1 %vm568_vm9, %v9755_v38 }
0x1264   :  { %7553 = vrot.lane.b32.xlu0 %v7552_v16, %s8332_s29 }
0x1267   :  { %v7893_v7 = vpop.eup %7892 }
0x1268   :  { %v4830_v55 = vmul.f32 %v7893_v7, %v9760_v25  ;;  %v5376_v38 = vpop.permute.xlu2 %5375  ;;  %v5374_v25 = vpop.permute.xlu0 %5373 }
0x126a   :  { %7362 = vmatmul.msk.f32.vlgmr.msra.gmra.mxu1 %vm777_vm10, %v4830_v55 }
0x126b   :  { %7385 = vmatpush.xpose.msk.msra.mxu1 %vm568_vm9, %v9739_v19  ;;  %v9838_v19 = vpop.f32.mrf.mxu0 }
0x126c   :  { %7563 = vrot.lane.b32.xlu0 %v7562_v33, %s8332_s29 }
0x1272   :  { %7382 = vmatmul.msk.f32.vlgmr.msrb.gmra.mxu1 %vm568_vm9, %v9757_v53 }
0x1273   :  { %7389 = vmatpush.xpose.msk.msrb.mxu1 %vm568_vm9, %v9768_v60 }
0x127a   :  { %7386 = vmatmul.msk.f32.vlgmr.msra.gmra.mxu1 %vm568_vm9, %v9766_v37 }
0x127b   :  { %7393 = vmatpush.xpose.msk.msra.mxu1 %vm568_vm9, %v5376_v38 }
0x1282   :  { %7390 = vmatmul.msk.f32.vlgmr.msrb.gmra.mxu1 %vm568_vm9, %v9745_v52 }
0x128a   :  { %7394 = vmatmul.msk.f32.vlgmr.msra.gmra.mxu1 %vm568_vm9, %v5374_v25 }
0x12a1   :  { %v4297_v58 = vpop.xlane.xlu2 %4296 }
0x12a2   :  { %7894 = vrcp.f32 %v4297_v58 }
0x12a3   :  { %v4309_v53 = vpop.xlane.xlu0 %4308 }
0x12a4   :  { %7896 = vrcp.f32 %v4309_v53 }
0x12a8   :  { %v7895_v29 = vpop.eup %7894  ;;  %v9840_v60 = vpop.f32.mrf.mxu0 }
0x12a9   :  { %v4327_v41 = vmul.f32 %v7895_v29, %v9772_v34  ;;  %v7549_v37 = vpop.permute.xlu2 %7548 }
0x12aa   :  { %v7551_v6 = vunpack.i.h.bf16 %v7549_v37  ;;  %v7550_v36 = vunpack.i.l.bf16 %v7549_v37  ;;  %v7897_v52 = vpop.eup %7896 }
0x12ab   :  { %v4796_v10 = vpop.xlane.xlu1 %4795  ;;  %7331 = vmatmul.msk.f32.vlgmr.msrb.gmra.mxu2 %vm777_vm10, %v4327_v41  ;;  %v4331_v0 = vmul.f32 %v7897_v52, %v9778_v5  ;;  %v4025_v52 = vld [vmem:[#allocation10 + $0x90] sm:$0xff] }
0x12ac   :  { %7898 = vrcp.f32 %v4796_v10  ;;  %4880 = vmatpush.msra.mxu3 %v7550_v36  ;;  %v4026_v10 = vld [vmem:[#allocation10 + $0x98] sm:$0xff] }
0x12ae   :  { %4988 = vmatpush.msrb.mxu3 %v7551_v6 }
0x12b0   :  { %v9844_v13 = vpop.f32.mrf.mxu0 }
0x12b1   :  { %v5401_v1 = vsel %vm777_vm10, %v9844_v13, -inf  ;;  %v4634_v20 = vpop.permute.xlu2 %4633 }
0x12b2   :  { %v7899_v26 = vpop.eup %7898  ;;  %5402 = vmax.xlane.f32.xlu2 %v5401_v1 }
0x12b3   :  { %v4824_v34 = vmul.f32 %v7899_v26, %v9786_v2  ;;  %7335 = vmatmul.msk.f32.vlgmr.msra.gmra.mxu2 %vm777_vm10, %v4331_v0  ;;  %v4808_v35 = vpop.xlane.xlu0 %4807  ;;  %v4023_v0 = vld [vmem:[#allocation10 + $0x80] sm:$0xff] }
0x12b4   :  { %7900 = vrcp.f32 %v4808_v35 }
0x12b5   :  { %7356 = vmatmul.msk.f32.vlgmr.msra.gmra.mxu3 %vm777_vm10, %v4824_v34 }
0x12b6   :  { %5148 = vmatpush.msra.mxu3 %v4026_v10 }
0x12b8   :  { %v9852_v27 = vpop.f32.mrf.mxu0  ;;  %5149 = vmatpush.msra.mxu3 %v4025_v52 }
0x12b9   :  { %v5407_v43 = vsel %vm777_vm10, %v9852_v27, -inf }
0x12ba   :  { %v7901_v23 = vpop.eup %7900  ;;  %5408 = vmax.xlane.f32.xlu2 %v5407_v43 }
0x12bb   :  { %v4828_v5 = vmul.f32 %v7901_v23, %v9793_v9 }
0x12bd   :  { %7360 = vmatmul.msk.f32.vlgmr.msrb.gmra.mxu3 %vm777_vm10, %v4828_v5 }
0x12c0   :  { %v9858_v50 = vpop.f32.mrf.mxu0 }
0x12c1   :  { %v5413_v2 = vsel %vm777_vm10, %v9858_v50, -inf }
0x12c2   :  { %5414 = vmax.xlane.f32.xlu0 %v5413_v2 }
0x12c3   :  { %v4522_v4 = vpop.permute.xlu1 %4521 }
0x12c4   :  { %7339 = vmatpush.xpose.msk.msrb.mxu2 %vm568_vm9, %v4522_v4 }
0x12c6   :  { %v4520_v16 = vpop.permute.xlu0 %4519 }
0x12c7   :  { %7340 = vmatmul.msk.f32.vlgmr.msrb.gmra.mxu2 %vm568_vm9, %v4520_v16 }
0x12c8   :  { %7347 = vmatpush.xpose.msk.msra.mxu2 %vm568_vm9, %v4634_v20  ;;  %v9897_v34 = vpop.f32.mrf.mxu0 }
0x12c9   :  { %v5419_v35 = vsel %vm777_vm10, %v9897_v34, -inf }
0x12cb   :  { %v9865_v7 = vpop.permute.xlu1 %7558 }
0x12cc   :  { %v7560_v9 = vunpack.i.l.bf16 %v9865_v7 }
0x12ce   :  { %v4632_v55 = vpop.permute.xlu0 %4631  ;;  %5536 = vmatpush.msrb.mxu1 %v7560_v9 }
0x12cf   :  { %7348 = vmatmul.msk.f32.vlgmr.msra.gmra.mxu2 %vm568_vm9, %v4632_v55 }
0x12d6   :  { %5770 = vrot.lane.b32.xlu0 %v9520_v59, %s8333_s30  ;;  %v7554_v33 = vpop.permute.xlu0 %7553 }
0x12d7   :  { %v7556_v38 = vunpack.i.h.bf16 %v7554_v33  ;;  %v7555_v25 = vunpack.i.l.bf16 %v7554_v33 }
0x12d9   :  { %5510 = vmatpush.msrb.mxu0 %v7555_v25 }
0x12db   :  { %5562 = vmatpush.msra.mxu0 %v7556_v38 }
0x12de   :  { %5619 = vrot.lane.b32.xlu0 %v9581_v32, %s8332_s29  ;;  %v9873_v58 = vpop.permute.xlu0 %7563 }
0x12df   :  { %v7565_v53 = vunpack.i.l.bf16 %v9873_v58  ;;  %v9876_v29 = vpop.f32.mrf.mxu1 }
0x12e1   :  { %5588 = vmatpush.msra.mxu1 %v7565_v53 }
0x12e6   :  { %5798 = vrot.lane.b32.xlu0 %v9530_v48, %s8333_s30  ;;  %v4024_v48 = vld [vmem:[#allocation10 + $0x88] sm:$0xff] }
0x12e7   :  { %v9880_v41 = vpop.f32.mrf.mxu1  ;;  %5150 = vmatpush.msra.mxu3 %v4024_v48 }
0x12e9   :  { %5151 = vmatpush.msra.mxu3 %v4023_v0 }
0x12ee   :  { %5671 = vrot.lane.b32.xlu0 %v9607_v46, %s8332_s29 }
0x12ef   :  { %v5230_v59 = vpop.f32.mrf.mxu1 }
0x12f0   :  { %v5404_v37 = vsel %vm777_vm10, %v5230_v59, -inf }
0x12f1   :  { %5405 = vmax.xlane.f32.xlu1 %v5404_v37 }
0x12f7   :  { %v5286_v6 = vpop.f32.mrf.mxu1 }
0x12f8   :  { %v5410_v36 = vsel %vm777_vm10, %v5286_v6, -inf }
0x12f9   :  { %5411 = vmax.xlane.f32.xlu2 %v5410_v36 }
0x12ff   :  { %v9890_v1 = vpop.f32.mrf.mxu1 }
0x1300   :  { %v5416_v26 = vsel %vm777_vm10, %v9890_v1, -inf }
0x1307   :  { %v9923_v55 = vpop.f32.mrf.mxu1 }
0x130a   :  { %5800 = vrot.lane.b32.xlu1 %v9528_v24, %s8333_s30 }
0x1311   :  { %5772 = vrot.lane.b32.xlu2 %v9516_v42, %s8333_s30 }
0x1318   :  { %5417 = vmax.xlane.f32.xlu0 %v5416_v26 }
0x132c   :  { %5828 = vrot.lane.b32.xlu0 %v9536_v49, %s8333_s30  ;;  %v5403_v49 = vpop.xlane.xlu2 %5402 }
0x132e   :  { %v4355_v24 = vpop.f32.mrf.mxu2 }
0x132f   :  { %7371 = vmatmul.msk.f32.vlgmr.msra.gmra.mxu3 %vm568_vm9, %v4355_v24 }
0x1334   :  { %5420 = vmax.xlane.f32.xlu1 %v5419_v35 }
0x1335   :  { %v5415_v43 = vpop.xlane.xlu0 %5414 }
0x1336   :  { %v4447_v42 = vpop.f32.mrf.mxu2 }
0x1337   :  { %7372 = vmatmul.msk.f32.gmra.mxu3 %vm568_vm9, %v9743_v54  ;;  %v5409_v54 = vpop.xlane.xlu2 %5408 }
0x133f   :  { %7373 = vmatmul.msk.f32.gmra.mxu3 %vm568_vm9, %v9673_v31 }
0x1347   :  { %7374 = vmatmul.msk.f32.gmra.mxu3 %vm568_vm9, %v9723_v30  ;;  %v5425_v30 = vsub.f32 %v9844_v13, %v5403_v49  ;;  %v5422_v13 = vsel %vm777_vm10, %v9923_v55, -inf }
0x1348   :  { %v5771_v31 = vpop.permute.xlu0 %5770 }
0x1349   :  { %v5433_v9 = vmul.f32 1.442695, %v5425_v30 }
0x134d   :  { %5856 = vrot.lane.b32.xlu1 %v9546_v51, %s8333_s30 }
0x134f   :  { %7375 = vmatmul.msk.f32.gmra.mxu3 %vm568_vm9, %v4447_v42 }
0x1357   :  { %7376 = vmatmul.msk.f32.gmra.mxu3 %vm568_vm9, %v9747_v63  ;;  %v9919_v63 = vpop.permute.xlu0 %5619 }
0x135f   :  { %7377 = vmatmul.msk.f32.gmra.mxu3 %vm568_vm9, %v9679_v28 }
0x1364   :  { %v5406_v23 = vpop.xlane.xlu1 %5405 }
0x1365   :  { %v5426_v5 = vsub.f32 %v5230_v59, %v5406_v23  ;;  %v9934_v59 = vpop.permute.xlu0 %5798  ;;  %v9969_v23 = vpop.f32.mrf.mxu3 }
0x1367   :  { %v5435_v2 = vmul.f32 1.442695, %v5426_v5  ;;  %7378 = vmatmul.msk.f32.gmra.mxu3 %vm568_vm9, %v9725_v8  ;;  %v5427_v8 = vsub.f32 %v9852_v27, %v5409_v54  ;;  %v5429_v27 = vsub.f32 %v9858_v50, %v5415_v43 }
0x1369   :  { %7902 = vpow2.f32 %v5435_v2  ;;  %v5437_v53 = vmul.f32 1.442695, %v5427_v8  ;;  %v5441_v36 = vmul.f32 1.442695, %v5429_v27 }
0x136c   :  { %v5412_v51 = vpop.xlane.xlu2 %5411 }
0x136d   :  { %v5428_v4 = vsub.f32 %v5286_v6, %v5412_v51  ;;  %v9943_v52 = vpop.permute.xlu0 %5671  ;;  %v9973_v5 = vpop.f32.mrf.mxu3 }
0x136f   :  { %v9917_v20 = vpop.eup %7902  ;;  %v5439_v16 = vmul.f32 1.442695, %v5428_v4  ;;  %v7567_v4 = vpack.i.bf16 %v9568_v57, %v9554_v62 }
0x1370   :  { %v5452_v28 = vsel %vm777_vm10, %v9917_v20, 0.0 }
0x1371   :  { %7904 = vpow2.f32 %v5439_v16  ;;  %5453 = vadd.xlane.f32.xlu2 %v5452_v28 }
0x1372   :  { %7906 = vpow2.f32 %v5433_v9 }
0x1373   :  { %7908 = vpow2.f32 %v5437_v53 }
0x1374   :  { %v5773_v33 = vpop.permute.xlu2 %5772  ;;  %7910 = vpow2.f32 %v5441_v36 }
0x1375   :  { %7411 = vmatpush.xpose.msk.msrb.mxu3 %vm568_vm9, %v5773_v33 }
0x1377   :  { %v9929_v38 = vpop.eup %7904  ;;  %5423 = vmax.xlane.f32.xlu1 %v5422_v13 }
0x1378   :  { %7412 = vmatmul.msk.f32.vlgmr.msrb.gmra.mxu3 %vm568_vm9, %v5771_v31  ;;  %v5458_v25 = vsel %vm777_vm10, %v9929_v38, 0.0  ;;  %v9936_v37 = vpop.eup %7906 }
0x1379   :  { %5459 = vadd.xlane.f32.xlu0 %v5458_v25  ;;  %v5449_v6 = vsel %vm777_vm10, %v9936_v37, 0.0  ;;  %v9941_v10 = vpop.eup %7908 }
0x137a   :  { %v5455_v48 = vsel %vm777_vm10, %v9941_v10, 0.0  ;;  %v9947_v0 = vpop.eup %7910 }
0x137b   :  { %v5461_v35 = vsel %vm777_vm10, %v9947_v0, 0.0 }
0x137f   :  { %5450 = vadd.xlane.f32.xlu1 %v5449_v6 }
0x1387   :  { %5456 = vadd.xlane.f32.xlu1 %v5455_v48 }
0x138b   :  { %v5418_v26 = vpop.xlane.xlu0 %5417 }
0x138c   :  { %v5430_v24 = vsub.f32 %v9890_v1, %v5418_v26  ;;  %v9962_v1 = vpop.permute.xlu1 %5800  ;;  %v7561_v26 = vunpack.i.h.bf16 %v9865_v7 }
0x138d   :  { %5826 = vrot.lane.b32.xlu0 %v9542_v12, %s8333_s30 }
0x138e   :  { %v5443_v50 = vmul.f32 1.442695, %v5430_v24 }
0x138f   :  { %5462 = vadd.xlane.f32.xlu1 %v5461_v35 }
0x1390   :  { %7912 = vpow2.f32 %v5443_v50 }
0x1395   :  { %5882 = vrot.lane.b32.xlu0 %v9564_v3, %s8333_s30 }
0x1396   :  { %v9956_v42 = vpop.eup %7912 }
0x1397   :  { %v5464_v49 = vsel %vm777_vm10, %v9956_v42, 0.0 }
0x1398   :  { %5465 = vadd.xlane.f32.xlu2 %v5464_v49 }
0x139d   :  { %5940 = vrot.lane.b32.xlu0 %v9586_v17, %s8333_s30 }
0x13a5   :  { %5938 = vrot.lane.b32.xlu0 %v9591_v14, %s8333_s30  ;;  %v9978_v14 = vpop.f32.mrf.mxu2 }
0x13a7   :  { %v5421_v12 = vpop.xlane.xlu1 %5420 }
0x13a8   :  { %v5431_v43 = vsub.f32 %v9897_v34, %v5421_v12  ;;  %v4743_v34 = vsel %vm777_vm10, %v9978_v14, -inf }
0x13aa   :  { %v5445_v54 = vmul.f32 1.442695, %v5431_v43 }
0x13ac   :  { %7914 = vpow2.f32 %v5445_v54 }
0x13ad   :  { %v4656_v12 = vpop.f32.mrf.mxu2 }
0x13b2   :  { %v9967_v3 = vpop.eup %7914  ;;  %v9976_v2 = vpop.f32.mrf.mxu3 }
0x13b3   :  { %v5467_v31 = vsel %vm777_vm10, %v9967_v3, 0.0 }
0x13b4   :  { %5468 = vadd.xlane.f32.xlu1 %v5467_v31 }
0x13ba   :  { %v9984_v51 = vpop.f32.mrf.mxu3 }
0x13bf   :  { %v5857_v17 = vpop.permute.xlu1 %5856 }
0x13c0   :  { %7417 = vmatpush.xpose.msk.msra.mxu3 %vm568_vm9, %v5857_v17 }
0x13c2   :  { %v9988_v30 = vpop.f32.mrf.mxu3 }
0x13ca   :  { %v9994_v16 = vpop.f32.mrf.mxu3 }
0x13cd   :  { %5854 = vrot.lane.b32.xlu1 %v9550_v47, %s8333_s30  ;;  %v5829_v47 = vpop.permute.xlu0 %5828 }
0x13cf   :  { %4744 = vmax.xlane.f32.xlu0 %v4743_v34 }
0x13d2   :  { %v10001_v13 = vpop.f32.mrf.mxu3 }
0x13d5   :  { %5912 = vrot.lane.b32.xlu1 %v9574_v40, %s8333_s30 }
0x13dd   :  { %5910 = vrot.lane.b32.xlu1 %v9579_v15, %s8333_s30 }
0x13e3   :  { %7568 = vrot.lane.b32.xlu0 %v7567_v4, %s8331_s10 }
0x13e4   :  { %v5454_v28 = vpop.xlane.xlu2 %5453 }
0x13e5   :  { %7916 = vrcp.f32 %v5454_v28  ;;  %5968 = vrot.lane.b32.xlu1 %v9598_v61, %s8333_s30 }
0x13ea   :  { %v5424_v9 = vpop.xlane.xlu1 %5423 }
0x13eb   :  { %v7917_v40 = vpop.eup %7916  ;;  %v5432_v33 = vsub.f32 %v9923_v55, %v5424_v9  ;;  %v10011_v55 = vpop.f32.mrf.mxu3 }
0x13ec   :  { %v5482_v8 = vmul.f32 %v7917_v40, %v9917_v20  ;;  %v5460_v15 = vpop.xlane.xlu0 %5459 }
0x13ed   :  { %v5447_v25 = vmul.f32 1.442695, %v5432_v33  ;;  %7918 = vrcp.f32 %v5460_v15 }
0x13ee   :  { %7396 = vmatmul.msk.f32.vlgmr.msrb.gmra.mxu1 %vm777_vm10, %v5482_v8 }
0x13ef   :  { %7920 = vpow2.f32 %v5447_v25  ;;  %5640 = vmatpush.msrb.mxu1 %v9919_v63 }
0x13f2   :  { %v5451_v53 = vpop.xlane.xlu1 %5450 }
0x13f3   :  { %v7919_v27 = vpop.eup %7918  ;;  %7922 = vrcp.f32 %v5451_v53  ;;  %v10019_v50 = vpop.f32.mrf.mxu3 }
0x13f4   :  { %v5484_v61 = vmul.f32 %v7919_v27, %v9929_v38 }
0x13f5   :  { %v10006_v6 = vpop.eup %7920 }
0x13f6   :  { %7398 = vmatmul.msk.f32.vlgmr.msra.gmra.mxu1 %vm777_vm10, %v5484_v61  ;;  %v5470_v20 = vsel %vm777_vm10, %v10006_v6, 0.0 }
0x13f7   :  { %5692 = vmatpush.msra.mxu1 %v9943_v52  ;;  %5471 = vadd.xlane.f32.xlu2 %v5470_v20  ;;  %v7566_v52 = vunpack.i.h.bf16 %v9873_v58  ;;  %v4755_v58 = vsel %vm777_vm10, %v4656_v12, -inf }
0x13f9   :  { %v7923_v36 = vpop.eup %7922 }
0x13fa   :  { %v5481_v63 = vmul.f32 %v7923_v36, %v9936_v37  ;;  %v5457_v48 = vpop.xlane.xlu1 %5456 }
0x13fb   :  { %7924 = vrcp.f32 %v5457_v48  ;;  %v10025_v54 = vpop.f32.mrf.mxu3 }
0x13fc   :  { %7395 = vmatmul.msk.f32.vlgmr.msrb.gmra.mxu0 %vm777_vm10, %v5481_v63 }
0x13fd   :  { %5614 = vmatpush.msrb.mxu0 %v7561_v26 }
0x13ff   :  { %v10017_v38 = vpop.permute.xlu0 %5826 }
0x1401   :  { %v7925_v24 = vpop.eup %7924 }
0x1402   :  { %v5483_v35 = vmul.f32 %v7925_v24, %v9941_v10  ;;  %v5463_v49 = vpop.xlane.xlu1 %5462 }
0x1403   :  { %7926 = vrcp.f32 %v5463_v49 }
0x1404   :  { %7397 = vmatmul.msk.f32.vlgmr.msra.gmra.mxu0 %vm777_vm10, %v5483_v35 }
0x1405   :  { %5666 = vmatpush.msra.mxu0 %v7566_v52 }
0x1407   :  { %v5883_v37 = vpop.permute.xlu0 %5882 }
0x1409   :  { %v7927_v7 = vpop.eup %7926 }
0x140a   :  { %v5485_v43 = vmul.f32 %v7927_v7, %v9947_v0  ;;  %v10034_v0 = vpop.f32.mrf.mxu3 }
0x140b   :  { %v5466_v31 = vpop.xlane.xlu2 %5465 }
0x140c   :  { %7928 = vrcp.f32 %v5466_v31  ;;  %7399 = vmatmul.msk.f32.vlgmr.msrb.gmra.mxu0 %vm777_vm10, %v5485_v43 }
0x140d   :  { %7413 = vmatpush.xpose.msk.msrb.mxu0 %vm568_vm9, %v9962_v1  ;;  %v5994_v1 = vsel %vm777_vm10, %v10034_v0, -inf }
0x140f   :  { %v5941_v10 = vpop.permute.xlu0 %5940  ;;  %4756 = vmax.xlane.f32.xlu1 %v4755_v58  ;;  %5884 = vrot.lane.b32.xlu2 %v9562_v44, %s8333_s30 }
0x1410   :  { %7423 = vmatpush.xpose.msk.msrb.mxu3 %vm568_vm9, %v5941_v10 }
0x1412   :  { %v7929_v17 = vpop.eup %7928 }
0x1413   :  { %v5486_v34 = vmul.f32 %v7929_v17, %v9956_v42 }
0x1415   :  { %7400 = vmatmul.msk.f32.vlgmr.msrb.gmra.mxu1 %vm777_vm10, %v5486_v34 }
0x1416   :  { %7415 = vmatpush.xpose.msk.msrb.mxu1 %vm568_vm9, %v5829_v47 }
0x1417   :  { %5995 = vmax.xlane.f32.xlu1 %v5994_v1  ;;  %5966 = vrot.lane.b32.xlu2 %v9605_v22, %s8333_s30  ;;  %v5939_v42 = vpop.permute.xlu0 %5938 }
0x1427   :  { %v5469_v4 = vpop.xlane.xlu1 %5468 }
0x1428   :  { %7930 = vrcp.f32 %v5469_v4 }
0x142e   :  { %v7931_v44 = vpop.eup %7930 }
0x142f   :  { %v5487_v28 = vmul.f32 %v7931_v44, %v9967_v3 }
0x1431   :  { %7401 = vmatmul.msk.f32.vlgmr.msra.gmra.mxu0 %vm777_vm10, %v5487_v28 }
0x1439   :  { %7414 = vmatmul.msk.f32.vlgmr.msrb.gmra.mxu0 %vm568_vm9, %v9934_v59 }
0x143f   :  { %v5855_v9 = vpop.permute.xlu1 %5854 }
0x1440   :  { %7418 = vmatmul.msk.f32.vlgmr.msra.gmra.mxu3 %vm568_vm9, %v5855_v9 }
0x1442   :  { %v4745_v47 = vpop.xlane.xlu0 %4744 }
0x1443   :  { %v4767_v40 = vsub.f32 %v9978_v14, %v4745_v47 }
0x1445   :  { %v4775_v33 = vmul.f32 1.442695, %v4767_v40 }
0x1447   :  { %7932 = vpow2.f32 %v4775_v33  ;;  %v5913_v59 = vpop.permute.xlu1 %5912  ;;  %v7572_v33 = vpack.i.bf16 %v9556_v39, %v9554_v62 }
0x1448   :  { %7424 = vmatmul.msk.f32.vlgmr.msrb.gmra.mxu3 %vm568_vm9, %v5939_v42 }
0x144d   :  { %v7933_v22 = vpop.eup %7932 }
0x144e   :  { %v4791_v8 = vsel %vm777_vm10, %v7933_v22, 0.0 }
0x144f   :  { %4792 = vadd.xlane.f32.xlu2 %v4791_v8  ;;  %v5911_v53 = vpop.permute.xlu1 %5910 }
0x1455   :  { %v7569_v3 = vpop.permute.xlu0 %7568 }
0x1456   :  { %v7571_v15 = vunpack.i.h.bf16 %v7569_v3  ;;  %v7570_v25 = vunpack.i.l.bf16 %v7569_v3 }
0x1457   :  { %v5969_v36 = vpop.permute.xlu1 %5968 }
0x1458   :  { %4853 = vmatpush.msrb.mxu2 %v7570_v25 }
0x145a   :  { %4961 = vmatpush.msra.mxu2 %v7571_v15  ;;  %v7582_v15 = vpack.i.bf16 %v9581_v32, %v9568_v57  ;;  %v4028_v57 = vld [vmem:[#allocation10 + $0xa8] sm:$0xff]  ;;  %v4027_v32 = vld [vmem:[#allocation10 + $0xa0] sm:$0xff] }
0x146a   :  { %v5472_v27 = vpop.xlane.xlu2 %5471 }
0x146b   :  { %7934 = vrcp.f32 %v5472_v27  ;;  %v10082_v9 = vpop.f32.mrf.mxu1  ;;  %v4030_v27 = vld [vmem:[#allocation10 + $0xb8] sm:$0xff] }
0x1471   :  { %v7935_v61 = vpop.eup %7934 }
0x1472   :  { %v5488_v14 = vmul.f32 %v7935_v61, %v10006_v6  ;;  %v5885_v20 = vpop.permute.xlu2 %5884  ;;  %v4029_v61 = vld [vmem:[#allocation10 + $0xb0] sm:$0xff] }
0x1473   :  { %7419 = vmatpush.xpose.msk.msra.mxu0 %vm568_vm9, %v5885_v20  ;;  %v10084_v47 = vpop.f32.mrf.mxu1 }
0x1474   :  { %7402 = vmatmul.msk.f32.vlgmr.msra.gmra.mxu1 %vm777_vm10, %v5488_v14 }
0x1475   :  { %7421 = vmatpush.xpose.msk.msra.mxu1 %vm568_vm9, %v5913_v59 }
0x1476   :  { %7420 = vmatmul.msk.f32.vlgmr.msra.gmra.mxu0 %vm568_vm9, %v5883_v37 }
0x1477   :  { %7425 = vmatpush.xpose.msk.msrb.mxu0 %vm568_vm9, %v5969_v36 }
0x1479   :  { %v10062_v49 = vpop.f32.mrf.mxu0 }
0x147a   :  { %v5967_v63 = vpop.permute.xlu2 %5966 }
0x147c   :  { %7416 = vmatmul.msk.f32.vlgmr.msrb.gmra.mxu1 %vm568_vm9, %v10017_v38 }
0x147e   :  { %7426 = vmatmul.msk.f32.vlgmr.msrb.gmra.mxu0 %vm568_vm9, %v5967_v63 }
0x1481   :  { %v10064_v52 = vpop.f32.mrf.mxu0 }
0x1482   :  { %v4757_v48 = vpop.xlane.xlu1 %4756 }
0x1483   :  { %v4771_v6 = vsub.f32 %v4656_v12, %v4757_v48 }
0x1484   :  { %7422 = vmatmul.msk.f32.vlgmr.msra.gmra.mxu1 %vm568_vm9, %v5911_v53 }
0x1485   :  { %v4783_v26 = vmul.f32 1.442695, %v4771_v6 }
0x1487   :  { %7936 = vpow2.f32 %v4783_v26 }
0x1489   :  { %v10066_v37 = vpop.f32.mrf.mxu0 }
0x148a   :  { %v5996_v43 = vpop.xlane.xlu1 %5995 }
0x148b   :  { %v6018_v58 = vsub.f32 %v10034_v0, %v5996_v43 }
0x148d   :  { %v7937_v24 = vpop.eup %7936  ;;  %v6026_v34 = vmul.f32 1.442695, %v6018_v58 }
0x148e   :  { %v4803_v35 = vsel %vm777_vm10, %v7937_v24, 0.0 }
0x148f   :  { %4804 = vadd.xlane.f32.xlu1 %v4803_v35 }
0x1492   :  { %v10086_v40 = vpop.f32.mrf.mxu1 }
0x14ae   :  { %v10068_v38 = vpop.f32.mrf.mxu0 }
0x14b6   :  { %v10070_v7 = vpop.f32.mrf.mxu0 }
0x14b7   :  { %v5997_v12 = vsel %vm777_vm10, %v10070_v7, -inf }
0x14b8   :  { %5998 = vmax.xlane.f32.xlu2 %v5997_v12 }
0x14c2   :  { %v4793_v31 = vpop.xlane.xlu2 %4792 }
0x14c3   :  { %7938 = vrcp.f32 %v4793_v31  ;;  %v5879_v10 = vpop.f32.mrf.mxu3 }
0x14c4   :  { %v6003_v17 = vsel %vm777_vm10, %v5879_v10, -inf  ;;  %7940 = vpow2.f32 %v6026_v34 }
0x14c5   :  { %6004 = vmax.xlane.f32.xlu1 %v6003_v17 }
0x14c9   :  { %v7939_v1 = vpop.eup %7938 }
0x14ca   :  { %v4823_v4 = vmul.f32 %v7939_v1, %v7933_v22  ;;  %v10078_v42 = vpop.eup %7940 }
0x14cb   :  { %v5963_v44 = vpop.f32.mrf.mxu3  ;;  %v6042_v0 = vsel %vm777_vm10, %v10078_v42, 0.0 }
0x14cc   :  { %7355 = vmatmul.msk.f32.vlgmr.msrb.gmra.mxu2 %vm777_vm10, %v4823_v4  ;;  %v6012_v28 = vsel %vm777_vm10, %v5963_v44, -inf }
0x14cd   :  { %6013 = vmax.xlane.f32.xlu1 %v6012_v28  ;;  %5083 = vmatpush.msrb.mxu2 %v4030_v27 }
0x14cf   :  { %5084 = vmatpush.msrb.mxu2 %v4029_v61 }
0x14d1   :  { %5085 = vmatpush.msrb.mxu2 %v4028_v57  ;;  %v4033_v57 = vld [vmem:[#allocation10 + $0xd0] sm:$0xff] }
0x14d3   :  { %5086 = vmatpush.msrb.mxu2 %v4027_v32 }
0x14d5   :  { %6043 = vadd.xlane.f32.xlu1 %v6042_v0 }
0x14ee   :  { %7573 = vrot.lane.b32.xlu1 %v7572_v33, %s8333_s30 }
0x14f1   :  { %v10091_v22 = vpop.f32.mrf.mxu1 }
0x14f3   :  { %v10093_v8 = vpop.f32.mrf.mxu0 }
0x14f4   :  { %v6006_v3 = vsel %vm777_vm10, %v10093_v8, -inf }
0x14f5   :  { %6007 = vmax.xlane.f32.xlu0 %v6006_v3 }
0x14f6   :  { %7583 = vrot.lane.b32.xlu1 %v7582_v15, %s8333_s30 }
0x14f9   :  { %v10100_v25 = vpop.f32.mrf.mxu1 }
0x14fa   :  { %v6000_v62 = vsel %vm777_vm10, %v10100_v25, -inf }
0x14fb   :  { %6001 = vmax.xlane.f32.xlu2 %v6000_v62  ;;  %v10119_v1 = vpop.f32.mrf.mxu0 }
0x14fc   :  { %v6015_v4 = vsel %vm777_vm10, %v10119_v1, -inf }
0x1501   :  { %v10109_v12 = vpop.f32.mrf.mxu1 }
0x1502   :  { %v4805_v39 = vpop.xlane.xlu1 %4804  ;;  %v6009_v58 = vsel %vm777_vm10, %v10109_v12, -inf }
0x1503   :  { %7942 = vrcp.f32 %v4805_v39 }
0x1509   :  { %v7943_v59 = vpop.eup %7942 }
0x150a   :  { %v4827_v53 = vmul.f32 %v7943_v59, %v7937_v24 }
0x150c   :  { %7359 = vmatmul.msk.f32.vlgmr.msra.gmra.mxu2 %vm777_vm10, %v4827_v53 }
0x152b   :  { %v5999_v35 = vpop.xlane.xlu2 %5998 }
0x152c   :  { %v6019_v31 = vsub.f32 %v10070_v7, %v5999_v35 }
0x152e   :  { %v6028_v17 = vmul.f32 1.442695, %v6019_v31 }
0x1538   :  { %v6005_v14 = vpop.xlane.xlu1 %6004 }
0x1539   :  { %v6021_v20 = vsub.f32 %v5879_v10, %v6005_v14 }
0x153b   :  { %v6032_v36 = vmul.f32 1.442695, %v6021_v20  ;;  %v4031_v20 = vld [vmem:[#allocation10 + $0xc0] sm:$0xff] }
0x153d   :  { %7944 = vpow2.f32 %v6032_v36 }
0x1540   :  { %v6014_v63 = vpop.xlane.xlu1 %6013 }
0x1541   :  { %v6024_v48 = vsub.f32 %v5963_v44, %v6014_v63 }
0x1543   :  { %v10105_v6 = vpop.eup %7944  ;;  %v6038_v26 = vmul.f32 1.442695, %v6024_v48 }
0x1544   :  { %v6051_v24 = vsel %vm777_vm10, %v10105_v6, 0.0 }
0x1545   :  { %7946 = vpow2.f32 %v6038_v26  ;;  %6052 = vadd.xlane.f32.xlu2 %v6051_v24 }
0x1546   :  { %7948 = vpow2.f32 %v6028_v17 }
0x1548   :  { %v6044_v7 = vpop.xlane.xlu1 %6043 }
0x1549   :  { %7950 = vrcp.f32 %v6044_v7 }
0x154b   :  { %v10111_v43 = vpop.eup %7946 }
0x154c   :  { %v6060_v10 = vsel %vm777_vm10, %v10111_v43, 0.0  ;;  %v10125_v44 = vpop.eup %7948 }
0x154d   :  { %6010 = vmax.xlane.f32.xlu2 %v6009_v58  ;;  %6061 = vadd.xlane.f32.xlu1 %v6060_v10  ;;  %v6045_v28 = vsel %vm777_vm10, %v10125_v44, 0.0 }
0x154f   :  { %v4855_v34 = vpop.f32.mrf.mxu2  ;;  %v7951_v0 = vpop.eup %7950 }
0x1550   :  { %7363 = vmatmul.msk.f32.vlgmr.msrb.gmra.mxu2 %vm568_vm9, %v4855_v34  ;;  %v6074_v62 = vmul.f32 %v7951_v0, %v10078_v42  ;;  %v7577_v42 = vpack.i.bf16 %v9560_v56, %v9558_v11 }
0x1555   :  { %6016 = vmax.xlane.f32.xlu2 %v6015_v4 }
0x1558   :  { %7364 = vmatmul.msk.f32.gmra.mxu2 %vm568_vm9, %v9969_v23 }
0x155d   :  { %6046 = vadd.xlane.f32.xlu2 %v6045_v28 }
0x1560   :  { %7365 = vmatmul.msk.f32.gmra.mxu2 %vm568_vm9, %v9838_v19  ;;  %v7574_v33 = vpop.permute.xlu1 %7573 }
0x1561   :  { %v7576_v3 = vunpack.i.h.bf16 %v7574_v33  ;;  %v7575_v15 = vunpack.i.l.bf16 %v7574_v33 }
0x1563   :  { %6103 = vmatpush.msrb.mxu1 %v7575_v15  ;;  %6129 = vmatpush.msra.mxu3 %v7576_v3 }
0x1564   :  { %7427 = vmatmul.msk.f32.vlgmr.msrb.gmra.mxu1 %vm777_vm10, %v6074_v62  ;;  %v4037_v62 = vld [vmem:[#allocation10 + $0xf0] sm:$0xff] }
0x1568   :  { %v6008_v23 = vpop.xlane.xlu0 %6007  ;;  %7366 = vmatmul.msk.f32.gmra.mxu2 %vm568_vm9, %v9876_v29  ;;  %v10135_v39 = vpop.permute.xlu1 %7583  ;;  %v4034_v29 = vld [vmem:[#allocation10 + $0xd8] sm:$0xff] }
0x1569   :  { %v6022_v59 = vsub.f32 %v10093_v8, %v6008_v23  ;;  %v7585_v53 = vunpack.i.l.bf16 %v10135_v39  ;;  %5733 = vmatpush.msra.mxu2 %v4034_v29  ;;  %v4032_v8 = vld [vmem:[#allocation10 + $0xc8] sm:$0xff]  ;;  %v7586_v34 = vunpack.i.h.bf16 %v10135_v39  ;;  %v4035_v39 = vld [vmem:[#allocation10 + $0xe0] sm:$0xff] }
0x156a   :  { %v4036_v23 = vld [vmem:[#allocation10 + $0xe8] sm:$0xff] }
0x156b   :  { %v6034_v19 = vmul.f32 1.442695, %v6022_v59  ;;  %6207 = vmatpush.msrb.mxu3 %v7585_v53  ;;  %5734 = vmatpush.msra.mxu2 %v4033_v57 }
0x156d   :  { %7952 = vpow2.f32 %v6034_v19  ;;  %5735 = vmatpush.msra.mxu2 %v4032_v8 }
0x156e   :  { %v6002_v32 = vpop.xlane.xlu2 %6001 }
0x156f   :  { %v6020_v14 = vsub.f32 %v10100_v25, %v6002_v32  ;;  %5736 = vmatpush.msra.mxu2 %v4031_v20  ;;  %v7587_v25 = vpack.i.bf16 %v9607_v46, %v9593_v18 }
0x1571   :  { %v6030_v63 = vmul.f32 1.442695, %v6020_v14 }
0x1573   :  { %v10139_v27 = vpop.eup %7952  ;;  %7954 = vpow2.f32 %v6030_v63 }
0x1574   :  { %v6054_v61 = vsel %vm777_vm10, %v10139_v27, 0.0 }
0x1575   :  { %6055 = vadd.xlane.f32.xlu0 %v6054_v61  ;;  %7578 = vrot.lane.b32.xlu2 %v7577_v42, %s8333_s30 }
0x1579   :  { %v7955_v11 = vpop.eup %7954 }
0x157a   :  { %v6048_v56 = vsel %vm777_vm10, %v7955_v11, 0.0 }
0x158f   :  { %v4963_v36 = vpop.f32.mrf.mxu2 }
0x1590   :  { %7367 = vmatmul.msk.f32.gmra.mxu2 %vm568_vm9, %v4963_v36 }
0x1598   :  { %7368 = vmatmul.msk.f32.gmra.mxu2 %vm568_vm9, %v9973_v5 }
0x159e   :  { %6049 = vadd.xlane.f32.xlu2 %v6048_v56 }
0x15a0   :  { %7369 = vmatmul.msk.f32.gmra.mxu2 %vm568_vm9, %v9840_v60 }
0x15a8   :  { %7370 = vmatmul.msk.f32.gmra.mxu2 %vm568_vm9, %v9880_v41 }
0x15b0   :  { %7403 = vmatmul.msk.f32.vlgmr.msra.gmra.mxu2 %vm568_vm9, %v10062_v49 }
0x15b6   :  { %7588 = vrot.lane.b32.xlu2 %v7587_v25, %s8333_s30 }
0x15b8   :  { %7404 = vmatmul.msk.f32.gmra.mxu2 %vm568_vm9, %v10082_v9  ;;  %v6053_v5 = vpop.xlane.xlu2 %6052 }
0x15c0   :  { %7405 = vmatmul.msk.f32.gmra.mxu2 %vm568_vm9, %v10064_v52  ;;  %v6011_v48 = vpop.xlane.xlu2 %6010 }
0x15c1   :  { %v6023_v60 = vsub.f32 %v10109_v12, %v6011_v48 }
0x15c3   :  { %v6036_v26 = vmul.f32 1.442695, %v6023_v60 }
0x15c5   :  { %7956 = vpow2.f32 %v6036_v26 }
0x15c8   :  { %7406 = vmatmul.msk.f32.gmra.mxu2 %vm568_vm9, %v10084_v47  ;;  %v6017_v41 = vpop.xlane.xlu2 %6016 }
0x15c9   :  { %v6025_v18 = vsub.f32 %v10119_v1, %v6017_v41 }
0x15cb   :  { %v7957_v46 = vpop.eup %7956  ;;  %v6040_v49 = vmul.f32 1.442695, %v6025_v18  ;;  %v10202_v18 = vld [vmem:[%s10476_s5 + $0x1] ss:$0 sm:$0xff] }
0x15cc   :  { %v6057_v24 = vsel %vm777_vm10, %v7957_v46, 0.0 }
0x15cd   :  { %7958 = vpow2.f32 %v6040_v49  ;;  %6058 = vadd.xlane.f32.xlu0 %v6057_v24 }
0x15ce   :  { %7960 = vrcp.f32 %v6053_v5 }
0x15d0   :  { %7407 = vmatmul.msk.f32.gmra.mxu2 %vm568_vm9, %v10066_v37  ;;  %v6047_v52 = vpop.xlane.xlu2 %6046 }
0x15d1   :  { %7962 = vrcp.f32 %v6047_v52 }
0x15d3   :  { %v7959_v9 = vpop.eup %7958  ;;  %v5088_v57 = vpop.f32.mrf.mxu2 }
0x15d4   :  { %v6063_v35 = vsel %vm777_vm10, %v7959_v9, 0.0  ;;  %v7961_v47 = vpop.eup %7960  ;;  %v5154_v26 = vadd.f32 %v9976_v2, %v5088_v57 }
0x15d5   :  { %6064 = vadd.xlane.f32.xlu0 %v6063_v35  ;;  %v6077_v37 = vmul.f32 %v7961_v47, %v10105_v6  ;;  %v6062_v6 = vpop.xlane.xlu1 %6061 }
0x15d7   :  { %v7963_v12 = vpop.eup %7962 }
0x15d8   :  { %v6075_v31 = vmul.f32 %v7963_v12, %v10125_v44  ;;  %7408 = vmatmul.msk.f32.gmra.mxu2 %vm568_vm9, %v10086_v40  ;;  %v7579_v58 = vpop.permute.xlu2 %7578 }
0x15d9   :  { %v7581_v10 = vunpack.i.h.bf16 %v7579_v58  ;;  %v7580_v17 = vunpack.i.l.bf16 %v7579_v58 }
0x15da   :  { %7428 = vmatmul.msk.f32.vlgmr.msra.gmra.mxu3 %vm777_vm10, %v6075_v31 }
0x15db   :  { %6155 = vmatpush.msra.mxu0 %v7580_v17  ;;  %6181 = vmatpush.msra.mxu1 %v7581_v10  ;;  %v5091_v32 = vpop.f32.mrf.mxu2 }
0x15dc   :  { %7430 = vmatmul.msk.f32.vlgmr.msra.gmra.mxu1 %vm777_vm10, %v6077_v37  ;;  %v5157_v47 = vadd.f32 %v9984_v51, %v5091_v32  ;;  %v10504_v32 = vld [vmem:[#allocation24_spill] sm:$0xff] }
0x15dd   :  { %6233 = vmatpush.msrb.mxu0 %v7586_v34 }
0x15e0   :  { %7409 = vmatmul.msk.f32.gmra.mxu2 %vm568_vm9, %v10068_v38 }
0x15e1   :  { %v6105_v61 = vpop.f32.mrf.mxu1 }
0x15e3   :  { %v5094_v8 = vpop.f32.mrf.mxu2 }
0x15e4   :  { %v5160_v34 = vadd.f32 %v9988_v30, %v5094_v8 }
0x15e8   :  { %v6056_v1 = vpop.xlane.xlu0 %6055  ;;  %7410 = vmatmul.msk.f32.gmra.mxu2 %vm568_vm9, %v10091_v22  ;;  %v4038_v22 = vld [vmem:[#allocation10 + $0xf8] sm:$0xff] }
0x15e9   :  { %7964 = vrcp.f32 %v6056_v1 }
0x15ea   :  { %7966 = vrcp.f32 %v6062_v6 }
0x15eb   :  { %v5097_v20 = vpop.f32.mrf.mxu2 }
0x15ec   :  { %v5163_v6 = vadd.f32 %v9994_v16, %v5097_v20 }
0x15ef   :  { %v7965_v40 = vpop.eup %7964 }
0x15f0   :  { %v6078_v4 = vmul.f32 %v7965_v40, %v10139_v27  ;;  %v7967_v44 = vpop.eup %7966 }
0x15f1   :  { %v6080_v15 = vmul.f32 %v7967_v44, %v10111_v43 }
0x15f2   :  { %7431 = vmatmul.msk.f32.vlgmr.msrb.gmra.mxu3 %vm777_vm10, %v6078_v4 }
0x1611   :  { %v6050_v7 = vpop.xlane.xlu2 %6049 }
0x1612   :  { %7968 = vrcp.f32 %v6050_v7  ;;  %v10501_v7 = vld [vmem:[#allocation25_spill] sm:$0xff] }
0x1613   :  { %v5100_v63 = vpop.f32.mrf.mxu2 }
0x1614   :  { %v5166_v30 = vadd.f32 %v10001_v13, %v5100_v63 }
0x1618   :  { %v7969_v28 = vpop.eup %7968 }
0x1619   :  { %v6076_v0 = vmul.f32 %v7969_v28, %v7955_v11  ;;  %v7589_v33 = vpop.permute.xlu2 %7588 }
0x161a   :  { %v7591_v3 = vunpack.i.h.bf16 %v7589_v33  ;;  %v7590_v38 = vunpack.i.l.bf16 %v7589_v33 }
0x161b   :  { %7429 = vmatmul.msk.f32.vlgmr.msra.gmra.mxu0 %vm777_vm10, %v6076_v0  ;;  %v5103_v56 = vpop.f32.mrf.mxu2 }
0x161c   :  { %6259 = vmatpush.msrb.mxu1 %v7590_v38  ;;  %6285 = vmatpush.msra.mxu3 %v7591_v3  ;;  %v10502_v38 = vld [vmem:[#allocation26_spill] sm:$0xff] }
0x161d   :  { %7433 = vmatmul.msk.f32.vlgmr.msrb.gmra.mxu1 %vm777_vm10, %v6080_v15  ;;  %6326 = vmatpush.msra.mxu0 %v4038_v22 }
0x161f   :  { %6327 = vmatpush.msra.mxu0 %v4037_v62 }
0x1621   :  { %6328 = vmatpush.msra.mxu0 %v4036_v23 }
0x1623   :  { %6329 = vmatpush.msra.mxu0 %v4035_v39  ;;  %v5106_v25 = vpop.f32.mrf.mxu2  ;;  %v10503_v39 = vld [vmem:[#allocation27_spill] sm:$0xff] }
0x1624   :  { %v5172_v57 = vadd.f32 %v10019_v50, %v5106_v25 }
0x162b   :  { %v10195_v5 = vpop.f32.mrf.mxu2 }
0x162c   :  { %v5175_v25 = vadd.f32 %v10025_v54, %v10195_v5  ;;  %v10507_v54 = vld [vmem:[#allocation30_spill] sm:$0xff] }
0x1633   :  { %v5738_v60 = vpop.f32.mrf.mxu2 }
0x1634   :  { %v5762_v41 = vadd.f32 %v5738_v60, %v5154_v26  ;;  %v10506_v60 = vld [vmem:[#allocation29_spill] sm:$0xff] }
0x163b   :  { %v5741_v35 = vpop.f32.mrf.mxu2 }
0x163c   :  { %v5763_v12 = vadd.f32 %v5741_v35, %v5157_v47 }
0x1640   :  { %v6059_v59 = vpop.xlane.xlu0 %6058 }
0x1641   :  { %7970 = vrcp.f32 %v6059_v59 }
0x1647   :  { %v7971_v53 = vpop.eup %7970 }
0x1648   :  { %v6079_v19 = vmul.f32 %v7971_v53, %v7957_v46  ;;  %v6065_v27 = vpop.xlane.xlu0 %6064 }
0x1649   :  { %7972 = vrcp.f32 %v6065_v27 }
0x164a   :  { %7432 = vmatmul.msk.f32.vlgmr.msrb.gmra.mxu0 %vm777_vm10, %v6079_v19  ;;  %v5169_v19 = vadd.f32 %v10011_v55, %v5103_v56 }
0x164f   :  { %v7973_v43 = vpop.eup %7972 }
0x1650   :  { %v6081_v42 = vmul.f32 %v7973_v43, %v7959_v9 }
0x1652   :  { %7434 = vmatmul.msk.f32.vlgmr.msra.gmra.mxu3 %vm777_vm10, %v6081_v42  ;;  %7435 = vmatmul.msk.f32.vlgmr.msra.gmra.mxu0 %vm568_vm9, %v6105_v61 }
0x1659   :  { %v6183_v36 = vpop.f32.mrf.mxu1 }
0x165d   :  { %v6131_v29 = vpop.f32.mrf.mxu3 }
0x165e   :  { %7436 = vmatmul.msk.f32.gmra.mxu0 %vm568_vm9, %v6131_v29 }
0x1675   :  { %v6209_v11 = vpop.f32.mrf.mxu3 }
0x1698   :  { %v6157_v14 = vpop.f32.mrf.mxu0 }
0x1699   :  { %7437 = vmatmul.msk.f32.gmra.mxu0 %vm568_vm9, %v6157_v14  ;;  %v10505_v14 = vld [vmem:[#allocation28_spill] sm:$0xff] }
0x169a   :  { %v6261_v46 = vpop.f32.mrf.mxu1 }
0x16a1   :  { %7438 = vmatmul.msk.f32.gmra.mxu0 %vm568_vm9, %v6183_v36 }
0x16a9   :  { %7439 = vmatmul.msk.f32.gmra.mxu0 %vm568_vm9, %v6209_v11 }
0x16c7   :  { %v6235_v48 = vpop.f32.mrf.mxu0 }
0x16c8   :  { %7440 = vmatmul.msk.f32.gmra.mxu0 %vm568_vm9, %v6235_v48 }
0x16cf   :  { %v6331_v49 = vpop.f32.mrf.mxu0 }
0x16d0   :  { %v6355_v24 = vadd.f32 %v6331_v49, %v5762_v41  ;;  %7441 = vmatmul.msk.f32.gmra.mxu0 %vm568_vm9, %v6261_v46 }
0x16d2   :  { %v6368_v52 = vadd.f32 %v10202_v18, %v6355_v24 }
0x16d4   :  { %v10207_v9 = vadd.f32 %v6368_v52, %v9396_v21  ;;  %v5744_v21 = vpop.f32.mrf.mxu2 }
0x16d5   :  { %v6287_v2 = vpop.f32.mrf.mxu3  ;;  %v5764_v37 = vadd.f32 %v5744_v21, %v5160_v34 }
0x16d6   :  { %6388 = vadd.xlane.f32.xlu0 %v10207_v9 }
0x16d8   :  { %7442 = vmatmul.msk.f32.gmra.mxu0 %vm568_vm9, %v6287_v2 }
0x16db   :  { %v6334_v31 = vpop.f32.mrf.mxu0 }
0x16dc   :  { %v6356_v58 = vadd.f32 %v6334_v31, %v5763_v12  ;;  %v5747_v4 = vpop.f32.mrf.mxu2 }
0x16dd   :  { %v5765_v28 = vadd.f32 %v5747_v4, %v5163_v6  ;;  %v6601_v4 = vld [vmem:[#allocation14 + $0x1f0] sm:$0xff]  ;;  %v6599_v6 = vld [vmem:[#allocation14 + $0x1e0] sm:$0xff] }
0x16de   :  { %v6369_v10 = vadd.f32 %v10202_v18, %v6356_v58  ;;  %6610 = vmatpush.msrb.mxu2 %v6601_v4 }
0x16e0   :  { %v10214_v17 = vadd.f32 %v6369_v10, %v9403_v45  ;;  %6611 = vmatpush.msrb.mxu2 %v6599_v6 }
0x16e2   :  { %6390 = vadd.xlane.f32.xlu2 %v10214_v17 }
0x16e4   :  { %v5750_v3 = vpop.f32.mrf.mxu2 }
0x16e5   :  { %v5766_v22 = vadd.f32 %v5750_v3, %v5166_v30  ;;  %v6595_v3 = vld [vmem:[#allocation14 + $0x1c0] sm:$0xff]  ;;  %v6596_v30 = vld [vmem:[#allocation14 + $0x1c8] sm:$0xff] }
0x16ec   :  { %v5753_v53 = vpop.f32.mrf.mxu2 }
0x16ed   :  { %v5767_v27 = vadd.f32 %v5753_v53, %v5169_v19  ;;  %v6587_v53 = vld [vmem:[#allocation14 + $0x180] sm:$0xff]  ;;  %v6588_v19 = vld [vmem:[#allocation14 + $0x188] sm:$0xff] }
0x16f4   :  { %v5756_v42 = vpop.f32.mrf.mxu2 }
0x16f5   :  { %v5768_v36 = vadd.f32 %v5756_v42, %v5172_v57  ;;  %v6584_v42 = vld [vmem:[#allocation14 + $0x168] sm:$0xff]  ;;  %v6579_v57 = vld [vmem:[#allocation14 + $0x140] sm:$0xff] }
0x16fc   :  { %v5759_v50 = vpop.f32.mrf.mxu2 }
0x16fd   :  { %v5769_v41 = vadd.f32 %v5759_v50, %v5175_v25  ;;  %v6573_v50 = vld [vmem:[#allocation14 + $0x110] sm:$0xff]  ;;  %v6574_v25 = vld [vmem:[#allocation14 + $0x118] sm:$0xff] }
0x1716   :  { %v6337_v1 = vpop.f32.mrf.mxu0 }
0x1717   :  { %v6357_v40 = vadd.f32 %v6337_v1, %v5764_v37 }
0x1719   :  { %v6370_v51 = vadd.f32 %v10202_v18, %v6357_v40 }
0x171b   :  { %v10221_v44 = vadd.f32 %v6370_v51, %v10501_v7  ;;  %v6602_v51 = vld [vmem:[#allocation14 + $0x1f8] sm:$0xff] }
0x171c   :  { %6651 = vmatpush.msra.mxu1 %v6602_v51 }
0x171d   :  { %6392 = vadd.xlane.f32.xlu0 %v10221_v44 }
0x171e   :  { %v6340_v45 = vpop.f32.mrf.mxu0 }
0x171f   :  { %v6358_v0 = vadd.f32 %v6340_v45, %v5765_v28  ;;  %v6600_v28 = vld [vmem:[#allocation14 + $0x1e8] sm:$0xff] }
0x1720   :  { %6652 = vmatpush.msra.mxu1 %v6600_v28 }
0x1721   :  { %v6371_v33 = vadd.f32 %v10202_v18, %v6358_v0  ;;  %v6597_v0 = vld [vmem:[#allocation14 + $0x1d0] sm:$0xff] }
0x1722   :  { %6612 = vmatpush.msrb.mxu2 %v6597_v0 }
0x1723   :  { %v10227_v15 = vadd.f32 %v6371_v33, %v10502_v38  ;;  %v6598_v33 = vld [vmem:[#allocation14 + $0x1d8] sm:$0xff]  ;;  %v6593_v38 = vld [vmem:[#allocation14 + $0x1b0] sm:$0xff] }
0x1724   :  { %6653 = vmatpush.msra.mxu1 %v6598_v33  ;;  %6613 = vmatpush.msrb.mxu2 %v6595_v3  ;;  %v10304_v3 = vld [vmem:[#allocation11 + $0x1] ss:$0 sm:$0xff] }
0x1725   :  { %6394 = vadd.xlane.f32.xlu0 %v10227_v15 }
0x1726   :  { %v6343_v16 = vpop.f32.mrf.mxu0  ;;  %6654 = vmatpush.msra.mxu1 %v6596_v30  ;;  %6614 = vmatpush.msrb.mxu2 %v6593_v38 }
0x1727   :  { %v6359_v62 = vadd.f32 %v6343_v16, %v5766_v22  ;;  %v6594_v22 = vld [vmem:[#allocation14 + $0x1b8] sm:$0xff]  ;;  %v6591_v16 = vld [vmem:[#allocation14 + $0x1a0] sm:$0xff] }
0x1728   :  { %6655 = vmatpush.msra.mxu1 %v6594_v22  ;;  %6615 = vmatpush.msrb.mxu2 %v6591_v16  ;;  %v10307_v16 = vld [vmem:[#allocation13 + $0x1] ss:$0 sm:$0xff] }
0x1729   :  { %v6372_v23 = vadd.f32 %v10202_v18, %v6359_v62  ;;  %v6592_v62 = vld [vmem:[#allocation14 + $0x1a8] sm:$0xff] }
0x172a   :  { %6656 = vmatpush.msra.mxu1 %v6592_v62 }
0x172b   :  { %v10232_v59 = vadd.f32 %v6372_v23, %v10503_v39  ;;  %v6589_v23 = vld [vmem:[#allocation14 + $0x190] sm:$0xff]  ;;  %v6590_v39 = vld [vmem:[#allocation14 + $0x198] sm:$0xff] }
0x172c   :  { %6616 = vmatpush.msrb.mxu2 %v6589_v23  ;;  %6657 = vmatpush.msra.mxu1 %v6590_v39 }
0x172d   :  { %6396 = vadd.xlane.f32.xlu0 %v10232_v59 }
0x172e   :  { %6617 = vmatpush.msrb.mxu2 %v6587_v53  ;;  %6658 = vmatpush.msra.mxu1 %v6588_v19 }
0x1745   :  { %v6346_v13 = vpop.f32.mrf.mxu0 }
0x1746   :  { %v6360_v43 = vadd.f32 %v6346_v13, %v5767_v27  ;;  %v6585_v27 = vld [vmem:[#allocation14 + $0x170] sm:$0xff]  ;;  %v6586_v13 = vld [vmem:[#allocation14 + $0x178] sm:$0xff] }
0x1747   :  { %6618 = vmatpush.msrb.mxu2 %v6585_v27  ;;  %6659 = vmatpush.msra.mxu1 %v6586_v13 }
0x1748   :  { %v6373_v61 = vadd.f32 %v10202_v18, %v6360_v43  ;;  %v6583_v43 = vld [vmem:[#allocation14 + $0x160] sm:$0xff] }
0x1749   :  { %v6389_v29 = vpop.xlane.xlu0 %6388  ;;  %6619 = vmatpush.msrb.mxu2 %v6583_v43  ;;  %6660 = vmatpush.msra.mxu1 %v6584_v42 }
0x174a   :  { %v6404_v8 = vmul.f32 %v6389_v29, %v10504_v32  ;;  %v10240_v20 = vadd.f32 %v6373_v61, %v10505_v14  ;;  %v6581_v61 = vld [vmem:[#allocation14 + $0x150] sm:$0xff]  ;;  %v6582_v29 = vld [vmem:[#allocation14 + $0x158] sm:$0xff] }
0x174b   :  { %6620 = vmatpush.msrb.mxu2 %v6581_v61  ;;  %6661 = vmatpush.msra.mxu1 %v6582_v29  ;;  %v6577_v14 = vld [vmem:[#allocation14 + $0x130] sm:$0xff] }
0x174c   :  { %v10243_v63 = vsub.f32 %v10207_v9, %v6404_v8  ;;  %6398 = vadd.xlane.f32.xlu1 %v10240_v20  ;;  %v6580_v8 = vld [vmem:[#allocation14 + $0x148] sm:$0xff] }
0x174d   :  { %v6349_v55 = vpop.f32.mrf.mxu0  ;;  %6621 = vmatpush.msrb.mxu2 %v6579_v57  ;;  %6662 = vmatpush.msra.mxu1 %v6580_v8 }
0x174e   :  { %v6361_v11 = vadd.f32 %v6349_v55, %v5768_v36  ;;  %v6420_v56 = vmul.f32 %v10243_v63, %v10243_v63  ;;  %v6578_v36 = vld [vmem:[#allocation14 + $0x138] sm:$0xff]  ;;  %v6575_v55 = vld [vmem:[#allocation14 + $0x120] sm:$0xff] }
0x174f   :  { %6622 = vmatpush.msrb.mxu2 %v6577_v14  ;;  %6663 = vmatpush.msra.mxu1 %v6578_v36 }
0x1750   :  { %v6374_v48 = vadd.f32 %v10202_v18, %v6361_v11  ;;  %6428 = vadd.xlane.f32.xlu0 %v6420_v56  ;;  %v6576_v11 = vld [vmem:[#allocation14 + $0x128] sm:$0xff] }
0x1751   :  { %6623 = vmatpush.msrb.mxu2 %v6575_v55  ;;  %6664 = vmatpush.msra.mxu1 %v6576_v11 }
0x1752   :  { %v10252_v26 = vadd.f32 %v6374_v48, %v10506_v60 }
0x1753   :  { %6624 = vmatpush.msrb.mxu2 %v6573_v50  ;;  %6665 = vmatpush.msra.mxu1 %v6574_v25 }
0x1754   :  { %6400 = vadd.xlane.f32.xlu1 %v10252_v26 }
0x1755   :  { %v6391_v46 = vpop.xlane.xlu2 %6390  ;;  %v6352_v49 = vpop.f32.mrf.mxu0 }
0x1756   :  { %v6405_v24 = vmul.f32 %v6391_v46, %v10504_v32  ;;  %v6362_v52 = vadd.f32 %v6352_v49, %v5769_v41  ;;  %v6571_v41 = vld [vmem:[#allocation14 + $0x100] sm:$0xff]  ;;  %v6572_v46 = vld [vmem:[#allocation14 + $0x108] sm:$0xff] }
0x1757   :  { %6625 = vmatpush.msrb.mxu2 %v6571_v41  ;;  %6666 = vmatpush.msra.mxu1 %v6572_v46 }
0x1758   :  { %v10257_v35 = vsub.f32 %v10214_v17, %v6405_v24  ;;  %v6375_v2 = vadd.f32 %v10202_v18, %v6362_v52 }
0x175a   :  { %v6421_v47 = vmul.f32 %v10257_v35, %v10257_v35  ;;  %v10263_v5 = vadd.f32 %v6375_v2, %v10507_v54 }
0x175c   :  { %6430 = vadd.xlane.f32.xlu0 %v6421_v47  ;;  %6402 = vadd.xlane.f32.xlu1 %v10263_v5 }
0x1790   :  { %v6393_v12 = vpop.xlane.xlu0 %6392 }
0x1791   :  { %v6406_v31 = vmul.f32 %v6393_v12, %v10504_v32 }
0x1793   :  { %v10268_v58 = vsub.f32 %v10221_v44, %v6406_v31 }
0x1795   :  { %v6422_v10 = vmul.f32 %v10268_v58, %v10268_v58 }
0x1797   :  { %6432 = vadd.xlane.f32.xlu2 %v6422_v10 }
0x1798   :  { %v6395_v18 = vpop.xlane.xlu0 %6394 }
0x1799   :  { %v6407_v21 = vmul.f32 %v6395_v18, %v10504_v32 }
0x179b   :  { %v10274_v34 = vsub.f32 %v10227_v15, %v6407_v21 }
0x179d   :  { %v6423_v37 = vmul.f32 %v10274_v34, %v10274_v34 }
0x179f   :  { %6434 = vadd.xlane.f32.xlu0 %v6423_v37 }
0x17a0   :  { %v6397_v1 = vpop.xlane.xlu0 %6396 }
0x17a1   :  { %v6408_v40 = vmul.f32 %v6397_v1, %v10504_v32 }
0x17a3   :  { %v10280_v7 = vsub.f32 %v10232_v59, %v6408_v40 }
0x17a5   :  { %v6424_v45 = vmul.f32 %v10280_v7, %v10280_v7 }
0x17a7   :  { %6436 = vadd.xlane.f32.xlu1 %v6424_v45 }
0x17bf   :  { %v6399_v56 = vpop.xlane.xlu1 %6398 }
0x17c0   :  { %v6409_v48 = vmul.f32 %v6399_v56, %v10504_v32 }
0x17c2   :  { %v10286_v60 = vsub.f32 %v10240_v20, %v6409_v48 }
0x17c3   :  { %v6429_v49 = vpop.xlane.xlu0 %6428 }
0x17c4   :  { %v6444_v24 = vmul.f32 %v6429_v49, %v10504_v32  ;;  %v6425_v52 = vmul.f32 %v10286_v60, %v10286_v60 }
0x17c6   :  { %v6452_v2 = vadd.f32 1e-05, %v6444_v24  ;;  %6438 = vadd.xlane.f32.xlu2 %v6425_v52 }
0x17c7   :  { %v6401_v47 = vpop.xlane.xlu1 %6400 }
0x17c8   :  { %7974 = vrsqrt.f32 %v6452_v2  ;;  %v6410_v54 = vmul.f32 %v6401_v47, %v10504_v32  ;;  %vm6466_vm10 = vweird.f32 %v6452_v2 }
0x17ca   :  { %v10293_v12 = vsub.f32 %v10252_v26, %v6410_v54 }
0x17cc   :  { %v6426_v31 = vmul.f32 %v10293_v12, %v10293_v12 }
0x17ce   :  { %v7975_v10 = vpop.eup %7974  ;;  %6440 = vadd.xlane.f32.xlu0 %v6426_v31 }
0x17cf   :  { %v6461_v18 = vmul.f32 %v7975_v10, %v6452_v2  ;;  %v6431_v21 = vpop.xlane.xlu0 %6430  ;;  %v6403_v37 = vpop.xlane.xlu1 %6402  ;;  %vm6467_vm9 = vweird.f32 %v7975_v10 }
0x17d0   :  { %v6445_v1 = vmul.f32 %v6431_v21, %v10504_v32  ;;  %v6411_v40 = vmul.f32 %v6403_v37, %v10504_v32  ;;  %vm6468_vm11 = vmor %vm6466_vm10, %vm6467_vm9 }
0x17d1   :  { %v6462_v4 = vmul.f32 %v7975_v10, %v6461_v18 }
0x17d2   :  { %v6453_v51 = vadd.f32 1e-05, %v6445_v1  ;;  %v10300_v6 = vsub.f32 %v10263_v5, %v6411_v40 }
0x17d3   :  { %v6463_v28 = vmul.f32 0.5, %v6462_v4 }
0x17d4   :  { %7976 = vrsqrt.f32 %v6453_v51  ;;  %v6427_v45 = vmul.f32 %v10300_v6, %v10300_v6  ;;  %vm6476_vm13 = vweird.f32 %v6453_v51 }
0x17d5   :  { %v6464_v0 = vsub.f32 1.5, %v6463_v28 }
0x17d6   :  { %6442 = vadd.xlane.f32.xlu1 %v6427_v45 }
0x17d7   :  { %v6465_v33 = vmul.f32 %v7975_v10, %v6464_v0 }
0x17d9   :  { %v6469_v30 = vsel %vm6468_vm11, %v7975_v10, %v6465_v33 }
0x17da   :  { %v7977_v38 = vpop.eup %7976  ;;  %v6540_v22 = vmul.f32 %v6469_v30, %v10243_v63 }
0x17db   :  { %v6471_v62 = vmul.f32 %v7977_v38, %v6453_v51  ;;  %vm6477_vm12 = vweird.f32 %v7977_v38 }
0x17dc   :  { %v6551_v23 = vmul.f32 %v10304_v3, %v6540_v22  ;;  %vm6478_vm14 = vmor %vm6476_vm13, %vm6477_vm12 }
0x17dd   :  { %v6472_v39 = vmul.f32 %v7977_v38, %v6471_v62 }
0x17de   :  { %v6562_v53 = vadd.f32 %v10307_v16, %v6551_v23 }
0x17df   :  { %v6473_v19 = vmul.f32 0.5, %v6472_v39 }
0x17e0   :  { %6626 = vmatmul.f32.vlgmr.msrb.gmra.mxu2 %v6562_v53  ;;  %6667 = vmatmul.f32.vlgmr.msra.gmra.mxu1 %v6562_v53 }
0x17e1   :  { %v6474_v27 = vsub.f32 1.5, %v6473_v19 }
0x17e3   :  { %v6475_v13 = vmul.f32 %v7977_v38, %v6474_v27 }
0x17e5   :  { %v6479_v43 = vsel %vm6478_vm14, %v7977_v38, %v6475_v13  ;;  %v7044_v13 = vld [vmem:[#allocation16 + $0x1f8] sm:$0xff] }
0x17e6   :  { %v6541_v42 = vmul.f32 %v6479_v43, %v10257_v35  ;;  %7091 = vmatpush.msrb.mxu0 %v7044_v13 }
0x17e8   :  { %v6552_v63 = vmul.f32 %v10304_v3, %v6541_v42 }
0x17ea   :  { %v6563_v61 = vadd.f32 %v10307_v16, %v6552_v63  ;;  %v7043_v63 = vld [vmem:[#allocation16 + $0x1f0] sm:$0xff] }
0x17eb   :  { %7092 = vmatpush.msrb.mxu0 %v7043_v63  ;;  %v7031_v63 = vld [vmem:[#allocation16 + $0x190] sm:$0xff] }
0x17ec   :  { %6629 = vmatmul.f32.gmra.mxu2 %v6563_v61  ;;  %6670 = vmatmul.f32.gmra.mxu1 %v6563_v61  ;;  %v7042_v61 = vld [vmem:[#allocation16 + $0x1e8] sm:$0xff] }
0x17ed   :  { %7093 = vmatpush.msrb.mxu0 %v7042_v61 }
0x180a   :  { %v6433_v29 = vpop.xlane.xlu2 %6432 }
0x180b   :  { %v6446_v57 = vmul.f32 %v6433_v29, %v10504_v32 }
0x180d   :  { %v6454_v8 = vadd.f32 1e-05, %v6446_v57  ;;  %v7028_v57 = vld [vmem:[#allocation16 + $0x178] sm:$0xff] }
0x180e   :  { %7050 = vmatpush.msrb.mxu3 %v7028_v57  ;;  %v7030_v57 = vld [vmem:[#allocation16 + $0x188] sm:$0xff] }
0x180f   :  { %7978 = vrsqrt.f32 %v6454_v8  ;;  %vm6486_vm0 = vweird.f32 %v6454_v8 }
0x1812   :  { %v6435_v14 = vpop.xlane.xlu0 %6434 }
0x1813   :  { %v6447_v36 = vmul.f32 %v6435_v14, %v10504_v32 }
0x1815   :  { %v7979_v55 = vpop.eup %7978  ;;  %v6455_v11 = vadd.f32 1e-05, %v6447_v36 }
0x1816   :  { %v6481_v56 = vmul.f32 %v7979_v55, %v6454_v8  ;;  %vm6487_vm15 = vweird.f32 %v7979_v55  ;;  %v7041_v8 = vld [vmem:[#allocation16 + $0x1e0] sm:$0xff] }
0x1817   :  { %7980 = vrsqrt.f32 %v6455_v11  ;;  %vm6488_vm1 = vmor %vm6486_vm0, %vm6487_vm15  ;;  %vm6496_vm3 = vweird.f32 %v6455_v11  ;;  %7094 = vmatpush.msrb.mxu0 %v7041_v8 }
0x1818   :  { %v6482_v48 = vmul.f32 %v7979_v55, %v6481_v56  ;;  %v7040_v56 = vld [vmem:[#allocation16 + $0x1d8] sm:$0xff] }
0x1819   :  { %7095 = vmatpush.msrb.mxu0 %v7040_v56  ;;  %v7029_v56 = vld [vmem:[#allocation16 + $0x180] sm:$0xff] }
0x181a   :  { %v6483_v35 = vmul.f32 0.5, %v6482_v48  ;;  %v6437_v50 = vpop.xlane.xlu1 %6436 }
0x181b   :  { %v6448_v25 = vmul.f32 %v6437_v50, %v10504_v32 }
0x181c   :  { %v6484_v41 = vsub.f32 1.5, %v6483_v35 }
0x181d   :  { %v7981_v46 = vpop.eup %7980  ;;  %v6456_v49 = vadd.f32 1e-05, %v6448_v25  ;;  %v7026_v25 = vld [vmem:[#allocation16 + $0x168] sm:$0xff] }
0x181e   :  { %v6485_v24 = vmul.f32 %v7979_v55, %v6484_v41  ;;  %v6491_v52 = vmul.f32 %v7981_v46, %v6455_v11  ;;  %vm6497_vm2 = vweird.f32 %v7981_v46  ;;  %v7027_v11 = vld [vmem:[#allocation16 + $0x170] sm:$0xff] }
0x181f   :  { %7982 = vrsqrt.f32 %v6456_v49  ;;  %vm6498_vm4 = vmor %vm6496_vm3, %vm6497_vm2  ;;  %vm6506_vm6 = vweird.f32 %v6456_v49  ;;  %7051 = vmatpush.msrb.mxu3 %v7027_v11  ;;  %v7039_v41 = vld [vmem:[#allocation16 + $0x1d0] sm:$0xff]  ;;  %v7016_v11 = vld [vmem:[#allocation16 + $0x118] sm:$0xff] }
0x1820   :  { %v6489_v2 = vsel %vm6488_vm1, %v7979_v55, %v6485_v24  ;;  %v6492_v47 = vmul.f32 %v7981_v46, %v6491_v52  ;;  %7096 = vmatpush.msrb.mxu0 %v7039_v41  ;;  %v7038_v24 = vld [vmem:[#allocation16 + $0x1c8] sm:$0xff] }
0x1821   :  { %v6542_v54 = vmul.f32 %v6489_v2, %v10268_v58  ;;  %7052 = vmatpush.msrb.mxu3 %v7026_v25 }
0x1822   :  { %v6493_v31 = vmul.f32 0.5, %v6492_v47  ;;  %7097 = vmatpush.msrb.mxu0 %v7038_v24 }
0x1823   :  { %v6553_v10 = vmul.f32 %v10304_v3, %v6542_v54  ;;  %v7024_v54 = vld [vmem:[#allocation16 + $0x158] sm:$0xff] }
0x1824   :  { %v6494_v18 = vsub.f32 1.5, %v6493_v31  ;;  %v7037_v31 = vld [vmem:[#allocation16 + $0x1c0] sm:$0xff] }
0x1825   :  { %v7983_v21 = vpop.eup %7982  ;;  %v6564_v37 = vadd.f32 %v10307_v16, %v6553_v10  ;;  %7098 = vmatpush.msrb.mxu0 %v7037_v31 }
0x1826   :  { %v6495_v1 = vmul.f32 %v7981_v46, %v6494_v18  ;;  %v6501_v40 = vmul.f32 %v7983_v21, %v6456_v49  ;;  %vm6507_vm5 = vweird.f32 %v7983_v21 }
0x1827   :  { %6632 = vmatmul.f32.gmra.mxu2 %v6564_v37  ;;  %6673 = vmatmul.f32.gmra.mxu1 %v6564_v37  ;;  %vm6508_vm7 = vmor %vm6506_vm6, %vm6507_vm5  ;;  %v7036_v37 = vld [vmem:[#allocation16 + $0x1b8] sm:$0xff] }
0x1828   :  { %v6499_v4 = vsel %vm6498_vm4, %v7981_v46, %v6495_v1  ;;  %v6502_v51 = vmul.f32 %v7983_v21, %v6501_v40  ;;  %7099 = vmatpush.msrb.mxu0 %v7036_v37 }
0x1829   :  { %v6543_v28 = vmul.f32 %v6499_v4, %v10274_v34 }
0x182a   :  { %v6503_v45 = vmul.f32 0.5, %v6502_v51  ;;  %v7022_v51 = vld [vmem:[#allocation16 + $0x148] sm:$0xff] }
0x182b   :  { %v6554_v58 = vmul.f32 %v10304_v3, %v6543_v28  ;;  %v7035_v28 = vld [vmem:[#allocation16 + $0x1b0] sm:$0xff] }
0x182c   :  { %v6504_v0 = vsub.f32 1.5, %v6503_v45  ;;  %7100 = vmatpush.msrb.mxu0 %v7035_v28 }
0x182d   :  { %v6565_v33 = vadd.f32 %v10307_v16, %v6554_v58  ;;  %v7021_v58 = vld [vmem:[#allocation16 + $0x140] sm:$0xff] }
0x182e   :  { %v6505_v30 = vmul.f32 %v7983_v21, %v6504_v0  ;;  %v7034_v0 = vld [vmem:[#allocation16 + $0x1a8] sm:$0xff] }
0x182f   :  { %6635 = vmatmul.f32.gmra.mxu2 %v6565_v33  ;;  %6676 = vmatmul.f32.gmra.mxu1 %v6565_v33 }
0x1830   :  { %v6509_v38 = vsel %vm6508_vm7, %v7983_v21, %v6505_v30  ;;  %v7023_v21 = vld [vmem:[#allocation16 + $0x150] sm:$0xff]  ;;  %7101 = vmatpush.msrb.mxu0 %v7034_v0 }
0x1831   :  { %v6544_v22 = vmul.f32 %v6509_v38, %v10280_v7  ;;  %v7444_v38 = vld [vmem:[%s10480_s9 + $0x2] sm:$0x3] }
0x1833   :  { %v6555_v62 = vmul.f32 %v10304_v3, %v6544_v22 }
0x1835   :  { %v6566_v23 = vadd.f32 %v10307_v16, %v6555_v62  ;;  %v7020_v62 = vld [vmem:[#allocation16 + $0x138] sm:$0xff] }
0x1837   :  { %6638 = vmatmul.f32.gmra.mxu2 %v6566_v23  ;;  %6679 = vmatmul.f32.gmra.mxu1 %v6566_v23  ;;  %v7033_v23 = vld [vmem:[#allocation16 + $0x1a0] sm:$0xff] }
0x1838   :  { %7102 = vmatpush.msrb.mxu0 %v7033_v23 }
0x1839   :  { %v6439_v34 = vpop.xlane.xlu2 %6438 }
0x183a   :  { %v6449_v39 = vmul.f32 %v6439_v34, %v10504_v32 }
0x183c   :  { %v6457_v53 = vadd.f32 1e-05, %v6449_v39  ;;  %v10340_v39 = vperm.slane %v7444_v38, 1 }
0x183e   :  { %7984 = vrsqrt.f32 %v6457_v53  ;;  %vm6516_vm9 = vweird.f32 %v6457_v53 }
0x1841   :  { %v6441_v19 = vpop.xlane.xlu0 %6440 }
0x1842   :  { %v6450_v27 = vmul.f32 %v6441_v19, %v10504_v32  ;;  %v7019_v19 = vld [vmem:[#allocation16 + $0x130] sm:$0xff] }
0x1844   :  { %v7985_v43 = vpop.eup %7984  ;;  %v6458_v42 = vadd.f32 1e-05, %v6450_v27  ;;  %v7032_v27 = vld [vmem:[#allocation16 + $0x198] sm:$0xff] }
0x1845   :  { %v6511_v7 = vmul.f32 %v7985_v43, %v6457_v53  ;;  %vm6517_vm8 = vweird.f32 %v7985_v43  ;;  %7103 = vmatpush.msrb.mxu0 %v7032_v27 }
0x1846   :  { %7986 = vrsqrt.f32 %v6458_v42  ;;  %vm6518_vm10 = vmor %vm6516_vm9, %vm6517_vm8  ;;  %vm6526_vm12 = vweird.f32 %v6458_v42 }
0x1847   :  { %v6512_v29 = vmul.f32 %v7985_v43, %v6511_v7  ;;  %7104 = vmatpush.msrb.mxu0 %v7031_v63 }
0x1849   :  { %v6513_v14 = vmul.f32 0.5, %v6512_v29  ;;  %v6443_v36 = vpop.xlane.xlu1 %6442  ;;  %v7017_v29 = vld [vmem:[#allocation16 + $0x120] sm:$0xff]  ;;  %7105 = vmatpush.msrb.mxu0 %v7030_v57 }
0x184a   :  { %v6451_v55 = vmul.f32 %v6443_v36, %v10504_v32  ;;  %v7025_v32 = vld [vmem:[#allocation16 + $0x160] sm:$0xff]  ;;  %v10349_v36 = vperm.slane %v7444_v38, 0 }
0x184b   :  { %v6514_v48 = vsub.f32 1.5, %v6513_v14  ;;  %7053 = vmatpush.msrb.mxu3 %v7025_v32  ;;  %7106 = vmatpush.msrb.mxu0 %v7029_v56 }
0x184c   :  { %v7987_v35 = vpop.eup %7986  ;;  %v10329_v50 = vadd.f32 1e-05, %v6451_v55 }
0x184d   :  { %v6515_v46 = vmul.f32 %v7985_v43, %v6514_v48  ;;  %v6521_v49 = vmul.f32 %v7987_v35, %v6458_v42  ;;  %7054 = vmatpush.msrb.mxu3 %v7024_v54  ;;  %vm6527_vm11 = vweird.f32 %v7987_v35  ;;  %v7018_v42 = vld [vmem:[#allocation16 + $0x128] sm:$0xff] }
0x184e   :  { %7988 = vrsqrt.f32 %v10329_v50  ;;  %vm6528_vm13 = vmor %vm6526_vm12, %vm6527_vm11  ;;  %vm6536_vm15 = vweird.f32 %v10329_v50 }
0x184f   :  { %v6519_v52 = vsel %vm6518_vm10, %v7985_v43, %v6515_v46  ;;  %v6522_v2 = vmul.f32 %v7987_v35, %v6521_v49  ;;  %7055 = vmatpush.msrb.mxu3 %v7023_v21  ;;  %v7014_v46 = vld [vmem:[#allocation16 + $0x108] sm:$0xff] }
0x1850   :  { %v6545_v47 = vmul.f32 %v6519_v52, %v10286_v60 }
0x1851   :  { %v6523_v10 = vmul.f32 0.5, %v6522_v2  ;;  %7056 = vmatpush.msrb.mxu3 %v7022_v51 }
0x1852   :  { %v6556_v18 = vmul.f32 %v10304_v3, %v6545_v47 }
0x1853   :  { %v6524_v1 = vsub.f32 1.5, %v6523_v10  ;;  %7057 = vmatpush.msrb.mxu3 %v7021_v58 }
0x1854   :  { %v7989_v40 = vpop.eup %7988  ;;  %v6567_v4 = vadd.f32 %v10307_v16, %v6556_v18 }
0x1855   :  { %v6525_v45 = vmul.f32 %v7987_v35, %v6524_v1  ;;  %v6531_v60 = vmul.f32 %v7989_v40, %v10329_v50  ;;  %7058 = vmatpush.msrb.mxu3 %v7020_v62  ;;  %vm6537_vm14 = vweird.f32 %v7989_v40 }
0x1856   :  { %6641 = vmatmul.f32.gmra.mxu2 %v6567_v4  ;;  %6682 = vmatmul.f32.gmra.mxu1 %v6567_v4  ;;  %vm6538_vm0 = vmor %vm6536_vm15, %vm6537_vm14 }
0x1857   :  { %v6529_v33 = vsel %vm6528_vm13, %v7987_v35, %v6525_v45  ;;  %v6532_v30 = vmul.f32 %v7989_v40, %v6531_v60  ;;  %7059 = vmatpush.msrb.mxu3 %v7019_v19  ;;  %v7015_v35 = vld [vmem:[#allocation16 + $0x110] sm:$0xff] }
0x1858   :  { %v6546_v22 = vmul.f32 %v6529_v33, %v10293_v12 }
0x1859   :  { %v6533_v34 = vmul.f32 0.5, %v6532_v30  ;;  %7060 = vmatpush.msrb.mxu3 %v7018_v42 }
0x185a   :  { %v6557_v53 = vmul.f32 %v10304_v3, %v6546_v22 }
0x185b   :  { %v6534_v13 = vsub.f32 1.5, %v6533_v34  ;;  %7061 = vmatpush.msrb.mxu3 %v7017_v29 }
0x185c   :  { %v6568_v43 = vadd.f32 %v10307_v16, %v6557_v53 }
0x185d   :  { %v6535_v12 = vmul.f32 %v7989_v40, %v6534_v13  ;;  %v6668_v7 = vpop.f32.mrf.mxu1  ;;  %7062 = vmatpush.msrb.mxu3 %v7016_v11 }
0x185e   :  { %v10346_v61 = vadd.f32 %v6668_v7, %v10340_v39  ;;  %6644 = vmatmul.f32.gmra.mxu2 %v6568_v43  ;;  %6685 = vmatmul.f32.gmra.mxu1 %v6568_v43 }
0x185f   :  { %v6539_v8 = vsel %vm6538_vm0, %v7989_v40, %v6535_v12  ;;  %7063 = vmatpush.msrb.mxu3 %v7015_v35 }
0x1860   :  { %v7446_v14 = vmul.f32 -1.442695, %v10346_v61  ;;  %v6547_v55 = vmul.f32 %v6539_v8, %v10300_v6  ;;  %v7013_v6 = vld [vmem:[#allocation16 + $0x100] sm:$0xff] }
0x1861   :  { %7064 = vmatpush.msrb.mxu3 %v7014_v46 }
0x1862   :  { %7990 = vpow2.f32 %v7446_v14  ;;  %v6558_v48 = vmul.f32 %v10304_v3, %v6547_v55 }
0x1863   :  { %v6627_v50 = vpop.f32.mrf.mxu2  ;;  %7065 = vmatpush.msrb.mxu3 %v7013_v6 }
0x1864   :  { %v10354_v25 = vadd.f32 %v6627_v50, %v10349_v36  ;;  %v6569_v41 = vadd.f32 %v10307_v16, %v6558_v48 }
0x1866   :  { %v7445_v49 = vmul.f32 -1.442695, %v10354_v25  ;;  %6647 = vmatmul.f32.gmra.mxu2 %v6569_v41  ;;  %6688 = vmatmul.f32.gmra.mxu1 %v6569_v41 }
0x1868   :  { %v7991_v32 = vpop.eup %7990  ;;  %7992 = vpow2.f32 %v7445_v49 }
0x1869   :  { %v6741_v24 = vadd.f32 1.0, %v7991_v32  ;;  %v6671_v3 = vpop.f32.mrf.mxu1 }
0x186a   :  { %v10359_v52 = vadd.f32 %v6671_v3, %v10340_v39 }
0x186b   :  { %7994 = vrcp.f32 %v6741_v24  ;;  %v6782_v40 = vand.u32 2147483648, %v6741_v24  ;;  %v6780_v28 = vand.u32 2147483647, %v6741_v24  ;;  %vm6776_vm2 = vweird.f32 %v6741_v24 }
0x186c   :  { %v7448_v2 = vmul.f32 -1.442695, %v10359_v52 }
0x186d   :  { %v6783_v0 = vor.u32 1.1754944e-38, %v6782_v40  ;;  %vm6781_vm4 = vcmp.eq.f32.partialorder %v6780_v28, 8.507059e+37 }
0x186e   :  { %v7993_v47 = vpop.eup %7992  ;;  %7996 = vpow2.f32 %v7448_v2 }
0x186f   :  { %v6740_v16 = vadd.f32 1.0, %v7993_v47  ;;  %v6630_v54 = vpop.f32.mrf.mxu2 }
0x1870   :  { %v10363_v31 = vadd.f32 %v6630_v54, %v10349_v36 }
0x1871   :  { %v7995_v10 = vpop.eup %7994  ;;  %7998 = vrcp.f32 %v6740_v16  ;;  %v6767_v62 = vand.u32 2147483648, %v6740_v16  ;;  %v6765_v19 = vand.u32 2147483647, %v6740_v16  ;;  %vm6761_vm6 = vweird.f32 %v6740_v16 }
0x1872   :  { %v6772_v18 = vmul.f32 %v7995_v10, %v6741_v24  ;;  %v7447_v21 = vmul.f32 -1.442695, %v10363_v31  ;;  %vm6777_vm1 = vweird.f32 %v7995_v10 }
0x1873   :  { %vm6778_vm3 = vmor %vm6776_vm2, %vm6777_vm1  ;;  %v6768_v42 = vor.u32 1.1754944e-38, %v6767_v62  ;;  %vm6766_vm8 = vcmp.eq.f32.partialorder %v6765_v19, 8.507059e+37 }
0x1874   :  { %v7997_v37 = vpop.eup %7996  ;;  %v6773_v1 = vsub.f32 1.0, %v6772_v18  ;;  %8000 = vpow2.f32 %v7447_v21 }
0x1875   :  { %v6743_v4 = vadd.f32 1.0, %v7997_v37 }
0x1876   :  { %v6774_v51 = vmul.f32 %v7995_v10, %v6773_v1 }
0x1877   :  { %v7999_v45 = vpop.eup %7998  ;;  %8002 = vrcp.f32 %v6743_v4  ;;  %v6812_v29 = vand.u32 2147483648, %v6743_v4  ;;  %vm6806_vm10 = vweird.f32 %v6743_v4 }
0x1878   :  { %v6775_v60 = vadd.f32 %v7995_v10, %v6774_v51  ;;  %v6757_v58 = vmul.f32 %v7999_v45, %v6740_v16  ;;  %vm6762_vm5 = vweird.f32 %v7999_v45 }
0x1879   :  { %vm6763_vm7 = vmor %vm6761_vm6, %vm6762_vm5  ;;  %v6813_v56 = vor.u32 1.1754944e-38, %v6812_v29 }
0x187a   :  { %v8001_v33 = vpop.eup %8000  ;;  %v6779_v30 = vsel %vm6778_vm3, %v7995_v10, %v6775_v60  ;;  %v6758_v38 = vsub.f32 1.0, %v6757_v58 }
0x187b   :  { %v6784_v22 = vsel %vm6781_vm4, %v6783_v0, %v6779_v30  ;;  %v6742_v23 = vadd.f32 1.0, %v8001_v33 }
0x187c   :  { %v6997_v34 = vmul.f32 %v6784_v22, %v10346_v61  ;;  %v6759_v53 = vmul.f32 %v7999_v45, %v6758_v38  ;;  %v6810_v61 = vand.u32 2147483647, %v6743_v4 }
0x187d   :  { %v8003_v27 = vpop.eup %8002  ;;  %8004 = vrcp.f32 %v6742_v23  ;;  %v6797_v41 = vand.u32 2147483648, %v6742_v23  ;;  %vm6791_vm14 = vweird.f32 %v6742_v23 }
0x187e   :  { %v6760_v13 = vadd.f32 %v7999_v45, %v6759_v53  ;;  %v6802_v43 = vmul.f32 %v8003_v27, %v6743_v4  ;;  %7107 = vmatmul.f32.vlgmr.msrb.gmra.mxu0 %v6997_v34  ;;  %vm6807_vm9 = vweird.f32 %v8003_v27  ;;  %vm6811_vm12 = vcmp.eq.f32.partialorder %v6810_v61, 8.507059e+37 }
0x187f   :  { %vm6808_vm11 = vmor %vm6806_vm10, %vm6807_vm9  ;;  %v6798_v32 = vor.u32 1.1754944e-38, %v6797_v41 }
0x1880   :  { %v6764_v63 = vsel %vm6763_vm7, %v7999_v45, %v6760_v13  ;;  %v6803_v12 = vsub.f32 1.0, %v6802_v43 }
0x1881   :  { %v6769_v7 = vsel %vm6766_vm8, %v6768_v42, %v6764_v63 }
0x1882   :  { %v6996_v57 = vmul.f32 %v6769_v7, %v10354_v25  ;;  %v6804_v8 = vmul.f32 %v8003_v27, %v6803_v12  ;;  %v6795_v25 = vand.u32 2147483647, %v6742_v23 }
0x1883   :  { %v8005_v14 = vpop.eup %8004 }
0x1884   :  { %v6805_v55 = vadd.f32 %v8003_v27, %v6804_v8  ;;  %v6787_v11 = vmul.f32 %v8005_v14, %v6742_v23  ;;  %7066 = vmatmul.f32.vlgmr.msrb.gmra.mxu3 %v6996_v57  ;;  %vm6792_vm13 = vweird.f32 %v8005_v14  ;;  %vm6796_vm0 = vcmp.eq.f32.partialorder %v6795_v25, 8.507059e+37 }
0x1885   :  { %vm6793_vm15 = vmor %vm6791_vm14, %vm6792_vm13 }
0x1886   :  { %v6809_v48 = vsel %vm6808_vm11, %v8003_v27, %v6805_v55  ;;  %v6788_v35 = vsub.f32 1.0, %v6787_v11 }
0x1887   :  { %v6814_v50 = vsel %vm6811_vm12, %v6813_v56, %v6809_v48 }
0x1888   :  { %v6999_v46 = vmul.f32 %v6814_v50, %v10359_v52  ;;  %v6789_v49 = vmul.f32 %v8005_v14, %v6788_v35 }
0x188a   :  { %v6790_v6 = vadd.f32 %v8005_v14, %v6789_v49  ;;  %7110 = vmatmul.f32.gmra.mxu0 %v6999_v46 }
0x188c   :  { %v6794_v24 = vsel %vm6793_vm15, %v8005_v14, %v6790_v6 }
0x188d   :  { %v6799_v3 = vsel %vm6796_vm0, %v6798_v32, %v6794_v24 }
0x188e   :  { %v6998_v2 = vmul.f32 %v6799_v3, %v10363_v31 }
0x1890   :  { %7069 = vmatmul.f32.gmra.mxu3 %v6998_v2 }
0x18a4   :  { %v6674_v47 = vpop.f32.mrf.mxu1 }
0x18a5   :  { %v6675_v16 = vadd.f32 %v6674_v47, %v10340_v39 }
0x18a7   :  { %v7450_v54 = vmul.f32 -1.442695, %v6675_v16 }
0x18a9   :  { %8006 = vpow2.f32 %v7450_v54 }
0x18aa   :  { %v6633_v52 = vpop.f32.mrf.mxu2 }
0x18ab   :  { %v10372_v10 = vadd.f32 %v6633_v52, %v10349_v36 }
0x18ac   :  { %v6677_v18 = vpop.f32.mrf.mxu1 }
0x18ad   :  { %v7449_v21 = vmul.f32 -1.442695, %v10372_v10  ;;  %v10376_v37 = vadd.f32 %v6677_v18, %v10340_v39 }
0x18af   :  { %v8007_v1 = vpop.eup %8006  ;;  %8008 = vpow2.f32 %v7449_v21  ;;  %v7452_v31 = vmul.f32 -1.442695, %v10376_v37 }
0x18b0   :  { %v6745_v40 = vadd.f32 1.0, %v8007_v1 }
0x18b1   :  { %8010 = vpow2.f32 %v7452_v31 }
0x18b2   :  { %8012 = vrcp.f32 %v6745_v40  ;;  %v6636_v4 = vpop.f32.mrf.mxu2  ;;  %v6840_v53 = vand.u32 2147483647, %v6745_v40  ;;  %v6842_v19 = vand.u32 2147483648, %v6745_v40  ;;  %vm6836_vm2 = vweird.f32 %v6745_v40 }
0x18b3   :  { %v10380_v51 = vadd.f32 %v6636_v4, %v10349_v36 }
0x18b4   :  { %v6680_v28 = vpop.f32.mrf.mxu1  ;;  %vm6841_vm4 = vcmp.eq.f32.partialorder %v6840_v53, 8.507059e+37  ;;  %v6843_v8 = vor.u32 1.1754944e-38, %v6842_v19 }
0x18b5   :  { %v8009_v45 = vpop.eup %8008  ;;  %v7451_v60 = vmul.f32 -1.442695, %v10380_v51  ;;  %v10384_v58 = vadd.f32 %v6680_v28, %v10340_v39 }
0x18b6   :  { %v6744_v0 = vadd.f32 1.0, %v8009_v45 }
0x18b7   :  { %v8011_v33 = vpop.eup %8010  ;;  %8014 = vpow2.f32 %v7451_v60  ;;  %v7454_v30 = vmul.f32 -1.442695, %v10384_v58 }
0x18b8   :  { %v8013_v38 = vpop.eup %8012  ;;  %8016 = vrcp.f32 %v6744_v0  ;;  %v6747_v62 = vadd.f32 1.0, %v8011_v33  ;;  %v6825_v48 = vand.u32 2147483647, %v6744_v0  ;;  %v6827_v35 = vand.u32 2147483648, %v6744_v0 }
0x18b9   :  { %v6832_v22 = vmul.f32 %v8013_v38, %v6745_v40  ;;  %8018 = vpow2.f32 %v7454_v30  ;;  %vm6837_vm1 = vweird.f32 %v8013_v38  ;;  %vm6821_vm6 = vweird.f32 %v6744_v0 }
0x18ba   :  { %v6639_v23 = vpop.f32.mrf.mxu2  ;;  %8020 = vrcp.f32 %v6747_v62  ;;  %vm6838_vm3 = vmor %vm6836_vm2, %vm6837_vm1  ;;  %v6870_v6 = vand.u32 2147483647, %v6747_v62  ;;  %v6872_v32 = vand.u32 2147483648, %v6747_v62  ;;  %v6828_v3 = vor.u32 1.1754944e-38, %v6827_v35 }
0x18bb   :  { %v6833_v34 = vsub.f32 1.0, %v6832_v22  ;;  %v10388_v27 = vadd.f32 %v6639_v23, %v10349_v36  ;;  %vm6826_vm9 = vcmp.eq.f32.partialorder %v6825_v48, 8.507059e+37  ;;  %vm6866_vm10 = vweird.f32 %v6747_v62 }
0x18bc   :  { %vm6871_vm12 = vcmp.eq.f32.partialorder %v6870_v6, 8.507059e+37  ;;  %v6873_v40 = vor.u32 1.1754944e-38, %v6872_v32 }
0x18bd   :  { %v8015_v13 = vpop.eup %8014  ;;  %v6834_v43 = vmul.f32 %v8013_v38, %v6833_v34  ;;  %v7453_v12 = vmul.f32 -1.442695, %v10388_v27 }
0x18be   :  { %v8017_v42 = vpop.eup %8016  ;;  %v10390_v63 = vadd.f32 1.0, %v8015_v13 }
0x18bf   :  { %v8019_v7 = vpop.eup %8018  ;;  %v6835_v29 = vadd.f32 %v8013_v38, %v6834_v43  ;;  %v6817_v57 = vmul.f32 %v8017_v42, %v6744_v0  ;;  %vm6822_vm5 = vweird.f32 %v8017_v42 }
0x18c0   :  { %8022 = vrcp.f32 %v10390_v63  ;;  %v8021_v61 = vpop.eup %8020  ;;  %v10394_v11 = vadd.f32 1.0, %v8019_v7  ;;  %vm6823_vm7 = vmor %vm6821_vm6, %vm6822_vm5  ;;  %v6857_v45 = vand.u32 2147483648, %v10390_v63  ;;  %v6855_v30 = vand.u32 2147483647, %v10390_v63 }
0x18c1   :  { %v6839_v14 = vsel %vm6838_vm3, %v8013_v38, %v6835_v29  ;;  %v6818_v55 = vsub.f32 1.0, %v6817_v57  ;;  %8024 = vpow2.f32 %v7453_v12  ;;  %v6862_v50 = vmul.f32 %v8021_v61, %v6747_v62 }
0x18c2   :  { %v6844_v56 = vsel %vm6841_vm4, %v6843_v8, %v6839_v14  ;;  %8026 = vrcp.f32 %v10394_v11  ;;  %vm6867_vm8 = vweird.f32 %v8021_v61  ;;  %vm6851_vm14 = vweird.f32 %v10390_v63 }
0x18c3   :  { %v7001_v41 = vmul.f32 %v6844_v56, %v6675_v16  ;;  %v6819_v46 = vmul.f32 %v8017_v42, %v6818_v55  ;;  %v6863_v49 = vsub.f32 1.0, %v6862_v50  ;;  %vm6868_vm11 = vmor %vm6866_vm10, %vm6867_vm8  ;;  %v6902_v62 = vand.u32 2147483648, %v10394_v11 }
0x18c4   :  { %v6858_v23 = vor.u32 1.1754944e-38, %v6857_v45  ;;  %v6900_v53 = vand.u32 2147483647, %v10394_v11  ;;  %vm6856_vm1 = vcmp.eq.f32.partialorder %v6855_v30, 8.507059e+37  ;;  %vm6896_vm2 = vweird.f32 %v10394_v11 }
0x18c5   :  { %v6820_v25 = vadd.f32 %v8017_v42, %v6819_v46  ;;  %7113 = vmatmul.f32.gmra.mxu0 %v7001_v41  ;;  %v6864_v2 = vmul.f32 %v8021_v61, %v6863_v49 }
0x18c6   :  { %v8023_v24 = vpop.eup %8022  ;;  %vm6901_vm4 = vcmp.eq.f32.partialorder %v6900_v53, 8.507059e+37 }
0x18c7   :  { %v8025_v47 = vpop.eup %8024  ;;  %v6824_v54 = vsel %vm6823_vm7, %v8017_v42, %v6820_v25  ;;  %v6847_v16 = vmul.f32 %v8023_v24, %v10390_v63  ;;  %v6865_v18 = vadd.f32 %v8021_v61, %v6864_v2  ;;  %vm6852_vm13 = vweird.f32 %v8023_v24 }
0x18c8   :  { %v6829_v52 = vsel %vm6826_vm9, %v6828_v3, %v6824_v54  ;;  %v6748_v21 = vadd.f32 1.0, %v8025_v47  ;;  %v8027_v1 = vpop.eup %8026  ;;  %vm6853_vm15 = vmor %vm6851_vm14, %vm6852_vm13  ;;  %v6903_v63 = vor.u32 1.1754944e-38, %v6902_v62 }
0x18c9   :  { %v7000_v31 = vmul.f32 %v6829_v52, %v10372_v10  ;;  %v6848_v4 = vsub.f32 1.0, %v6847_v16  ;;  %v6869_v28 = vsel %vm6868_vm11, %v8021_v61, %v6865_v18  ;;  %v6892_v60 = vmul.f32 %v8027_v1, %v10394_v11 }
0x18ca   :  { %8028 = vrcp.f32 %v6748_v21  ;;  %v6874_v0 = vsel %vm6871_vm12, %v6873_v40, %v6869_v28  ;;  %vm6897_vm0 = vweird.f32 %v8027_v1  ;;  %v6887_v14 = vand.u32 2147483648, %v6748_v21 }
0x18cb   :  { %v6849_v33 = vmul.f32 %v8023_v24, %v6848_v4  ;;  %7072 = vmatmul.f32.gmra.mxu3 %v7000_v31  ;;  %v7003_v38 = vmul.f32 %v6874_v0, %v10376_v37  ;;  %v6893_v22 = vsub.f32 1.0, %v6892_v60  ;;  %vm6898_vm3 = vmor %vm6896_vm2, %vm6897_vm0  ;;  %v6885_v11 = vand.u32 2147483647, %v6748_v21 }
0x18cc   :  { %vm6881_vm6 = vweird.f32 %v6748_v21  ;;  %v6888_v35 = vor.u32 1.1754944e-38, %v6887_v14 }
0x18cd   :  { %v6850_v10 = vadd.f32 %v8023_v24, %v6849_v33  ;;  %v6894_v34 = vmul.f32 %v8027_v1, %v6893_v22  ;;  %7116 = vmatmul.f32.gmra.mxu0 %v7003_v38  ;;  %vm6886_vm8 = vcmp.eq.f32.partialorder %v6885_v11, 8.507059e+37 }
0x18cf   :  { %v6854_v19 = vsel %vm6853_vm15, %v8023_v24, %v6850_v10  ;;  %v6895_v42 = vadd.f32 %v8027_v1, %v6894_v34 }
0x18d0   :  { %v8029_v13 = vpop.eup %8028  ;;  %v6859_v43 = vsel %vm6856_vm1, %v6858_v23, %v6854_v19 }
0x18d1   :  { %v7002_v37 = vmul.f32 %v6859_v43, %v10380_v51  ;;  %v6877_v12 = vmul.f32 %v8029_v13, %v6748_v21  ;;  %v6899_v7 = vsel %vm6898_vm3, %v8027_v1, %v6895_v42  ;;  %vm6882_vm5 = vweird.f32 %v8029_v13 }
0x18d2   :  { %v6904_v29 = vsel %vm6901_vm4, %v6903_v63, %v6899_v7  ;;  %vm6883_vm7 = vmor %vm6881_vm6, %vm6882_vm5 }
0x18d3   :  { %v6878_v57 = vsub.f32 1.0, %v6877_v12  ;;  %v6683_v8 = vpop.f32.mrf.mxu1  ;;  %7075 = vmatmul.f32.gmra.mxu3 %v7002_v37  ;;  %v7005_v61 = vmul.f32 %v6904_v29, %v10384_v58 }
0x18d4   :  { %v10410_v55 = vadd.f32 %v6683_v8, %v10340_v39 }
0x18d5   :  { %v6879_v56 = vmul.f32 %v8029_v13, %v6878_v57  ;;  %7119 = vmatmul.f32.gmra.mxu0 %v7005_v61 }
0x18d6   :  { %v7456_v51 = vmul.f32 -1.442695, %v10410_v55 }
0x18d7   :  { %v6880_v48 = vadd.f32 %v8029_v13, %v6879_v56 }
0x18d8   :  { %8030 = vpow2.f32 %v7456_v51 }
0x18d9   :  { %v6884_v50 = vsel %vm6883_vm7, %v8029_v13, %v6880_v48  ;;  %v6642_v41 = vpop.f32.mrf.mxu2 }
0x18da   :  { %v6889_v46 = vsel %vm6886_vm8, %v6888_v35, %v6884_v50  ;;  %v10414_v58 = vadd.f32 %v6642_v41, %v10349_v36 }
0x18db   :  { %v7004_v49 = vmul.f32 %v6889_v46, %v10388_v27  ;;  %v6686_v25 = vpop.f32.mrf.mxu1 }
0x18dc   :  { %v7455_v6 = vmul.f32 -1.442695, %v10414_v58  ;;  %v10419_v32 = vadd.f32 %v6686_v25, %v10340_v39 }
0x18dd   :  { %7078 = vmatmul.f32.gmra.mxu3 %v7004_v49 }
0x18de   :  { %v8031_v24 = vpop.eup %8030  ;;  %8032 = vpow2.f32 %v7455_v6  ;;  %v7458_v3 = vmul.f32 -1.442695, %v10419_v32 }
0x18df   :  { %v6751_v2 = vadd.f32 1.0, %v8031_v24 }
0x18e0   :  { %8034 = vpow2.f32 %v7458_v3 }
0x18e1   :  { %8036 = vrcp.f32 %v6751_v2  ;;  %v6645_v47 = vpop.f32.mrf.mxu2  ;;  %v6930_v0 = vand.u32 2147483647, %v6751_v2  ;;  %v6932_v33 = vand.u32 2147483648, %v6751_v2  ;;  %vm6926_vm10 = vweird.f32 %v6751_v2 }
0x18e2   :  { %v10423_v54 = vadd.f32 %v6645_v47, %v10349_v36 }
0x18e3   :  { %v6689_v16 = vpop.f32.mrf.mxu1  ;;  %vm6931_vm12 = vcmp.eq.f32.partialorder %v6930_v0, 8.507059e+37  ;;  %v6933_v19 = vor.u32 1.1754944e-38, %v6932_v33 }
0x18e4   :  { %v8033_v27 = vpop.eup %8032  ;;  %v7457_v52 = vmul.f32 -1.442695, %v10423_v54  ;;  %v10427_v18 = vadd.f32 %v6689_v16, %v10340_v39 }
0x18e5   :  { %v6750_v21 = vadd.f32 1.0, %v8033_v27 }
0x18e6   :  { %v8035_v1 = vpop.eup %8034  ;;  %8038 = vpow2.f32 %v7457_v52  ;;  %v7460_v31 = vmul.f32 -1.442695, %v10427_v18 }
0x18e7   :  { %v8037_v40 = vpop.eup %8036  ;;  %8040 = vrcp.f32 %v6750_v21  ;;  %v6753_v28 = vadd.f32 1.0, %v8035_v1  ;;  %v6915_v63 = vand.u32 2147483647, %v6750_v21  ;;  %v6917_v12 = vand.u32 2147483648, %v6750_v21 }
0x18e8   :  { %v6922_v4 = vmul.f32 %v8037_v40, %v6751_v2  ;;  %8042 = vpow2.f32 %v7460_v31  ;;  %vm6927_vm9 = vweird.f32 %v8037_v40  ;;  %vm6911_vm14 = vweird.f32 %v6750_v21 }
0x18e9   :  { %v6648_v45 = vpop.f32.mrf.mxu2  ;;  %8044 = vrcp.f32 %v6753_v28  ;;  %vm6928_vm11 = vmor %vm6926_vm10, %vm6927_vm9  ;;  %v6960_v14 = vand.u32 2147483647, %v6753_v28  ;;  %v6962_v56 = vand.u32 2147483648, %v6753_v28  ;;  %v6918_v51 = vor.u32 1.1754944e-38, %v6917_v12 }
0x18ea   :  { %v6923_v60 = vsub.f32 1.0, %v6922_v4  ;;  %v10431_v30 = vadd.f32 %v6648_v45, %v10349_v36  ;;  %vm6916_vm1 = vcmp.eq.f32.partialorder %v6915_v63, 8.507059e+37  ;;  %vm6956_vm2 = vweird.f32 %v6753_v28 }
0x18eb   :  { %vm6961_vm4 = vcmp.eq.f32.partialorder %v6960_v14, 8.507059e+37  ;;  %v6963_v24 = vor.u32 1.1754944e-38, %v6962_v56 }
0x18ec   :  { %v8039_v39 = vpop.eup %8038  ;;  %v6924_v38 = vmul.f32 %v8037_v40, %v6923_v60  ;;  %v7459_v62 = vmul.f32 -1.442695, %v10431_v30 }
0x18ed   :  { %v8041_v22 = vpop.eup %8040  ;;  %v10433_v10 = vadd.f32 1.0, %v8039_v39 }
0x18ee   :  { %v8043_v23 = vpop.eup %8042  ;;  %v6925_v34 = vadd.f32 %v8037_v40, %v6924_v38  ;;  %v6907_v53 = vmul.f32 %v8041_v22, %v6750_v21  ;;  %vm6912_vm13 = vweird.f32 %v8041_v22 }
0x18ef   :  { %8046 = vrcp.f32 %v10433_v10  ;;  %v8045_v13 = vpop.eup %8044  ;;  %v10437_v42 = vadd.f32 1.0, %v8043_v23  ;;  %vm6913_vm15 = vmor %vm6911_vm14, %vm6912_vm13  ;;  %v6947_v47 = vand.u32 2147483648, %v10433_v10  ;;  %v6945_v21 = vand.u32 2147483647, %v10433_v10 }
0x18f0   :  { %v6929_v36 = vsel %vm6928_vm11, %v8037_v40, %v6925_v34  ;;  %v6908_v43 = vsub.f32 1.0, %v6907_v53  ;;  %8048 = vpow2.f32 %v7459_v62  ;;  %v6952_v7 = vmul.f32 %v8045_v13, %v6753_v28 }
0x18f1   :  { %v6934_v37 = vsel %vm6931_vm12, %v6933_v19, %v6929_v36  ;;  %8050 = vrcp.f32 %v10437_v42  ;;  %vm6957_vm0 = vweird.f32 %v8045_v13  ;;  %vm6941_vm6 = vweird.f32 %v10433_v10  ;;  %v7603_v36 = vld [vmem:[%s10482_s11 + $0x1] ss:$0 sm:$0xff]  ;;  %s8334_s11 = smov [#allocation17]  }
0x18f2   :  { %v7007_v29 = vmul.f32 %v6934_v37, %v10410_v55  ;;  %v6909_v57 = vmul.f32 %v8041_v22, %v6908_v43  ;;  %v6953_v8 = vsub.f32 1.0, %v6952_v7  ;;  %vm6958_vm3 = vmor %vm6956_vm2, %vm6957_vm0  ;;  %v6992_v40 = vand.u32 2147483648, %v10437_v42  ;;  %s7152_s20 = sshll.u32 %s8334_s11, 4  ;;  %s7153_s20 = int_to_ptr.vmem [resolvable:$true] %s7152_s20 }
0x18f3   :  { %v6948_v4 = vor.u32 1.1754944e-38, %v6947_v47  ;;  %v6990_v45 = vand.u32 2147483647, %v10437_v42  ;;  %vm6946_vm9 = vcmp.eq.f32.partialorder %v6945_v21, 8.507059e+37  ;;  %vm6986_vm10 = vweird.f32 %v10437_v42 }
0x18f4   :  { %v6910_v61 = vadd.f32 %v8041_v22, %v6909_v57  ;;  %7122 = vmatmul.f32.gmra.mxu0 %v7007_v29  ;;  %v6954_v48 = vmul.f32 %v8045_v13, %v6953_v8  ;;  %v6993_v38 = vor.u32 1.1754944e-38, %v6992_v40 }
0x18f5   :  { %v8047_v11 = vpop.eup %8046  ;;  %vm6991_vm12 = vcmp.eq.f32.partialorder %v6990_v45, 8.507059e+37 }
0x18f6   :  { %v8049_v35 = vpop.eup %8048  ;;  %v6914_v50 = vsel %vm6913_vm15, %v8041_v22, %v6910_v61  ;;  %v6937_v55 = vmul.f32 %v8047_v11, %v10433_v10  ;;  %v6955_v46 = vadd.f32 %v8045_v13, %v6954_v48  ;;  %vm6942_vm5 = vweird.f32 %v8047_v11 }
0x18f7   :  { %v6919_v41 = vsel %vm6916_vm1, %v6918_v51, %v6914_v50  ;;  %v6754_v49 = vadd.f32 1.0, %v8049_v35  ;;  %v8051_v25 = vpop.eup %8050  ;;  %vm6943_vm7 = vmor %vm6941_vm6, %vm6942_vm5 }
0x18f8   :  { %v7006_v6 = vmul.f32 %v6919_v41, %v10414_v58  ;;  %v6938_v3 = vsub.f32 1.0, %v6937_v55  ;;  %v6959_v2 = vsel %vm6958_vm3, %v8045_v13, %v6955_v46  ;;  %v6982_v16 = vmul.f32 %v8051_v25, %v10437_v42 }
0x18f9   :  { %8052 = vrcp.f32 %v6754_v49  ;;  %v6964_v27 = vsel %vm6961_vm4, %v6963_v24, %v6959_v2  ;;  %vm6987_vm8 = vweird.f32 %v8051_v25  ;;  %v6977_v53 = vand.u32 2147483648, %v6754_v49 }
0x18fa   :  { %v6939_v52 = vmul.f32 %v8047_v11, %v6938_v3  ;;  %7081 = vmatmul.f32.gmra.mxu3 %v7006_v6  ;;  %v7009_v1 = vmul.f32 %v6964_v27, %v10419_v32  ;;  %v6983_v31 = vsub.f32 1.0, %v6982_v16  ;;  %vm6988_vm11 = vmor %vm6986_vm10, %vm6987_vm8  ;;  %v6975_v13 = vand.u32 2147483647, %v6754_v49 }
0x18fb   :  { %vm6971_vm14 = vweird.f32 %v6754_v49  ;;  %v6978_v43 = vor.u32 1.1754944e-38, %v6977_v53  ;;  %v7108_v7 = vpop.f32.mrf.mxu0 }
0x18fc   :  { %v6940_v58 = vadd.f32 %v8047_v11, %v6939_v52  ;;  %v6984_v28 = vmul.f32 %v8051_v25, %v6983_v31  ;;  %7125 = vmatmul.f32.gmra.mxu0 %v7009_v1  ;;  %vm6976_vm0 = vcmp.eq.f32.partialorder %v6975_v13, 8.507059e+37 }
0x18fe   :  { %v6944_v60 = vsel %vm6943_vm7, %v8047_v11, %v6940_v58  ;;  %v6985_v39 = vadd.f32 %v8051_v25, %v6984_v28 }
0x18ff   :  { %v8053_v0 = vpop.eup %8052  ;;  %v6949_v33 = vsel %vm6946_vm9, %v6948_v4, %v6944_v60 }
0x1900   :  { %v7008_v32 = vmul.f32 %v6949_v33, %v10423_v54  ;;  %v6967_v22 = vmul.f32 %v8053_v0, %v6754_v49  ;;  %v6989_v10 = vsel %vm6988_vm11, %v8051_v25, %v6985_v39  ;;  %vm6972_vm13 = vweird.f32 %v8053_v0 }
0x1901   :  { %v6994_v62 = vsel %vm6991_vm12, %v6993_v38, %v6989_v10  ;;  %vm6973_vm15 = vmor %vm6971_vm14, %vm6972_vm13 }
0x1902   :  { %v6968_v23 = vsub.f32 1.0, %v6967_v22  ;;  %7084 = vmatmul.f32.gmra.mxu3 %v7008_v32  ;;  %v7011_v34 = vmul.f32 %v6994_v62, %v10427_v18 }
0x1904   :  { %v6969_v19 = vmul.f32 %v8053_v0, %v6968_v23  ;;  %7128 = vmatmul.f32.gmra.mxu0 %v7011_v34 }
0x1906   :  { %v6970_v54 = vadd.f32 %v8053_v0, %v6969_v19 }
0x1907   :  { %v7067_v42 = vpop.f32.mrf.mxu3  ;;  %v7111_v14 = vpop.f32.mrf.mxu0 }
0x1908   :  { %v6974_v37 = vsel %vm6973_vm15, %v8053_v0, %v6970_v54  ;;  %v7068_v63 = vadd.f32 %v7603_v36, %v7067_v42 }
0x1909   :  { %v6979_v12 = vsel %vm6976_vm0, %v6978_v43, %v6974_v37 }
0x190a   :  { %v7010_v18 = vmul.f32 %v6979_v12, %v10431_v30  ;;  %v7109_v29 = vadd.f32 %v7108_v7, %v7068_v63 }
0x190c   :  { %v7132_v57 = vadd.f32 %v7109_v29, %v10207_v9  ;;  %7087 = vmatmul.f32.gmra.mxu3 %v7010_v18 }
0x190e   :  { %7140 = vst [vmem:[#allocation17] sm:$0xff] %v7132_v57 }
0x1913   :  { %v7070_v8 = vpop.f32.mrf.mxu3 }
0x1914   :  { %v7071_v61 = vadd.f32 %v7603_v36, %v7070_v8 }
0x1916   :  { %v7112_v56 = vadd.f32 %v7111_v14, %v7071_v61 }
0x1918   :  { %v7133_v11 = vadd.f32 %v7112_v56, %v10214_v17 }
0x191a   :  { %7141 = vst [vmem:[#allocation17 + $0x8] sm:$0xff] %v7133_v11 }
0x1942   :  { %v7114_v51 = vpop.f32.mrf.mxu0 }
0x194a   :  { %v7117_v46 = vpop.f32.mrf.mxu0 }
0x194e   :  { %v7073_v48 = vpop.f32.mrf.mxu3 }
0x194f   :  { %v7074_v35 = vadd.f32 %v7603_v36, %v7073_v48 }
0x1951   :  { %v7115_v50 = vadd.f32 %v7114_v51, %v7074_v35 }
0x1952   :  { %v7120_v24 = vpop.f32.mrf.mxu0 }
0x1953   :  { %v7134_v55 = vadd.f32 %v7115_v50, %v10221_v44 }
0x1955   :  { %7142 = vst [vmem:[#allocation17 + $0x10] sm:$0xff] %v7134_v55 }
0x1956   :  { %v7076_v30 = vpop.f32.mrf.mxu3 }
0x1957   :  { %v7077_v41 = vadd.f32 %v7603_v36, %v7076_v30 }
0x1959   :  { %v7118_v9 = vadd.f32 %v7117_v46, %v7077_v41 }
0x195b   :  { %v7135_v49 = vadd.f32 %v7118_v9, %v10227_v15 }
0x195d   :  { %7143 = vst [vmem:[#allocation17 + $0x18] sm:$0xff] %v7135_v49 }
0x1960   :  { %v7079_v25 = vpop.f32.mrf.mxu3 }
0x1961   :  { %v7080_v6 = vadd.f32 %v7603_v36, %v7079_v25 }
0x1963   :  { %v7121_v3 = vadd.f32 %v7120_v24, %v7080_v6 }
0x1965   :  { %v7136_v17 = vadd.f32 %v7121_v3, %v10232_v59 }
0x1967   :  { %7144 = vst [vmem:[#allocation17 + $0x20] sm:$0xff] %v7136_v17 }
0x1971   :  { %v7123_v2 = vpop.f32.mrf.mxu0 }
0x1979   :  { %v7126_v1 = vpop.f32.mrf.mxu0 }
0x197d   :  { %v7082_v47 = vpop.f32.mrf.mxu3 }
0x197e   :  { %v7083_v16 = vadd.f32 %v7603_v36, %v7082_v47 }
0x1980   :  { %v7124_v27 = vadd.f32 %v7123_v2, %v7083_v16 }
0x1981   :  { %v7129_v4 = vpop.f32.mrf.mxu0 }
0x1982   :  { %v7137_v44 = vadd.f32 %v7124_v27, %v10240_v20 }
0x1984   :  { %7145 = vst [vmem:[#allocation17 + $0x28] sm:$0xff] %v7137_v44 }
0x1985   :  { %v7085_v52 = vpop.f32.mrf.mxu3 }
0x1986   :  { %v7086_v21 = vadd.f32 %v7603_v36, %v7085_v52 }
0x1988   :  { %v7127_v31 = vadd.f32 %v7126_v1, %v7086_v21 }
0x198a   :  { %v7138_v15 = vadd.f32 %v7127_v31, %v10252_v26 }
0x198c   :  { %7146 = vst [vmem:[#allocation17 + $0x30] sm:$0xff] %v7138_v15 }
0x198f   :  { %v7088_v58 = vpop.f32.mrf.mxu3 }
0x1990   :  { %v7089_v40 = vadd.f32 %v7603_v36, %v7088_v58 }
0x1992   :  { %v7130_v59 = vadd.f32 %v7129_v4, %v7089_v40 }
0x1994   :  { %v7139_v20 = vadd.f32 %v7130_v59, %v10263_v5 }
0x1996   :  { %7147 = vst [vmem:[#allocation17 + $0x38] sm:$0xff] %v7139_v20 }
0x1997   :  { %7160 = dma.vmem_to_hbm [thread:$0]  %s7153_s20, 1024, %s7155_s23, [#allocation4], %s8324_s8, %s8324_s8, %s8325_s14  }
0x1998   :  { %8312 = dma.done.wait [#allocation4], 1024  }
0x1999   :  { %8313 = vsyncadd [#allocation4], 4294966272 }
0x199a   :  { %7165 = vsyncpa [#allocation3], 1 }
0x199b   :  { %7166 = vsyncpa [#allocation6], 1 }
0x199c   :  { %7167 = vsyncpa [#allocation9], 1 }
0x199d   :  { %7168 = vsyncpa [#allocation12], 1 }
0x199e   :  { %7169 = vsyncpa [#allocation15], 1 }
0x199f   :  { %7170 = vsyncpa [#allocation4], 1 }

</bundles_post_ra>
